<compile_context>
chip_gen: v6e
topology: v6e:2x2x1
jax: 0.10.0
libtpu: 0.0.40
codegen_flags: <defaults>
</compile_context>

<pallas_src>
import math
import functools

import jax
import jax.numpy as jnp
from jax import lax
from jax.experimental import pallas as pl
from jax.experimental.pallas import tpu as pltpu

_TM_MAX = 256          # matmul row tile
_TN_MAX = 256          # matmul col tile
_TK_MAX = 512          # matmul reduction tile
_GN_HW_TILE = 1024     # GroupNorm spatial tile
_VMEM_LIMIT = 32 * 1024 * 1024


# ----------------------------------------------------------------------------
# helpers
# ----------------------------------------------------------------------------
def _round_up(v, m):
    return (v + m - 1) // m * m


def _pick_tile(dim, max_tile, mult):
    """Pick a tile size <= max_tile (multiple of `mult`) minimizing padding."""
    if dim <= max_tile:
        return _round_up(dim, mult)
    best_t, best_pad = max_tile, _round_up(dim, max_tile)
    t = max_tile - mult
    lo = max(mult, max_tile // 2)
    while t >= lo:
        pad = _round_up(dim, t)
        if pad < best_pad:
            best_t, best_pad = t, pad
        t -= mult
    return best_t


def _pad2(x, m0, m1):
    r0 = _round_up(x.shape[0], m0) - x.shape[0]
    r1 = _round_up(x.shape[1], m1) - x.shape[1]
    if r0 == 0 and r1 == 0:
        return x
    return jnp.pad(x, ((0, r0), (0, r1)))


# ----------------------------------------------------------------------------
# Pallas kernel 1: tiled matmul + bias (+ optional fused residual add)
#   bf16 operands, f32 accumulation in VMEM scratch.
# ----------------------------------------------------------------------------
def _matmul_bias_kernel(a_ref, b_ref, bias_ref, o_ref, acc_ref):
    @pl.when(pl.program_id(2) == 0)
    def _():
        acc_ref[...] = jnp.zeros_like(acc_ref)

    acc_ref[...] += jnp.dot(a_ref[...], b_ref[...],
                            preferred_element_type=jnp.float32)

    @pl.when(pl.program_id(2) == pl.num_programs(2) - 1)
    def _():
        o_ref[...] = (acc_ref[...] + bias_ref[...]).astype(o_ref.dtype)


def _matmul_bias_res_kernel(a_ref, b_ref, bias_ref, res_ref, o_ref, acc_ref):
    @pl.when(pl.program_id(2) == 0)
    def _():
        acc_ref[...] = jnp.zeros_like(acc_ref)

    acc_ref[...] += jnp.dot(a_ref[...], b_ref[...],
                            preferred_element_type=jnp.float32)

    @pl.when(pl.program_id(2) == pl.num_programs(2) - 1)
    def _():
        o_ref[...] = (acc_ref[...] + bias_ref[...]
                      + res_ref[...].astype(jnp.float32)).astype(o_ref.dtype)


def matmul_bias(a, b, bias, residual=None, out_dtype=jnp.float32):
    """(M, K) @ (K, N) + bias[N] (+ residual[M, N]) on the MXU."""
    M, K = a.shape
    _, N = b.shape
    tm = _pick_tile(M, _TM_MAX, 8)
    tk = _pick_tile(K, _TK_MAX, 128)
    tn = _pick_tile(N, _TN_MAX, 128)

    a_p = _pad2(a.astype(jnp.bfloat16), tm, tk)
    b_p = _pad2(b.astype(jnp.bfloat16), tk, tn)
    bias_p = _pad2(bias.astype(jnp.float32).reshape(1, N), 1, tn)
    Mp, Kp = a_p.shape
    Np = b_p.shape[1]

    # bias / residual index maps do not depend on k -> fetched once per (i, j).
    in_specs = [
        pl.BlockSpec((tm, tk), lambda i, j, k: (i, k)),
        pl.BlockSpec((tk, tn), lambda i, j, k: (k, j)),
        pl.BlockSpec((1, tn), lambda i, j, k: (0, j)),
    ]
    inputs = [a_p, b_p, bias_p]
    if residual is not None:
        res_p = _pad2(residual.astype(jnp.float32), tm, tn)
        in_specs.append(pl.BlockSpec((tm, tn), lambda i, j, k: (i, j)))
        inputs.append(res_p)
        kernel = _matmul_bias_res_kernel
    else:
        kernel = _matmul_bias_kernel

    out = pl.pallas_call(
        kernel,
        out_shape=jax.ShapeDtypeStruct((Mp, Np), out_dtype),
        grid_spec=pltpu.PrefetchScalarGridSpec(
            num_scalar_prefetch=0,
            grid=(Mp // tm, Np // tn, Kp // tk),
            in_specs=in_specs,
            out_specs=pl.BlockSpec((tm, tn), lambda i, j, k: (i, j)),
            scratch_shapes=[pltpu.VMEM((tm, tn), jnp.float32)],
        ),
        compiler_params=pltpu.CompilerParams(
            dimension_semantics=("parallel", "parallel", "arbitrary"),
            vmem_limit_bytes=_VMEM_LIMIT),
    )(*inputs)
    return out[:M, :N]


# ----------------------------------------------------------------------------
# Pallas kernels 2/3: GroupNorm (32 groups) + fused SiLU, two-pass, HW-tiled
# ----------------------------------------------------------------------------
def _gn_stats_kernel(x_ref, s_ref, ss_ref):
    @pl.when(pl.program_id(1) == 0)
    def _():
        s_ref[...] = jnp.zeros_like(s_ref)
        ss_ref[...] = jnp.zeros_like(ss_ref)

    x = x_ref[0].astype(jnp.float32)                         # (thw, C)
    s_ref[...] = s_ref[...] + jnp.sum(x, axis=0, keepdims=True)[None]
    ss_ref[...] = ss_ref[...] + jnp.sum(x * x, axis=0, keepdims=True)[None]


def _gn_norm_kernel(x_ref, scale_ref, shift_ref, o_ref, *, silu):
    x = x_ref[0].astype(jnp.float32)                         # (thw, C)
    y = x * scale_ref[0] + shift_ref[0]                      # (1, C) broadcast
    if silu:
        y = y * (1.0 / (1.0 + jnp.exp(-y)))
    o_ref[0] = y.astype(o_ref.dtype)


def group_norm_silu(x, gn, *, groups=32, eps=1e-5, silu=True,
                    out_dtype=jnp.bfloat16):
    B, H, W, C = x.shape
    HW = H * W
    thw = _pick_tile(HW, _GN_HW_TILE, 8)
    HWp = _round_up(HW, thw)
    xf = x.reshape(B, HW, C)
    if HWp != HW:
        xf = jnp.pad(xf, ((0, 0), (0, HWp - HW), (0, 0)))
    n_t = HWp // thw

    # pass 1: per-channel sum / sum-of-squares (accumulated over HW tiles;
    # zero padding contributes nothing to either sum)
    s, ss = pl.pallas_call(
        _gn_stats_kernel,
        out_shape=(jax.ShapeDtypeStruct((B, 1, C), jnp.float32),
                   jax.ShapeDtypeStruct((B, 1, C), jnp.float32)),
        grid_spec=pltpu.PrefetchScalarGridSpec(
            num_scalar_prefetch=0,
            grid=(B, n_t),
            in_specs=[pl.BlockSpec((1, thw, C), lambda b, t: (b, t, 0))],
            out_specs=[pl.BlockSpec((1, 1, C), lambda b, t: (b, 0, 0)),
                       pl.BlockSpec((1, 1, C), lambda b, t: (b, 0, 0))],
        ),
        compiler_params=pltpu.CompilerParams(
            dimension_semantics=("parallel", "arbitrary"),
            vmem_limit_bytes=_VMEM_LIMIT),
    )(xf)

    # tiny per-(batch, group) reduction / affine folding in plain JAX
    cg = C // groups
    n = float(HW * cg)
    gs = s.reshape(B, groups, cg).sum(axis=-1, keepdims=True)
    gss = ss.reshape(B, groups, cg).sum(axis=-1, keepdims=True)
    mean = gs / n
    var = jnp.maximum(gss / n - mean * mean, 0.0)
    rstd = lax.rsqrt(var + eps)
    mean_c = jnp.broadcast_to(mean, (B, groups, cg)).reshape(B, 1, C)
    rstd_c = jnp.broadcast_to(rstd, (B, groups, cg)).reshape(B, 1, C)
    scale = gn["gamma"].reshape(1, 1, C) * rstd_c            # (B, 1, C)
    shift = gn["beta"].reshape(1, 1, C) - mean_c * scale     # (B, 1, C)

    # pass 2: normalize + SiLU, emit bf16 for the following conv
    y = pl.pallas_call(
        functools.partial(_gn_norm_kernel, silu=silu),
        out_shape=jax.ShapeDtypeStruct((B, HWp, C), out_dtype),
        grid_spec=pltpu.PrefetchScalarGridSpec(
            num_scalar_prefetch=0,
            grid=(B, n_t),
            in_specs=[pl.BlockSpec((1, thw, C), lambda b, t: (b, t, 0)),
                      pl.BlockSpec((1, 1, C), lambda b, t: (b, 0, 0)),
                      pl.BlockSpec((1, 1, C), lambda b, t: (b, 0, 0))],
            out_specs=pl.BlockSpec((1, thw, C), lambda b, t: (b, t, 0)),
        ),
        compiler_params=pltpu.CompilerParams(
            dimension_semantics=("parallel", "parallel"),
            vmem_limit_bytes=_VMEM_LIMIT),
    )(xf, scale, shift)
    return y[:, :HW, :].reshape(B, H, W, C)


# ----------------------------------------------------------------------------
# Conv wrappers (weights kept in PyTorch layout (Cout, Cin, KH, KW))
# ----------------------------------------------------------------------------
def _conv_from_patches(patches, p, residual=None, out_dtype=jnp.float32):
    B, Ho, Wo, KC = patches.shape
    cout, cin, kh, kw = p["w"].shape
    w = jnp.transpose(p["w"], (2, 3, 1, 0)).reshape(kh * kw * cin, cout)
    res2d = residual.reshape(B * Ho * Wo, cout) if residual is not None else None
    y = matmul_bias(patches.reshape(B * Ho * Wo, KC), w, p["b"],
                    residual=res2d, out_dtype=out_dtype)
    return y.reshape(B, Ho, Wo, cout)


def conv1x1(x, p, residual=None, out_dtype=jnp.float32):
    B, H, W, C = x.shape
    cout = p["w"].shape[0]
    w = p["w"][:, :, 0, 0].T
    res2d = residual.reshape(B * H * W, cout) if residual is not None else None
    y = matmul_bias(x.reshape(B * H * W, C), w, p["b"],
                    residual=res2d, out_dtype=out_dtype)
    return y.reshape(B, H, W, cout)


def conv3x3(x, p, residual=None, out_dtype=jnp.float32):
    """3x3 conv, stride 1, padding 1 — im2col (built in bf16) + MXU matmul."""
    # TODO(synk): for very large H*W the (B,H,W,9C) im2col patch array is the
    # dominant HBM cost; an overlapping-window manual-DMA kernel would avoid it.
    B, H, W, C = x.shape
    xp = jnp.pad(x.astype(jnp.bfloat16), ((0, 0), (1, 1), (1, 1), (0, 0)))
    patches = jnp.concatenate(
        [xp[:, ky:ky + H, kx:kx + W, :] for ky in range(3) for kx in range(3)],
        axis=-1)                                   # (B, H, W, 9*C), (ky,kx,cin) order
    return _conv_from_patches(patches, p, residual, out_dtype)


def conv3x3_stride2_trim(x, p):
    """PyTorch Conv2d(k=3, stride=2, padding=1)(x)[:, :, 1:, 1:] — only the kept
    output positions are computed (no post-hoc slicing of a larger conv)."""
    B, H, W, C = x.shape
    Ho = (H - 1) // 2 + 1
    Wo = (W - 1) // 2 + 1
    Ht, Wt = Ho - 1, Wo - 1
    xp = jnp.pad(x.astype(jnp.bfloat16), ((0, 0), (1, 1), (1, 1), (0, 0)))
    patches = jnp.concatenate(
        [xp[:, 2 + ky:2 + ky + 2 * (Ht - 1) + 1:2,
             2 + kx:2 + kx + 2 * (Wt - 1) + 1:2, :]
         for ky in range(3) for kx in range(3)],
        axis=-1)                                   # (B, Ht, Wt, 9*C)
    return _conv_from_patches(patches, p)


# ----------------------------------------------------------------------------
# Module forward functions (pure functions over a params pytree)
# ----------------------------------------------------------------------------
def resnet_block(p, x):
    # conv1 output only feeds norm2 -> emit bf16 (halves that intermediate's HBM)
    h = conv3x3(group_norm_silu(x, p["norm1"], silu=True), p["conv1"],
                out_dtype=jnp.bfloat16)
    h_norm = group_norm_silu(h, p["norm2"], silu=True)
    sc = conv1x1(x, p["shortcut"]) if p["shortcut"] is not None else x
    # residual add fused into the conv2 matmul epilogue (f32)
    return conv3x3(h_norm, p["conv2"], residual=sc)


def encoder_block_forward(p, x_nchw):
    x = jnp.transpose(x_nchw, (0, 2, 3, 1)).astype(jnp.float32)   # NCHW -> NHWC
    x = resnet_block(p["res1"], x)
    x = resnet_block(p["res2"], x)
    if p["downsample"] is not None:
        x = conv3x3_stride2_trim(x, p["downsample"])
    return jnp.transpose(x, (0, 3, 1, 2))                         # back to NCHW


# ----------------------------------------------------------------------------
# Deterministic parameter init (shapes follow the PyTorch __init__)
# ----------------------------------------------------------------------------
class _Keys:
    def __init__(self, key):
        self._key = key

    def __call__(self):
        self._key, k = jax.random.split(self._key)
        return k


def _conv_init(kg, cin, cout, ksize):
    fan_in = cin * ksize * ksize
    bound = 1.0 / math.sqrt(fan_in)
    w = jax.random.uniform(kg(), (cout, cin, ksize, ksize), jnp.float32, -bound, bound)
    b = jax.random.uniform(kg(), (cout,), jnp.float32, -bound, bound)
    return {"w": w, "b": b}


def _gn_init(c):
    return {"gamma": jnp.ones((c,), jnp.float32), "beta": jnp.zeros((c,), jnp.float32)}


def _resnet_init(kg, cin, cout):
    return {
        "norm1": _gn_init(cin),
        "conv1": _conv_init(kg, cin, cout, 3),
        "norm2": _gn_init(cout),
        "conv2": _conv_init(kg, cout, cout, 3),
        "shortcut": _conv_init(kg, cin, cout, 1) if cin != cout else None,
    }


def init_encoder_block(kg, cin, cout, downsample):
    return {
        "res1": _resnet_init(kg, cin, cout),
        "res2": _resnet_init(kg, cout, cout),
        "downsample": _conv_init(kg, cout, cout, 3) if downsample else None,
    }


# ----------------------------------------------------------------------------
# Pure-JAX reference (f32) for a correctness check
# ----------------------------------------------------------------------------
def _ref_conv2d(x, p, stride=1, padding=1):
    y = lax.conv_general_dilated(
        x, p["w"], window_strides=(stride, stride),
        padding=((padding, padding), (padding, padding)),
        dimension_numbers=("NHWC", "OIHW", "NHWC"),
        precision=lax.Precision.HIGHEST)
    return y + p["b"]


def _ref_gn_silu(x, gn, groups=32, eps=1e-5, silu=True):
    B, H, W, C = x.shape
    xg = x.reshape(B, H * W, groups, C // groups)
    mean = xg.mean(axis=(1, 3), keepdims=True)
    var = xg.var(axis=(1, 3), keepdims=True)
    y = ((xg - mean) * lax.rsqrt(var + eps)).reshape(B, H, W, C)
    y = y * gn["gamma"] + gn["beta"]
    if silu:
        y = y * jax.nn.sigmoid(y)
    return y


def _ref_resnet(p, x):
    h = _ref_conv2d(_ref_gn_silu(x, p["norm1"]), p["conv1"])
    h = _ref_conv2d(_ref_gn_silu(h, p["norm2"]), p["conv2"])
    sc = _ref_conv2d(x, p["shortcut"], padding=0) if p["shortcut"] is not None else x
    return sc + h


def _ref_encoder_block(p, x_nchw):
    x = jnp.transpose(x_nchw, (0, 2, 3, 1))
    x = _ref_resnet(p["res1"], x)
    x = _ref_resnet(p["res2"], x)
    if p["downsample"] is not None:
        x = _ref_conv2d(x, p["downsample"], stride=2, padding=1)[:, 1:, 1:, :]
    return jnp.transpose(x, (0, 3, 1, 2))


if __name__ == "__main__":
    # GroupNorm(32, C) requires channels to be multiples of 32.
    B, C_in, H, W = 2, 64, 16, 16
    C_out = 128

    kg = _Keys(jax.random.PRNGKey(0))
    params = init_encoder_block(kg, C_in, C_out, downsample=True)
    x = jax.random.normal(jax.random.PRNGKey(0), (B, C_in, H, W), jnp.float32)

    fwd = jax.jit(encoder_block_forward)
    y = fwd(params, x)
    jax.block_until_ready(y)

    assert y.shape == (B, C_out, H // 2 - 1, W // 2 - 1), y.shape
    assert bool(jnp.all(jnp.isfinite(y)))

    y_ref = jax.jit(_ref_encoder_block)(params, x)
    jax.block_until_ready(y_ref)
    err = float(jnp.max(jnp.abs(y - y_ref)) / (jnp.max(jnp.abs(y_ref)) + 1e-6))
    assert err < 0.1, f"mismatch vs reference: rel_err={err}"

    print("KERNEL_OK")
</pallas_src>

<mosaic_0001>
module attributes {stable_mosaic.version = 11 : i64} {
  func.func @_gn_stats_kernel(%arg0: i32, %arg1: i32, %arg2: memref<1x256x64xf32, #tpu.memory_space<vmem>>, %arg3: memref<1x1x64xf32, #tpu.memory_space<vmem>>, %arg4: memref<1x1x64xf32, #tpu.memory_space<vmem>>) attributes {dimension_semantics = [#tpu.dimension_semantics<parallel>, #tpu.dimension_semantics<arbitrary>], iteration_bounds = array<i64: 2, 1>, scalar_prefetch = 0 : i64, scratch_operands = 0 : i64, tpu.core_type = #tpu.core_type<tc>, window_params = [{transform_indices = @transform_0, window_bounds = array<i64: 1, 256, 64>}, {transform_indices = @transform_1, window_bounds = array<i64: 1, 1, 64>}, {transform_indices = @transform_2, window_bounds = array<i64: 1, 1, 64>}]} {
    %c0_i32 = arith.constant 0 : i32
    %0 = arith.cmpi eq, %arg1, %c0_i32 : i32
    %1 = arith.extui %0 : i1 to i32
    %c0_i32_0 = arith.constant 0 : i32
    %2 = arith.cmpi ne, %1, %c0_i32_0 : i32
    scf.if %2 {
      %cst_16 = arith.constant 0.000000e+00 : f32
      %18 = vector.broadcast %cst_16 : f32 to vector<1x1x64xf32>
      %c0_17 = arith.constant 0 : index
      %c0_18 = arith.constant 0 : index
      %c0_19 = arith.constant 0 : index
      %19 = vector.load %arg3[%c0_17, %c0_18, %c0_19] : memref<1x1x64xf32, #tpu.memory_space<vmem>>, vector<1x1x64xf32>
      tpu.vector_store %arg3[%c0_17, %c0_18, %c0_19], %18 {strides = array<i32>} : memref<1x1x64xf32, #tpu.memory_space<vmem>>, vector<1x1x64xf32>,
      %cst_20 = arith.constant 0.000000e+00 : f32
      %20 = vector.broadcast %cst_20 : f32 to vector<1x1x64xf32>
      %c0_21 = arith.constant 0 : index
      %c0_22 = arith.constant 0 : index
      %c0_23 = arith.constant 0 : index
      %21 = vector.load %arg4[%c0_21, %c0_22, %c0_23] : memref<1x1x64xf32, #tpu.memory_space<vmem>>, vector<1x1x64xf32>
      tpu.vector_store %arg4[%c0_21, %c0_22, %c0_23], %20 {strides = array<i32>} : memref<1x1x64xf32, #tpu.memory_space<vmem>>, vector<1x1x64xf32>,
    } else {
    }
    %c0 = arith.constant 0 : index
    %c0_1 = arith.constant 0 : index
    %c0_2 = arith.constant 0 : index
    %3 = vector.load %arg2[%c0, %c0_1, %c0_2] : memref<1x256x64xf32, #tpu.memory_space<vmem>>, vector<1x256x64xf32>
    %4 = vector.shape_cast %3 : vector<1x256x64xf32> to vector<256x64xf32>
    %c0_3 = arith.constant 0 : index
    %c0_4 = arith.constant 0 : index
    %c0_5 = arith.constant 0 : index
    %5 = vector.load %arg3[%c0_3, %c0_4, %c0_5] : memref<1x1x64xf32, #tpu.memory_space<vmem>>, vector<1x1x64xf32>
    %cst = arith.constant dense<0.000000e+00> : vector<64xf32>
    %6 = vector.multi_reduction <add>, %4, %cst [0] : vector<256x64xf32> to vector<64xf32>
    %7 = vector.shape_cast %6 : vector<64xf32> to vector<1x64xf32>
    %8 = vector.shape_cast %7 : vector<1x64xf32> to vector<1x1x64xf32>
    %9 = arith.addf %5, %8 : vector<1x1x64xf32>
    %c0_6 = arith.constant 0 : index
    %c0_7 = arith.constant 0 : index
    %c0_8 = arith.constant 0 : index
    %10 = vector.load %arg3[%c0_6, %c0_7, %c0_8] : memref<1x1x64xf32, #tpu.memory_space<vmem>>, vector<1x1x64xf32>
    tpu.vector_store %arg3[%c0_6, %c0_7, %c0_8], %9 {strides = array<i32>} : memref<1x1x64xf32, #tpu.memory_space<vmem>>, vector<1x1x64xf32>,
    %c0_9 = arith.constant 0 : index
    %c0_10 = arith.constant 0 : index
    %c0_11 = arith.constant 0 : index
    %11 = vector.load %arg4[%c0_9, %c0_10, %c0_11] : memref<1x1x64xf32, #tpu.memory_space<vmem>>, vector<1x1x64xf32>
    %12 = arith.mulf %4, %4 : vector<256x64xf32>
    %cst_12 = arith.constant dense<0.000000e+00> : vector<64xf32>
    %13 = vector.multi_reduction <add>, %12, %cst_12 [0] : vector<256x64xf32> to vector<64xf32>
    %14 = vector.shape_cast %13 : vector<64xf32> to vector<1x64xf32>
    %15 = vector.shape_cast %14 : vector<1x64xf32> to vector<1x1x64xf32>
    %16 = arith.addf %11, %15 : vector<1x1x64xf32>
    %c0_13 = arith.constant 0 : index
    %c0_14 = arith.constant 0 : index
    %c0_15 = arith.constant 0 : index
    %17 = vector.load %arg4[%c0_13, %c0_14, %c0_15] : memref<1x1x64xf32, #tpu.memory_space<vmem>>, vector<1x1x64xf32>
    tpu.vector_store %arg4[%c0_13, %c0_14, %c0_15], %16 {strides = array<i32>} : memref<1x1x64xf32, #tpu.memory_space<vmem>>, vector<1x1x64xf32>,
    return
  }
  func.func @transform_0(%arg0: i32, %arg1: i32) -> (i32, i32, i32) {
    %c0_i32 = arith.constant 0 : i32
    %c0_i32_0 = arith.constant 0 : i32
    return %arg0, %arg1, %c0_i32 : i32, i32, i32
  }
  func.func @transform_1(%arg0: i32, %arg1: i32) -> (i32, i32, i32) {
    %c0_i32 = arith.constant 0 : i32
    %c0_i32_0 = arith.constant 0 : i32
    %c0_i32_1 = arith.constant 0 : i32
    return %arg0, %c0_i32, %c0_i32_0 : i32, i32, i32
  }
  func.func @transform_2(%arg0: i32, %arg1: i32) -> (i32, i32, i32) {
    %c0_i32 = arith.constant 0 : i32
    %c0_i32_0 = arith.constant 0 : i32
    %c0_i32_1 = arith.constant 0 : i32
    return %arg0, %c0_i32, %c0_i32_0 : i32, i32, i32
  }
}

module attributes {stable_mosaic.version = 11 : i64} {
  func.func @_gn_norm_kernel(%arg0: i32, %arg1: i32, %arg2: memref<1x256x64xf32, #tpu.memory_space<vmem>>, %arg3: memref<1x1x64xf32, #tpu.memory_space<vmem>>, %arg4: memref<1x1x64xf32, #tpu.memory_space<vmem>>, %arg5: memref<1x256x64xbf16, #tpu.memory_space<vmem>>) attributes {dimension_semantics = [#tpu.dimension_semantics<parallel>, #tpu.dimension_semantics<parallel>], iteration_bounds = array<i64: 2, 1>, scalar_prefetch = 0 : i64, scratch_operands = 0 : i64, tpu.core_type = #tpu.core_type<tc>, window_params = [{transform_indices = @transform_0, window_bounds = array<i64: 1, 256, 64>}, {transform_indices = @transform_1, window_bounds = array<i64: 1, 1, 64>}, {transform_indices = @transform_2, window_bounds = array<i64: 1, 1, 64>}, {transform_indices = @transform_3, window_bounds = array<i64: 1, 256, 64>}]} {
    %c0 = arith.constant 0 : index
    %c0_0 = arith.constant 0 : index
    %c0_1 = arith.constant 0 : index
    %0 = vector.load %arg2[%c0, %c0_0, %c0_1] : memref<1x256x64xf32, #tpu.memory_space<vmem>>, vector<1x256x64xf32>
    %1 = vector.shape_cast %0 : vector<1x256x64xf32> to vector<256x64xf32>
    %c0_2 = arith.constant 0 : index
    %c0_3 = arith.constant 0 : index
    %c0_4 = arith.constant 0 : index
    %2 = vector.load %arg3[%c0_2, %c0_3, %c0_4] : memref<1x1x64xf32, #tpu.memory_space<vmem>>, vector<1x1x64xf32>
    %3 = vector.shape_cast %2 : vector<1x1x64xf32> to vector<1x64xf32>
    %4 = vector.broadcast %3 : vector<1x64xf32> to vector<256x64xf32>
    %5 = arith.mulf %1, %4 : vector<256x64xf32>
    %c0_5 = arith.constant 0 : index
    %c0_6 = arith.constant 0 : index
    %c0_7 = arith.constant 0 : index
    %6 = vector.load %arg4[%c0_5, %c0_6, %c0_7] : memref<1x1x64xf32, #tpu.memory_space<vmem>>, vector<1x1x64xf32>
    %7 = vector.shape_cast %6 : vector<1x1x64xf32> to vector<1x64xf32>
    %8 = vector.broadcast %7 : vector<1x64xf32> to vector<256x64xf32>
    %9 = arith.addf %5, %8 : vector<256x64xf32>
    %cst = arith.constant 0.000000e+00 : f32
    %10 = vector.broadcast %cst : f32 to vector<256x64xf32>
    %11 = arith.subf %10, %9 : vector<256x64xf32>
    %12 = math.exp %11 : vector<256x64xf32>
    %cst_8 = arith.constant 1.000000e+00 : f32
    %13 = vector.broadcast %cst_8 : f32 to vector<256x64xf32>
    %14 = arith.addf %13, %12 : vector<256x64xf32>
    %cst_9 = arith.constant 1.000000e+00 : f32
    %15 = vector.broadcast %cst_9 : f32 to vector<256x64xf32>
    %16 = arith.divf %15, %14 : vector<256x64xf32>
    %17 = arith.mulf %9, %16 : vector<256x64xf32>
    %18 = arith.truncf %17 : vector<256x64xf32> to vector<256x64xbf16>
    %c0_10 = arith.constant 0 : index
    %c0_11 = arith.constant 0 : index
    %c0_12 = arith.constant 0 : index
    %19 = vector.load %arg5[%c0_10, %c0_11, %c0_12] : memref<1x256x64xbf16, #tpu.memory_space<vmem>>, vector<1x256x64xbf16>
    %20 = vector.shape_cast %19 : vector<1x256x64xbf16> to vector<256x64xbf16>
    %21 = vector.shape_cast %18 : vector<256x64xbf16> to vector<1x256x64xbf16>
    tpu.vector_store %arg5[%c0_10, %c0_11, %c0_12], %21 {strides = array<i32>} : memref<1x256x64xbf16, #tpu.memory_space<vmem>>, vector<1x256x64xbf16>,
    return
  }
  func.func @transform_0(%arg0: i32, %arg1: i32) -> (i32, i32, i32) {
    %c0_i32 = arith.constant 0 : i32
    %c0_i32_0 = arith.constant 0 : i32
    return %arg0, %arg1, %c0_i32 : i32, i32, i32
  }
  func.func @transform_1(%arg0: i32, %arg1: i32) -> (i32, i32, i32) {
    %c0_i32 = arith.constant 0 : i32
    %c0_i32_0 = arith.constant 0 : i32
    %c0_i32_1 = arith.constant 0 : i32
    return %arg0, %c0_i32, %c0_i32_0 : i32, i32, i32
  }
  func.func @transform_2(%arg0: i32, %arg1: i32) -> (i32, i32, i32) {
    %c0_i32 = arith.constant 0 : i32
    %c0_i32_0 = arith.constant 0 : i32
    %c0_i32_1 = arith.constant 0 : i32
    return %arg0, %c0_i32, %c0_i32_0 : i32, i32, i32
  }
  func.func @transform_3(%arg0: i32, %arg1: i32) -> (i32, i32, i32) {
    %c0_i32 = arith.constant 0 : i32
    %c0_i32_0 = arith.constant 0 : i32
    return %arg0, %arg1, %c0_i32 : i32, i32, i32
  }
}

module attributes {stable_mosaic.version = 11 : i64} {
  func.func @_matmul_bias_kernel(%arg0: i32, %arg1: i32, %arg2: i32, %arg3: memref<256x384xbf16, #tpu.memory_space<vmem>>, %arg4: memref<384x128xbf16, #tpu.memory_space<vmem>>, %arg5: memref<1x128xf32, #tpu.memory_space<vmem>>, %arg6: memref<256x128xbf16, #tpu.memory_space<vmem>>, %arg7: memref<256x128xf32, #tpu.memory_space<vmem>>) attributes {dimension_semantics = [#tpu.dimension_semantics<parallel>, #tpu.dimension_semantics<parallel>, #tpu.dimension_semantics<arbitrary>], iteration_bounds = array<i64: 2, 1, 2>, scalar_prefetch = 0 : i64, scratch_operands = 1 : i64, tpu.core_type = #tpu.core_type<tc>, window_params = [{transform_indices = @transform_0, window_bounds = array<i64: 256, 384>}, {transform_indices = @transform_1, window_bounds = array<i64: 384, 128>}, {transform_indices = @transform_2, window_bounds = array<i64: 1, 128>}, {transform_indices = @transform_3, window_bounds = array<i64: 256, 128>}]} {
    %c0_i32 = arith.constant 0 : i32
    %0 = arith.cmpi eq, %arg2, %c0_i32 : i32
    %1 = arith.extui %0 : i1 to i32
    %c0_i32_0 = arith.constant 0 : i32
    %2 = arith.cmpi ne, %1, %c0_i32_0 : i32
    scf.if %2 {
      %cst_9 = arith.constant 0.000000e+00 : f32
      %12 = vector.broadcast %cst_9 : f32 to vector<256x128xf32>
      %c0_10 = arith.constant 0 : index
      %c0_11 = arith.constant 0 : index
      %13 = vector.load %arg7[%c0_10, %c0_11] : memref<256x128xf32, #tpu.memory_space<vmem>>, vector<256x128xf32>
      tpu.vector_store %arg7[%c0_10, %c0_11], %12 {strides = array<i32>} : memref<256x128xf32, #tpu.memory_space<vmem>>, vector<256x128xf32>,
    } else {
    }
    %c0 = arith.constant 0 : index
    %c0_1 = arith.constant 0 : index
    %3 = vector.load %arg7[%c0, %c0_1] : memref<256x128xf32, #tpu.memory_space<vmem>>, vector<256x128xf32>
    %c0_2 = arith.constant 0 : index
    %c0_3 = arith.constant 0 : index
    %4 = vector.load %arg3[%c0_2, %c0_3] : memref<256x384xbf16, #tpu.memory_space<vmem>>, vector<256x384xbf16>
    %c0_4 = arith.constant 0 : index
    %c0_5 = arith.constant 0 : index
    %5 = vector.load %arg4[%c0_4, %c0_5] : memref<384x128xbf16, #tpu.memory_space<vmem>>, vector<384x128xbf16>
    %cst = arith.constant dense<0.000000e+00> : vector<256x128xf32>
    %6 = tpu.matmul %4, %5, %cst {dimension_numbers = #tpu.dot_dimension_numbers<[1], [0], [0], [1], [0, 0, 1, 1], [], []>} : vector<256x384xbf16>, vector<384x128xbf16>, vector<256x128xf32> -> vector<256x128xf32>
    %7 = arith.addf %3, %6 : vector<256x128xf32>
    %c0_6 = arith.constant 0 : index
    %c0_7 = arith.constant 0 : index
    %8 = vector.load %arg7[%c0_6, %c0_7] : memref<256x128xf32, #tpu.memory_space<vmem>>, vector<256x128xf32>
    tpu.vector_store %arg7[%c0_6, %c0_7], %7 {strides = array<i32>} : memref<256x128xf32, #tpu.memory_space<vmem>>, vector<256x128xf32>,
    %c1_i32 = arith.constant 1 : i32
    %9 = arith.cmpi eq, %arg2, %c1_i32 : i32
    %10 = arith.extui %9 : i1 to i32
    %c0_i32_8 = arith.constant 0 : i32
    %11 = arith.cmpi ne, %10, %c0_i32_8 : i32
    scf.if %11 {
      %c0_9 = arith.constant 0 : index
      %c0_10 = arith.constant 0 : index
      %12 = vector.load %arg7[%c0_9, %c0_10] : memref<256x128xf32, #tpu.memory_space<vmem>>, vector<256x128xf32>
      %c0_11 = arith.constant 0 : index
      %c0_12 = arith.constant 0 : index
      %13 = vector.load %arg5[%c0_11, %c0_12] : memref<1x128xf32, #tpu.memory_space<vmem>>, vector<1x128xf32>
      %14 = vector.broadcast %13 : vector<1x128xf32> to vector<256x128xf32>
      %15 = arith.addf %12, %14 : vector<256x128xf32>
      %16 = arith.truncf %15 : vector<256x128xf32> to vector<256x128xbf16>
      %c0_13 = arith.constant 0 : index
      %c0_14 = arith.constant 0 : index
      %17 = vector.load %arg6[%c0_13, %c0_14] : memref<256x128xbf16, #tpu.memory_space<vmem>>, vector<256x128xbf16>
      tpu.vector_store %arg6[%c0_13, %c0_14], %16 {strides = array<i32>} : memref<256x128xbf16, #tpu.memory_space<vmem>>, vector<256x128xbf16>,
    } else {
    }
    return
  }
  func.func @transform_0(%arg0: i32, %arg1: i32, %arg2: i32) -> (i32, i32) {
    %c0_i32 = arith.constant 0 : i32
    return %arg0, %arg2 : i32, i32
  }
  func.func @transform_1(%arg0: i32, %arg1: i32, %arg2: i32) -> (i32, i32) {
    %c0_i32 = arith.constant 0 : i32
    return %arg2, %arg1 : i32, i32
  }
  func.func @transform_2(%arg0: i32, %arg1: i32, %arg2: i32) -> (i32, i32) {
    %c0_i32 = arith.constant 0 : i32
    %c0_i32_0 = arith.constant 0 : i32
    return %c0_i32, %arg1 : i32, i32
  }
  func.func @transform_3(%arg0: i32, %arg1: i32, %arg2: i32) -> (i32, i32) {
    %c0_i32 = arith.constant 0 : i32
    return %arg0, %arg1 : i32, i32
  }
}

module attributes {stable_mosaic.version = 11 : i64} {
  func.func @_gn_stats_kernel(%arg0: i32, %arg1: i32, %arg2: memref<1x256x128xbf16, #tpu.memory_space<vmem>>, %arg3: memref<1x1x128xf32, #tpu.memory_space<vmem>>, %arg4: memref<1x1x128xf32, #tpu.memory_space<vmem>>) attributes {dimension_semantics = [#tpu.dimension_semantics<parallel>, #tpu.dimension_semantics<arbitrary>], iteration_bounds = array<i64: 2, 1>, scalar_prefetch = 0 : i64, scratch_operands = 0 : i64, tpu.core_type = #tpu.core_type<tc>, window_params = [{transform_indices = @transform_0, window_bounds = array<i64: 1, 256, 128>}, {transform_indices = @transform_1, window_bounds = array<i64: 1, 1, 128>}, {transform_indices = @transform_2, window_bounds = array<i64: 1, 1, 128>}]} {
    %c0_i32 = arith.constant 0 : i32
    %0 = arith.cmpi eq, %arg1, %c0_i32 : i32
    %1 = arith.extui %0 : i1 to i32
    %c0_i32_0 = arith.constant 0 : i32
    %2 = arith.cmpi ne, %1, %c0_i32_0 : i32
    scf.if %2 {
      %cst_16 = arith.constant 0.000000e+00 : f32
      %19 = vector.broadcast %cst_16 : f32 to vector<1x1x128xf32>
      %c0_17 = arith.constant 0 : index
      %c0_18 = arith.constant 0 : index
      %c0_19 = arith.constant 0 : index
      %20 = vector.load %arg3[%c0_17, %c0_18, %c0_19] : memref<1x1x128xf32, #tpu.memory_space<vmem>>, vector<1x1x128xf32>
      tpu.vector_store %arg3[%c0_17, %c0_18, %c0_19], %19 {strides = array<i32>} : memref<1x1x128xf32, #tpu.memory_space<vmem>>, vector<1x1x128xf32>,
      %cst_20 = arith.constant 0.000000e+00 : f32
      %21 = vector.broadcast %cst_20 : f32 to vector<1x1x128xf32>
      %c0_21 = arith.constant 0 : index
      %c0_22 = arith.constant 0 : index
      %c0_23 = arith.constant 0 : index
      %22 = vector.load %arg4[%c0_21, %c0_22, %c0_23] : memref<1x1x128xf32, #tpu.memory_space<vmem>>, vector<1x1x128xf32>
      tpu.vector_store %arg4[%c0_21, %c0_22, %c0_23], %21 {strides = array<i32>} : memref<1x1x128xf32, #tpu.memory_space<vmem>>, vector<1x1x128xf32>,
    } else {
    }
    %c0 = arith.constant 0 : index
    %c0_1 = arith.constant 0 : index
    %c0_2 = arith.constant 0 : index
    %3 = vector.load %arg2[%c0, %c0_1, %c0_2] : memref<1x256x128xbf16, #tpu.memory_space<vmem>>, vector<1x256x128xbf16>
    %4 = vector.shape_cast %3 : vector<1x256x128xbf16> to vector<256x128xbf16>
    %5 = arith.extf %4 : vector<256x128xbf16> to vector<256x128xf32>
    %c0_3 = arith.constant 0 : index
    %c0_4 = arith.constant 0 : index
    %c0_5 = arith.constant 0 : index
    %6 = vector.load %arg3[%c0_3, %c0_4, %c0_5] : memref<1x1x128xf32, #tpu.memory_space<vmem>>, vector<1x1x128xf32>
    %cst = arith.constant dense<0.000000e+00> : vector<128xf32>
    %7 = vector.multi_reduction <add>, %5, %cst [0] : vector<256x128xf32> to vector<128xf32>
    %8 = vector.shape_cast %7 : vector<128xf32> to vector<1x128xf32>
    %9 = vector.shape_cast %8 : vector<1x128xf32> to vector<1x1x128xf32>
    %10 = arith.addf %6, %9 : vector<1x1x128xf32>
    %c0_6 = arith.constant 0 : index
    %c0_7 = arith.constant 0 : index
    %c0_8 = arith.constant 0 : index
    %11 = vector.load %arg3[%c0_6, %c0_7, %c0_8] : memref<1x1x128xf32, #tpu.memory_space<vmem>>, vector<1x1x128xf32>
    tpu.vector_store %arg3[%c0_6, %c0_7, %c0_8], %10 {strides = array<i32>} : memref<1x1x128xf32, #tpu.memory_space<vmem>>, vector<1x1x128xf32>,
    %c0_9 = arith.constant 0 : index
    %c0_10 = arith.constant 0 : index
    %c0_11 = arith.constant 0 : index
    %12 = vector.load %arg4[%c0_9, %c0_10, %c0_11] : memref<1x1x128xf32, #tpu.memory_space<vmem>>, vector<1x1x128xf32>
    %13 = arith.mulf %5, %5 : vector<256x128xf32>
    %cst_12 = arith.constant dense<0.000000e+00> : vector<128xf32>
    %14 = vector.multi_reduction <add>, %13, %cst_12 [0] : vector<256x128xf32> to vector<128xf32>
    %15 = vector.shape_cast %14 : vector<128xf32> to vector<1x128xf32>
    %16 = vector.shape_cast %15 : vector<1x128xf32> to vector<1x1x128xf32>
    %17 = arith.addf %12, %16 : vector<1x1x128xf32>
    %c0_13 = arith.constant 0 : index
    %c0_14 = arith.constant 0 : index
    %c0_15 = arith.constant 0 : index
    %18 = vector.load %arg4[%c0_13, %c0_14, %c0_15] : memref<1x1x128xf32, #tpu.memory_space<vmem>>, vector<1x1x128xf32>
    tpu.vector_store %arg4[%c0_13, %c0_14, %c0_15], %17 {strides = array<i32>} : memref<1x1x128xf32, #tpu.memory_space<vmem>>, vector<1x1x128xf32>,
    return
  }
  func.func @transform_0(%arg0: i32, %arg1: i32) -> (i32, i32, i32) {
    %c0_i32 = arith.constant 0 : i32
    %c0_i32_0 = arith.constant 0 : i32
    return %arg0, %arg1, %c0_i32 : i32, i32, i32
  }
  func.func @transform_1(%arg0: i32, %arg1: i32) -> (i32, i32, i32) {
    %c0_i32 = arith.constant 0 : i32
    %c0_i32_0 = arith.constant 0 : i32
    %c0_i32_1 = arith.constant 0 : i32
    return %arg0, %c0_i32, %c0_i32_0 : i32, i32, i32
  }
  func.func @transform_2(%arg0: i32, %arg1: i32) -> (i32, i32, i32) {
    %c0_i32 = arith.constant 0 : i32
    %c0_i32_0 = arith.constant 0 : i32
    %c0_i32_1 = arith.constant 0 : i32
    return %arg0, %c0_i32, %c0_i32_0 : i32, i32, i32
  }
}

module attributes {stable_mosaic.version = 11 : i64} {
  func.func @_gn_norm_kernel(%arg0: i32, %arg1: i32, %arg2: memref<1x256x128xbf16, #tpu.memory_space<vmem>>, %arg3: memref<1x1x128xf32, #tpu.memory_space<vmem>>, %arg4: memref<1x1x128xf32, #tpu.memory_space<vmem>>, %arg5: memref<1x256x128xbf16, #tpu.memory_space<vmem>>) attributes {dimension_semantics = [#tpu.dimension_semantics<parallel>, #tpu.dimension_semantics<parallel>], iteration_bounds = array<i64: 2, 1>, scalar_prefetch = 0 : i64, scratch_operands = 0 : i64, tpu.core_type = #tpu.core_type<tc>, window_params = [{transform_indices = @transform_0, window_bounds = array<i64: 1, 256, 128>}, {transform_indices = @transform_1, window_bounds = array<i64: 1, 1, 128>}, {transform_indices = @transform_2, window_bounds = array<i64: 1, 1, 128>}, {transform_indices = @transform_3, window_bounds = array<i64: 1, 256, 128>}]} {
    %c0 = arith.constant 0 : index
    %c0_0 = arith.constant 0 : index
    %c0_1 = arith.constant 0 : index
    %0 = vector.load %arg2[%c0, %c0_0, %c0_1] : memref<1x256x128xbf16, #tpu.memory_space<vmem>>, vector<1x256x128xbf16>
    %1 = vector.shape_cast %0 : vector<1x256x128xbf16> to vector<256x128xbf16>
    %2 = arith.extf %1 : vector<256x128xbf16> to vector<256x128xf32>
    %c0_2 = arith.constant 0 : index
    %c0_3 = arith.constant 0 : index
    %c0_4 = arith.constant 0 : index
    %3 = vector.load %arg3[%c0_2, %c0_3, %c0_4] : memref<1x1x128xf32, #tpu.memory_space<vmem>>, vector<1x1x128xf32>
    %4 = vector.shape_cast %3 : vector<1x1x128xf32> to vector<1x128xf32>
    %5 = vector.broadcast %4 : vector<1x128xf32> to vector<256x128xf32>
    %6 = arith.mulf %2, %5 : vector<256x128xf32>
    %c0_5 = arith.constant 0 : index
    %c0_6 = arith.constant 0 : index
    %c0_7 = arith.constant 0 : index
    %7 = vector.load %arg4[%c0_5, %c0_6, %c0_7] : memref<1x1x128xf32, #tpu.memory_space<vmem>>, vector<1x1x128xf32>
    %8 = vector.shape_cast %7 : vector<1x1x128xf32> to vector<1x128xf32>
    %9 = vector.broadcast %8 : vector<1x128xf32> to vector<256x128xf32>
    %10 = arith.addf %6, %9 : vector<256x128xf32>
    %cst = arith.constant 0.000000e+00 : f32
    %11 = vector.broadcast %cst : f32 to vector<256x128xf32>
    %12 = arith.subf %11, %10 : vector<256x128xf32>
    %13 = math.exp %12 : vector<256x128xf32>
    %cst_8 = arith.constant 1.000000e+00 : f32
    %14 = vector.broadcast %cst_8 : f32 to vector<256x128xf32>
    %15 = arith.addf %14, %13 : vector<256x128xf32>
    %cst_9 = arith.constant 1.000000e+00 : f32
    %16 = vector.broadcast %cst_9 : f32 to vector<256x128xf32>
    %17 = arith.divf %16, %15 : vector<256x128xf32>
    %18 = arith.mulf %10, %17 : vector<256x128xf32>
    %19 = arith.truncf %18 : vector<256x128xf32> to vector<256x128xbf16>
    %c0_10 = arith.constant 0 : index
    %c0_11 = arith.constant 0 : index
    %c0_12 = arith.constant 0 : index
    %20 = vector.load %arg5[%c0_10, %c0_11, %c0_12] : memref<1x256x128xbf16, #tpu.memory_space<vmem>>, vector<1x256x128xbf16>
    %21 = vector.shape_cast %20 : vector<1x256x128xbf16> to vector<256x128xbf16>
    %22 = vector.shape_cast %19 : vector<256x128xbf16> to vector<1x256x128xbf16>
    tpu.vector_store %arg5[%c0_10, %c0_11, %c0_12], %22 {strides = array<i32>} : memref<1x256x128xbf16, #tpu.memory_space<vmem>>, vector<1x256x128xbf16>,
    return
  }
  func.func @transform_0(%arg0: i32, %arg1: i32) -> (i32, i32, i32) {
    %c0_i32 = arith.constant 0 : i32
    %c0_i32_0 = arith.constant 0 : i32
    return %arg0, %arg1, %c0_i32 : i32, i32, i32
  }
  func.func @transform_1(%arg0: i32, %arg1: i32) -> (i32, i32, i32) {
    %c0_i32 = arith.constant 0 : i32
    %c0_i32_0 = arith.constant 0 : i32
    %c0_i32_1 = arith.constant 0 : i32
    return %arg0, %c0_i32, %c0_i32_0 : i32, i32, i32
  }
  func.func @transform_2(%arg0: i32, %arg1: i32) -> (i32, i32, i32) {
    %c0_i32 = arith.constant 0 : i32
    %c0_i32_0 = arith.constant 0 : i32
    %c0_i32_1 = arith.constant 0 : i32
    return %arg0, %c0_i32, %c0_i32_0 : i32, i32, i32
  }
  func.func @transform_3(%arg0: i32, %arg1: i32) -> (i32, i32, i32) {
    %c0_i32 = arith.constant 0 : i32
    %c0_i32_0 = arith.constant 0 : i32
    return %arg0, %arg1, %c0_i32 : i32, i32, i32
  }
}

module attributes {stable_mosaic.version = 11 : i64} {
  func.func @_matmul_bias_kernel(%arg0: i32, %arg1: i32, %arg2: i32, %arg3: memref<256x128xbf16, #tpu.memory_space<vmem>>, %arg4: memref<128x128xbf16, #tpu.memory_space<vmem>>, %arg5: memref<1x128xf32, #tpu.memory_space<vmem>>, %arg6: memref<256x128xf32, #tpu.memory_space<vmem>>, %arg7: memref<256x128xf32, #tpu.memory_space<vmem>>) attributes {dimension_semantics = [#tpu.dimension_semantics<parallel>, #tpu.dimension_semantics<parallel>, #tpu.dimension_semantics<arbitrary>], iteration_bounds = array<i64: 2, 1, 1>, scalar_prefetch = 0 : i64, scratch_operands = 1 : i64, tpu.core_type = #tpu.core_type<tc>, window_params = [{transform_indices = @transform_0, window_bounds = array<i64: 256, 128>}, {transform_indices = @transform_1, window_bounds = array<i64: 128, 128>}, {transform_indices = @transform_2, window_bounds = array<i64: 1, 128>}, {transform_indices = @transform_3, window_bounds = array<i64: 256, 128>}]} {
    %c0_i32 = arith.constant 0 : i32
    %0 = arith.cmpi eq, %arg2, %c0_i32 : i32
    %1 = arith.extui %0 : i1 to i32
    %c0_i32_0 = arith.constant 0 : i32
    %2 = arith.cmpi ne, %1, %c0_i32_0 : i32
    scf.if %2 {
      %cst_10 = arith.constant 0.000000e+00 : f32
      %12 = vector.broadcast %cst_10 : f32 to vector<256x128xf32>
      %c0_11 = arith.constant 0 : index
      %c0_12 = arith.constant 0 : index
      %13 = vector.load %arg7[%c0_11, %c0_12] : memref<256x128xf32, #tpu.memory_space<vmem>>, vector<256x128xf32>
      tpu.vector_store %arg7[%c0_11, %c0_12], %12 {strides = array<i32>} : memref<256x128xf32, #tpu.memory_space<vmem>>, vector<256x128xf32>,
    } else {
    }
    %c0 = arith.constant 0 : index
    %c0_1 = arith.constant 0 : index
    %3 = vector.load %arg7[%c0, %c0_1] : memref<256x128xf32, #tpu.memory_space<vmem>>, vector<256x128xf32>
    %c0_2 = arith.constant 0 : index
    %c0_3 = arith.constant 0 : index
    %4 = vector.load %arg3[%c0_2, %c0_3] : memref<256x128xbf16, #tpu.memory_space<vmem>>, vector<256x128xbf16>
    %c0_4 = arith.constant 0 : index
    %c0_5 = arith.constant 0 : index
    %5 = vector.load %arg4[%c0_4, %c0_5] : memref<128x128xbf16, #tpu.memory_space<vmem>>, vector<128x128xbf16>
    %cst = arith.constant dense<0.000000e+00> : vector<256x128xf32>
    %6 = tpu.matmul %4, %5, %cst {dimension_numbers = #tpu.dot_dimension_numbers<[1], [0], [0], [1], [0, 0, 1, 1], [], []>} : vector<256x128xbf16>, vector<128x128xbf16>, vector<256x128xf32> -> vector<256x128xf32>
    %7 = arith.addf %3, %6 : vector<256x128xf32>
    %c0_6 = arith.constant 0 : index
    %c0_7 = arith.constant 0 : index
    %8 = vector.load %arg7[%c0_6, %c0_7] : memref<256x128xf32, #tpu.memory_space<vmem>>, vector<256x128xf32>
    tpu.vector_store %arg7[%c0_6, %c0_7], %7 {strides = array<i32>} : memref<256x128xf32, #tpu.memory_space<vmem>>, vector<256x128xf32>,
    %c0_i32_8 = arith.constant 0 : i32
    %9 = arith.cmpi eq, %arg2, %c0_i32_8 : i32
    %10 = arith.extui %9 : i1 to i32
    %c0_i32_9 = arith.constant 0 : i32
    %11 = arith.cmpi ne, %10, %c0_i32_9 : i32
    scf.if %11 {
      %c0_10 = arith.constant 0 : index
      %c0_11 = arith.constant 0 : index
      %12 = vector.load %arg7[%c0_10, %c0_11] : memref<256x128xf32, #tpu.memory_space<vmem>>, vector<256x128xf32>
      %c0_12 = arith.constant 0 : index
      %c0_13 = arith.constant 0 : index
      %13 = vector.load %arg5[%c0_12, %c0_13] : memref<1x128xf32, #tpu.memory_space<vmem>>, vector<1x128xf32>
      %14 = vector.broadcast %13 : vector<1x128xf32> to vector<256x128xf32>
      %15 = arith.addf %12, %14 : vector<256x128xf32>
      %c0_14 = arith.constant 0 : index
      %c0_15 = arith.constant 0 : index
      %16 = vector.load %arg6[%c0_14, %c0_15] : memref<256x128xf32, #tpu.memory_space<vmem>>, vector<256x128xf32>
      tpu.vector_store %arg6[%c0_14, %c0_15], %15 {strides = array<i32>} : memref<256x128xf32, #tpu.memory_space<vmem>>, vector<256x128xf32>,
    } else {
    }
    return
  }
  func.func @transform_0(%arg0: i32, %arg1: i32, %arg2: i32) -> (i32, i32) {
    %c0_i32 = arith.constant 0 : i32
    return %arg0, %arg2 : i32, i32
  }
  func.func @transform_1(%arg0: i32, %arg1: i32, %arg2: i32) -> (i32, i32) {
    %c0_i32 = arith.constant 0 : i32
    return %arg2, %arg1 : i32, i32
  }
  func.func @transform_2(%arg0: i32, %arg1: i32, %arg2: i32) -> (i32, i32) {
    %c0_i32 = arith.constant 0 : i32
    %c0_i32_0 = arith.constant 0 : i32
    return %c0_i32, %arg1 : i32, i32
  }
  func.func @transform_3(%arg0: i32, %arg1: i32, %arg2: i32) -> (i32, i32) {
    %c0_i32 = arith.constant 0 : i32
    return %arg0, %arg1 : i32, i32
  }
}

module attributes {stable_mosaic.version = 11 : i64} {
  func.func @_matmul_bias_res_kernel(%arg0: i32, %arg1: i32, %arg2: i32, %arg3: memref<256x384xbf16, #tpu.memory_space<vmem>>, %arg4: memref<384x128xbf16, #tpu.memory_space<vmem>>, %arg5: memref<1x128xf32, #tpu.memory_space<vmem>>, %arg6: memref<256x128xf32, #tpu.memory_space<vmem>>, %arg7: memref<256x128xf32, #tpu.memory_space<vmem>>, %arg8: memref<256x128xf32, #tpu.memory_space<vmem>>) attributes {dimension_semantics = [#tpu.dimension_semantics<parallel>, #tpu.dimension_semantics<parallel>, #tpu.dimension_semantics<arbitrary>], iteration_bounds = array<i64: 2, 1, 3>, scalar_prefetch = 0 : i64, scratch_operands = 1 : i64, tpu.core_type = #tpu.core_type<tc>, window_params = [{transform_indices = @transform_0, window_bounds = array<i64: 256, 384>}, {transform_indices = @transform_1, window_bounds = array<i64: 384, 128>}, {transform_indices = @transform_2, window_bounds = array<i64: 1, 128>}, {transform_indices = @transform_3, window_bounds = array<i64: 256, 128>}, {transform_indices = @transform_4, window_bounds = array<i64: 256, 128>}]} {
    %c0_i32 = arith.constant 0 : i32
    %0 = arith.cmpi eq, %arg2, %c0_i32 : i32
    %1 = arith.extui %0 : i1 to i32
    %c0_i32_0 = arith.constant 0 : i32
    %2 = arith.cmpi ne, %1, %c0_i32_0 : i32
    scf.if %2 {
      %cst_9 = arith.constant 0.000000e+00 : f32
      %12 = vector.broadcast %cst_9 : f32 to vector<256x128xf32>
      %c0_10 = arith.constant 0 : index
      %c0_11 = arith.constant 0 : index
      %13 = vector.load %arg8[%c0_10, %c0_11] : memref<256x128xf32, #tpu.memory_space<vmem>>, vector<256x128xf32>
      tpu.vector_store %arg8[%c0_10, %c0_11], %12 {strides = array<i32>} : memref<256x128xf32, #tpu.memory_space<vmem>>, vector<256x128xf32>,
    } else {
    }
    %c0 = arith.constant 0 : index
    %c0_1 = arith.constant 0 : index
    %3 = vector.load %arg8[%c0, %c0_1] : memref<256x128xf32, #tpu.memory_space<vmem>>, vector<256x128xf32>
    %c0_2 = arith.constant 0 : index
    %c0_3 = arith.constant 0 : index
    %4 = vector.load %arg3[%c0_2, %c0_3] : memref<256x384xbf16, #tpu.memory_space<vmem>>, vector<256x384xbf16>
    %c0_4 = arith.constant 0 : index
    %c0_5 = arith.constant 0 : index
    %5 = vector.load %arg4[%c0_4, %c0_5] : memref<384x128xbf16, #tpu.memory_space<vmem>>, vector<384x128xbf16>
    %cst = arith.constant dense<0.000000e+00> : vector<256x128xf32>
    %6 = tpu.matmul %4, %5, %cst {dimension_numbers = #tpu.dot_dimension_numbers<[1], [0], [0], [1], [0, 0, 1, 1], [], []>} : vector<256x384xbf16>, vector<384x128xbf16>, vector<256x128xf32> -> vector<256x128xf32>
    %7 = arith.addf %3, %6 : vector<256x128xf32>
    %c0_6 = arith.constant 0 : index
    %c0_7 = arith.constant 0 : index
    %8 = vector.load %arg8[%c0_6, %c0_7] : memref<256x128xf32, #tpu.memory_space<vmem>>, vector<256x128xf32>
    tpu.vector_store %arg8[%c0_6, %c0_7], %7 {strides = array<i32>} : memref<256x128xf32, #tpu.memory_space<vmem>>, vector<256x128xf32>,
    %c2_i32 = arith.constant 2 : i32
    %9 = arith.cmpi eq, %arg2, %c2_i32 : i32
    %10 = arith.extui %9 : i1 to i32
    %c0_i32_8 = arith.constant 0 : i32
    %11 = arith.cmpi ne, %10, %c0_i32_8 : i32
    scf.if %11 {
      %c0_9 = arith.constant 0 : index
      %c0_10 = arith.constant 0 : index
      %12 = vector.load %arg8[%c0_9, %c0_10] : memref<256x128xf32, #tpu.memory_space<vmem>>, vector<256x128xf32>
      %c0_11 = arith.constant 0 : index
      %c0_12 = arith.constant 0 : index
      %13 = vector.load %arg5[%c0_11, %c0_12] : memref<1x128xf32, #tpu.memory_space<vmem>>, vector<1x128xf32>
      %14 = vector.broadcast %13 : vector<1x128xf32> to vector<256x128xf32>
      %15 = arith.addf %12, %14 : vector<256x128xf32>
      %c0_13 = arith.constant 0 : index
      %c0_14 = arith.constant 0 : index
      %16 = vector.load %arg6[%c0_13, %c0_14] : memref<256x128xf32, #tpu.memory_space<vmem>>, vector<256x128xf32>
      %17 = arith.addf %15, %16 : vector<256x128xf32>
      %c0_15 = arith.constant 0 : index
      %c0_16 = arith.constant 0 : index
      %18 = vector.load %arg7[%c0_15, %c0_16] : memref<256x128xf32, #tpu.memory_space<vmem>>, vector<256x128xf32>
      tpu.vector_store %arg7[%c0_15, %c0_16], %17 {strides = array<i32>} : memref<256x128xf32, #tpu.memory_space<vmem>>, vector<256x128xf32>,
    } else {
    }
    return
  }
  func.func @transform_0(%arg0: i32, %arg1: i32, %arg2: i32) -> (i32, i32) {
    %c0_i32 = arith.constant 0 : i32
    return %arg0, %arg2 : i32, i32
  }
  func.func @transform_1(%arg0: i32, %arg1: i32, %arg2: i32) -> (i32, i32) {
    %c0_i32 = arith.constant 0 : i32
    return %arg2, %arg1 : i32, i32
  }
  func.func @transform_2(%arg0: i32, %arg1: i32, %arg2: i32) -> (i32, i32) {
    %c0_i32 = arith.constant 0 : i32
    %c0_i32_0 = arith.constant 0 : i32
    return %c0_i32, %arg1 : i32, i32
  }
  func.func @transform_3(%arg0: i32, %arg1: i32, %arg2: i32) -> (i32, i32) {
    %c0_i32 = arith.constant 0 : i32
    return %arg0, %arg1 : i32, i32
  }
  func.func @transform_4(%arg0: i32, %arg1: i32, %arg2: i32) -> (i32, i32) {
    %c0_i32 = arith.constant 0 : i32
    return %arg0, %arg1 : i32, i32
  }
}

module attributes {stable_mosaic.version = 11 : i64} {
  func.func @_gn_stats_kernel(%arg0: i32, %arg1: i32, %arg2: memref<1x256x128xf32, #tpu.memory_space<vmem>>, %arg3: memref<1x1x128xf32, #tpu.memory_space<vmem>>, %arg4: memref<1x1x128xf32, #tpu.memory_space<vmem>>) attributes {dimension_semantics = [#tpu.dimension_semantics<parallel>, #tpu.dimension_semantics<arbitrary>], iteration_bounds = array<i64: 2, 1>, scalar_prefetch = 0 : i64, scratch_operands = 0 : i64, tpu.core_type = #tpu.core_type<tc>, window_params = [{transform_indices = @transform_0, window_bounds = array<i64: 1, 256, 128>}, {transform_indices = @transform_1, window_bounds = array<i64: 1, 1, 128>}, {transform_indices = @transform_2, window_bounds = array<i64: 1, 1, 128>}]} {
    %c0_i32 = arith.constant 0 : i32
    %0 = arith.cmpi eq, %arg1, %c0_i32 : i32
    %1 = arith.extui %0 : i1 to i32
    %c0_i32_0 = arith.constant 0 : i32
    %2 = arith.cmpi ne, %1, %c0_i32_0 : i32
    scf.if %2 {
      %cst_16 = arith.constant 0.000000e+00 : f32
      %18 = vector.broadcast %cst_16 : f32 to vector<1x1x128xf32>
      %c0_17 = arith.constant 0 : index
      %c0_18 = arith.constant 0 : index
      %c0_19 = arith.constant 0 : index
      %19 = vector.load %arg3[%c0_17, %c0_18, %c0_19] : memref<1x1x128xf32, #tpu.memory_space<vmem>>, vector<1x1x128xf32>
      tpu.vector_store %arg3[%c0_17, %c0_18, %c0_19], %18 {strides = array<i32>} : memref<1x1x128xf32, #tpu.memory_space<vmem>>, vector<1x1x128xf32>,
      %cst_20 = arith.constant 0.000000e+00 : f32
      %20 = vector.broadcast %cst_20 : f32 to vector<1x1x128xf32>
      %c0_21 = arith.constant 0 : index
      %c0_22 = arith.constant 0 : index
      %c0_23 = arith.constant 0 : index
      %21 = vector.load %arg4[%c0_21, %c0_22, %c0_23] : memref<1x1x128xf32, #tpu.memory_space<vmem>>, vector<1x1x128xf32>
      tpu.vector_store %arg4[%c0_21, %c0_22, %c0_23], %20 {strides = array<i32>} : memref<1x1x128xf32, #tpu.memory_space<vmem>>, vector<1x1x128xf32>,
    } else {
    }
    %c0 = arith.constant 0 : index
    %c0_1 = arith.constant 0 : index
    %c0_2 = arith.constant 0 : index
    %3 = vector.load %arg2[%c0, %c0_1, %c0_2] : memref<1x256x128xf32, #tpu.memory_space<vmem>>, vector<1x256x128xf32>
    %4 = vector.shape_cast %3 : vector<1x256x128xf32> to vector<256x128xf32>
    %c0_3 = arith.constant 0 : index
    %c0_4 = arith.constant 0 : index
    %c0_5 = arith.constant 0 : index
    %5 = vector.load %arg3[%c0_3, %c0_4, %c0_5] : memref<1x1x128xf32, #tpu.memory_space<vmem>>, vector<1x1x128xf32>
    %cst = arith.constant dense<0.000000e+00> : vector<128xf32>
    %6 = vector.multi_reduction <add>, %4, %cst [0] : vector<256x128xf32> to vector<128xf32>
    %7 = vector.shape_cast %6 : vector<128xf32> to vector<1x128xf32>
    %8 = vector.shape_cast %7 : vector<1x128xf32> to vector<1x1x128xf32>
    %9 = arith.addf %5, %8 : vector<1x1x128xf32>
    %c0_6 = arith.constant 0 : index
    %c0_7 = arith.constant 0 : index
    %c0_8 = arith.constant 0 : index
    %10 = vector.load %arg3[%c0_6, %c0_7, %c0_8] : memref<1x1x128xf32, #tpu.memory_space<vmem>>, vector<1x1x128xf32>
    tpu.vector_store %arg3[%c0_6, %c0_7, %c0_8], %9 {strides = array<i32>} : memref<1x1x128xf32, #tpu.memory_space<vmem>>, vector<1x1x128xf32>,
    %c0_9 = arith.constant 0 : index
    %c0_10 = arith.constant 0 : index
    %c0_11 = arith.constant 0 : index
    %11 = vector.load %arg4[%c0_9, %c0_10, %c0_11] : memref<1x1x128xf32, #tpu.memory_space<vmem>>, vector<1x1x128xf32>
    %12 = arith.mulf %4, %4 : vector<256x128xf32>
    %cst_12 = arith.constant dense<0.000000e+00> : vector<128xf32>
    %13 = vector.multi_reduction <add>, %12, %cst_12 [0] : vector<256x128xf32> to vector<128xf32>
    %14 = vector.shape_cast %13 : vector<128xf32> to vector<1x128xf32>
    %15 = vector.shape_cast %14 : vector<1x128xf32> to vector<1x1x128xf32>
    %16 = arith.addf %11, %15 : vector<1x1x128xf32>
    %c0_13 = arith.constant 0 : index
    %c0_14 = arith.constant 0 : index
    %c0_15 = arith.constant 0 : index
    %17 = vector.load %arg4[%c0_13, %c0_14, %c0_15] : memref<1x1x128xf32, #tpu.memory_space<vmem>>, vector<1x1x128xf32>
    tpu.vector_store %arg4[%c0_13, %c0_14, %c0_15], %16 {strides = array<i32>} : memref<1x1x128xf32, #tpu.memory_space<vmem>>, vector<1x1x128xf32>,
    return
  }
  func.func @transform_0(%arg0: i32, %arg1: i32) -> (i32, i32, i32) {
    %c0_i32 = arith.constant 0 : i32
    %c0_i32_0 = arith.constant 0 : i32
    return %arg0, %arg1, %c0_i32 : i32, i32, i32
  }
  func.func @transform_1(%arg0: i32, %arg1: i32) -> (i32, i32, i32) {
    %c0_i32 = arith.constant 0 : i32
    %c0_i32_0 = arith.constant 0 : i32
    %c0_i32_1 = arith.constant 0 : i32
    return %arg0, %c0_i32, %c0_i32_0 : i32, i32, i32
  }
  func.func @transform_2(%arg0: i32, %arg1: i32) -> (i32, i32, i32) {
    %c0_i32 = arith.constant 0 : i32
    %c0_i32_0 = arith.constant 0 : i32
    %c0_i32_1 = arith.constant 0 : i32
    return %arg0, %c0_i32, %c0_i32_0 : i32, i32, i32
  }
}

module attributes {stable_mosaic.version = 11 : i64} {
  func.func @_matmul_bias_kernel(%arg0: i32, %arg1: i32, %arg2: i32, %arg3: memref<256x384xbf16, #tpu.memory_space<vmem>>, %arg4: memref<384x128xbf16, #tpu.memory_space<vmem>>, %arg5: memref<1x128xf32, #tpu.memory_space<vmem>>, %arg6: memref<256x128xbf16, #tpu.memory_space<vmem>>, %arg7: memref<256x128xf32, #tpu.memory_space<vmem>>) attributes {dimension_semantics = [#tpu.dimension_semantics<parallel>, #tpu.dimension_semantics<parallel>, #tpu.dimension_semantics<arbitrary>], iteration_bounds = array<i64: 2, 1, 3>, scalar_prefetch = 0 : i64, scratch_operands = 1 : i64, tpu.core_type = #tpu.core_type<tc>, window_params = [{transform_indices = @transform_0, window_bounds = array<i64: 256, 384>}, {transform_indices = @transform_1, window_bounds = array<i64: 384, 128>}, {transform_indices = @transform_2, window_bounds = array<i64: 1, 128>}, {transform_indices = @transform_3, window_bounds = array<i64: 256, 128>}]} {
    %c0_i32 = arith.constant 0 : i32
    %0 = arith.cmpi eq, %arg2, %c0_i32 : i32
    %1 = arith.extui %0 : i1 to i32
    %c0_i32_0 = arith.constant 0 : i32
    %2 = arith.cmpi ne, %1, %c0_i32_0 : i32
    scf.if %2 {
      %cst_9 = arith.constant 0.000000e+00 : f32
      %12 = vector.broadcast %cst_9 : f32 to vector<256x128xf32>
      %c0_10 = arith.constant 0 : index
      %c0_11 = arith.constant 0 : index
      %13 = vector.load %arg7[%c0_10, %c0_11] : memref<256x128xf32, #tpu.memory_space<vmem>>, vector<256x128xf32>
      tpu.vector_store %arg7[%c0_10, %c0_11], %12 {strides = array<i32>} : memref<256x128xf32, #tpu.memory_space<vmem>>, vector<256x128xf32>,
    } else {
    }
    %c0 = arith.constant 0 : index
    %c0_1 = arith.constant 0 : index
    %3 = vector.load %arg7[%c0, %c0_1] : memref<256x128xf32, #tpu.memory_space<vmem>>, vector<256x128xf32>
    %c0_2 = arith.constant 0 : index
    %c0_3 = arith.constant 0 : index
    %4 = vector.load %arg3[%c0_2, %c0_3] : memref<256x384xbf16, #tpu.memory_space<vmem>>, vector<256x384xbf16>
    %c0_4 = arith.constant 0 : index
    %c0_5 = arith.constant 0 : index
    %5 = vector.load %arg4[%c0_4, %c0_5] : memref<384x128xbf16, #tpu.memory_space<vmem>>, vector<384x128xbf16>
    %cst = arith.constant dense<0.000000e+00> : vector<256x128xf32>
    %6 = tpu.matmul %4, %5, %cst {dimension_numbers = #tpu.dot_dimension_numbers<[1], [0], [0], [1], [0, 0, 1, 1], [], []>} : vector<256x384xbf16>, vector<384x128xbf16>, vector<256x128xf32> -> vector<256x128xf32>
    %7 = arith.addf %3, %6 : vector<256x128xf32>
    %c0_6 = arith.constant 0 : index
    %c0_7 = arith.constant 0 : index
    %8 = vector.load %arg7[%c0_6, %c0_7] : memref<256x128xf32, #tpu.memory_space<vmem>>, vector<256x128xf32>
    tpu.vector_store %arg7[%c0_6, %c0_7], %7 {strides = array<i32>} : memref<256x128xf32, #tpu.memory_space<vmem>>, vector<256x128xf32>,
    %c2_i32 = arith.constant 2 : i32
    %9 = arith.cmpi eq, %arg2, %c2_i32 : i32
    %10 = arith.extui %9 : i1 to i32
    %c0_i32_8 = arith.constant 0 : i32
    %11 = arith.cmpi ne, %10, %c0_i32_8 : i32
    scf.if %11 {
      %c0_9 = arith.constant 0 : index
      %c0_10 = arith.constant 0 : index
      %12 = vector.load %arg7[%c0_9, %c0_10] : memref<256x128xf32, #tpu.memory_space<vmem>>, vector<256x128xf32>
      %c0_11 = arith.constant 0 : index
      %c0_12 = arith.constant 0 : index
      %13 = vector.load %arg5[%c0_11, %c0_12] : memref<1x128xf32, #tpu.memory_space<vmem>>, vector<1x128xf32>
      %14 = vector.broadcast %13 : vector<1x128xf32> to vector<256x128xf32>
      %15 = arith.addf %12, %14 : vector<256x128xf32>
      %16 = arith.truncf %15 : vector<256x128xf32> to vector<256x128xbf16>
      %c0_13 = arith.constant 0 : index
      %c0_14 = arith.constant 0 : index
      %17 = vector.load %arg6[%c0_13, %c0_14] : memref<256x128xbf16, #tpu.memory_space<vmem>>, vector<256x128xbf16>
      tpu.vector_store %arg6[%c0_13, %c0_14], %16 {strides = array<i32>} : memref<256x128xbf16, #tpu.memory_space<vmem>>, vector<256x128xbf16>,
    } else {
    }
    return
  }
  func.func @transform_0(%arg0: i32, %arg1: i32, %arg2: i32) -> (i32, i32) {
    %c0_i32 = arith.constant 0 : i32
    return %arg0, %arg2 : i32, i32
  }
  func.func @transform_1(%arg0: i32, %arg1: i32, %arg2: i32) -> (i32, i32) {
    %c0_i32 = arith.constant 0 : i32
    return %arg2, %arg1 : i32, i32
  }
  func.func @transform_2(%arg0: i32, %arg1: i32, %arg2: i32) -> (i32, i32) {
    %c0_i32 = arith.constant 0 : i32
    %c0_i32_0 = arith.constant 0 : i32
    return %c0_i32, %arg1 : i32, i32
  }
  func.func @transform_3(%arg0: i32, %arg1: i32, %arg2: i32) -> (i32, i32) {
    %c0_i32 = arith.constant 0 : i32
    return %arg0, %arg1 : i32, i32
  }
}

module attributes {stable_mosaic.version = 11 : i64} {
  func.func @_gn_norm_kernel(%arg0: i32, %arg1: i32, %arg2: memref<1x256x128xf32, #tpu.memory_space<vmem>>, %arg3: memref<1x1x128xf32, #tpu.memory_space<vmem>>, %arg4: memref<1x1x128xf32, #tpu.memory_space<vmem>>, %arg5: memref<1x256x128xbf16, #tpu.memory_space<vmem>>) attributes {dimension_semantics = [#tpu.dimension_semantics<parallel>, #tpu.dimension_semantics<parallel>], iteration_bounds = array<i64: 2, 1>, scalar_prefetch = 0 : i64, scratch_operands = 0 : i64, tpu.core_type = #tpu.core_type<tc>, window_params = [{transform_indices = @transform_0, window_bounds = array<i64: 1, 256, 128>}, {transform_indices = @transform_1, window_bounds = array<i64: 1, 1, 128>}, {transform_indices = @transform_2, window_bounds = array<i64: 1, 1, 128>}, {transform_indices = @transform_3, window_bounds = array<i64: 1, 256, 128>}]} {
    %c0 = arith.constant 0 : index
    %c0_0 = arith.constant 0 : index
    %c0_1 = arith.constant 0 : index
    %0 = vector.load %arg2[%c0, %c0_0, %c0_1] : memref<1x256x128xf32, #tpu.memory_space<vmem>>, vector<1x256x128xf32>
    %1 = vector.shape_cast %0 : vector<1x256x128xf32> to vector<256x128xf32>
    %c0_2 = arith.constant 0 : index
    %c0_3 = arith.constant 0 : index
    %c0_4 = arith.constant 0 : index
    %2 = vector.load %arg3[%c0_2, %c0_3, %c0_4] : memref<1x1x128xf32, #tpu.memory_space<vmem>>, vector<1x1x128xf32>
    %3 = vector.shape_cast %2 : vector<1x1x128xf32> to vector<1x128xf32>
    %4 = vector.broadcast %3 : vector<1x128xf32> to vector<256x128xf32>
    %5 = arith.mulf %1, %4 : vector<256x128xf32>
    %c0_5 = arith.constant 0 : index
    %c0_6 = arith.constant 0 : index
    %c0_7 = arith.constant 0 : index
    %6 = vector.load %arg4[%c0_5, %c0_6, %c0_7] : memref<1x1x128xf32, #tpu.memory_space<vmem>>, vector<1x1x128xf32>
    %7 = vector.shape_cast %6 : vector<1x1x128xf32> to vector<1x128xf32>
    %8 = vector.broadcast %7 : vector<1x128xf32> to vector<256x128xf32>
    %9 = arith.addf %5, %8 : vector<256x128xf32>
    %cst = arith.constant 0.000000e+00 : f32
    %10 = vector.broadcast %cst : f32 to vector<256x128xf32>
    %11 = arith.subf %10, %9 : vector<256x128xf32>
    %12 = math.exp %11 : vector<256x128xf32>
    %cst_8 = arith.constant 1.000000e+00 : f32
    %13 = vector.broadcast %cst_8 : f32 to vector<256x128xf32>
    %14 = arith.addf %13, %12 : vector<256x128xf32>
    %cst_9 = arith.constant 1.000000e+00 : f32
    %15 = vector.broadcast %cst_9 : f32 to vector<256x128xf32>
    %16 = arith.divf %15, %14 : vector<256x128xf32>
    %17 = arith.mulf %9, %16 : vector<256x128xf32>
    %18 = arith.truncf %17 : vector<256x128xf32> to vector<256x128xbf16>
    %c0_10 = arith.constant 0 : index
    %c0_11 = arith.constant 0 : index
    %c0_12 = arith.constant 0 : index
    %19 = vector.load %arg5[%c0_10, %c0_11, %c0_12] : memref<1x256x128xbf16, #tpu.memory_space<vmem>>, vector<1x256x128xbf16>
    %20 = vector.shape_cast %19 : vector<1x256x128xbf16> to vector<256x128xbf16>
    %21 = vector.shape_cast %18 : vector<256x128xbf16> to vector<1x256x128xbf16>
    tpu.vector_store %arg5[%c0_10, %c0_11, %c0_12], %21 {strides = array<i32>} : memref<1x256x128xbf16, #tpu.memory_space<vmem>>, vector<1x256x128xbf16>,
    return
  }
  func.func @transform_0(%arg0: i32, %arg1: i32) -> (i32, i32, i32) {
    %c0_i32 = arith.constant 0 : i32
    %c0_i32_0 = arith.constant 0 : i32
    return %arg0, %arg1, %c0_i32 : i32, i32, i32
  }
  func.func @transform_1(%arg0: i32, %arg1: i32) -> (i32, i32, i32) {
    %c0_i32 = arith.constant 0 : i32
    %c0_i32_0 = arith.constant 0 : i32
    %c0_i32_1 = arith.constant 0 : i32
    return %arg0, %c0_i32, %c0_i32_0 : i32, i32, i32
  }
  func.func @transform_2(%arg0: i32, %arg1: i32) -> (i32, i32, i32) {
    %c0_i32 = arith.constant 0 : i32
    %c0_i32_0 = arith.constant 0 : i32
    %c0_i32_1 = arith.constant 0 : i32
    return %arg0, %c0_i32, %c0_i32_0 : i32, i32, i32
  }
  func.func @transform_3(%arg0: i32, %arg1: i32) -> (i32, i32, i32) {
    %c0_i32 = arith.constant 0 : i32
    %c0_i32_0 = arith.constant 0 : i32
    return %arg0, %arg1, %c0_i32 : i32, i32, i32
  }
}

module attributes {stable_mosaic.version = 11 : i64} {
  func.func @_matmul_bias_kernel(%arg0: i32, %arg1: i32, %arg2: i32, %arg3: memref<104x384xbf16, #tpu.memory_space<vmem>>, %arg4: memref<384x128xbf16, #tpu.memory_space<vmem>>, %arg5: memref<1x128xf32, #tpu.memory_space<vmem>>, %arg6: memref<104x128xf32, #tpu.memory_space<vmem>>, %arg7: memref<104x128xf32, #tpu.memory_space<vmem>>) attributes {dimension_semantics = [#tpu.dimension_semantics<parallel>, #tpu.dimension_semantics<parallel>, #tpu.dimension_semantics<arbitrary>], iteration_bounds = array<i64: 1, 1, 3>, scalar_prefetch = 0 : i64, scratch_operands = 1 : i64, tpu.core_type = #tpu.core_type<tc>, window_params = [{transform_indices = @transform_0, window_bounds = array<i64: 104, 384>}, {transform_indices = @transform_1, window_bounds = array<i64: 384, 128>}, {transform_indices = @transform_2, window_bounds = array<i64: 1, 128>}, {transform_indices = @transform_3, window_bounds = array<i64: 104, 128>}]} {
    %c0_i32 = arith.constant 0 : i32
    %0 = arith.cmpi eq, %arg2, %c0_i32 : i32
    %1 = arith.extui %0 : i1 to i32
    %c0_i32_0 = arith.constant 0 : i32
    %2 = arith.cmpi ne, %1, %c0_i32_0 : i32
    scf.if %2 {
      %cst_9 = arith.constant 0.000000e+00 : f32
      %12 = vector.broadcast %cst_9 : f32 to vector<104x128xf32>
      %c0_10 = arith.constant 0 : index
      %c0_11 = arith.constant 0 : index
      %13 = vector.load %arg7[%c0_10, %c0_11] : memref<104x128xf32, #tpu.memory_space<vmem>>, vector<104x128xf32>
      tpu.vector_store %arg7[%c0_10, %c0_11], %12 {strides = array<i32>} : memref<104x128xf32, #tpu.memory_space<vmem>>, vector<104x128xf32>,
    } else {
    }
    %c0 = arith.constant 0 : index
    %c0_1 = arith.constant 0 : index
    %3 = vector.load %arg7[%c0, %c0_1] : memref<104x128xf32, #tpu.memory_space<vmem>>, vector<104x128xf32>
    %c0_2 = arith.constant 0 : index
    %c0_3 = arith.constant 0 : index
    %4 = vector.load %arg3[%c0_2, %c0_3] : memref<104x384xbf16, #tpu.memory_space<vmem>>, vector<104x384xbf16>
    %c0_4 = arith.constant 0 : index
    %c0_5 = arith.constant 0 : index
    %5 = vector.load %arg4[%c0_4, %c0_5] : memref<384x128xbf16, #tpu.memory_space<vmem>>, vector<384x128xbf16>
    %cst = arith.constant dense<0.000000e+00> : vector<104x128xf32>
    %6 = tpu.matmul %4, %5, %cst {dimension_numbers = #tpu.dot_dimension_numbers<[1], [0], [0], [1], [0, 0, 1, 1], [], []>} : vector<104x384xbf16>, vector<384x128xbf16>, vector<104x128xf32> -> vector<104x128xf32>
    %7 = arith.addf %3, %6 : vector<104x128xf32>
    %c0_6 = arith.constant 0 : index
    %c0_7 = arith.constant 0 : index
    %8 = vector.load %arg7[%c0_6, %c0_7] : memref<104x128xf32, #tpu.memory_space<vmem>>, vector<104x128xf32>
    tpu.vector_store %arg7[%c0_6, %c0_7], %7 {strides = array<i32>} : memref<104x128xf32, #tpu.memory_space<vmem>>, vector<104x128xf32>,
    %c2_i32 = arith.constant 2 : i32
    %9 = arith.cmpi eq, %arg2, %c2_i32 : i32
    %10 = arith.extui %9 : i1 to i32
    %c0_i32_8 = arith.constant 0 : i32
    %11 = arith.cmpi ne, %10, %c0_i32_8 : i32
    scf.if %11 {
      %c0_9 = arith.constant 0 : index
      %c0_10 = arith.constant 0 : index
      %12 = vector.load %arg7[%c0_9, %c0_10] : memref<104x128xf32, #tpu.memory_space<vmem>>, vector<104x128xf32>
      %c0_11 = arith.constant 0 : index
      %c0_12 = arith.constant 0 : index
      %13 = vector.load %arg5[%c0_11, %c0_12] : memref<1x128xf32, #tpu.memory_space<vmem>>, vector<1x128xf32>
      %14 = vector.broadcast %13 : vector<1x128xf32> to vector<104x128xf32>
      %15 = arith.addf %12, %14 : vector<104x128xf32>
      %c0_13 = arith.constant 0 : index
      %c0_14 = arith.constant 0 : index
      %16 = vector.load %arg6[%c0_13, %c0_14] : memref<104x128xf32, #tpu.memory_space<vmem>>, vector<104x128xf32>
      tpu.vector_store %arg6[%c0_13, %c0_14], %15 {strides = array<i32>} : memref<104x128xf32, #tpu.memory_space<vmem>>, vector<104x128xf32>,
    } else {
    }
    return
  }
  func.func @transform_0(%arg0: i32, %arg1: i32, %arg2: i32) -> (i32, i32) {
    %c0_i32 = arith.constant 0 : i32
    return %arg0, %arg2 : i32, i32
  }
  func.func @transform_1(%arg0: i32, %arg1: i32, %arg2: i32) -> (i32, i32) {
    %c0_i32 = arith.constant 0 : i32
    return %arg2, %arg1 : i32, i32
  }
  func.func @transform_2(%arg0: i32, %arg1: i32, %arg2: i32) -> (i32, i32) {
    %c0_i32 = arith.constant 0 : i32
    %c0_i32_0 = arith.constant 0 : i32
    return %c0_i32, %arg1 : i32, i32
  }
  func.func @transform_3(%arg0: i32, %arg1: i32, %arg2: i32) -> (i32, i32) {
    %c0_i32 = arith.constant 0 : i32
    return %arg0, %arg1 : i32, i32
  }
}

</mosaic_0001>

<bundles_post_ra>
// kernel: encoder_block_forward.14
= control target key start
LH: loop header
LB: loop body
LE: loop exit
PB: predicated region body
PF: predicated region fallthrough
CT: control target
= control target key end

     0   :  { %8 = vsyncpa [#allocation3], 0  ;;  %s878_s0 = inlined_call_operand.hbm [shape: f32[2,256,64], index: 0, kind: input, shape index: {}]   ;;  %s879_s1 = inlined_call_operand.vmem [shape: f32[2,1,64], index: 1, kind: output, shape index: {0}]   ;;  %s880_s2 = inlined_call_operand.vmem [shape: f32[2,1,64], index: 2, kind: output, shape index: {1}]  }
   0x1   :  { %10 = vsyncpa [#allocation3 + $0x1], 0  ;;  %s667_s9 = smov 0   ;;  %s669_s10 = smov 0  }
   0x2   :  { %s671_s11 = smov 0   ;;  %s673_s12 = smov 0  }
   0x3   :  { %s675_s13 = smov 0   ;;  %s677_s14 = smov 0  }
   0x4 LB: > { %s498_s15 = sadd.s32 4294967295, %s646_s14   ;;  %s28_s16 = sadd.s32 1, %s642_s13  ;;  %s646_s14 = sphi %s677_s14, %s16_s14   ;;  %s642_s13 = sphi %s675_s13, %s888_s13   ;;  %s638_s12 = sphi %s673_s12, %s887_s12   ;;  %s634_s11 = sphi %s671_s11, %s886_s11   ;;  %s630_s10 = sphi %s669_s10, %s885_s10   ;;  %s626_s9 = sphi %s667_s9, %s884_s9  }
   0x5   : > { %p30_p0 = scmp.ge.s32.totalorder %s28_s16, 2  ;;  %s37_s17 = sadd.s32 1, %s634_s11 }
   0x6   : > { %p44_p1 = scmp.ne.s32.totalorder %s634_s11, %s630_s10  ;;  %p45_p2 = scmp.eq.s32.totalorder %s646_s14, 0 }
   0x7   : > { %s890_s16 = smov (%p30_p0, %s28_s16), 0  ;;  %p50_p4 = scmp.ne.s32.totalorder %s630_s10, %s626_s9 }
   0x8   : > { %p703_p3 = por %p45_p2, %p44_p1  ;;  %s32_s19 = ssub.s32 %s642_s13, %s890_s16 }
   0x9   : > { %p51_p5 = scmp.eq.s32.totalorder %s498_s15, 0  ;;  %p35_p6 = scmp.eq.s32.totalorder %s32_s19, 0 }
   0xa   : > { %p516_p8 = scmp.lt.s32.totalorder %s646_s14, 2  ;;  %s126_s22 = sand.u32 1, %s634_s11  }
   0xb   : > { %p710_p7 = por %p51_p5, %p50_p4  ;;  %s509_s23 = sshll.u32 %s642_s13, 12 }
   0xc   : > { %s716_s21 = scalar_select %p35_p6, %s634_s11, %s37_s17  }
   0xd   : > { %s502_s24 = sshll.u32 %s126_s22, 8  ;;  %s138_s27 = scalar_lea.hbm %s878_s0, %s509_s23 }
   0xe   : > { %s130_s28 = scalar_lea.vmem [#allocation2], %s502_s24  ;;  %p725_p9 = pnand %p516_p8, %p703_p3 }
   0xf   : > { %s139_s29 = sshll.u32 %s130_s28, 4  ;;  %s127_s3 = scalar_lea.sflag [#allocation3], %s126_s22  ;;  %s140_s29 = int_to_ptr.vmem [resolvable:$true] %s139_s29 }
  0x10   : > { %p570_p10 = pneg %p725_p9  ;;  %s581_s4 = scalar_lea.vmem %s140_s29, 4096 }
  0x11   : > { %p582_p11 = scmp.ne.s32.totalorder %s140_s29, %s581_s4  ;;  %s648_s5 = smov [#allocation2]  }
  0x12   : > { %s586_s6 = sshll.u32 %s648_s5, 4  ;;  %s587_s6 = int_to_ptr.vmem [resolvable:$false] %s586_s6 }
  0x13   : > { %p584_p12 = pnand %p582_p11, %p570_p10  ;;  %s588_s7 = scalar_lea.vmem %s587_s6, 8192 }
  0x14   : > { %p589_p0 = scmp.lt.s32.totalorder %s140_s29, %s587_s6  ;;  %p590_p1 = scmp.lt.s32.totalorder %s588_s7, %s581_s4 }
  0x15   : > { %p585_p13 = pneg %p584_p12 }
  0x16   : > { %p591_p2 = por %p590_p1, %p589_p0 }
  0x18   : > { %p592_p3 = pnand %p591_p2, %p585_p13 }
  0x1a   : > { %595 = shalt.err (!%p592_p3)
}
  0x1b   : > { %s649_s8 = smov 128   ;;  %s650_s9 = smov 8  }
  0x1c   : > { %515 = dma.hbm_to_vmem [thread:$0]  (!%p725_p9), %s138_s27, 4096, %s140_s29, %s127_s3, %s649_s8, %s649_s8, %s650_s9  }
  0x1d   : > { %p505_p4 = scmp.ge.s32.totalorder %s646_s14, 1  ;;  %p147_p5 = scmp.lt.s32.totalorder %s646_s14, 3 }
  0x1f   : > { %p148_p6 = pnand %p505_p4, %p147_p5 }
  0x20   : > { %s153_s15 = sand.u32 (!%p148_p6), 1, %s630_s10  }
  0x21   : > { %151 = sbr.rel (%p148_p6) target bundleno = 123 (0x7b), region = 24  ;;  %s506_s17 = sshll.u32 (!%p148_p6), %s153_s15, 8 }
  0x22   : > { %s154_s18 = scalar_lea.sflag (!%p148_p6), [#allocation3], %s153_s15  ;;  %s736_s19 = scalar_lea.vmem (!%p148_p6), [#allocation2], %s506_s17 }
  0x26   : > { %621 = dma.done.wait (%p710_p7), %s154_s18, 4096  }
  0x27   : > { %623 = vsyncadd (%p710_p7), %s154_s18, 4294963200  ;;  %p180_p8 = scmp.lt.s32.totalorder %s638_s12, 1  ;;  %vm190_vm0 = vcmask 516096   ;;  %v651_v0 = vmov 0.0   ;;  %vm226_vm1 = vcmask 523264   ;;  %v193_v1 = vld [vmem:[%s736_s19] sm:$0xff] }
  0x28   : > { %v194_v2 = vld [vmem:[%s736_s19 + $0x8] sm:$0xff]  ;;  %v195_v3 = vld [vmem:[%s736_s19 + $0x10] sm:$0xff]  ;;  %v227_v4 = vsel %vm226_vm1, %v193_v1, 0.0  ;;  %v196_v7 = vld [vmem:[%s736_s19 + $0x18] sm:$0xff]  ;;  %v300_v28 = vmul.f32 %v193_v1, %v193_v1 }
  0x29   : > { %s892_s12 = smov (!%p180_p8, %s638_s12), 1  ;;  %v228_v5 = vsel %vm226_vm1, %v194_v2, 0.0  ;;  %v230_v6 = vsel %vm226_vm1, %v195_v3, 0.0  ;;  %v232_v9 = vsel %vm226_vm1, %v196_v7, 0.0  ;;  %v197_v10 = vld [vmem:[%s736_s19 + $0x20] sm:$0xff]  ;;  %v198_v13 = vld [vmem:[%s736_s19 + $0x28] sm:$0xff]  ;;  %v301_v29 = vmul.f32 %v194_v2, %v194_v2 }
  0x2a   : > { %s747_s24 = scalar_lea.vmem %s879_s1, %s892_s12  ;;  %s752_s20 = scalar_lea.vmem %s880_s2, %s892_s12  ;;  %v229_v8 = vadd.f32 %v228_v5, %v227_v4  ;;  %v234_v12 = vsel %vm226_vm1, %v197_v10, 0.0  ;;  %v236_v15 = vsel %vm226_vm1, %v198_v13, 0.0  ;;  %v199_v16 = vld [vmem:[%s736_s19 + $0x30] sm:$0xff]  ;;  %v200_v19 = vld [vmem:[%s736_s19 + $0x38] sm:$0xff]  ;;  %v201_v22 = vld [vmem:[%s736_s19 + $0x40] sm:$0xff]  ;;  %v302_v30 = vmul.f32 %v195_v3, %v195_v3 }
  0x2b   : > { %191 = vst.msk [vmem:[%s747_s24] sm:$0x1] %vm190_vm0, %v651_v0  ;;  %192 = vst.msk [vmem:[%s752_s20] sm:$0x1] %vm190_vm0, %v651_v0  ;;  %v238_v18 = vsel %vm226_vm1, %v199_v16, 0.0  ;;  %v240_v21 = vsel %vm226_vm1, %v200_v19, 0.0  ;;  %v303_v35 = vmul.f32 %v196_v7, %v196_v7  ;;  %v304_v38 = vmul.f32 %v197_v10, %v197_v10 }
  0x2c   : > { %v231_v11 = vadd.f32 %v230_v6, %v229_v8  ;;  %v242_v24 = vsel %vm226_vm1, %v201_v22, 0.0  ;;  %v202_v25 = vld [vmem:[%s736_s19 + $0x48] sm:$0xff]  ;;  %v203_v31 = vld [vmem:[%s736_s19 + $0x50] sm:$0xff]  ;;  %v204_v33 = vld [vmem:[%s736_s19 + $0x58] sm:$0xff]  ;;  %v332_v39 = vsel %vm226_vm1, %v300_v28, 0.0  ;;  %v333_v40 = vsel %vm226_vm1, %v301_v29, 0.0 }
  0x2d   : > { %v244_v27 = vsel %vm226_vm1, %v202_v25, 0.0  ;;  %v246_v34 = vsel %vm226_vm1, %v203_v31, 0.0  ;;  %v248_v37 = vsel %vm226_vm1, %v204_v33, 0.0  ;;  %v335_v41 = vsel %vm226_vm1, %v302_v30, 0.0  ;;  %v205_v42 = vld [vmem:[%s736_s19 + $0x60] sm:$0xff]  ;;  %v206_v48 = vld [vmem:[%s736_s19 + $0x68] sm:$0xff] }
  0x2e   : > { %v233_v14 = vadd.f32 %v232_v9, %v231_v11  ;;  %v334_v44 = vadd.f32 %v333_v40, %v332_v39  ;;  %v250_v45 = vsel %vm226_vm1, %v205_v42, 0.0  ;;  %v305_v46 = vmul.f32 %v198_v13, %v198_v13  ;;  %v207_v54 = vld [vmem:[%s736_s19 + $0x70] sm:$0xff]  ;;  %v208_v60 = vld [vmem:[%s736_s19 + $0x78] sm:$0xff]  ;;  %v209_v2 = vld [vmem:[%s736_s19 + $0x80] sm:$0xff] }
  0x2f   : > { %v337_v47 = vsel %vm226_vm1, %v303_v35, 0.0  ;;  %v252_v51 = vsel %vm226_vm1, %v206_v48, 0.0  ;;  %v306_v52 = vmul.f32 %v199_v16, %v199_v16  ;;  %v339_v53 = vsel %vm226_vm1, %v304_v38, 0.0  ;;  %v210_v8 = vld [vmem:[%s736_s19 + $0x88] sm:$0xff]  ;;  %v215_v38 = vld [vmem:[%s736_s19 + $0xb0] sm:$0xff] }
  0x30   : > { %v235_v17 = vadd.f32 %v234_v12, %v233_v14  ;;  %v336_v50 = vadd.f32 %v335_v41, %v334_v44  ;;  %v254_v57 = vsel %vm226_vm1, %v207_v54, 0.0  ;;  %v307_v58 = vmul.f32 %v200_v19, %v200_v19  ;;  %v211_v14 = vld [vmem:[%s736_s19 + $0x90] sm:$0xff]  ;;  %v216_v44 = vld [vmem:[%s736_s19 + $0xb8] sm:$0xff] }
  0x31   : > { %v341_v59 = vsel %vm226_vm1, %v305_v46, 0.0  ;;  %v256_v63 = vsel %vm226_vm1, %v208_v60, 0.0  ;;  %v308_v0 = vmul.f32 %v201_v22, %v201_v22  ;;  %v343_v1 = vsel %vm226_vm1, %v306_v52, 0.0 }
  0x32   : > { %v237_v20 = vadd.f32 %v236_v15, %v235_v17  ;;  %v338_v56 = vadd.f32 %v337_v47, %v336_v50  ;;  %v258_v5 = vsel %vm226_vm1, %v209_v2, 0.0  ;;  %v309_v6 = vmul.f32 %v202_v25, %v202_v25  ;;  %v217_v50 = vld [vmem:[%s736_s19 + $0xc0] sm:$0xff] }
  0x33   : > { %v345_v7 = vsel %vm226_vm1, %v307_v58, 0.0  ;;  %v260_v11 = vsel %vm226_vm1, %v210_v8, 0.0  ;;  %v310_v12 = vmul.f32 %v203_v31, %v203_v31  ;;  %v347_v13 = vsel %vm226_vm1, %v308_v0, 0.0 }
  0x34   : > { %v239_v23 = vadd.f32 %v238_v18, %v237_v20  ;;  %v340_v62 = vadd.f32 %v339_v53, %v338_v56  ;;  %v262_v17 = vsel %vm226_vm1, %v211_v14, 0.0  ;;  %v311_v18 = vmul.f32 %v204_v33, %v204_v33  ;;  %v212_v20 = vld [vmem:[%s736_s19 + $0x98] sm:$0xff]  ;;  %v218_v56 = vld [vmem:[%s736_s19 + $0xc8] sm:$0xff] }
  0x35   : > { %v349_v19 = vsel %vm226_vm1, %v309_v6, 0.0  ;;  %v351_v25 = vsel %vm226_vm1, %v310_v12, 0.0  ;;  %v313_v30 = vmul.f32 %v206_v48, %v206_v48  ;;  %v270_v41 = vsel %vm226_vm1, %v215_v38, 0.0 }
  0x36   : > { %v241_v26 = vadd.f32 %v240_v21, %v239_v23  ;;  %v342_v4 = vadd.f32 %v341_v59, %v340_v62  ;;  %v264_v23 = vsel %vm226_vm1, %v212_v20, 0.0  ;;  %v353_v31 = vsel %vm226_vm1, %v311_v18, 0.0  ;;  %v219_v62 = vld [vmem:[%s736_s19 + $0xd0] sm:$0xff] }
  0x37   : > { %v272_v47 = vsel %vm226_vm1, %v216_v44, 0.0  ;;  %v316_v48 = vmul.f32 %v209_v2, %v209_v2  ;;  %v274_v53 = vsel %vm226_vm1, %v217_v50, 0.0  ;;  %v276_v59 = vsel %vm226_vm1, %v218_v56, 0.0 }
  0x38   : > { %v243_v32 = vadd.f32 %v242_v24, %v241_v26  ;;  %v344_v10 = vadd.f32 %v343_v1, %v342_v4  ;;  %v312_v24 = vmul.f32 %v205_v42, %v205_v42  ;;  %v213_v26 = vld [vmem:[%s736_s19 + $0xa0] sm:$0xff]  ;;  %v315_v42 = vmul.f32 %v208_v60, %v208_v60  ;;  %v220_v4 = vld [vmem:[%s736_s19 + $0xd8] sm:$0xff] }
  0x39   : > { %v266_v29 = vsel %vm226_vm1, %v213_v26, 0.0  ;;  %v318_v60 = vmul.f32 %v211_v14, %v211_v14  ;;  %v278_v1 = vsel %vm226_vm1, %v219_v62, 0.0  ;;  %v319_v2 = vmul.f32 %v212_v20, %v212_v20 }
  0x3a   : > { %v245_v36 = vadd.f32 %v244_v27, %v243_v32  ;;  %v346_v16 = vadd.f32 %v345_v7, %v344_v10  ;;  %v214_v32 = vld [vmem:[%s736_s19 + $0xa8] sm:$0xff]  ;;  %v280_v7 = vsel %vm226_vm1, %v220_v4, 0.0  ;;  %v221_v10 = vld [vmem:[%s736_s19 + $0xe0] sm:$0xff]  ;;  %v322_v20 = vmul.f32 %v215_v38, %v215_v38 }
  0x3b   : > { %v268_v35 = vsel %vm226_vm1, %v214_v32, 0.0  ;;  %v321_v14 = vmul.f32 %v214_v32, %v214_v32  ;;  %v324_v32 = vmul.f32 %v217_v50, %v217_v50 }
  0x3c   : > { %v247_v43 = vadd.f32 %v246_v34, %v245_v36  ;;  %v348_v22 = vadd.f32 %v347_v13, %v346_v16  ;;  %v314_v36 = vmul.f32 %v207_v54, %v207_v54  ;;  %v317_v54 = vmul.f32 %v210_v8, %v210_v8  ;;  %v222_v16 = vld [vmem:[%s736_s19 + $0xe8] sm:$0xff] }
  0x3d   : > { %v320_v8 = vmul.f32 %v213_v26, %v213_v26  ;;  %v282_v13 = vsel %vm226_vm1, %v221_v10, 0.0  ;;  %v323_v26 = vmul.f32 %v216_v44, %v216_v44  ;;  %v327_v44 = vmul.f32 %v220_v4, %v220_v4 }
  0x3e   : > { %v249_v49 = vadd.f32 %v248_v37, %v247_v43  ;;  %v350_v28 = vadd.f32 %v349_v19, %v348_v22  ;;  %v355_v37 = vsel %vm226_vm1, %v312_v24, 0.0  ;;  %v357_v43 = vsel %vm226_vm1, %v313_v30, 0.0  ;;  %v223_v22 = vld [vmem:[%s736_s19 + $0xf0] sm:$0xff] }
  0x3f   : > { %v284_v19 = vsel %vm226_vm1, %v222_v16, 0.0 }
  0x40   : > { %v251_v55 = vadd.f32 %v250_v45, %v249_v49  ;;  %v352_v34 = vadd.f32 %v351_v25, %v350_v28  ;;  %v359_v49 = vsel %vm226_vm1, %v314_v36, 0.0  ;;  %v286_v25 = vsel %vm226_vm1, %v223_v22, 0.0  ;;  %v224_v28 = vld [vmem:[%s736_s19 + $0xf8] sm:$0xff] }
  0x41   : > { %v325_v36 = vmul.f32 %v218_v56, %v218_v56  ;;  %v330_v56 = vmul.f32 %v223_v22, %v223_v22 }
  0x42   : > { %v253_v61 = vadd.f32 %v252_v51, %v251_v55  ;;  %v354_v40 = vadd.f32 %v353_v31, %v352_v34  ;;  %v361_v55 = vsel %vm226_vm1, %v315_v42, 0.0  ;;  %v288_v31 = vsel %vm226_vm1, %v224_v28, 0.0 }
  0x44   : > { %v255_v3 = vadd.f32 %v254_v57, %v253_v61  ;;  %v356_v46 = vadd.f32 %v355_v37, %v354_v40  ;;  %v363_v61 = vsel %vm226_vm1, %v316_v48, 0.0  ;;  %v377_v37 = vsel %vm226_vm1, %v323_v26, 0.0 }
  0x45   : > { %v326_v40 = vmul.f32 %v219_v62, %v219_v62  ;;  %v328_v48 = vmul.f32 %v221_v10, %v221_v10 }
  0x46   : > { %v257_v9 = vadd.f32 %v256_v63, %v255_v3  ;;  %v358_v52 = vadd.f32 %v357_v43, %v356_v46  ;;  %v365_v3 = vsel %vm226_vm1, %v317_v54, 0.0 }
  0x48   : > { %v259_v15 = vadd.f32 %v258_v5, %v257_v9  ;;  %v360_v58 = vadd.f32 %v359_v49, %v358_v52  ;;  %v367_v9 = vsel %vm226_vm1, %v318_v60, 0.0  ;;  %v383_v49 = vsel %vm226_vm1, %v326_v40, 0.0  ;;  %v225_v60 = vld [vmem:[%s747_s24] sm:$0x1] }
  0x49   : > { %v329_v52 = vmul.f32 %v222_v16, %v222_v16 }
  0x4a   : > { %v261_v21 = vadd.f32 %v260_v11, %v259_v15  ;;  %v362_v0 = vadd.f32 %v361_v55, %v360_v58  ;;  %v369_v15 = vsel %vm226_vm1, %v319_v2, 0.0 }
  0x4b   : > { %v389_v62 = vsel %vm226_vm1, %v329_v52, 0.0 }
  0x4c   : > { %v263_v27 = vadd.f32 %v262_v17, %v261_v21  ;;  %v364_v6 = vadd.f32 %v363_v61, %v362_v0  ;;  %v371_v21 = vsel %vm226_vm1, %v320_v8, 0.0  ;;  %v331_v61 = vmul.f32 %v224_v28, %v224_v28 }
  0x4e   : > { %v265_v33 = vadd.f32 %v264_v23, %v263_v27  ;;  %v366_v12 = vadd.f32 %v365_v3, %v364_v6  ;;  %v373_v27 = vsel %vm226_vm1, %v321_v14, 0.0  ;;  %v393_v4 = vsel %vm226_vm1, %v331_v61, 0.0 }
  0x50   : > { %v267_v39 = vadd.f32 %v266_v29, %v265_v33  ;;  %v368_v18 = vadd.f32 %v367_v9, %v366_v12  ;;  %v375_v33 = vsel %vm226_vm1, %v322_v20, 0.0  ;;  %v299_v12 = vld [vmem:[%s752_s20] sm:$0x1] }
  0x52   : > { %v269_v45 = vadd.f32 %v268_v35, %v267_v39  ;;  %v370_v24 = vadd.f32 %v369_v15, %v368_v18 }
  0x54   : > { %v271_v51 = vadd.f32 %v270_v41, %v269_v45  ;;  %v372_v30 = vadd.f32 %v371_v21, %v370_v24  ;;  %v379_v41 = vsel %vm226_vm1, %v324_v32, 0.0  ;;  %v381_v45 = vsel %vm226_vm1, %v325_v36, 0.0 }
  0x56   : > { %v273_v57 = vadd.f32 %v272_v47, %v271_v51  ;;  %v374_v35 = vadd.f32 %v373_v27, %v372_v30 }
  0x58   : > { %v275_v63 = vadd.f32 %v274_v53, %v273_v57  ;;  %v376_v39 = vadd.f32 %v375_v33, %v374_v35  ;;  %v385_v53 = vsel %vm226_vm1, %v327_v44, 0.0  ;;  %v387_v57 = vsel %vm226_vm1, %v328_v48, 0.0 }
  0x5a   : > { %v277_v5 = vadd.f32 %v276_v59, %v275_v63  ;;  %v378_v43 = vadd.f32 %v377_v37, %v376_v39 }
  0x5c   : > { %v279_v11 = vadd.f32 %v278_v1, %v277_v5  ;;  %v380_v47 = vadd.f32 %v379_v41, %v378_v43  ;;  %v391_v1 = vsel %vm226_vm1, %v330_v56, 0.0 }
  0x5e   : > { %v281_v17 = vadd.f32 %v280_v7, %v279_v11  ;;  %v382_v51 = vadd.f32 %v381_v45, %v380_v47 }
  0x60   : > { %v283_v23 = vadd.f32 %v282_v13, %v281_v17  ;;  %v384_v55 = vadd.f32 %v383_v49, %v382_v51 }
  0x62   : > { %v285_v29 = vadd.f32 %v284_v19, %v283_v23  ;;  %v386_v59 = vadd.f32 %v385_v53, %v384_v55 }
  0x64   : > { %v287_v34 = vadd.f32 %v286_v25, %v285_v29  ;;  %v388_v0 = vadd.f32 %v387_v57, %v386_v59 }
  0x66   : > { %v289_v38 = vadd.f32 %v288_v31, %v287_v34  ;;  %v390_v3 = vadd.f32 %v389_v62, %v388_v0 }
  0x68   : > { %v290_v42 = vrot.slane %v289_v38, 4  ;;  %v392_v5 = vadd.f32 %v391_v1, %v390_v3 }
  0x6a   : > { %v291_v46 = vadd.f32 %v290_v42, %v289_v38  ;;  %v394_v6 = vadd.f32 %v393_v4, %v392_v5 }
  0x6c   : > { %v292_v50 = vrot.slane %v291_v46, 2  ;;  %v395_v7 = vrot.slane %v394_v6, 4 }
  0x6e   : > { %v293_v54 = vadd.f32 %v292_v50, %v291_v46  ;;  %v396_v8 = vadd.f32 %v395_v7, %v394_v6 }
  0x70   : > { %v294_v58 = vrot.slane %v293_v54, 1  ;;  %v397_v9 = vrot.slane %v396_v8, 2 }
  0x72   : > { %v295_v63 = vadd.f32 %v294_v58, %v293_v54  ;;  %v398_v10 = vadd.f32 %v397_v9, %v396_v8 }
  0x74   : > { %v296_v2 = vadd.f32 %v295_v63, %v225_v60  ;;  %v399_v11 = vrot.slane %v398_v10, 1 }
  0x76   : > { %298 = vst.msk [vmem:[%s747_s24] sm:$0x1] %vm190_vm0, %v296_v2  ;;  %v400_v13 = vadd.f32 %v399_v11, %v398_v10 }
  0x78   : > { %v401_v14 = vadd.f32 %v400_v13, %v299_v12 }
  0x7a   : > { %402 = vst.msk [vmem:[%s752_s20] sm:$0x1] %vm190_vm0, %v401_v14 }
  0x7b PF: > { %s16_s14 = sadd.s32 1, %s646_s14   ;;  %s884_s9 = smov %s630_s10 }
  0x7c   : > { %p13_p7 = scmp.ge.s32.totalorder %s16_s14, 4   ;;  %s885_s10 = smov %s634_s11 }
  0x7d   : > { %s886_s11 = smov %s716_s21  ;;  %s887_s12 = smov %s642_s13 }
  0x7e   : > { %s888_s13 = smov %s890_s16  ;;  %15 = sbr.rel (!%p13_p7) target bundleno = 4 (0x4), region = 80 }
  0x83   :  { %432 = vsyncpa [#allocation3], 1 }
  0x84   :  { %434 = vsyncpa [#allocation3 + $0x1], 1 }

// kernel: encoder_block_forward.15
= control target key start
LH: loop header
LB: loop body
LE: loop exit
PB: predicated region body
PF: predicated region fallthrough
CT: control target
= control target key end

     0   :  { %8 = vsyncpa [#allocation3], 0  ;;  %s1654_s0 = inlined_call_operand.hbm [shape: f32[2,256,64], index: 0, kind: input, shape index: {}]   ;;  %s1655_s1 = inlined_call_operand.vmem [shape: f32[2,1,64], index: 1, kind: input, shape index: {}]   ;;  %s1656_s2 = inlined_call_operand.vmem [shape: f32[2,1,64], index: 2, kind: input, shape index: {}]   ;;  %s1657_s3 = inlined_call_operand.vmem [shape: bf16[2,256,64], index: 3, kind: output, shape index: {}]  }
   0x1   :  { %10 = vsyncpa [#allocation3 + $0x1], 0  ;;  %s1224_s12 = smov 0   ;;  %s1226_s13 = smov 0  }
   0x2   :  { %s1228_s14 = smov 0   ;;  %s1230_s15 = smov 0  }
   0x3   :  { %s1232_s16 = smov 0   ;;  %s1234_s17 = smov 0  }
   0x4 LB: > { %s855_s18 = sadd.s32 4294967295, %s1199_s17   ;;  %s28_s19 = sadd.s32 1, %s1195_s16  ;;  %s1199_s17 = sphi %s1234_s17, %s16_s17   ;;  %s1195_s16 = sphi %s1232_s16, %s1665_s16   ;;  %s1191_s15 = sphi %s1230_s15, %s1664_s15   ;;  %s1187_s14 = sphi %s1228_s14, %s1663_s14   ;;  %s1183_s13 = sphi %s1226_s13, %s1662_s13   ;;  %s1179_s12 = sphi %s1224_s12, %s1661_s12  }
   0x5   : > { %p30_p0 = scmp.ge.s32.totalorder %s28_s19, 2  ;;  %s37_s20 = sadd.s32 1, %s1187_s14 }
   0x6   : > { %p44_p1 = scmp.ne.s32.totalorder %s1187_s14, %s1183_s13  ;;  %p45_p2 = scmp.eq.s32.totalorder %s1199_s17, 0 }
   0x7   : > { %s1667_s19 = smov (%p30_p0, %s28_s19), 0  ;;  %p50_p4 = scmp.ne.s32.totalorder %s1183_s13, %s1179_s12 }
   0x8   : > { %p1260_p3 = por %p45_p2, %p44_p1  ;;  %s32_s22 = ssub.s32 %s1195_s16, %s1667_s19 }
   0x9   : > { %p51_p5 = scmp.eq.s32.totalorder %s855_s18, 0  ;;  %p35_p6 = scmp.eq.s32.totalorder %s32_s22, 0 }
   0xa   : > { %p942_p8 = scmp.lt.s32.totalorder %s1199_s17, 2  ;;  %s154_s25 = sand.u32 1, %s1187_s14  }
   0xb   : > { %p1267_p7 = por %p51_p5, %p50_p4  ;;  %s902_s26 = sshll.u32 %s1195_s16, 12 }
   0xc   : > { %s1273_s24 = scalar_select %p35_p6, %s1187_s14, %s37_s20  }
   0xd   : > { %s859_s27 = sshll.u32 %s154_s25, 8  ;;  %s166_s30 = scalar_lea.hbm %s1654_s0, %s902_s26 }
   0xe   : > { %s158_s4 = scalar_lea.vmem [#allocation2], %s859_s27  ;;  %p1282_p9 = pnand %p942_p8, %p1260_p3 }
   0xf   : > { %s167_s5 = sshll.u32 %s158_s4, 4  ;;  %s155_s7 = scalar_lea.sflag [#allocation3], %s154_s25  ;;  %s168_s5 = int_to_ptr.vmem [resolvable:$true] %s167_s5 }
  0x10   : > { %p1123_p10 = pneg %p1282_p9  ;;  %s1134_s8 = scalar_lea.vmem %s168_s5, 4096 }
  0x11   : > { %p1135_p11 = scmp.ne.s32.totalorder %s168_s5, %s1134_s8  ;;  %s1201_s9 = smov [#allocation2]  }
  0x12   : > { %s1139_s10 = sshll.u32 %s1201_s9, 4  ;;  %s1140_s10 = int_to_ptr.vmem [resolvable:$false] %s1139_s10 }
  0x13   : > { %p1137_p12 = pnand %p1135_p11, %p1123_p10  ;;  %s1141_s11 = scalar_lea.vmem %s1140_s10, 8192 }
  0x14   : > { %p1142_p0 = scmp.lt.s32.totalorder %s168_s5, %s1140_s10  ;;  %p1143_p1 = scmp.lt.s32.totalorder %s1141_s11, %s1134_s8 }
  0x15   : > { %p1138_p13 = pneg %p1137_p12 }
  0x16   : > { %p1144_p2 = por %p1143_p1, %p1142_p0 }
  0x18   : > { %p1145_p3 = pnand %p1144_p2, %p1138_p13 }
  0x1a   : > { %1148 = shalt.err (!%p1145_p3)
}
  0x1b   : > { %s1202_s12 = smov 128   ;;  %s1203_s18 = smov 8  }
  0x1c   : > { %941 = dma.hbm_to_vmem [thread:$0]  (!%p1282_p9), %s166_s30, 4096, %s168_s5, %s155_s7, %s1202_s12, %s1202_s12, %s1203_s18  }
  0x1d   : > { %p862_p4 = scmp.ge.s32.totalorder %s1199_s17, 1  ;;  %p187_p5 = scmp.lt.s32.totalorder %s1199_s17, 3 }
  0x1f   : > { %p188_p6 = pnand %p862_p4, %p187_p5 }
  0x20   : > { %s193_s20 = sand.u32 (!%p188_p6), 1, %s1183_s13  }
  0x21   : > { %191 = sbr.rel (%p188_p6) target bundleno = 149 (0x95), region = 32  ;;  %s863_s21 = sshll.u32 (!%p188_p6), %s193_s20, 8 }
  0x22   : > { %s194_s22 = scalar_lea.sflag (!%p188_p6), [#allocation3], %s193_s20  ;;  %s1293_s25 = scalar_lea.vmem (!%p188_p6), [#allocation2], %s863_s21 }
  0x26   : > { %1174 = dma.done.wait (%p1267_p7), %s194_s22, 4096  }
  0x27   : > { %1176 = vsyncadd (%p1267_p7), %s194_s22, 4294963200  ;;  %p231_p8 = scmp.lt.s32.totalorder %s1191_s15, 1  ;;  %v247_v0 = vld [vmem:[%s1293_s25] sm:$0xff]  ;;  %v248_v4 = vld [vmem:[%s1293_s25 + $0x8] sm:$0xff]  ;;  %vm709_vm0 = vcmask 519168  }
  0x28   : > { %v249_v5 = vld [vmem:[%s1293_s25 + $0x10] sm:$0xff]  ;;  %v250_v6 = vld [vmem:[%s1293_s25 + $0x18] sm:$0xff]  ;;  %v251_v10 = vld [vmem:[%s1293_s25 + $0x20] sm:$0xff] }
  0x29   : > { %s1669_s15 = smov (!%p231_p8, %s1191_s15), 1  ;;  %v252_v11 = vld [vmem:[%s1293_s25 + $0x28] sm:$0xff]  ;;  %v253_v12 = vld [vmem:[%s1293_s25 + $0x30] sm:$0xff]  ;;  %v254_v17 = vld [vmem:[%s1293_s25 + $0x38] sm:$0xff] }
  0x2a   : > { %s233_s28 = scalar_lea.vmem %s1655_s1, %s1669_s15  ;;  %s236_s30 = scalar_lea.vmem %s1656_s2, %s1669_s15  ;;  %v255_v26 = vld [vmem:[%s1293_s25 + $0x40] sm:$0xff]  ;;  %v256_v31 = vld [vmem:[%s1293_s25 + $0x48] sm:$0xff]  ;;  %v257_v32 = vld [vmem:[%s1293_s25 + $0x50] sm:$0xff] }
  0x2b   : > { %v1312_v1 = vld [vmem:[%s233_s28] ss:$0 sm:$0xff]  ;;  %v258_v33 = vld [vmem:[%s1293_s25 + $0x58] sm:$0xff]  ;;  %v260_v52 = vld [vmem:[%s1293_s25 + $0x68] sm:$0xff]  ;;  %s903_s4 = sshll.u32 %s1669_s15, 7 }
  0x2c   : > { %v1314_v2 = vld [vmem:[%s236_s30] ss:$0 sm:$0xff]  ;;  %v286_v3 = vmul.f32 %v1312_v1, %v247_v0  ;;  %v287_v7 = vmul.f32 %v1312_v1, %v248_v4  ;;  %v288_v8 = vmul.f32 %v1312_v1, %v249_v5  ;;  %v289_v9 = vmul.f32 %v1312_v1, %v250_v6  ;;  %v261_v59 = vld [vmem:[%s1293_s25 + $0x70] sm:$0xff]  ;;  %v262_v4 = vld [vmem:[%s1293_s25 + $0x78] sm:$0xff]  ;;  %s1504_s6 = scalar_lea.vmem %s1657_s3, %s903_s4 }
  0x2d   : > { %v290_v14 = vmul.f32 %v1312_v1, %v251_v10  ;;  %v291_v15 = vmul.f32 %v1312_v1, %v252_v11  ;;  %v292_v16 = vmul.f32 %v1312_v1, %v253_v12  ;;  %v293_v21 = vmul.f32 %v1312_v1, %v254_v17  ;;  %v259_v38 = vld [vmem:[%s1293_s25 + $0x60] sm:$0xff]  ;;  %v265_v10 = vld [vmem:[%s1293_s25 + $0x90] sm:$0xff] }
  0x2e   : > { %v1327_v13 = vadd.f32 %v1314_v2, %v286_v3  ;;  %v1334_v18 = vadd.f32 %v1314_v2, %v287_v7  ;;  %v1337_v19 = vadd.f32 %v1314_v2, %v288_v8  ;;  %v1340_v20 = vadd.f32 %v1314_v2, %v289_v9  ;;  %v263_v8 = vld [vmem:[%s1293_s25 + $0x80] sm:$0xff]  ;;  %v264_v9 = vld [vmem:[%s1293_s25 + $0x88] sm:$0xff] }
  0x2f   : > { %v1345_v23 = vadd.f32 %v1314_v2, %v290_v14  ;;  %v1348_v24 = vadd.f32 %v1314_v2, %v291_v15  ;;  %v1351_v25 = vadd.f32 %v1314_v2, %v292_v16  ;;  %v1358_v30 = vadd.f32 %v1314_v2, %v293_v21 }
  0x30   : > { %v357_v22 = vsub.f32 0.0, %v1327_v13  ;;  %v358_v27 = vsub.f32 0.0, %v1334_v18  ;;  %v359_v28 = vsub.f32 0.0, %v1337_v19  ;;  %v360_v29 = vsub.f32 0.0, %v1340_v20 }
  0x31   : > { %v361_v35 = vsub.f32 0.0, %v1345_v23  ;;  %v362_v36 = vsub.f32 0.0, %v1348_v24  ;;  %v363_v37 = vsub.f32 0.0, %v1351_v25  ;;  %v294_v42 = vmul.f32 %v1312_v1, %v255_v26 }
  0x32   : > { %v389_v34 = vmul.f32 1.442695, %v357_v22  ;;  %v391_v39 = vmul.f32 1.442695, %v358_v27  ;;  %v393_v40 = vmul.f32 1.442695, %v359_v28  ;;  %v295_v48 = vmul.f32 %v1312_v1, %v256_v31 }
  0x33   : > { %v395_v41 = vmul.f32 1.442695, %v360_v29  ;;  %v397_v43 = vmul.f32 1.442695, %v361_v35  ;;  %v399_v44 = vmul.f32 1.442695, %v362_v36  ;;  %v1370_v47 = vadd.f32 %v1314_v2, %v294_v42 }
  0x34   : > { %993 = vpow2.f32 %v389_v34  ;;  %v401_v45 = vmul.f32 1.442695, %v363_v37  ;;  %v364_v46 = vsub.f32 0.0, %v1358_v30  ;;  %v296_v49 = vmul.f32 %v1312_v1, %v257_v32  ;;  %v266_v27 = vld [vmem:[%s1293_s25 + $0x98] sm:$0xff] }
  0x35   : > { %995 = vpow2.f32 %v391_v39  ;;  %v297_v50 = vmul.f32 %v1312_v1, %v258_v33  ;;  %v298_v51 = vmul.f32 %v1312_v1, %v259_v38  ;;  %v365_v54 = vsub.f32 0.0, %v1370_v47 }
  0x36   : > { %997 = vpow2.f32 %v393_v40  ;;  %v403_v53 = vmul.f32 1.442695, %v364_v46  ;;  %v1379_v55 = vadd.f32 %v1314_v2, %v295_v48  ;;  %v1382_v56 = vadd.f32 %v1314_v2, %v296_v49  ;;  %v267_v49 = vld [vmem:[%s1293_s25 + $0xa0] sm:$0xff] }
  0x37   : > { %999 = vpow2.f32 %v395_v41  ;;  %v1385_v57 = vadd.f32 %v1314_v2, %v297_v50  ;;  %v1388_v58 = vadd.f32 %v1314_v2, %v298_v51  ;;  %v405_v60 = vmul.f32 1.442695, %v365_v54  ;;  %v268_v50 = vld [vmem:[%s1293_s25 + $0xa8] sm:$0xff] }
  0x38   : > { %1001 = vpow2.f32 %v397_v43  ;;  %v366_v61 = vsub.f32 0.0, %v1379_v55  ;;  %v299_v62 = vmul.f32 %v1312_v1, %v260_v52  ;;  %v367_v63 = vsub.f32 0.0, %v1382_v56 }
  0x39   : > { %1003 = vpow2.f32 %v399_v44  ;;  %v368_v0 = vsub.f32 0.0, %v1385_v57  ;;  %v369_v3 = vsub.f32 0.0, %v1388_v58  ;;  %v300_v7 = vmul.f32 %v1312_v1, %v261_v59  ;;  %v269_v59 = vld [vmem:[%s1293_s25 + $0xb0] sm:$0xff] }
  0x3a   : > { %1005 = vpow2.f32 %v401_v45  ;;  %v407_v5 = vmul.f32 1.442695, %v366_v61  ;;  %v1398_v6 = vadd.f32 %v1314_v2, %v299_v62  ;;  %v409_v11 = vmul.f32 1.442695, %v367_v63 }
  0x3b   : > { %1007 = vpow2.f32 %v403_v53  ;;  %v411_v12 = vmul.f32 1.442695, %v368_v0  ;;  %v413_v14 = vmul.f32 1.442695, %v369_v3  ;;  %v1406_v16 = vadd.f32 %v1314_v2, %v300_v7  ;;  %v270_v7 = vld [vmem:[%s1293_s25 + $0xb8] sm:$0xff] }
  0x3c   : > { %1009 = vpow2.f32 %v405_v60  ;;  %v370_v15 = vsub.f32 0.0, %v1398_v6  ;;  %v301_v17 = vmul.f32 %v1312_v1, %v262_v4  ;;  %v302_v21 = vmul.f32 %v1312_v1, %v263_v8 }
  0x3d   : > { %1011 = vpow2.f32 %v407_v5  ;;  %v303_v22 = vmul.f32 %v1312_v1, %v264_v9  ;;  %v304_v26 = vmul.f32 %v1312_v1, %v265_v10  ;;  %v371_v29 = vsub.f32 0.0, %v1406_v16 }
  0x3e   : > { %1013 = vpow2.f32 %v409_v11  ;;  %v415_v28 = vmul.f32 1.442695, %v370_v15  ;;  %v1415_v31 = vadd.f32 %v1314_v2, %v301_v17  ;;  %v1418_v32 = vadd.f32 %v1314_v2, %v302_v21 }
  0x3f   : > { %1015 = vpow2.f32 %v411_v12  ;;  %v1421_v33 = vadd.f32 %v1314_v2, %v303_v22  ;;  %v1424_v34 = vadd.f32 %v1314_v2, %v304_v26  ;;  %v417_v36 = vmul.f32 1.442695, %v371_v29 }
  0x40   : > { %1017 = vpow2.f32 %v413_v14  ;;  %v372_v37 = vsub.f32 0.0, %v1415_v31  ;;  %v305_v38 = vmul.f32 %v1312_v1, %v266_v27  ;;  %v373_v41 = vsub.f32 0.0, %v1418_v32 }
  0x41   : > { %v994_v35 = vpop.eup %993  ;;  %1019 = vpow2.f32 %v415_v28  ;;  %v374_v42 = vsub.f32 0.0, %v1421_v33  ;;  %v375_v43 = vsub.f32 0.0, %v1424_v34  ;;  %v306_v4 = vmul.f32 %v1312_v1, %v267_v49 }
  0x42   : > { %v996_v39 = vpop.eup %995  ;;  %v453_v40 = vadd.f32 1.0, %v994_v35  ;;  %1021 = vpow2.f32 %v417_v36  ;;  %v1431_v46 = vmul.f32 1.442695, %v372_v37  ;;  %v1434_v48 = vadd.f32 %v1314_v2, %v305_v38 }
  0x43   : > { %v998_v44 = vpop.eup %997  ;;  %v454_v45 = vadd.f32 1.0, %v996_v39  ;;  %v1438_v53 = vmul.f32 1.442695, %v373_v41  ;;  %v1440_v54 = vmul.f32 1.442695, %v374_v42  ;;  %v307_v5 = vmul.f32 %v1312_v1, %v268_v50  ;;  %v271_v41 = vld [vmem:[%s1293_s25 + $0xc0] sm:$0xff] }
  0x44   : > { %v1000_v51 = vpop.eup %999  ;;  %1023 = vrcp.f32 %v453_v40  ;;  %v455_v52 = vadd.f32 1.0, %v998_v44  ;;  %v1443_v62 = vmul.f32 1.442695, %v375_v43  ;;  %v376_v63 = vsub.f32 0.0, %v1434_v48  ;;  %v272_v42 = vld [vmem:[%s1293_s25 + $0xc8] sm:$0xff]  ;;  %v273_v50 = vld [vmem:[%s1293_s25 + $0xd0] sm:$0xff] }
  0x45   : > { %v1002_v60 = vpop.eup %1001  ;;  %1025 = vrcp.f32 %v454_v45  ;;  %v456_v61 = vadd.f32 1.0, %v1000_v51  ;;  %v308_v11 = vmul.f32 %v1312_v1, %v269_v59  ;;  %v1453_v15 = vadd.f32 %v1314_v2, %v306_v4 }
  0x46   : > { %v1004_v0 = vpop.eup %1003  ;;  %1027 = vrcp.f32 %v455_v52  ;;  %v457_v3 = vadd.f32 1.0, %v1002_v60  ;;  %v1449_v10 = vmul.f32 1.442695, %v376_v63  ;;  %v1456_v17 = vadd.f32 %v1314_v2, %v307_v5  ;;  %v275_v5 = vld [vmem:[%s1293_s25 + $0xe0] sm:$0xff] }
  0x47   : > { %v1006_v8 = vpop.eup %1005  ;;  %1029 = vrcp.f32 %v456_v61  ;;  %v458_v9 = vadd.f32 1.0, %v1004_v0  ;;  %v1459_v26 = vadd.f32 %v1314_v2, %v308_v11  ;;  %v309_v27 = vmul.f32 %v1312_v1, %v270_v7  ;;  %v274_v61 = vld [vmem:[%s1293_s25 + $0xd8] sm:$0xff] }
  0x48   : > { %v1008_v12 = vpop.eup %1007  ;;  %1031 = vrcp.f32 %v457_v3  ;;  %v459_v14 = vadd.f32 1.0, %v1006_v8  ;;  %v377_v35 = vsub.f32 0.0, %v1453_v15  ;;  %v378_v36 = vsub.f32 0.0, %v1456_v17 }
  0x49   : > { %v1010_v21 = vpop.eup %1009  ;;  %1033 = vrcp.f32 %v458_v9  ;;  %v460_v22 = vadd.f32 1.0, %v1008_v12  ;;  %v379_v39 = vsub.f32 0.0, %v1459_v26  ;;  %v1466_v40 = vadd.f32 %v1314_v2, %v309_v27 }
  0x4a   : > { %v1012_v28 = vpop.eup %1011  ;;  %1035 = vrcp.f32 %v459_v14  ;;  %v461_v29 = vadd.f32 1.0, %v1010_v21  ;;  %v1470_v45 = vmul.f32 1.442695, %v377_v35  ;;  %v1472_v49 = vmul.f32 1.442695, %v378_v36 }
  0x4b   : > { %v1014_v37 = vpop.eup %1013  ;;  %1037 = vrcp.f32 %v460_v22  ;;  %v462_v38 = vadd.f32 1.0, %v1012_v28  ;;  %v1475_v59 = vmul.f32 1.442695, %v379_v39  ;;  %v380_v60 = vsub.f32 0.0, %v1466_v40 }
  0x4c   : > { %v1016_v43 = vpop.eup %1015  ;;  %1039 = vrcp.f32 %v461_v29  ;;  %v463_v44 = vadd.f32 1.0, %v1014_v37  ;;  %v310_v3 = vmul.f32 %v1312_v1, %v271_v41  ;;  %v311_v4 = vmul.f32 %v1312_v1, %v272_v42 }
  0x4d   : > { %v1018_v51 = vpop.eup %1017  ;;  %1041 = vrcp.f32 %v462_v38  ;;  %v464_v52 = vadd.f32 1.0, %v1016_v43  ;;  %v1482_v8 = vmul.f32 1.442695, %v380_v60  ;;  %v312_v9 = vmul.f32 %v1312_v1, %v273_v50 }
  0x4e   : > { %v1020_v63 = vpop.eup %1019  ;;  %1043 = vrcp.f32 %v463_v44  ;;  %v465_v0 = vadd.f32 1.0, %v1018_v51  ;;  %v1487_v12 = vadd.f32 %v1314_v2, %v310_v3  ;;  %v1490_v14 = vadd.f32 %v1314_v2, %v311_v4 }
  0x4f   : > { %1045 = vrcp.f32 %v464_v52  ;;  %v466_v7 = vadd.f32 1.0, %v1020_v63  ;;  %v1022_v11 = vpop.eup %1021  ;;  %v313_v21 = vmul.f32 %v1312_v1, %v274_v61  ;;  %v1494_v28 = vadd.f32 %v1314_v2, %v312_v9 }
  0x50   : > { %1047 = vrcp.f32 %v465_v0  ;;  %v467_v27 = vadd.f32 1.0, %v1022_v11  ;;  %v314_v29 = vmul.f32 %v1312_v1, %v275_v5  ;;  %v381_v37 = vsub.f32 0.0, %v1487_v12 }
  0x51   : > { %v1024_v22 = vpop.eup %1023  ;;  %1049 = vrcp.f32 %v466_v7  ;;  %v382_v38 = vsub.f32 0.0, %v1490_v14  ;;  %v383_v42 = vsub.f32 0.0, %v1494_v28  ;;  %v276_v7 = vld [vmem:[%s1293_s25 + $0xe8] sm:$0xff] }
  0x52   : > { %v1026_v35 = vpop.eup %1025  ;;  %v549_v36 = vmul.f32 %v1024_v22, %v1327_v13  ;;  %1051 = vpow2.f32 %v1431_v46  ;;  %v1509_v13 = vadd.f32 %v1314_v2, %v313_v21  ;;  %v437_v50 = vmul.f32 1.442695, %v381_v37 }
  0x53   : > { %v1028_v39 = vpop.eup %1027  ;;  %v550_v41 = vmul.f32 %v1026_v35, %v1334_v18  ;;  %1053 = vrcp.f32 %v467_v27  ;;  %v439_v18 = vmul.f32 1.442695, %v382_v38 }
  0x54   : > { %v1030_v46 = vpop.eup %1029  ;;  %v904_v43 = vpack.c.bf16 %v549_v36, %v549_v36  ;;  %v551_v44 = vmul.f32 %v1028_v39, %v1337_v19  ;;  %1055 = vpow2.f32 %v1438_v53  ;;  %v441_v19 = vmul.f32 1.442695, %v383_v42  ;;  %v277_v42 = vld [vmem:[%s1293_s25 + $0xf0] sm:$0xff] }
  0x55   : > { %v1032_v51 = vpop.eup %1031  ;;  %v905_v52 = vpack.c.bf16 %v550_v41, %v550_v41  ;;  %v552_v60 = vmul.f32 %v1030_v46, %v1340_v20  ;;  %1057 = vpow2.f32 %v1440_v54  ;;  %v384_v54 = vsub.f32 0.0, %v1509_v13 }
  0x56   : > { %v1034_v61 = vpop.eup %1033  ;;  %710 = vst.msk [vmem:[%s1504_s6] sm:$0xf] %vm709_vm0, %v904_v43  ;;  %v906_v63 = vpack.c.bf16 %v551_v44, %v551_v44  ;;  %v553_v0 = vmul.f32 %v1032_v51, %v1345_v23  ;;  %1059 = vpow2.f32 %v1443_v62  ;;  %v1529_v62 = vadd.f32 %v1314_v2, %v314_v29 }
  0x57   : > { %v1036_v53 = vpop.eup %1035  ;;  %711 = vst.msk [vmem:[%s1504_s6 + $0x4] sm:$0xf] %vm709_vm0, %v905_v52  ;;  %v907_v3 = vpack.c.bf16 %v552_v60, %v552_v60  ;;  %v554_v20 = vmul.f32 %v1034_v61, %v1348_v24  ;;  %1061 = vpow2.f32 %v1449_v10  ;;  %v443_v11 = vmul.f32 1.442695, %v384_v54 }
  0x58   : > { %v1038_v4 = vpop.eup %1037  ;;  %712 = vst.msk [vmem:[%s1504_s6 + $0x8] sm:$0xf] %vm709_vm0, %v906_v63  ;;  %v908_v5 = vpack.c.bf16 %v553_v0, %v553_v0  ;;  %v555_v23 = vmul.f32 %v1036_v53, %v1351_v25  ;;  %1063 = vpow2.f32 %v1470_v45  ;;  %v385_v22 = vsub.f32 0.0, %v1529_v62 }
  0x59   : > { %v1040_v9 = vpop.eup %1039  ;;  %713 = vst.msk [vmem:[%s1504_s6 + $0xc] sm:$0xf] %vm709_vm0, %v907_v3  ;;  %v909_v24 = vpack.c.bf16 %v554_v20, %v554_v20  ;;  %v556_v10 = vmul.f32 %v1038_v4, %v1358_v30  ;;  %1065 = vpow2.f32 %v1472_v49  ;;  %v315_v49 = vmul.f32 %v1312_v1, %v276_v7 }
  0x5a   : > { %v1042_v21 = vpop.eup %1041  ;;  %714 = vst.msk [vmem:[%s1504_s6 + $0x10] sm:$0xf] %vm709_vm0, %v908_v5  ;;  %v910_v25 = vpack.c.bf16 %v555_v23, %v555_v23  ;;  %v557_v45 = vmul.f32 %v1040_v9, %v1370_v47  ;;  %1067 = vpow2.f32 %v1475_v59  ;;  %v445_v36 = vmul.f32 1.442695, %v385_v22 }
  0x5b   : > { %v1044_v27 = vpop.eup %1043  ;;  %715 = vst.msk [vmem:[%s1504_s6 + $0x14] sm:$0xf] %vm709_vm0, %v909_v24  ;;  %v911_v29 = vpack.c.bf16 %v556_v10, %v556_v10  ;;  %v558_v30 = vmul.f32 %v1042_v21, %v1379_v55  ;;  %1069 = vpow2.f32 %v1482_v8  ;;  %v1553_v8 = vadd.f32 %v1314_v2, %v315_v49 }
  0x5c   : > { %v1046_v35 = vpop.eup %1045  ;;  %716 = vst.msk [vmem:[%s1504_s6 + $0x18] sm:$0xf] %vm709_vm0, %v910_v25  ;;  %v912_v47 = vpack.c.bf16 %v557_v45, %v557_v45  ;;  %v559_v59 = vmul.f32 %v1044_v27, %v1382_v56  ;;  %1071 = vpow2.f32 %v437_v50  ;;  %v278_v50 = vld [vmem:[%s1293_s25 + $0xf8] sm:$0xff] }
  0x5d   : > { %v1048_v37 = vpop.eup %1047  ;;  %717 = vst.msk [vmem:[%s1504_s6 + $0x1c] sm:$0xf] %vm709_vm0, %v911_v29  ;;  %v913_v38 = vpack.c.bf16 %v558_v30, %v558_v30  ;;  %v560_v55 = vmul.f32 %v1046_v35, %v1385_v57  ;;  %1073 = vpow2.f32 %v439_v18  ;;  %v386_v44 = vsub.f32 0.0, %v1553_v8 }
  0x5e   : > { %v1050_v39 = vpop.eup %1049  ;;  %718 = vst.msk [vmem:[%s1504_s6 + $0x20] sm:$0xf] %vm709_vm0, %v912_v47  ;;  %v914_v41 = vpack.c.bf16 %v559_v59, %v559_v59  ;;  %v561_v56 = vmul.f32 %v1048_v37, %v1388_v58  ;;  %1075 = vpow2.f32 %v441_v19  ;;  %v317_v53 = vmul.f32 %v1312_v1, %v278_v50 }
  0x5f   : > { %v1052_v46 = vpop.eup %1051  ;;  %719 = vst.msk [vmem:[%s1504_s6 + $0x24] sm:$0xf] %vm709_vm0, %v913_v38  ;;  %v915_v43 = vpack.c.bf16 %v560_v55, %v560_v55  ;;  %v562_v57 = vmul.f32 %v1050_v39, %v1398_v6  ;;  %1077 = vpow2.f32 %v443_v11  ;;  %v447_v63 = vmul.f32 1.442695, %v386_v44 }
  0x60   : > { %v1054_v51 = vpop.eup %1053  ;;  %720 = vst.msk [vmem:[%s1504_s6 + $0x28] sm:$0xf] %vm709_vm0, %v914_v41  ;;  %v916_v52 = vpack.c.bf16 %v561_v56, %v561_v56  ;;  %v468_v58 = vadd.f32 1.0, %v1052_v46  ;;  %1079 = vpow2.f32 %v445_v36  ;;  %v316_v6 = vmul.f32 %v1312_v1, %v277_v42 }
  0x61   : > { %v1056_v60 = vpop.eup %1055  ;;  %721 = vst.msk [vmem:[%s1504_s6 + $0x2c] sm:$0xf] %vm709_vm0, %v915_v43  ;;  %v917_v18 = vpack.c.bf16 %v562_v57, %v562_v57  ;;  %v563_v61 = vmul.f32 %v1054_v51, %v1406_v16  ;;  %v1581_v24 = vadd.f32 %v1314_v2, %v317_v53 }
  0x62   : > { %v1058_v0 = vpop.eup %1057  ;;  %722 = vst.msk [vmem:[%s1504_s6 + $0x30] sm:$0xf] %vm709_vm0, %v916_v52  ;;  %1081 = vrcp.f32 %v468_v58  ;;  %v469_v19 = vadd.f32 1.0, %v1056_v60  ;;  %v1578_v7 = vadd.f32 %v1314_v2, %v316_v6 }
  0x63   : > { %v1060_v3 = vpop.eup %1059  ;;  %723 = vst.msk [vmem:[%s1504_s6 + $0x34] sm:$0xf] %vm709_vm0, %v917_v18  ;;  %v918_v20 = vpack.c.bf16 %v563_v61, %v563_v61  ;;  %v470_v54 = vadd.f32 1.0, %v1058_v0  ;;  %1083 = vpow2.f32 %v447_v63  ;;  %v388_v49 = vsub.f32 0.0, %v1581_v24 }
  0x64   : > { %v1062_v4 = vpop.eup %1061  ;;  %1085 = vrcp.f32 %v469_v19  ;;  %v471_v16 = vadd.f32 1.0, %v1060_v3  ;;  %v387_v27 = vsub.f32 0.0, %v1578_v7 }
  0x65   : > { %v1064_v5 = vpop.eup %1063  ;;  %724 = vst.msk [vmem:[%s1504_s6 + $0x38] sm:$0xf] %vm709_vm0, %v918_v20  ;;  %1087 = vrcp.f32 %v470_v54  ;;  %v472_v23 = vadd.f32 1.0, %v1062_v4  ;;  %v451_v39 = vmul.f32 1.442695, %v388_v49 }
  0x66   : > { %v1066_v9 = vpop.eup %1065  ;;  %1089 = vrcp.f32 %v471_v16  ;;  %v473_v1 = vadd.f32 1.0, %v1064_v5  ;;  %v449_v38 = vmul.f32 1.442695, %v387_v27 }
  0x67   : > { %v1068_v10 = vpop.eup %1067  ;;  %1091 = vrcp.f32 %v472_v23  ;;  %v474_v11 = vadd.f32 1.0, %v1066_v9 }
  0x68   : > { %v1070_v21 = vpop.eup %1069  ;;  %1093 = vrcp.f32 %v473_v1  ;;  %v475_v25 = vadd.f32 1.0, %v1068_v10 }
  0x69   : > { %v1072_v45 = vpop.eup %1071  ;;  %1095 = vrcp.f32 %v474_v11  ;;  %v476_v22 = vadd.f32 1.0, %v1070_v21 }
  0x6a   : > { %v1074_v29 = vpop.eup %1073  ;;  %1097 = vrcp.f32 %v475_v25  ;;  %v477_v30 = vadd.f32 1.0, %v1072_v45 }
  0x6b   : > { %v1076_v35 = vpop.eup %1075  ;;  %1099 = vrcp.f32 %v476_v22  ;;  %v478_v2 = vadd.f32 1.0, %v1074_v29 }
  0x6c   : > { %v1078_v47 = vpop.eup %1077  ;;  %1101 = vrcp.f32 %v477_v30  ;;  %v479_v59 = vadd.f32 1.0, %v1076_v35 }
  0x6d   : > { %v1080_v36 = vpop.eup %1079  ;;  %1103 = vrcp.f32 %v478_v2  ;;  %v480_v37 = vadd.f32 1.0, %v1078_v47 }
  0x6e   : > { %1105 = vrcp.f32 %v479_v59  ;;  %v481_v55 = vadd.f32 1.0, %v1080_v36 }
  0x6f   : > { %v1082_v41 = vpop.eup %1081  ;;  %1107 = vrcp.f32 %v480_v37 }
  0x70   : > { %v1084_v56 = vpop.eup %1083  ;;  %v564_v42 = vmul.f32 %v1082_v41, %v1415_v31  ;;  %1109 = vrcp.f32 %v481_v55 }
  0x71   : > { %v1086_v46 = vpop.eup %1085  ;;  %v482_v43 = vadd.f32 1.0, %v1084_v56  ;;  %1111 = vpow2.f32 %v449_v38 }
  0x72   : > { %v1088_v57 = vpop.eup %1087  ;;  %v919_v44 = vpack.c.bf16 %v564_v42, %v564_v42  ;;  %v565_v50 = vmul.f32 %v1086_v46, %v1418_v32  ;;  %1113 = vpow2.f32 %v451_v39 }
  0x73   : > { %v1090_v51 = vpop.eup %1089  ;;  %v566_v52 = vmul.f32 %v1088_v57, %v1421_v33  ;;  %1115 = vrcp.f32 %v482_v43 }
  0x74   : > { %v1092_v58 = vpop.eup %1091  ;;  %725 = vst.msk [vmem:[%s1504_s6 + $0x3c] sm:$0xf] %vm709_vm0, %v919_v44  ;;  %v920_v31 = vpack.c.bf16 %v565_v50, %v565_v50  ;;  %v567_v60 = vmul.f32 %v1090_v51, %v1424_v34 }
  0x75   : > { %v1094_v18 = vpop.eup %1093  ;;  %v921_v61 = vpack.c.bf16 %v566_v52, %v566_v52  ;;  %v568_v63 = vmul.f32 %v1092_v58, %v1434_v48 }
  0x76   : > { %v1096_v6 = vpop.eup %1095  ;;  %726 = vst.msk [vmem:[%s1504_s6 + $0x40] sm:$0xf] %vm709_vm0, %v920_v31  ;;  %v922_v32 = vpack.c.bf16 %v567_v60, %v567_v60  ;;  %v569_v33 = vmul.f32 %v1094_v18, %v1453_v15 }
  0x77   : > { %v1098_v0 = vpop.eup %1097  ;;  %727 = vst.msk [vmem:[%s1504_s6 + $0x44] sm:$0xf] %vm709_vm0, %v921_v61  ;;  %v923_v19 = vpack.c.bf16 %v568_v63, %v568_v63  ;;  %v570_v53 = vmul.f32 %v1096_v6, %v1456_v17 }
  0x78   : > { %v1100_v34 = vpop.eup %1099  ;;  %728 = vst.msk [vmem:[%s1504_s6 + $0x48] sm:$0xf] %vm709_vm0, %v922_v32  ;;  %v924_v3 = vpack.c.bf16 %v569_v33, %v569_v33  ;;  %v571_v48 = vmul.f32 %v1098_v0, %v1459_v26 }
  0x79   : > { %v1102_v20 = vpop.eup %1101  ;;  %729 = vst.msk [vmem:[%s1504_s6 + $0x4c] sm:$0xf] %vm709_vm0, %v923_v19  ;;  %v925_v54 = vpack.c.bf16 %v570_v53, %v570_v53  ;;  %v572_v15 = vmul.f32 %v1100_v34, %v1466_v40 }
  0x7a   : > { %v1104_v4 = vpop.eup %1103  ;;  %730 = vst.msk [vmem:[%s1504_s6 + $0x50] sm:$0xf] %vm709_vm0, %v924_v3  ;;  %v926_v16 = vpack.c.bf16 %v571_v48, %v571_v48  ;;  %v573_v17 = vmul.f32 %v1102_v20, %v1487_v12 }
  0x7b   : > { %v1106_v5 = vpop.eup %1105  ;;  %731 = vst.msk [vmem:[%s1504_s6 + $0x54] sm:$0xf] %vm709_vm0, %v925_v54  ;;  %v927_v23 = vpack.c.bf16 %v572_v15, %v572_v15  ;;  %v574_v26 = vmul.f32 %v1104_v4, %v1490_v14 }
  0x7c   : > { %v1108_v9 = vpop.eup %1107  ;;  %732 = vst.msk [vmem:[%s1504_s6 + $0x58] sm:$0xf] %vm709_vm0, %v926_v16  ;;  %v928_v1 = vpack.c.bf16 %v573_v17, %v573_v17  ;;  %v575_v40 = vmul.f32 %v1106_v5, %v1494_v28 }
  0x7d   : > { %v1110_v10 = vpop.eup %1109  ;;  %733 = vst.msk [vmem:[%s1504_s6 + $0x5c] sm:$0xf] %vm709_vm0, %v927_v23  ;;  %v929_v11 = vpack.c.bf16 %v574_v26, %v574_v26  ;;  %v576_v12 = vmul.f32 %v1108_v9, %v1509_v13 }
  0x7e   : > { %v1112_v21 = vpop.eup %1111  ;;  %734 = vst.msk [vmem:[%s1504_s6 + $0x60] sm:$0xf] %vm709_vm0, %v928_v1  ;;  %v930_v25 = vpack.c.bf16 %v575_v40, %v575_v40  ;;  %v577_v14 = vmul.f32 %v1110_v10, %v1529_v62 }
  0x7f   : > { %v1114_v45 = vpop.eup %1113  ;;  %735 = vst.msk [vmem:[%s1504_s6 + $0x64] sm:$0xf] %vm709_vm0, %v929_v11  ;;  %v931_v22 = vpack.c.bf16 %v576_v12, %v576_v12  ;;  %v483_v28 = vadd.f32 1.0, %v1112_v21 }
  0x80   : > { %v1116_v27 = vpop.eup %1115  ;;  %736 = vst.msk [vmem:[%s1504_s6 + $0x68] sm:$0xf] %vm709_vm0, %v930_v25  ;;  %v932_v29 = vpack.c.bf16 %v577_v14, %v577_v14  ;;  %v484_v13 = vadd.f32 1.0, %v1114_v45 }
  0x81   : > { %737 = vst.msk [vmem:[%s1504_s6 + $0x6c] sm:$0xf] %vm709_vm0, %v931_v22  ;;  %v578_v30 = vmul.f32 %v1116_v27, %v1553_v8  ;;  %1117 = vrcp.f32 %v483_v28 }
  0x82   : > { %738 = vst.msk [vmem:[%s1504_s6 + $0x70] sm:$0xf] %vm709_vm0, %v932_v29  ;;  %1119 = vrcp.f32 %v484_v13 }
  0x83   : > { %v933_v62 = vpack.c.bf16 %v578_v30, %v578_v30 }
  0x85   : > { %739 = vst.msk [vmem:[%s1504_s6 + $0x74] sm:$0xf] %vm709_vm0, %v933_v62 }
  0x8e   : > { %v1118_v49 = vpop.eup %1117 }
  0x8f   : > { %v1120_v35 = vpop.eup %1119  ;;  %v579_v2 = vmul.f32 %v1118_v49, %v1578_v7 }
  0x90   : > { %v580_v47 = vmul.f32 %v1120_v35, %v1581_v24 }
  0x91   : > { %v934_v59 = vpack.c.bf16 %v579_v2, %v579_v2 }
  0x92   : > { %v935_v36 = vpack.c.bf16 %v580_v47, %v580_v47 }
  0x93   : > { %740 = vst.msk [vmem:[%s1504_s6 + $0x78] sm:$0xf] %vm709_vm0, %v934_v59 }
  0x94   : > { %741 = vst.msk [vmem:[%s1504_s6 + $0x7c] sm:$0xf] %vm709_vm0, %v935_v36 }
  0x95 PF: > { %s16_s17 = sadd.s32 1, %s1199_s17   ;;  %s1661_s12 = smov %s1183_s13 }
  0x96   : > { %p13_p7 = scmp.ge.s32.totalorder %s16_s17, 4   ;;  %s1662_s13 = smov %s1187_s14 }
  0x97   : > { %s1663_s14 = smov %s1273_s24  ;;  %s1664_s15 = smov %s1195_s16 }
  0x98   : > { %s1665_s16 = smov %s1667_s19  ;;  %15 = sbr.rel (!%p13_p7) target bundleno = 4 (0x4), region = 78 }
  0x9d   :  { %772 = vsyncpa [#allocation3], 1 }
  0x9e   :  { %774 = vsyncpa [#allocation3 + $0x1], 1 }

// kernel: encoder_block_forward.17
= control target key start
LH: loop header
LB: loop body
LE: loop exit
PB: predicated region body
PF: predicated region fallthrough
CT: control target
= control target key end

     0   :  { %s599_s9 = smov 0   ;;  %s601_s10 = smov 0   ;;  %s663_s0 = inlined_call_operand.vmem [shape: bf16[2,256,128], index: 0, kind: input, shape index: {}]   ;;  %s664_s1 = inlined_call_operand.vmem [shape: f32[2,1,128], index: 1, kind: output, shape index: {0}]   ;;  %s665_s2 = inlined_call_operand.vmem [shape: f32[2,1,128], index: 2, kind: output, shape index: {1}]  }
   0x1   :  { %s603_s11 = smov 0  }
   0x2 LB: > { %s25_s12 = sadd.s32 1, %s577_s10  ;;  %p449_p0 = scmp.ge.s32.totalorder %s581_s11, 1  ;;  %s581_s11 = sphi %s603_s11, %s13_s11   ;;  %s577_s10 = sphi %s601_s10, %s667_s10   ;;  %s573_s9 = sphi %s599_s9, %s666_s9  }
   0x3   : > { %p27_p1 = scmp.ge.s32.totalorder %s25_s12, 2  ;;  %p134_p2 = scmp.lt.s32.totalorder %s581_s11, 3 }
   0x5   : > { %s669_s12 = smov (%p27_p1, %s25_s12), 0  ;;  %p135_p3 = pnand %p449_p0, %p134_p2 }
   0x6   : > { %p162_p4 = scmp.lt.s32.totalorder (!%p135_p3), %s573_s9, 1 }
   0x7   : > { %138 = sbr.rel (%p135_p3) target bundleno = 97 (0x61), region = 24 }
   0xc   : > { %s671_s9 = smov (!%p162_p4, %s573_s9), 1  ;;  %v583_v0 = vmov 0.0  }
   0xd   : > { %s454_s13 = sshll.u32 %s671_s9, 7  ;;  %s620_s16 = scalar_lea.vmem %s664_s1, %s671_s9 }
   0xe   : > { %181 = vst [vmem:[%s620_s16] sm:$0x1] %v583_v0  ;;  %s626_s19 = scalar_lea.vmem %s665_s2, %s671_s9  ;;  %s632_s22 = scalar_lea.vmem %s663_s0, %s454_s13 }
   0xf   : > { %182 = vst [vmem:[%s626_s19] sm:$0x1] %v583_v0  ;;  %v456_v1 = vld [vmem:[%s632_s22] sm:$0xff]   ;;  %v519_v2 = vld [vmem:[%s632_s22 + $0x8] sm:$0xff]   ;;  %v520_v7 = vld [vmem:[%s632_s22 + $0x10] sm:$0xff]  }
  0x10   : > { %v457_v3 = vunpack.c.l.bf16 %v456_v1  ;;  %v458_v4 = vunpack.c.h.bf16 %v456_v1  ;;  %v461_v5 = vunpack.c.l.bf16 %v519_v2  ;;  %v462_v8 = vunpack.c.h.bf16 %v519_v2  ;;  %v521_v12 = vld [vmem:[%s632_s22 + $0x18] sm:$0xff]   ;;  %v522_v20 = vld [vmem:[%s632_s22 + $0x20] sm:$0xff]   ;;  %v523_v29 = vld [vmem:[%s632_s22 + $0x28] sm:$0xff]  }
  0x11   : > { %v465_v10 = vunpack.c.l.bf16 %v520_v7  ;;  %v466_v15 = vunpack.c.h.bf16 %v520_v7  ;;  %v469_v18 = vunpack.c.l.bf16 %v521_v12  ;;  %v470_v23 = vunpack.c.h.bf16 %v521_v12  ;;  %v524_v38 = vld [vmem:[%s632_s22 + $0x30] sm:$0xff]   ;;  %v525_v47 = vld [vmem:[%s632_s22 + $0x38] sm:$0xff]   ;;  %v526_v56 = vld [vmem:[%s632_s22 + $0x40] sm:$0xff]  }
  0x12   : > { %v248_v6 = vadd.f32 %v458_v4, %v457_v3  ;;  %v288_v13 = vmul.f32 %v457_v3, %v457_v3  ;;  %v289_v14 = vmul.f32 %v458_v4, %v458_v4  ;;  %v290_v17 = vmul.f32 %v461_v5, %v461_v5  ;;  %v527_v1 = vld [vmem:[%s632_s22 + $0x48] sm:$0xff]  }
  0x13   : > { %v291_v21 = vmul.f32 %v462_v8, %v462_v8  ;;  %v292_v25 = vmul.f32 %v465_v10, %v465_v10  ;;  %v473_v27 = vunpack.c.l.bf16 %v522_v20  ;;  %v293_v30 = vmul.f32 %v466_v15, %v466_v15 }
  0x14   : > { %v249_v9 = vadd.f32 %v461_v5, %v248_v6  ;;  %v320_v22 = vadd.f32 %v289_v14, %v288_v13  ;;  %v474_v32 = vunpack.c.h.bf16 %v522_v20  ;;  %v294_v34 = vmul.f32 %v469_v18, %v469_v18 }
  0x15   : > { %v477_v36 = vunpack.c.l.bf16 %v523_v29  ;;  %v295_v39 = vmul.f32 %v470_v23, %v470_v23  ;;  %v478_v41 = vunpack.c.h.bf16 %v523_v29  ;;  %v296_v43 = vmul.f32 %v473_v27, %v473_v27 }
  0x16   : > { %v250_v11 = vadd.f32 %v462_v8, %v249_v9  ;;  %v321_v26 = vadd.f32 %v320_v22, %v290_v17  ;;  %v481_v45 = vunpack.c.l.bf16 %v524_v38  ;;  %v297_v48 = vmul.f32 %v474_v32, %v474_v32 }
  0x17   : > { %v482_v50 = vunpack.c.h.bf16 %v524_v38  ;;  %v298_v52 = vmul.f32 %v477_v36, %v477_v36  ;;  %v485_v54 = vunpack.c.l.bf16 %v525_v47  ;;  %v299_v57 = vmul.f32 %v478_v41, %v478_v41 }
  0x18   : > { %v251_v16 = vadd.f32 %v465_v10, %v250_v11  ;;  %v322_v31 = vadd.f32 %v321_v26, %v291_v21  ;;  %v486_v59 = vunpack.c.h.bf16 %v525_v47  ;;  %v300_v61 = vmul.f32 %v481_v45, %v481_v45  ;;  %v528_v10 = vld [vmem:[%s632_s22 + $0x50] sm:$0xff]  }
  0x19   : > { %v489_v63 = vunpack.c.l.bf16 %v526_v56  ;;  %v301_v2 = vmul.f32 %v482_v50, %v482_v50  ;;  %v490_v4 = vunpack.c.h.bf16 %v526_v56  ;;  %v302_v6 = vmul.f32 %v485_v54, %v485_v54 }
  0x1a   : > { %v252_v19 = vadd.f32 %v466_v15, %v251_v16  ;;  %v323_v35 = vadd.f32 %v322_v31, %v292_v25  ;;  %v493_v8 = vunpack.c.l.bf16 %v527_v1  ;;  %v303_v11 = vmul.f32 %v486_v59, %v486_v59 }
  0x1b   : > { %v494_v13 = vunpack.c.h.bf16 %v527_v1  ;;  %v304_v15 = vmul.f32 %v489_v63, %v489_v63  ;;  %v497_v17 = vunpack.c.l.bf16 %v528_v10  ;;  %v305_v20 = vmul.f32 %v490_v4, %v490_v4 }
  0x1c   : > { %v253_v24 = vadd.f32 %v469_v18, %v252_v19  ;;  %v324_v40 = vadd.f32 %v323_v35, %v293_v30  ;;  %v529_v19 = vld [vmem:[%s632_s22 + $0x58] sm:$0xff]   ;;  %v498_v22 = vunpack.c.h.bf16 %v528_v10 }
  0x1d   : > { %v501_v26 = vunpack.c.l.bf16 %v529_v19  ;;  %v307_v29 = vmul.f32 %v494_v13, %v494_v13  ;;  %v502_v31 = vunpack.c.h.bf16 %v529_v19 }
  0x1e   : > { %v254_v28 = vadd.f32 %v470_v23, %v253_v24  ;;  %v325_v44 = vadd.f32 %v324_v40, %v294_v34  ;;  %v306_v24 = vmul.f32 %v493_v8, %v493_v8  ;;  %v309_v38 = vmul.f32 %v498_v22, %v498_v22 }
  0x1f   : > { %v311_v47 = vmul.f32 %v502_v31, %v502_v31 }
  0x20   : > { %v255_v33 = vadd.f32 %v473_v27, %v254_v28  ;;  %v326_v49 = vadd.f32 %v325_v44, %v295_v39  ;;  %v530_v28 = vld [vmem:[%s632_s22 + $0x60] sm:$0xff]  }
  0x21   : > { %v505_v35 = vunpack.c.l.bf16 %v530_v28  ;;  %v506_v40 = vunpack.c.h.bf16 %v530_v28  ;;  %v287_v28 = vld [vmem:[%s626_s19] sm:$0x1] }
  0x22   : > { %v256_v37 = vadd.f32 %v474_v32, %v255_v33  ;;  %v327_v53 = vadd.f32 %v326_v49, %v296_v43  ;;  %v308_v33 = vmul.f32 %v497_v17, %v497_v17 }
  0x23   : > { %v313_v56 = vmul.f32 %v506_v40, %v506_v40 }
  0x24   : > { %v257_v42 = vadd.f32 %v477_v36, %v256_v37  ;;  %v328_v58 = vadd.f32 %v327_v53, %v297_v48  ;;  %v531_v37 = vld [vmem:[%s632_s22 + $0x68] sm:$0xff]  }
  0x25   : > { %v509_v44 = vunpack.c.l.bf16 %v531_v37  ;;  %v510_v49 = vunpack.c.h.bf16 %v531_v37 }
  0x26   : > { %v258_v46 = vadd.f32 %v478_v41, %v257_v42  ;;  %v329_v62 = vadd.f32 %v328_v58, %v298_v52  ;;  %v310_v42 = vmul.f32 %v501_v26, %v501_v26 }
  0x28   : > { %v259_v51 = vadd.f32 %v481_v45, %v258_v46  ;;  %v330_v3 = vadd.f32 %v329_v62, %v299_v57  ;;  %v532_v46 = vld [vmem:[%s632_s22 + $0x70] sm:$0xff]  }
  0x29   : > { %v513_v53 = vunpack.c.l.bf16 %v532_v46  ;;  %v514_v58 = vunpack.c.h.bf16 %v532_v46 }
  0x2a   : > { %v260_v55 = vadd.f32 %v482_v50, %v259_v51  ;;  %v331_v7 = vadd.f32 %v330_v3, %v300_v61  ;;  %v312_v51 = vmul.f32 %v505_v35, %v505_v35 }
  0x2c   : > { %v261_v60 = vadd.f32 %v485_v54, %v260_v55  ;;  %v332_v12 = vadd.f32 %v331_v7, %v301_v2  ;;  %v533_v55 = vld [vmem:[%s632_s22 + $0x78] sm:$0xff]   ;;  %v317_v7 = vmul.f32 %v514_v58, %v514_v58 }
  0x2d   : > { %v517_v62 = vunpack.c.l.bf16 %v533_v55  ;;  %v518_v2 = vunpack.c.h.bf16 %v533_v55 }
  0x2e   : > { %v262_v0 = vadd.f32 %v486_v59, %v261_v60  ;;  %v333_v16 = vadd.f32 %v332_v12, %v302_v6  ;;  %v314_v60 = vmul.f32 %v509_v44, %v509_v44 }
  0x2f   : > { %v318_v10 = vmul.f32 %v517_v62, %v517_v62 }
  0x30   : > { %v263_v5 = vadd.f32 %v489_v63, %v262_v0  ;;  %v334_v21 = vadd.f32 %v333_v16, %v303_v11  ;;  %v315_v0 = vmul.f32 %v510_v49, %v510_v49 }
  0x32   : > { %v264_v9 = vadd.f32 %v490_v4, %v263_v5  ;;  %v335_v25 = vadd.f32 %v334_v21, %v304_v15  ;;  %v316_v4 = vmul.f32 %v513_v53, %v513_v53 }
  0x34   : > { %v265_v14 = vadd.f32 %v493_v8, %v264_v9  ;;  %v336_v30 = vadd.f32 %v335_v25, %v305_v20  ;;  %v247_v20 = vld [vmem:[%s620_s16] sm:$0x1] }
  0x36   : > { %v266_v18 = vadd.f32 %v494_v13, %v265_v14  ;;  %v337_v34 = vadd.f32 %v336_v30, %v306_v24  ;;  %v319_v13 = vmul.f32 %v518_v2, %v518_v2 }
  0x38   : > { %v267_v23 = vadd.f32 %v497_v17, %v266_v18  ;;  %v338_v39 = vadd.f32 %v337_v34, %v307_v29 }
  0x3a   : > { %v268_v27 = vadd.f32 %v498_v22, %v267_v23  ;;  %v339_v43 = vadd.f32 %v338_v39, %v308_v33 }
  0x3c   : > { %v269_v32 = vadd.f32 %v501_v26, %v268_v27  ;;  %v340_v48 = vadd.f32 %v339_v43, %v309_v38 }
  0x3e   : > { %v270_v36 = vadd.f32 %v502_v31, %v269_v32  ;;  %v341_v52 = vadd.f32 %v340_v48, %v310_v42 }
  0x40   : > { %v271_v41 = vadd.f32 %v505_v35, %v270_v36  ;;  %v342_v57 = vadd.f32 %v341_v52, %v311_v47 }
  0x42   : > { %v272_v45 = vadd.f32 %v506_v40, %v271_v41  ;;  %v343_v61 = vadd.f32 %v342_v57, %v312_v51 }
  0x44   : > { %v273_v50 = vadd.f32 %v509_v44, %v272_v45  ;;  %v344_v1 = vadd.f32 %v343_v61, %v313_v56 }
  0x46   : > { %v274_v54 = vadd.f32 %v510_v49, %v273_v50  ;;  %v345_v5 = vadd.f32 %v344_v1, %v314_v60 }
  0x48   : > { %v275_v59 = vadd.f32 %v513_v53, %v274_v54  ;;  %v346_v8 = vadd.f32 %v345_v5, %v315_v0 }
  0x4a   : > { %v276_v63 = vadd.f32 %v514_v58, %v275_v59  ;;  %v347_v11 = vadd.f32 %v346_v8, %v316_v4 }
  0x4c   : > { %v277_v3 = vadd.f32 %v517_v62, %v276_v63  ;;  %v348_v14 = vadd.f32 %v347_v11, %v317_v7 }
  0x4e   : > { %v278_v6 = vadd.f32 %v518_v2, %v277_v3  ;;  %v349_v16 = vadd.f32 %v348_v14, %v318_v10 }
  0x50   : > { %v279_v9 = vrot.slane %v278_v6, 4  ;;  %v350_v18 = vadd.f32 %v349_v16, %v319_v13 }
  0x52   : > { %v280_v12 = vadd.f32 %v279_v9, %v278_v6  ;;  %v351_v21 = vrot.slane %v350_v18, 4 }
  0x54   : > { %v281_v15 = vrot.slane %v280_v12, 2  ;;  %v352_v23 = vadd.f32 %v351_v21, %v350_v18 }
  0x56   : > { %v282_v17 = vadd.f32 %v281_v15, %v280_v12  ;;  %v353_v25 = vrot.slane %v352_v23, 2 }
  0x58   : > { %v283_v19 = vrot.slane %v282_v17, 1  ;;  %v354_v26 = vadd.f32 %v353_v25, %v352_v23 }
  0x5a   : > { %v284_v22 = vadd.f32 %v283_v19, %v282_v17  ;;  %v355_v27 = vrot.slane %v354_v26, 1 }
  0x5c   : > { %v285_v24 = vadd.f32 %v284_v22, %v247_v20  ;;  %v356_v29 = vadd.f32 %v355_v27, %v354_v26 }
  0x5e   : > { %286 = vst [vmem:[%s620_s16] sm:$0x1] %v285_v24  ;;  %v357_v30 = vadd.f32 %v356_v29, %v287_v28 }
  0x60   : > { %358 = vst [vmem:[%s626_s19] sm:$0x1] %v357_v30 }
  0x61 PF: > { %s13_s11 = sadd.s32 1, %s581_s11   ;;  %s666_s9 = smov %s577_s10 }
  0x62   : > { %p10_p5 = scmp.ge.s32.totalorder %s13_s11, 4   ;;  %s667_s10 = smov %s669_s12 }
  0x64   :  { %12 = sbr.rel (!%p10_p5) target bundleno = 2 (0x2), region = 70 }

// kernel: encoder_block_forward.16
= control target key start
LH: loop header
LB: loop body
LE: loop exit
PB: predicated region body
PF: predicated region fallthrough
CT: control target
= control target key end

     0   :  { %s2469_s12 = smov 0   ;;  %s2471_s13 = smov 0   ;;  %s2862_s0 = inlined_call_operand.vmem [shape: bf16[512,768], index: 0, kind: input, shape index: {}]   ;;  %s2863_s1 = inlined_call_operand.vmem [shape: bf16[768,128], index: 1, kind: input, shape index: {}]   ;;  %s2864_s2 = inlined_call_operand.vmem [shape: f32[1,128], index: 2, kind: input, shape index: {}]   ;;  %s2865_s3 = inlined_call_operand.vmem [shape: bf16[512,128], index: 3, kind: output, shape index: {}]  }
   0x1   :  { %s2473_s14 = smov 0   ;;  %s2475_s15 = smov 0  }
   0x2   :  { %s2477_s16 = smov 0   ;;  %s2479_s17 = smov 0  }
   0x3   :  { %s2481_s18 = smov 0  }
   0x4 LB: > { %s25_s19 = sadd.s32 1, %s2438_s16  ;;  %s32_s20 = sadd.s32 1, %s2442_s17  ;;  %s2446_s18 = sphi %s2481_s18, %s13_s18   ;;  %s2442_s17 = sphi %s2479_s17, %s2871_s17   ;;  %s2438_s16 = sphi %s2477_s16, %s2870_s16   ;;  %s2434_s15 = sphi %s2475_s15, %s2869_s15   ;;  %s2430_s14 = sphi %s2473_s14, %s2868_s14   ;;  %s2426_s13 = sphi %s2471_s13, %s2867_s13   ;;  %s2422_s12 = sphi %s2469_s12, %s2866_s12  }
   0x5   : > { %p26_p0 = scmp.ge.s32.totalorder %s25_s19, 2  ;;  %p48_p1 = scmp.ne.s32.totalorder %s2426_s13, %s2422_s12 }
   0x6   : > { %p49_p2 = scmp.eq.s32.totalorder %s2446_s18, 0  ;;  %s41_s24 = sadd.s32 1, %s2426_s13 }
   0x7   : > { %s2873_s19 = smov (%p26_p0, %s25_s19), 0  ;;  %s2875_s20 = smov (!%p26_p0, %s32_s20), %s2442_s17 }
   0x8   : > { %p50_p3 = por %p49_p2, %p48_p1  ;;  %p34_p4 = scmp.ge.s32.totalorder %s2875_s20, 2 }
   0x9   : > { %s37_s21 = ssub.s32 %s2438_s16, %s2873_s19  ;;  %p1736_p6 = scmp.ge.s32.totalorder %s2446_s18, 4 }
   0xa   : > { %s2877_s20 = smov (%p34_p4, %s2875_s20), 0 }
   0xb   : > { %s36_s22 = ssub.s32 %s2442_s17, %s2877_s20  ;;  %162 = sbr.rel (%p1736_p6) target bundleno = 62 (0x3e), region = 20 }
   0xc   : > { %s38_s23 = sor.u32 %s37_s21, %s36_s22 }
   0xd   : > { %p39_p5 = scmp.eq.s32.totalorder %s38_s23, 0 }
   0xf   : > { %s2520_s25 = scalar_select %p39_p5, %s2426_s13, %s41_s24  }
  0x10   : > { %165 = sbr.rel (!%p50_p3) target bundleno = 62 (0x3e), region = 24  ;;  %s167_s26 = sand.u32 (%p50_p3), 1, %s2426_s13  }
  0x11   : > { %s171_s27 = smul.u32 (%p50_p3), 3, %s2438_s16 }
  0x12   : > { %s2244_s28 = smul.u32 (%p50_p3), 384, %s167_s26 }
  0x13   : > { %s2245_s29 = smul.u32 (%p50_p3), 192, %s2442_s17 }
  0x14   : > { %s2534_s8 = scalar_lea.vmem (%p50_p3), [#allocation3], %s2244_s28 }
  0x15   : > { %s173_s30 = sadd.s32 %s2245_s29, %s171_s27 }
  0x16   : > { %s1739_s4 = sshll.u32 %s173_s30, 2 }
  0x17   : > { %s2529_s7 = scalar_lea.vmem %s2862_s0, %s1739_s4 }
  0x18   : > { %v190_v0 = vld [vmem:[%s2529_s7] sm:$0xff]  ;;  %v192_v1 = vld [vmem:[%s2529_s7 + $0x18] sm:$0xff]  ;;  %v194_v2 = vld [vmem:[%s2529_s7 + $0x30] sm:$0xff] }
  0x19   : > { %191 = vst [vmem:[%s2534_s8] sm:$0xff] %v190_v0  ;;  %193 = vst [vmem:[%s2534_s8 + $0xc] sm:$0xff] %v192_v1  ;;  %v196_v3 = vld [vmem:[%s2529_s7 + $0x48] sm:$0xff]  ;;  %v198_v4 = vld [vmem:[%s2529_s7 + $0x60] sm:$0xff] }
  0x1a   : > { %195 = vst [vmem:[%s2534_s8 + $0x18] sm:$0xff] %v194_v2  ;;  %v200_v5 = vld [vmem:[%s2529_s7 + $0x78] sm:$0xff]  ;;  %197 = vst [vmem:[%s2534_s8 + $0x24] sm:$0xff] %v196_v3  ;;  %v202_v6 = vld [vmem:[%s2529_s7 + $0x90] sm:$0xff] }
  0x1b   : > { %199 = vst [vmem:[%s2534_s8 + $0x30] sm:$0xff] %v198_v4  ;;  %201 = vst [vmem:[%s2534_s8 + $0x3c] sm:$0xff] %v200_v5  ;;  %v204_v7 = vld [vmem:[%s2529_s7 + $0xa8] sm:$0xff]  ;;  %v206_v8 = vld [vmem:[%s2529_s7 + $0xc0] sm:$0xff] }
  0x1c   : > { %203 = vst [vmem:[%s2534_s8 + $0x48] sm:$0xff] %v202_v6  ;;  %205 = vst [vmem:[%s2534_s8 + $0x54] sm:$0xff] %v204_v7  ;;  %v208_v9 = vld [vmem:[%s2529_s7 + $0xd8] sm:$0xff]  ;;  %v210_v10 = vld [vmem:[%s2529_s7 + $0xf0] sm:$0xff] }
  0x1d   : > { %207 = vst [vmem:[%s2534_s8 + $0x60] sm:$0xff] %v206_v8  ;;  %v212_v11 = vld [vmem:[%s2529_s7 + $0x108] sm:$0xff]  ;;  %209 = vst [vmem:[%s2534_s8 + $0x6c] sm:$0xff] %v208_v9  ;;  %v214_v12 = vld [vmem:[%s2529_s7 + $0x120] sm:$0xff] }
  0x1e   : > { %211 = vst [vmem:[%s2534_s8 + $0x78] sm:$0xff] %v210_v10  ;;  %213 = vst [vmem:[%s2534_s8 + $0x84] sm:$0xff] %v212_v11  ;;  %v216_v13 = vld [vmem:[%s2529_s7 + $0x138] sm:$0xff]  ;;  %v218_v14 = vld [vmem:[%s2529_s7 + $0x150] sm:$0xff] }
  0x1f   : > { %215 = vst [vmem:[%s2534_s8 + $0x90] sm:$0xff] %v214_v12  ;;  %217 = vst [vmem:[%s2534_s8 + $0x9c] sm:$0xff] %v216_v13  ;;  %v220_v15 = vld [vmem:[%s2529_s7 + $0x168] sm:$0xff]  ;;  %v222_v16 = vld [vmem:[%s2529_s7 + $0x180] sm:$0xff] }
  0x20   : > { %219 = vst [vmem:[%s2534_s8 + $0xa8] sm:$0xff] %v218_v14  ;;  %v224_v17 = vld [vmem:[%s2529_s7 + $0x198] sm:$0xff]  ;;  %221 = vst [vmem:[%s2534_s8 + $0xb4] sm:$0xff] %v220_v15  ;;  %v226_v18 = vld [vmem:[%s2529_s7 + $0x1b0] sm:$0xff] }
  0x21   : > { %223 = vst [vmem:[%s2534_s8 + $0xc0] sm:$0xff] %v222_v16  ;;  %225 = vst [vmem:[%s2534_s8 + $0xcc] sm:$0xff] %v224_v17  ;;  %v228_v19 = vld [vmem:[%s2529_s7 + $0x1c8] sm:$0xff]  ;;  %v230_v20 = vld [vmem:[%s2529_s7 + $0x1e0] sm:$0xff] }
  0x22   : > { %227 = vst [vmem:[%s2534_s8 + $0xd8] sm:$0xff] %v226_v18  ;;  %229 = vst [vmem:[%s2534_s8 + $0xe4] sm:$0xff] %v228_v19  ;;  %v232_v21 = vld [vmem:[%s2529_s7 + $0x1f8] sm:$0xff]  ;;  %v234_v22 = vld [vmem:[%s2529_s7 + $0x210] sm:$0xff] }
  0x23   : > { %231 = vst [vmem:[%s2534_s8 + $0xf0] sm:$0xff] %v230_v20  ;;  %v236_v23 = vld [vmem:[%s2529_s7 + $0x228] sm:$0xff]  ;;  %233 = vst [vmem:[%s2534_s8 + $0xfc] sm:$0xff] %v232_v21  ;;  %v238_v24 = vld [vmem:[%s2529_s7 + $0x240] sm:$0xff] }
  0x24   : > { %235 = vst [vmem:[%s2534_s8 + $0x108] sm:$0xff] %v234_v22  ;;  %237 = vst [vmem:[%s2534_s8 + $0x114] sm:$0xff] %v236_v23  ;;  %v240_v25 = vld [vmem:[%s2529_s7 + $0x258] sm:$0xff]  ;;  %v242_v26 = vld [vmem:[%s2529_s7 + $0x270] sm:$0xff] }
  0x25   : > { %239 = vst [vmem:[%s2534_s8 + $0x120] sm:$0xff] %v238_v24  ;;  %241 = vst [vmem:[%s2534_s8 + $0x12c] sm:$0xff] %v240_v25  ;;  %v244_v27 = vld [vmem:[%s2529_s7 + $0x288] sm:$0xff]  ;;  %v246_v28 = vld [vmem:[%s2529_s7 + $0x2a0] sm:$0xff] }
  0x26   : > { %243 = vst [vmem:[%s2534_s8 + $0x138] sm:$0xff] %v242_v26  ;;  %v248_v29 = vld [vmem:[%s2529_s7 + $0x2b8] sm:$0xff]  ;;  %245 = vst [vmem:[%s2534_s8 + $0x144] sm:$0xff] %v244_v27  ;;  %v250_v30 = vld [vmem:[%s2529_s7 + $0x2d0] sm:$0xff] }
  0x27   : > { %247 = vst [vmem:[%s2534_s8 + $0x150] sm:$0xff] %v246_v28  ;;  %249 = vst [vmem:[%s2534_s8 + $0x15c] sm:$0xff] %v248_v29  ;;  %v252_v31 = vld [vmem:[%s2529_s7 + $0x2e8] sm:$0xff]  ;;  %v1742_v33 = vld [vmem:[%s2529_s7 + $0x20] sm:$0xf] }
  0x28   : > { %v1740_v32 = vld [vmem:[%s2529_s7 + $0x8] sm:$0xf]  ;;  %251 = vst [vmem:[%s2534_s8 + $0x168] sm:$0xff] %v250_v30  ;;  %253 = vst [vmem:[%s2534_s8 + $0x174] sm:$0xff] %v252_v31  ;;  %v1744_v34 = vld [vmem:[%s2529_s7 + $0x38] sm:$0xf] }
  0x29   : > { %1741 = vst [vmem:[%s2534_s8 + $0x8] sm:$0xf] %v1740_v32  ;;  %v1746_v35 = vld [vmem:[%s2529_s7 + $0x50] sm:$0xf]  ;;  %1743 = vst [vmem:[%s2534_s8 + $0x14] sm:$0xf] %v1742_v33 }
  0x2a   : > { %1745 = vst [vmem:[%s2534_s8 + $0x20] sm:$0xf] %v1744_v34  ;;  %1747 = vst [vmem:[%s2534_s8 + $0x2c] sm:$0xf] %v1746_v35  ;;  %v1748_v36 = vld [vmem:[%s2529_s7 + $0x68] sm:$0xf] }
  0x2b   : > { %v1750_v37 = vld [vmem:[%s2529_s7 + $0x80] sm:$0xf]  ;;  %v1752_v38 = vld [vmem:[%s2529_s7 + $0x98] sm:$0xf]  ;;  %1749 = vst [vmem:[%s2534_s8 + $0x38] sm:$0xf] %v1748_v36 }
  0x2c   : > { %1751 = vst [vmem:[%s2534_s8 + $0x44] sm:$0xf] %v1750_v37  ;;  %1753 = vst [vmem:[%s2534_s8 + $0x50] sm:$0xf] %v1752_v38  ;;  %v1754_v39 = vld [vmem:[%s2529_s7 + $0xb0] sm:$0xf] }
  0x2d   : > { %v1756_v40 = vld [vmem:[%s2529_s7 + $0xc8] sm:$0xf]  ;;  %v1758_v41 = vld [vmem:[%s2529_s7 + $0xe0] sm:$0xf]  ;;  %1755 = vst [vmem:[%s2534_s8 + $0x5c] sm:$0xf] %v1754_v39 }
  0x2e   : > { %1757 = vst [vmem:[%s2534_s8 + $0x68] sm:$0xf] %v1756_v40  ;;  %1759 = vst [vmem:[%s2534_s8 + $0x74] sm:$0xf] %v1758_v41  ;;  %v1760_v42 = vld [vmem:[%s2529_s7 + $0xf8] sm:$0xf] }
  0x2f   : > { %v1762_v43 = vld [vmem:[%s2529_s7 + $0x110] sm:$0xf]  ;;  %v1764_v44 = vld [vmem:[%s2529_s7 + $0x128] sm:$0xf]  ;;  %1761 = vst [vmem:[%s2534_s8 + $0x80] sm:$0xf] %v1760_v42 }
  0x30   : > { %1763 = vst [vmem:[%s2534_s8 + $0x8c] sm:$0xf] %v1762_v43  ;;  %1765 = vst [vmem:[%s2534_s8 + $0x98] sm:$0xf] %v1764_v44  ;;  %v1766_v45 = vld [vmem:[%s2529_s7 + $0x140] sm:$0xf] }
  0x31   : > { %v1768_v46 = vld [vmem:[%s2529_s7 + $0x158] sm:$0xf]  ;;  %v1770_v47 = vld [vmem:[%s2529_s7 + $0x170] sm:$0xf]  ;;  %1767 = vst [vmem:[%s2534_s8 + $0xa4] sm:$0xf] %v1766_v45 }
  0x32   : > { %1769 = vst [vmem:[%s2534_s8 + $0xb0] sm:$0xf] %v1768_v46  ;;  %1771 = vst [vmem:[%s2534_s8 + $0xbc] sm:$0xf] %v1770_v47  ;;  %v1772_v48 = vld [vmem:[%s2529_s7 + $0x188] sm:$0xf] }
  0x33   : > { %v1774_v49 = vld [vmem:[%s2529_s7 + $0x1a0] sm:$0xf]  ;;  %v1776_v50 = vld [vmem:[%s2529_s7 + $0x1b8] sm:$0xf]  ;;  %1773 = vst [vmem:[%s2534_s8 + $0xc8] sm:$0xf] %v1772_v48 }
  0x34   : > { %1775 = vst [vmem:[%s2534_s8 + $0xd4] sm:$0xf] %v1774_v49  ;;  %1777 = vst [vmem:[%s2534_s8 + $0xe0] sm:$0xf] %v1776_v50  ;;  %v1778_v51 = vld [vmem:[%s2529_s7 + $0x1d0] sm:$0xf] }
  0x35   : > { %v1780_v52 = vld [vmem:[%s2529_s7 + $0x1e8] sm:$0xf]  ;;  %v1782_v53 = vld [vmem:[%s2529_s7 + $0x200] sm:$0xf]  ;;  %1779 = vst [vmem:[%s2534_s8 + $0xec] sm:$0xf] %v1778_v51 }
  0x36   : > { %1781 = vst [vmem:[%s2534_s8 + $0xf8] sm:$0xf] %v1780_v52  ;;  %1783 = vst [vmem:[%s2534_s8 + $0x104] sm:$0xf] %v1782_v53  ;;  %v1784_v54 = vld [vmem:[%s2529_s7 + $0x218] sm:$0xf] }
  0x37   : > { %v1786_v55 = vld [vmem:[%s2529_s7 + $0x230] sm:$0xf]  ;;  %v1788_v56 = vld [vmem:[%s2529_s7 + $0x248] sm:$0xf]  ;;  %1785 = vst [vmem:[%s2534_s8 + $0x110] sm:$0xf] %v1784_v54 }
  0x38   : > { %1787 = vst [vmem:[%s2534_s8 + $0x11c] sm:$0xf] %v1786_v55  ;;  %1789 = vst [vmem:[%s2534_s8 + $0x128] sm:$0xf] %v1788_v56  ;;  %v1790_v57 = vld [vmem:[%s2529_s7 + $0x260] sm:$0xf] }
  0x39   : > { %v1792_v58 = vld [vmem:[%s2529_s7 + $0x278] sm:$0xf]  ;;  %v1794_v59 = vld [vmem:[%s2529_s7 + $0x290] sm:$0xf]  ;;  %1791 = vst [vmem:[%s2534_s8 + $0x134] sm:$0xf] %v1790_v57 }
  0x3a   : > { %1793 = vst [vmem:[%s2534_s8 + $0x140] sm:$0xf] %v1792_v58  ;;  %1795 = vst [vmem:[%s2534_s8 + $0x14c] sm:$0xf] %v1794_v59  ;;  %v1796_v60 = vld [vmem:[%s2529_s7 + $0x2a8] sm:$0xf] }
  0x3b   : > { %v1798_v61 = vld [vmem:[%s2529_s7 + $0x2c0] sm:$0xf]  ;;  %v1800_v62 = vld [vmem:[%s2529_s7 + $0x2d8] sm:$0xf]  ;;  %1797 = vst [vmem:[%s2534_s8 + $0x158] sm:$0xf] %v1796_v60 }
  0x3c   : > { %1799 = vst [vmem:[%s2534_s8 + $0x164] sm:$0xf] %v1798_v61  ;;  %1801 = vst [vmem:[%s2534_s8 + $0x170] sm:$0xf] %v1800_v62  ;;  %v1802_v63 = vld [vmem:[%s2529_s7 + $0x2f0] sm:$0xf] }
  0x3d   : > { %1803 = vst [vmem:[%s2534_s8 + $0x17c] sm:$0xf] %v1802_v63 }
  0x3e PF: > { %p1804_p7 = scmp.ge.s32.totalorder %s2446_s18, 1  ;;  %p342_p8 = scmp.lt.s32.totalorder %s2446_s18, 5 }
  0x40   : > { %p343_p9 = pnand %p1804_p7, %p342_p8 }
  0x41   : > { %s349_s9 = sand.u32 (!%p343_p9), 1, %s2422_s12   ;;  %s388_s10 = smul.u32 (!%p343_p9), 48, %s2430_s14 }
  0x42   : > { %346 = sbr.rel (%p343_p9) target bundleno = 441 (0x1b9), region = 54  ;;  %s1806_s21 = sshll.u32 (!%p343_p9), %s2434_s15, 5 }
  0x43   : > { %s2246_s11 = smul.u32 (!%p343_p9), 384, %s349_s9  ;;  %p389_p10 = scmp.lt.s32.totalorder (!%p343_p9), %s388_s10, 95 }
  0x44   : > { %p401_p11 = scmp.lt.s32.totalorder (!%p343_p9), %s1806_s21, 63  ;;  %p1808_p12 = scmp.ne.s32.totalorder (!%p343_p9), %s2430_s14, 0 }
  0x45   : > { %s2676_s12 = scalar_lea.vmem (!%p343_p9), [#allocation3], %s2246_s11 }
  0x47   : > { %s2879_s10 = smov (!%p389_p10, %s388_s10), 95  ;;  %s2881_s21 = smov (!%p401_p11, %s1806_s21), 63 }
  0x48   : > { %s1805_s22 = sshll.u32 %s2879_s10, 2  ;;  %s1807_s27 = sshll.u32 %s2881_s21, 2 }
  0x49   : > { %s2669_s26 = scalar_lea.vmem %s2863_s1, %s1805_s22  ;;  %s2674_s30 = scalar_lea.vmem %s2865_s3, %s1807_s27 }
  0x4a   : > { %413 = sbr.rel (%p1808_p12) target bundleno = 96 (0x60), region = 62 }
  0x4f   : > { %v2448_v0 = vmov 0.0  }
  0x50   : > { %414 = vst [vmem:[#allocation2 + $0xb0] sm:$0xff] %v2448_v0  ;;  %415 = vst [vmem:[#allocation2] sm:$0xff] %v2448_v0 }
  0x51   : > { %416 = vst [vmem:[#allocation2 + $0xd8] sm:$0xff] %v2448_v0  ;;  %417 = vst [vmem:[#allocation2 + $0x18] sm:$0xff] %v2448_v0 }
  0x52   : > { %418 = vst [vmem:[#allocation2 + $0x50] sm:$0xff] %v2448_v0  ;;  %419 = vst [vmem:[#allocation2 + $0x68] sm:$0xff] %v2448_v0 }
  0x53   : > { %420 = vst [vmem:[#allocation2 + $0x30] sm:$0xff] %v2448_v0  ;;  %421 = vst [vmem:[#allocation2 + $0x48] sm:$0xff] %v2448_v0 }
  0x54   : > { %422 = vst [vmem:[#allocation2 + $0x80] sm:$0xff] %v2448_v0  ;;  %423 = vst [vmem:[#allocation2 + $0x88] sm:$0xff] %v2448_v0 }
  0x55   : > { %424 = vst [vmem:[#allocation2 + $0xe8] sm:$0xff] %v2448_v0  ;;  %425 = vst [vmem:[#allocation2 + $0xb8] sm:$0xff] %v2448_v0 }
  0x56   : > { %426 = vst [vmem:[#allocation2 + $0x60] sm:$0xff] %v2448_v0  ;;  %427 = vst [vmem:[#allocation2 + $0xf0] sm:$0xff] %v2448_v0 }
  0x57   : > { %428 = vst [vmem:[#allocation2 + $0x8] sm:$0xff] %v2448_v0  ;;  %429 = vst [vmem:[#allocation2 + $0x78] sm:$0xff] %v2448_v0 }
  0x58   : > { %430 = vst [vmem:[#allocation2 + $0x38] sm:$0xff] %v2448_v0  ;;  %431 = vst [vmem:[#allocation2 + $0x58] sm:$0xff] %v2448_v0 }
  0x59   : > { %432 = vst [vmem:[#allocation2 + $0x40] sm:$0xff] %v2448_v0  ;;  %433 = vst [vmem:[#allocation2 + $0xc8] sm:$0xff] %v2448_v0 }
  0x5a   : > { %434 = vst [vmem:[#allocation2 + $0xe0] sm:$0xff] %v2448_v0  ;;  %435 = vst [vmem:[#allocation2 + $0x90] sm:$0xff] %v2448_v0 }
  0x5b   : > { %436 = vst [vmem:[#allocation2 + $0x70] sm:$0xff] %v2448_v0  ;;  %437 = vst [vmem:[#allocation2 + $0xc0] sm:$0xff] %v2448_v0 }
  0x5c   : > { %438 = vst [vmem:[#allocation2 + $0xa8] sm:$0xff] %v2448_v0  ;;  %439 = vst [vmem:[#allocation2 + $0xd0] sm:$0xff] %v2448_v0 }
  0x5d   : > { %440 = vst [vmem:[#allocation2 + $0x10] sm:$0xff] %v2448_v0  ;;  %441 = vst [vmem:[#allocation2 + $0x28] sm:$0xff] %v2448_v0 }
  0x5e   : > { %442 = vst [vmem:[#allocation2 + $0xa0] sm:$0xff] %v2448_v0  ;;  %443 = vst [vmem:[#allocation2 + $0xf8] sm:$0xff] %v2448_v0 }
  0x5f   : > { %444 = vst [vmem:[#allocation2 + $0x20] sm:$0xff] %v2448_v0  ;;  %445 = vst [vmem:[#allocation2 + $0x98] sm:$0xff] %v2448_v0 }
  0x60 PF: > { %v2304_v1 = vld [vmem:[%s2669_s26 + $0x78] sm:$0xff]   ;;  %v2306_v3 = vld [vmem:[%s2669_s26 + $0x70] sm:$0xff]   ;;  %v2308_v5 = vld [vmem:[%s2669_s26 + $0x68] sm:$0xff]   ;;  %p1881_p13 = scmp.ne.s32.totalorder %s2430_s14, 1 }
  0x61   : > { %v2305_v2 = vld [vmem:[%s2669_s26 + $0x38] sm:$0xff]   ;;  %2044 = vmatprep.subr.bf16.mxu0 %v2304_v1  ;;  %2228 = vmatprep.subr.bf16.mxu1 %v2304_v1  ;;  %v2307_v4 = vld [vmem:[%s2669_s26 + $0x30] sm:$0xff]   ;;  %v2309_v6 = vld [vmem:[%s2669_s26 + $0x28] sm:$0xff]  }
  0x62   : > { %2045 = vmatpush3.bf16.msra.mxu0 %v2305_v2  ;;  %2236 = vmatpush3.bf16.msra.mxu1 %v2305_v2  ;;  %v2310_v7 = vld [vmem:[%s2669_s26 + $0x60] sm:$0xff]   ;;  %v2312_v9 = vld [vmem:[%s2669_s26 + $0x58] sm:$0xff]   ;;  %v2314_v11 = vld [vmem:[%s2669_s26 + $0x50] sm:$0xff]  }
  0x63   : > { %2046 = vmatprep.subr.bf16.mxu0 %v2306_v3  ;;  %2229 = vmatprep.subr.bf16.mxu1 %v2306_v3  ;;  %v2311_v8 = vld [vmem:[%s2669_s26 + $0x20] sm:$0xff]   ;;  %v2313_v10 = vld [vmem:[%s2669_s26 + $0x18] sm:$0xff]   ;;  %v2315_v14 = vld [vmem:[%s2669_s26 + $0x10] sm:$0xff]  }
  0x64   : > { %v2322_v12 = vld [vmem:[%s2676_s12 + $0x4] ss:$12 sps:$4 sm:$0xff]   ;;  %v2316_v15 = vld [vmem:[%s2669_s26 + $0x48] sm:$0xff]   ;;  %v2326_v19 = vld [vmem:[%s2669_s26 + $0xb8] sm:$0xff]  }
  0x65   : > { %v2325_v13 = vld [vmem:[%s2676_s12 + $0x124] ss:$12 sps:$4 sm:$0xff]   ;;  %1022 = vmatprep.mubr.bf16.mxu0 %v2322_v12  ;;  %v2317_v16 = vld [vmem:[%s2669_s26 + $0x8] sm:$0xff]   ;;  %v2336_v29 = vld [vmem:[%s2676_s12 + $0x34] ss:$12 sps:$4 sm:$0xff]  }
  0x66   : > { %2047 = vmatpush3.bf16.msra.mxu0 %v2307_v4  ;;  %2237 = vmatpush3.bf16.msra.mxu1 %v2307_v4  ;;  %v2318_v17 = vld [vmem:[%s2669_s26 + $0x40] sm:$0xff]   ;;  %v2328_v22 = vld [vmem:[%s2676_s12 + $0x1c] ss:$12 sps:$4 sm:$0xff]   ;;  %v2327_v23 = vld [vmem:[%s2669_s26 + $0xb0] sm:$0xff]  }
  0x67   : > { %2048 = vmatprep.subr.bf16.mxu0 %v2308_v5  ;;  %2230 = vmatprep.subr.bf16.mxu1 %v2308_v5  ;;  %v2319_v18 = vld [vmem:[%s2669_s26] sm:$0xff]   ;;  %v2330_v24 = vld [vmem:[%s2676_s12 + $0x13c] ss:$12 sps:$4 sm:$0xff]   ;;  %v2343_v34 = vld [vmem:[%s2669_s26 + $0x90] sm:$0xff]  }
  0x68   : > { %1118 = vmatprep.mubr.bf16.mxu1 %v2325_v13  ;;  %v2320_v20 = vld [vmem:[%s2676_s12] ss:$12 sps:$4 sm:$0xff]   ;;  %v2332_v25 = vld [vmem:[%s2676_s12 + $0x18] ss:$12 sps:$4 sm:$0xff]   ;;  %v2340_v32 = vld [vmem:[%s2676_s12 + $0x30] ss:$12 sps:$4 sm:$0xff]  }
  0x69   : > { %v2323_v21 = vld [vmem:[%s2676_s12 + $0x120] ss:$12 sps:$4 sm:$0xff]   ;;  %v2333_v27 = vld [vmem:[%s2676_s12 + $0x138] ss:$12 sps:$4 sm:$0xff]   ;;  %v2341_v33 = vld [vmem:[%s2676_s12 + $0x150] ss:$12 sps:$4 sm:$0xff]  }
  0x6a   : > { %2049 = vmatpush3.bf16.msra.mxu0 %v2309_v6  ;;  %2238 = vmatpush3.bf16.msra.mxu1 %v2309_v6  ;;  %v2334_v26 = vld [vmem:[%s2669_s26 + $0xa8] sm:$0xff]   ;;  %v2335_v28 = vld [vmem:[%s2669_s26 + $0xa0] sm:$0xff]   ;;  %v2342_v31 = vld [vmem:[%s2669_s26 + $0x98] sm:$0xff]  }
  0x6b   : > { %2050 = vmatprep.subr.bf16.mxu0 %v2310_v7  ;;  %2231 = vmatprep.subr.bf16.mxu1 %v2310_v7  ;;  %v2338_v30 = vld [vmem:[%s2676_s12 + $0x154] ss:$12 sps:$4 sm:$0xff]   ;;  %v2344_v35 = vld [vmem:[%s2676_s12 + $0x4c] ss:$12 sps:$4 sm:$0xff]   ;;  %v2352_v40 = vld [vmem:[%s2676_s12 + $0x64] ss:$12 sps:$4 sm:$0xff]  }
  0x6c   : > { %v2346_v36 = vld [vmem:[%s2676_s12 + $0x16c] ss:$12 sps:$4 sm:$0xff]   ;;  %v2348_v38 = vld [vmem:[%s2676_s12 + $0x48] ss:$12 sps:$4 sm:$0xff]   ;;  %v2351_v41 = vld [vmem:[%s2669_s26 + $0x80] sm:$0xff]  }
  0x6d   : > { %v2350_v37 = vld [vmem:[%s2669_s26 + $0x88] sm:$0xff]   ;;  %v2359_v46 = vld [vmem:[%s2676_s12 + $0x38] ss:$12 sps:$4 sm:$0xff]   ;;  %v2361_v48 = vld [vmem:[%s2676_s12 + $0x50] ss:$12 sps:$4 sm:$0xff]  }
  0x6e   : > { %2051 = vmatpush3.bf16.msra.mxu0 %v2311_v8  ;;  %2239 = vmatpush3.bf16.msra.mxu1 %v2311_v8  ;;  %v2349_v39 = vld [vmem:[%s2676_s12 + $0x168] ss:$12 sps:$4 sm:$0xff]   ;;  %v2355_v43 = vld [vmem:[%s2676_s12 + $0x60] ss:$12 sps:$4 sm:$0xff]   ;;  %v2360_v47 = vld [vmem:[%s2676_s12 + $0x78] ss:$12 sps:$4 sm:$0xff]  }
  0x6f   : > { %2052 = vmatprep.subr.bf16.mxu0 %v2312_v9  ;;  %2232 = vmatprep.subr.bf16.mxu1 %v2312_v9  ;;  %v2354_v42 = vld [vmem:[%s2676_s12 + $0x8] ss:$12 sps:$4 sm:$0xff]   ;;  %v2356_v44 = vld [vmem:[%s2676_s12 + $0x20] ss:$12 sps:$4 sm:$0xff]   ;;  %v2365_v51 = vld [vmem:[%s2676_s12 + $0x90] ss:$12 sps:$4 sm:$0xff]  }
  0x70   : > { %v2357_v45 = vld [vmem:[%s2676_s12 + $0x7c] ss:$12 sps:$4 sm:$0xff]   ;;  %v2362_v49 = vld [vmem:[%s2676_s12 + $0x94] ss:$12 sps:$4 sm:$0xff]   ;;  %v2367_v53 = vld [vmem:[%s2676_s12 + $0xac] ss:$12 sps:$4 sm:$0xff]  }
  0x71   : > { %v2364_v50 = vld [vmem:[%s2676_s12 + $0x68] ss:$12 sps:$4 sm:$0xff]   ;;  %v2366_v52 = vld [vmem:[%s2676_s12 + $0x80] ss:$12 sps:$4 sm:$0xff]   ;;  %v2369_v54 = vld [vmem:[%s2676_s12 + $0x98] ss:$12 sps:$4 sm:$0xff]  }
  0x72   : > { %2053 = vmatpush3.bf16.msra.mxu0 %v2313_v10  ;;  %2240 = vmatpush3.bf16.msra.mxu1 %v2313_v10  ;;  %v2370_v55 = vld [vmem:[%s2676_s12 + $0xa8] ss:$12 sps:$4 sm:$0xff]   ;;  %v2371_v56 = vld [vmem:[%s2676_s12 + $0xb0] ss:$12 sps:$4 sm:$0xff]   ;;  %v2375_v59 = vld [vmem:[%s2676_s12 + $0xc0] ss:$12 sps:$4 sm:$0xff]  }
  0x73   : > { %2054 = vmatprep.subr.bf16.mxu0 %v2314_v11  ;;  %2233 = vmatprep.subr.bf16.mxu1 %v2314_v11  ;;  %v2372_v57 = vld [vmem:[%s2676_s12 + $0xc4] ss:$12 sps:$4 sm:$0xff]   ;;  %v2374_v58 = vld [vmem:[%s2676_s12 + $0xc8] ss:$12 sps:$4 sm:$0xff]   ;;  %v2376_v60 = vld [vmem:[%s2676_s12 + $0xe0] ss:$12 sps:$4 sm:$0xff]  }
  0x74   : > { %v2377_v61 = vld [vmem:[%s2676_s12 + $0xdc] ss:$12 sps:$4 sm:$0xff]   ;;  %v2379_v62 = vld [vmem:[%s2676_s12 + $0xf8] ss:$12 sps:$4 sm:$0xff]   ;;  %v2382_v1 = vld [vmem:[%s2676_s12 + $0xf4] ss:$12 sps:$4 sm:$0xff]  }
  0x75   : > { %v2380_v63 = vld [vmem:[%s2676_s12 + $0xd8] ss:$12 sps:$4 sm:$0xff]   ;;  %v2381_v0 = vld [vmem:[%s2676_s12 + $0x110] ss:$12 sps:$4 sm:$0xff]   ;;  %v2384_v2 = vld [vmem:[%s2676_s12 + $0x128] ss:$12 sps:$4 sm:$0xff]  }
  0x76   : > { %2055 = vmatpush3.bf16.msra.mxu0 %v2315_v14  ;;  %2241 = vmatpush3.bf16.msra.mxu1 %v2315_v14  ;;  %v2385_v3 = vld [vmem:[%s2676_s12 + $0xf0] ss:$12 sps:$4 sm:$0xff]   ;;  %v2386_v4 = vld [vmem:[%s2676_s12 + $0x140] ss:$12 sps:$4 sm:$0xff]   ;;  %v2389_v6 = vld [vmem:[%s2676_s12 + $0x158] ss:$12 sps:$4 sm:$0xff]  }
  0x77   : > { %2056 = vmatprep.subr.bf16.mxu0 %v2316_v15  ;;  %2234 = vmatprep.subr.bf16.mxu1 %v2316_v15  ;;  %v2387_v5 = vld [vmem:[%s2676_s12 + $0x10c] ss:$12 sps:$4 sm:$0xff]   ;;  %v2390_v7 = vld [vmem:[%s2676_s12 + $0x108] ss:$12 sps:$4 sm:$0xff]   ;;  %v2391_v8 = vld [vmem:[%s2676_s12 + $0x170] ss:$12 sps:$4 sm:$0xff]  }
  0x7a   : > { %2057 = vmatpush3.bf16.msra.mxu0 %v2317_v16  ;;  %2242 = vmatpush3.bf16.msra.mxu1 %v2317_v16 }
  0x7b   : > { %2058 = vmatprep.subr.bf16.mxu0 %v2318_v17  ;;  %2235 = vmatprep.subr.bf16.mxu1 %v2318_v17 }
  0x7e   : > { %2059 = vmatpush3.bf16.msra.mxu0 %v2319_v18  ;;  %2243 = vmatpush3.bf16.msra.mxu1 %v2319_v18 }
  0x7f   : > { %2180 = vmatprep.subr.bf16.mxu1 %v2326_v19 }
  0x81   : > { %1023 = vmatmul.mubr.bf16.vlgmr.msra.gmra.mxu0 %v2320_v20  ;;  %1119 = vmatmul.mubr.bf16.vlgmr.msra.gmra.mxu1 %v2323_v21 }
  0x82   : > { %2181 = vmatpush3.bf16.msra.mxu1 %v2326_v19  ;;  %1030 = vmatprep.mubr.bf16.mxu0 %v2328_v22 }
  0x83   : > { %2182 = vmatprep.subr.bf16.mxu1 %v2327_v23  ;;  %1126 = vmatprep.mubr.bf16.mxu1 %v2330_v24 }
  0x86   : > { %2183 = vmatpush3.bf16.msra.mxu1 %v2327_v23 }
  0x87   : > { %2184 = vmatprep.subr.bf16.mxu1 %v2334_v26 }
  0x89   : > { %1031 = vmatmul.mubr.bf16.gmra.mxu0 %v2332_v25  ;;  %1127 = vmatmul.mubr.bf16.gmra.mxu1 %v2333_v27 }
  0x8a   : > { %2185 = vmatpush3.bf16.msra.mxu1 %v2334_v26  ;;  %1038 = vmatprep.mubr.bf16.mxu0 %v2336_v29 }
  0x8b   : > { %2186 = vmatprep.subr.bf16.mxu1 %v2335_v28  ;;  %1134 = vmatprep.mubr.bf16.mxu1 %v2338_v30 }
  0x8e   : > { %2187 = vmatpush3.bf16.msra.mxu1 %v2335_v28 }
  0x8f   : > { %2188 = vmatprep.subr.bf16.mxu1 %v2342_v31 }
  0x91   : > { %1039 = vmatmul.mubr.bf16.gmra.mxu0 %v2340_v32  ;;  %1135 = vmatmul.mubr.bf16.gmra.mxu1 %v2341_v33 }
  0x92   : > { %2189 = vmatpush3.bf16.msra.mxu1 %v2342_v31  ;;  %1046 = vmatprep.mubr.bf16.mxu0 %v2344_v35 }
  0x93   : > { %2190 = vmatprep.subr.bf16.mxu1 %v2343_v34  ;;  %1142 = vmatprep.mubr.bf16.mxu1 %v2346_v36 }
  0x96   : > { %2191 = vmatpush3.bf16.msra.mxu1 %v2343_v34 }
  0x97   : > { %2192 = vmatprep.subr.bf16.mxu1 %v2350_v37 }
  0x99   : > { %1047 = vmatmul.mubr.bf16.gmra.mxu0 %v2348_v38  ;;  %1143 = vmatmul.mubr.bf16.gmra.mxu1 %v2349_v39 }
  0x9a   : > { %2193 = vmatpush3.bf16.msra.mxu1 %v2350_v37  ;;  %1054 = vmatprep.mubr.bf16.mxu0 %v2352_v40 }
  0x9b   : > { %2194 = vmatprep.subr.bf16.mxu1 %v2351_v41  ;;  %2196 = vmatprep.mubr.bf16.mxu1 %v2354_v42 }
  0x9e   : > { %2195 = vmatpush3.bf16.msra.mxu1 %v2351_v41 }
  0xa1   : > { %1055 = vmatmul.mubr.bf16.gmra.mxu0 %v2355_v43  ;;  %2197 = vmatmul.mubr.bf16.vlgmr.msra.gmra.mxu1 %v2356_v44 }
  0xa2   : > { %1062 = vmatprep.mubr.bf16.mxu0 %v2357_v45  ;;  %2200 = vmatprep.mubr.bf16.mxu1 %v2359_v46 }
  0xa9   : > { %1063 = vmatmul.mubr.bf16.gmra.mxu0 %v2360_v47  ;;  %2201 = vmatmul.mubr.bf16.gmra.mxu1 %v2361_v48 }
  0xaa   : > { %1070 = vmatprep.mubr.bf16.mxu0 %v2362_v49  ;;  %2204 = vmatprep.mubr.bf16.mxu1 %v2364_v50  ;;  %v448_v49 = vld [vmem:[#allocation2 + $0xd8] sm:$0xff] }
  0xb1   : > { %1071 = vmatmul.mubr.bf16.gmra.mxu0 %v2365_v51  ;;  %2205 = vmatmul.mubr.bf16.gmra.mxu1 %v2366_v52 }
  0xb2   : > { %1078 = vmatprep.mubr.bf16.mxu0 %v2367_v53  ;;  %2208 = vmatprep.mubr.bf16.mxu1 %v2369_v54  ;;  %v446_v54 = vld [vmem:[#allocation2 + $0xb0] sm:$0xff] }
  0xb9   : > { %1079 = vmatmul.mubr.bf16.gmra.mxu0 %v2370_v55  ;;  %2209 = vmatmul.mubr.bf16.gmra.mxu1 %v2371_v56 }
  0xba   : > { %1086 = vmatprep.mubr.bf16.mxu0 %v2372_v57  ;;  %2212 = vmatprep.mubr.bf16.mxu1 %v2374_v58 }
  0xc1   : > { %1087 = vmatmul.mubr.bf16.gmra.mxu0 %v2375_v59  ;;  %2213 = vmatmul.mubr.bf16.gmra.mxu1 %v2376_v60  ;;  %v449_v60 = vld [vmem:[#allocation2 + $0x18] sm:$0xff] }
  0xc2   : > { %1094 = vmatprep.mubr.bf16.mxu0 %v2377_v61  ;;  %2216 = vmatprep.mubr.bf16.mxu1 %v2379_v62 }
  0xc9   : > { %1095 = vmatmul.mubr.bf16.gmra.mxu0 %v2380_v63  ;;  %2217 = vmatmul.mubr.bf16.gmra.mxu1 %v2381_v0 }
  0xca   : > { %1102 = vmatprep.mubr.bf16.mxu0 %v2382_v1  ;;  %2220 = vmatprep.mubr.bf16.mxu1 %v2384_v2  ;;  %v447_v2 = vld [vmem:[#allocation2] sm:$0xff] }
  0xd1   : > { %1103 = vmatmul.mubr.bf16.gmra.mxu0 %v2385_v3  ;;  %2221 = vmatmul.mubr.bf16.gmra.mxu1 %v2386_v4 }
  0xd2   : > { %1110 = vmatprep.mubr.bf16.mxu0 %v2387_v5  ;;  %2224 = vmatprep.mubr.bf16.mxu1 %v2389_v6 }
  0xd9   : > { %1111 = vmatmul.mubr.bf16.gmra.mxu0 %v2390_v7  ;;  %2225 = vmatmul.mubr.bf16.gmra.mxu1 %v2391_v8  ;;  %v452_v8 = vld [vmem:[#allocation2 + $0x30] sm:$0xff] }
 0x141   : > { %v2060_v9 = vpop.f32.mrf.mxu0  ;;  %v2132_v10 = vpop.f32.mrf.mxu1 }
 0x143   : > { %v2061_v11 = vpop.f32.mrf.mxu0  ;;  %v2133_v12 = vpop.f32.mrf.mxu1 }
 0x144   : > { %v2751_v13 = vadd.f32 %v2133_v12, %v2132_v10  ;;  %v2062_v51 = vadd.f32 %v2061_v11, %v2060_v9 }
 0x145   : > { %v2063_v14 = vpop.f32.mrf.mxu0  ;;  %v2135_v15 = vpop.f32.mrf.mxu1 }
 0x147   : > { %v2064_v16 = vpop.f32.mrf.mxu0  ;;  %v2136_v17 = vpop.f32.mrf.mxu1 }
 0x148   : > { %v2753_v18 = vadd.f32 %v2136_v17, %v2135_v15  ;;  %v2065_v62 = vadd.f32 %v2064_v16, %v2063_v14  ;;  %v450_v17 = vld [vmem:[#allocation2 + $0x50] sm:$0xff] }
 0x149   : > { %v2066_v19 = vpop.f32.mrf.mxu0  ;;  %v2138_v20 = vpop.f32.mrf.mxu1 }
 0x14b   : > { %v2067_v21 = vpop.f32.mrf.mxu0  ;;  %v2139_v22 = vpop.f32.mrf.mxu1 }
 0x14c   : > { %v2755_v23 = vadd.f32 %v2139_v22, %v2138_v20  ;;  %v2068_v47 = vadd.f32 %v2067_v21, %v2066_v19  ;;  %v453_v22 = vld [vmem:[#allocation2 + $0x48] sm:$0xff] }
 0x14d   : > { %v2069_v24 = vpop.f32.mrf.mxu0  ;;  %v2141_v25 = vpop.f32.mrf.mxu1 }
 0x14f   : > { %v2070_v26 = vpop.f32.mrf.mxu0  ;;  %v2142_v27 = vpop.f32.mrf.mxu1 }
 0x150   : > { %v2757_v28 = vadd.f32 %v2142_v27, %v2141_v25  ;;  %v2071_v56 = vadd.f32 %v2070_v26, %v2069_v24 }
 0x151   : > { %v2072_v29 = vpop.f32.mrf.mxu0  ;;  %v2144_v30 = vpop.f32.mrf.mxu1 }
 0x153   : > { %v2073_v31 = vpop.f32.mrf.mxu0  ;;  %v2145_v32 = vpop.f32.mrf.mxu1 }
 0x154   : > { %v2759_v33 = vadd.f32 %v2145_v32, %v2144_v30  ;;  %v2074_v10 = vadd.f32 %v2073_v31, %v2072_v29  ;;  %v451_v32 = vld [vmem:[#allocation2 + $0x68] sm:$0xff] }
 0x155   : > { %v2075_v34 = vpop.f32.mrf.mxu0  ;;  %v2147_v35 = vpop.f32.mrf.mxu1 }
 0x157   : > { %v2076_v36 = vpop.f32.mrf.mxu0  ;;  %v2148_v37 = vpop.f32.mrf.mxu1 }
 0x158   : > { %v2761_v38 = vadd.f32 %v2148_v37, %v2147_v35  ;;  %v2077_v25 = vadd.f32 %v2076_v36, %v2075_v34 }
 0x159   : > { %v2078_v39 = vpop.f32.mrf.mxu0  ;;  %v2763_v40 = vpop.f32.mrf.mxu1 }
 0x15b   : > { %v2079_v41 = vpop.f32.mrf.mxu0  ;;  %v2765_v42 = vpop.f32.mrf.mxu1 }
 0x15c   : > { %v2080_v4 = vadd.f32 %v2079_v41, %v2078_v39  ;;  %v456_v41 = vld [vmem:[#allocation2 + $0xe8] sm:$0xff] }
 0x15d   : > { %v2081_v43 = vpop.f32.mrf.mxu0  ;;  %v2767_v44 = vpop.f32.mrf.mxu1 }
 0x15f   : > { %v2082_v45 = vpop.f32.mrf.mxu0  ;;  %v2769_v46 = vpop.f32.mrf.mxu1 }
 0x160   : > { %v2083_v16 = vadd.f32 %v2082_v45, %v2081_v43 }
 0x161   : > { %v2084_v48 = vpop.f32.mrf.mxu0  ;;  %v2198_v50 = vpop.f32.mrf.mxu1 }
 0x162   : > { %v1194_v52 = vadd.f32 %v2198_v50, %v2068_v47 }
 0x163   : > { %v2085_v53 = vpop.f32.mrf.mxu0  ;;  %v1185_v55 = vpop.f32.mrf.mxu1 }
 0x164   : > { %v1314_v57 = vadd.f32 %v1194_v52, %v448_v49  ;;  %v1186_v58 = vadd.f32 %v2062_v51, %v1185_v55  ;;  %v2086_v45 = vadd.f32 %v2085_v53, %v2084_v48  ;;  %v454_v51 = vld [vmem:[#allocation2 + $0x80] sm:$0xff] }
 0x165   : > { %v2087_v59 = vpop.f32.mrf.mxu0  ;;  %v2199_v61 = vpop.f32.mrf.mxu1 }
 0x166   : > { %1346 = vst [vmem:[#allocation2 + $0xd8] sm:$0xff] %v1314_v57  ;;  %v1312_v63 = vadd.f32 %v1186_v58, %v446_v54  ;;  %v1197_v0 = vadd.f32 %v2199_v61, %v2071_v56  ;;  %v457_v56 = vld [vmem:[#allocation2 + $0xb8] sm:$0xff] }
 0x167   : > { %v2088_v1 = vpop.f32.mrf.mxu0  ;;  %v1188_v3 = vpop.f32.mrf.mxu1 }
 0x168   : > { %1344 = vst [vmem:[#allocation2 + $0xb0] sm:$0xff] %v1312_v63  ;;  %v1315_v5 = vadd.f32 %v1197_v0, %v449_v60  ;;  %v1189_v6 = vadd.f32 %v2065_v62, %v1188_v3  ;;  %v2089_v58 = vadd.f32 %v2088_v1, %v2087_v59  ;;  %v455_v63 = vld [vmem:[#allocation2 + $0x88] sm:$0xff] }
 0x169   : > { %v2090_v7 = vpop.f32.mrf.mxu0  ;;  %v2202_v9 = vpop.f32.mrf.mxu1  ;;  %v460_v1 = vld [vmem:[#allocation2 + $0x8] sm:$0xff] }
 0x16a   : > { %1347 = vst [vmem:[#allocation2 + $0x18] sm:$0xff] %v1315_v5  ;;  %v1313_v11 = vadd.f32 %v1189_v6, %v447_v2  ;;  %v1210_v12 = vadd.f32 %v2202_v9, %v2080_v4 }
 0x16b   : > { %v2091_v15 = vpop.f32.mrf.mxu0  ;;  %v1201_v14 = vpop.f32.mrf.mxu1 }
 0x16c   : > { %1345 = vst [vmem:[#allocation2] sm:$0xff] %v1313_v11  ;;  %v1318_v19 = vadd.f32 %v1210_v12, %v452_v8  ;;  %v1202_v20 = vadd.f32 %v2074_v10, %v1201_v14  ;;  %v2092_v31 = vadd.f32 %v2091_v15, %v2090_v7  ;;  %v458_v7 = vld [vmem:[#allocation2 + $0x60] sm:$0xff] }
 0x16d   : > { %v2093_v21 = vpop.f32.mrf.mxu0  ;;  %v2203_v24 = vpop.f32.mrf.mxu1 }
 0x16e   : > { %1350 = vst [vmem:[#allocation2 + $0x30] sm:$0xff] %v1318_v19  ;;  %v1316_v26 = vadd.f32 %v1202_v20, %v450_v17  ;;  %v1213_v27 = vadd.f32 %v2203_v24, %v2083_v16  ;;  %v459_v16 = vld [vmem:[#allocation2 + $0xf0] sm:$0xff]  ;;  %v461_v24 = vld [vmem:[#allocation2 + $0x78] sm:$0xff] }
 0x16f   : > { %v2094_v30 = vpop.f32.mrf.mxu0  ;;  %v1204_v29 = vpop.f32.mrf.mxu1 }
 0x170   : > { %1348 = vst [vmem:[#allocation2 + $0x50] sm:$0xff] %v1316_v26  ;;  %v1319_v35 = vadd.f32 %v1213_v27, %v453_v22  ;;  %v1205_v37 = vadd.f32 %v2077_v25, %v1204_v29  ;;  %v2095_v36 = vadd.f32 %v2094_v30, %v2093_v21 }
 0x171   : > { %v2096_v39 = vpop.f32.mrf.mxu0  ;;  %v2206_v43 = vpop.f32.mrf.mxu1 }
 0x172   : > { %1351 = vst [vmem:[#allocation2 + $0x48] sm:$0xff] %v1319_v35  ;;  %v1317_v47 = vadd.f32 %v1205_v37, %v451_v32  ;;  %v1226_v49 = vadd.f32 %v2206_v43, %v2092_v31  ;;  %v462_v37 = vld [vmem:[#allocation2 + $0x38] sm:$0xff] }
 0x173   : > { %v2097_v50 = vpop.f32.mrf.mxu0  ;;  %v1217_v34 = vpop.f32.mrf.mxu1 }
 0x174   : > { %1349 = vst [vmem:[#allocation2 + $0x68] sm:$0xff] %v1317_v47  ;;  %v1322_v52 = vadd.f32 %v1226_v49, %v456_v41  ;;  %v1218_v54 = vadd.f32 %v2086_v45, %v1217_v34  ;;  %v2098_v4 = vadd.f32 %v2097_v50, %v2096_v39 }
 0x175   : > { %v2099_v55 = vpop.f32.mrf.mxu0  ;;  %v2207_v57 = vpop.f32.mrf.mxu1 }
 0x176   : > { %1354 = vst [vmem:[#allocation2 + $0xe8] sm:$0xff] %v1322_v52  ;;  %v1320_v60 = vadd.f32 %v1218_v54, %v454_v51  ;;  %v1229_v61 = vadd.f32 %v2207_v57, %v2095_v36  ;;  %v463_v51 = vld [vmem:[#allocation2 + $0x58] sm:$0xff] }
 0x177   : > { %v2100_v62 = vpop.f32.mrf.mxu0  ;;  %v1220_v48 = vpop.f32.mrf.mxu1 }
 0x178   : > { %1352 = vst [vmem:[#allocation2 + $0x80] sm:$0xff] %v1320_v60  ;;  %v1323_v53 = vadd.f32 %v1229_v61, %v457_v56  ;;  %v1221_v0 = vadd.f32 %v2089_v58, %v1220_v48  ;;  %v2101_v12 = vadd.f32 %v2100_v62, %v2099_v55  ;;  %v464_v58 = vld [vmem:[#allocation2 + $0x40] sm:$0xff] }
 0x179   : > { %v2102_v2 = vpop.f32.mrf.mxu0  ;;  %v2210_v3 = vpop.f32.mrf.mxu1 }
 0x17a   : > { %1355 = vst [vmem:[#allocation2 + $0xb8] sm:$0xff] %v1323_v53  ;;  %v1321_v5 = vadd.f32 %v1221_v0, %v455_v63 }
 0x17b   : > { %v2103_v6 = vpop.f32.mrf.mxu0  ;;  %v1233_v8 = vpop.f32.mrf.mxu1 }
 0x17c   : > { %1353 = vst [vmem:[#allocation2 + $0x88] sm:$0xff] %v1321_v5  ;;  %v2104_v9 = vadd.f32 %v2103_v6, %v2102_v2  ;;  %v1234_v59 = vadd.f32 %v2098_v4, %v1233_v8  ;;  %v465_v2 = vld [vmem:[#allocation2 + $0xc8] sm:$0xff]  ;;  %v472_v4 = vld [vmem:[#allocation2 + $0x10] sm:$0xff] }
 0x17d   : > { %v2105_v10 = vpop.f32.mrf.mxu0  ;;  %v2211_v11 = vpop.f32.mrf.mxu1 }
 0x17e   : > { %v1242_v15 = vadd.f32 %v2210_v3, %v2104_v9  ;;  %v1324_v17 = vadd.f32 %v1234_v59, %v458_v7  ;;  %v470_v9 = vld [vmem:[#allocation2 + $0xa8] sm:$0xff] }
 0x17f   : > { %v2106_v14 = vpop.f32.mrf.mxu0  ;;  %v1236_v19 = vpop.f32.mrf.mxu1 }
 0x180   : > { %v1326_v20 = vadd.f32 %v1242_v15, %v460_v1  ;;  %1356 = vst [vmem:[#allocation2 + $0x60] sm:$0xff] %v1324_v17  ;;  %v2107_v21 = vadd.f32 %v2106_v14, %v2105_v10  ;;  %v1237_v22 = vadd.f32 %v2101_v12, %v1236_v19  ;;  %v466_v15 = vld [vmem:[#allocation2 + $0xe0] sm:$0xff]  ;;  %v473_v14 = vld [vmem:[#allocation2 + $0x28] sm:$0xff] }
 0x181   : > { %v2108_v25 = vpop.f32.mrf.mxu0  ;;  %v2214_v26 = vpop.f32.mrf.mxu1 }
 0x182   : > { %1358 = vst [vmem:[#allocation2 + $0x8] sm:$0xff] %v1326_v20  ;;  %v1245_v27 = vadd.f32 %v2211_v11, %v2107_v21  ;;  %v1325_v30 = vadd.f32 %v1237_v22, %v459_v16 }
 0x183   : > { %v2109_v32 = vpop.f32.mrf.mxu0  ;;  %v1249_v29 = vpop.f32.mrf.mxu1 }
 0x184   : > { %v1327_v31 = vadd.f32 %v1245_v27, %v461_v24  ;;  %1357 = vst [vmem:[#allocation2 + $0xf0] sm:$0xff] %v1325_v30  ;;  %v2110_v35 = vadd.f32 %v2109_v32, %v2108_v25  ;;  %v471_v24 = vld [vmem:[#allocation2 + $0xd0] sm:$0xff] }
 0x185   : > { %v2111_v39 = vpop.f32.mrf.mxu0  ;;  %v2215_v41 = vpop.f32.mrf.mxu1  ;;  %v467_v32 = vld [vmem:[#allocation2 + $0x90] sm:$0xff] }
 0x186   : > { %1359 = vst [vmem:[#allocation2 + $0x78] sm:$0xff] %v1327_v31  ;;  %v1250_v43 = vadd.f32 %v2110_v35, %v1249_v29  ;;  %v476_v31 = vld [vmem:[#allocation2 + $0x20] sm:$0xff] }
 0x187   : > { %v2112_v45 = vpop.f32.mrf.mxu0  ;;  %v1252_v47 = vpop.f32.mrf.mxu1 }
 0x188   : > { %v1328_v49 = vadd.f32 %v1250_v43, %v462_v37  ;;  %v2113_v50 = vadd.f32 %v2112_v45, %v2111_v39 }
 0x189   : > { %v2114_v34 = vpop.f32.mrf.mxu0  ;;  %v2771_v36 = vpop.f32.mrf.mxu1 }
 0x18a   : > { %1360 = vst [vmem:[#allocation2 + $0x38] sm:$0xff] %v1328_v49  ;;  %v1253_v52 = vadd.f32 %v2113_v50, %v1252_v47  ;;  %v468_v50 = vld [vmem:[#allocation2 + $0x70] sm:$0xff] }
 0x18b   : > { %v2115_v54 = vpop.f32.mrf.mxu0  ;;  %v1265_v55 = vpop.f32.mrf.mxu1 }
 0x18c   : > { %v1329_v56 = vadd.f32 %v1253_v52, %v463_v51  ;;  %v2116_v57 = vadd.f32 %v2115_v54, %v2114_v34  ;;  %v477_v34 = vld [vmem:[#allocation2 + $0x98] sm:$0xff] }
 0x18d   : > { %v2117_v60 = vpop.f32.mrf.mxu0  ;;  %v2773_v61 = vpop.f32.mrf.mxu1 }
 0x18e   : > { %1361 = vst [vmem:[#allocation2 + $0x58] sm:$0xff] %v1329_v56  ;;  %v1258_v62 = vadd.f32 %v2214_v26, %v2116_v57 }
 0x18f   : > { %v2118_v63 = vpop.f32.mrf.mxu0  ;;  %v1268_v48 = vpop.f32.mrf.mxu1 }
 0x190   : > { %v1330_v53 = vadd.f32 %v1258_v62, %v464_v58  ;;  %v2119_v0 = vadd.f32 %v2118_v63, %v2117_v60 }
 0x191   : > { %v2120_v3 = vpop.f32.mrf.mxu0  ;;  %v2222_v5 = vpop.f32.mrf.mxu1 }
 0x192   : > { %1362 = vst [vmem:[#allocation2 + $0x40] sm:$0xff] %v1330_v53  ;;  %v1261_v6 = vadd.f32 %v2215_v41, %v2119_v0  ;;  %v1290_v7 = vadd.f32 %v2222_v5, %v2755_v23  ;;  %v2152_v23 = vadd.f32 %v2765_v42, %v2763_v40  ;;  %v2155_v40 = vadd.f32 %v2769_v46, %v2767_v44  ;;  %v474_v41 = vld [vmem:[#allocation2 + $0xa0] sm:$0xff]  ;;  %v475_v46 = vld [vmem:[#allocation2 + $0xf8] sm:$0xff] }
 0x193   : > { %v2121_v8 = vpop.f32.mrf.mxu0  ;;  %v1281_v59 = vpop.f32.mrf.mxu1 }
 0x194   : > { %v1331_v1 = vadd.f32 %v1261_v6, %v465_v2  ;;  %v1338_v10 = vadd.f32 %v1290_v7, %v472_v4  ;;  %v2122_v11 = vadd.f32 %v2121_v8, %v2120_v3  ;;  %v1282_v12 = vadd.f32 %v2751_v13, %v1281_v59 }
 0x195   : > { %v2123_v17 = vpop.f32.mrf.mxu0  ;;  %v2223_v16 = vpop.f32.mrf.mxu1 }
 0x196   : > { %1363 = vst [vmem:[#allocation2 + $0xc8] sm:$0xff] %v1331_v1  ;;  %1370 = vst [vmem:[#allocation2 + $0x10] sm:$0xff] %v1338_v10  ;;  %v1266_v19 = vadd.f32 %v2122_v11, %v1265_v55  ;;  %v1336_v20 = vadd.f32 %v1282_v12, %v470_v9  ;;  %v1293_v21 = vadd.f32 %v2223_v16, %v2757_v28 }
 0x197   : > { %v2124_v22 = vpop.f32.mrf.mxu0  ;;  %v1284_v25 = vpop.f32.mrf.mxu1 }
 0x198   : > { %v1332_v26 = vadd.f32 %v1266_v19, %v466_v15  ;;  %1368 = vst [vmem:[#allocation2 + $0xa8] sm:$0xff] %v1336_v20  ;;  %v1339_v27 = vadd.f32 %v1293_v21, %v473_v14  ;;  %v2125_v13 = vadd.f32 %v2124_v22, %v2123_v17  ;;  %v1285_v30 = vadd.f32 %v2753_v18, %v1284_v25 }
 0x199   : > { %v2126_v29 = vpop.f32.mrf.mxu0  ;;  %v2226_v35 = vpop.f32.mrf.mxu1 }
 0x19a   : > { %1364 = vst [vmem:[#allocation2 + $0xe0] sm:$0xff] %v1332_v26  ;;  %1371 = vst [vmem:[#allocation2 + $0x28] sm:$0xff] %v1339_v27  ;;  %v1269_v37 = vadd.f32 %v2125_v13, %v1268_v48  ;;  %v1337_v28 = vadd.f32 %v1285_v30, %v471_v24  ;;  %v1306_v39 = vadd.f32 %v2226_v35, %v2152_v23 }
 0x19b   : > { %v2127_v42 = vpop.f32.mrf.mxu0  ;;  %v1297_v43 = vpop.f32.mrf.mxu1 }
 0x19c   : > { %v1333_v45 = vadd.f32 %v1269_v37, %v467_v32  ;;  %1369 = vst [vmem:[#allocation2 + $0xd0] sm:$0xff] %v1337_v28  ;;  %v1342_v47 = vadd.f32 %v1306_v39, %v476_v31  ;;  %v2128_v49 = vadd.f32 %v2127_v42, %v2126_v29  ;;  %v1298_v18 = vadd.f32 %v2759_v33, %v1297_v43  ;;  %v469_v33 = vld [vmem:[#allocation2 + $0xc0] sm:$0xff] }
 0x19d   : > { %v2129_v51 = vpop.f32.mrf.mxu0  ;;  %v2227_v52 = vpop.f32.mrf.mxu1 }
 0x19e   : > { %1365 = vst [vmem:[#allocation2 + $0x90] sm:$0xff] %v1333_v45  ;;  %1374 = vst [vmem:[#allocation2 + $0x20] sm:$0xff] %v1342_v47  ;;  %v1274_v54 = vadd.f32 %v2771_v36, %v2128_v49  ;;  %v1340_v55 = vadd.f32 %v1298_v18, %v474_v41  ;;  %v1309_v56 = vadd.f32 %v2227_v52, %v2155_v40 }
 0x19f   : > { %v2130_v44 = vpop.f32.mrf.mxu0  ;;  %v1300_v57 = vpop.f32.mrf.mxu1 }
 0x1a0   : > { %v1334_v58 = vadd.f32 %v1274_v54, %v468_v50  ;;  %1372 = vst [vmem:[#allocation2 + $0xa0] sm:$0xff] %v1340_v55  ;;  %v1343_v60 = vadd.f32 %v1309_v56, %v477_v34  ;;  %v2131_v62 = vadd.f32 %v2130_v44, %v2129_v51  ;;  %v1301_v63 = vadd.f32 %v2761_v38, %v1300_v57 }
 0x1a2   : > { %1366 = vst [vmem:[#allocation2 + $0x70] sm:$0xff] %v1334_v58  ;;  %1375 = vst [vmem:[#allocation2 + $0x98] sm:$0xff] %v1343_v60  ;;  %v1277_v48 = vadd.f32 %v2773_v61, %v2131_v62  ;;  %v1341_v53 = vadd.f32 %v1301_v63, %v475_v46  ;;  %1379 = sbr.rel (%p1881_p13) target bundleno = 441 (0x1b9), region = 66 }
 0x1a4   : > { %v1335_v0 = vadd.f32 %v1277_v48, %v469_v33  ;;  %1373 = vst [vmem:[#allocation2 + $0xf8] sm:$0xff] %v1341_v53 }
 0x1a6   : > { %1367 = vst [vmem:[#allocation2 + $0xc0] sm:$0xff] %v1335_v0 }
 0x1a7   : > { %v1380_v36 = vld [vmem:[#allocation2 + $0xb0] sm:$0xff]  ;;  %v1381_v2 = vld [vmem:[#allocation2] sm:$0xff]  ;;  %v1382_v5 = vld [vmem:[#allocation2 + $0xd8] sm:$0xff] }
 0x1a8   : > { %v2791_v3 = vld [vmem:[%s2864_s2] ss:$0 sm:$0xff]  ;;  %v1383_v61 = vld [vmem:[#allocation2 + $0x18] sm:$0xff]  ;;  %v1384_v6 = vld [vmem:[#allocation2 + $0x50] sm:$0xff] }
 0x1a9   : > { %v1419_v38 = vadd.f32 %v2791_v3, %v1380_v36  ;;  %v1420_v4 = vadd.f32 %v2791_v3, %v1381_v2  ;;  %v1421_v7 = vadd.f32 %v2791_v3, %v1382_v5  ;;  %v1422_v8 = vadd.f32 %v2791_v3, %v1383_v61  ;;  %v1385_v9 = vld [vmem:[#allocation2 + $0x68] sm:$0xff]  ;;  %v1386_v1 = vld [vmem:[#allocation2 + $0x30] sm:$0xff]  ;;  %v1388_v14 = vld [vmem:[#allocation2 + $0x80] sm:$0xff] }
 0x1aa   : > { %v1423_v59 = vadd.f32 %v2791_v3, %v1384_v6  ;;  %v1387_v10 = vld [vmem:[#allocation2 + $0x48] sm:$0xff]  ;;  %v1424_v12 = vadd.f32 %v2791_v3, %v1385_v9  ;;  %v1425_v15 = vadd.f32 %v2791_v3, %v1386_v1  ;;  %v1427_v21 = vadd.f32 %v2791_v3, %v1388_v14  ;;  %v1391_v22 = vld [vmem:[#allocation2 + $0xb8] sm:$0xff]  ;;  %v1392_v25 = vld [vmem:[#allocation2 + $0x60] sm:$0xff] }
 0x1ab   : > { %v1952_v11 = vpack.c.bf16 %v1420_v4, %v1419_v38  ;;  %v1426_v17 = vadd.f32 %v2791_v3, %v1387_v10  ;;  %v1389_v16 = vld [vmem:[#allocation2 + $0x88] sm:$0xff]  ;;  %v1957_v20 = vpack.c.bf16 %v1422_v8, %v1421_v7  ;;  %v1393_v26 = vld [vmem:[#allocation2 + $0xf0] sm:$0xff]  ;;  %v1430_v30 = vadd.f32 %v2791_v3, %v1391_v22  ;;  %v1395_v31 = vld [vmem:[#allocation2 + $0x78] sm:$0xff] }
 0x1ac   : > { %v1390_v19 = vld [vmem:[#allocation2 + $0xe8] sm:$0xff]  ;;  %v1428_v23 = vadd.f32 %v2791_v3, %v1389_v16  ;;  %v1962_v27 = vpack.c.bf16 %v1424_v12, %v1423_v59  ;;  %v1431_v32 = vadd.f32 %v2791_v3, %v1392_v25  ;;  %v1396_v35 = vld [vmem:[#allocation2 + $0x38] sm:$0xff]  ;;  %v1432_v28 = vadd.f32 %v2791_v3, %v1393_v26  ;;  %v1398_v41 = vld [vmem:[#allocation2 + $0x40] sm:$0xff] }
 0x1ad   : > { %v1429_v24 = vadd.f32 %v2791_v3, %v1390_v19  ;;  %1953 = vst [vmem:[%s2674_s30] sm:$0xff] %v1952_v11   ;;  %v1967_v13 = vpack.c.bf16 %v1426_v17, %v1425_v15  ;;  %v1394_v29 = vld [vmem:[#allocation2 + $0x8] sm:$0xff]  ;;  %2029 = vst [vmem:[%s2674_s30 + $0x8] sm:$0xff] %v1957_v20   ;;  %v1434_v40 = vadd.f32 %v2791_v3, %v1395_v31  ;;  %v1397_v42 = vld [vmem:[#allocation2 + $0x58] sm:$0xff] }
 0x1ae   : > { %v1972_v37 = vpack.c.bf16 %v1428_v23, %v1427_v21  ;;  %v1433_v39 = vadd.f32 %v2791_v3, %v1394_v29  ;;  %v1399_v43 = vld [vmem:[#allocation2 + $0xc8] sm:$0xff]  ;;  %2030 = vst [vmem:[%s2674_s30 + $0x10] sm:$0xff] %v1962_v27   ;;  %v1435_v47 = vadd.f32 %v2791_v3, %v1396_v35  ;;  %v1436_v49 = vadd.f32 %v2791_v3, %v1397_v42  ;;  %v1400_v50 = vld [vmem:[#allocation2 + $0xe0] sm:$0xff]  ;;  %v1401_v51 = vld [vmem:[#allocation2 + $0x90] sm:$0xff] }
 0x1af   : > { %2031 = vst [vmem:[%s2674_s30 + $0x18] sm:$0xff] %v1967_v13   ;;  %v1977_v45 = vpack.c.bf16 %v1430_v30, %v1429_v24  ;;  %v1437_v18 = vadd.f32 %v2791_v3, %v1398_v41  ;;  %v1402_v34 = vld [vmem:[#allocation2 + $0x70] sm:$0xff]  ;;  %v1982_v52 = vpack.c.bf16 %v1432_v28, %v1431_v32  ;;  %v1438_v55 = vadd.f32 %v2791_v3, %v1399_v43  ;;  %v1403_v44 = vld [vmem:[#allocation2 + $0xc0] sm:$0xff]  ;;  %v1404_v46 = vld [vmem:[#allocation2 + $0xa8] sm:$0xff] }
 0x1b0   : > { %2032 = vst [vmem:[%s2674_s30 + $0x20] sm:$0xff] %v1972_v37   ;;  %v1987_v54 = vpack.c.bf16 %v1434_v40, %v1433_v39  ;;  %v1439_v56 = vadd.f32 %v2791_v3, %v1400_v50  ;;  %v1405_v57 = vld [vmem:[#allocation2 + $0xd0] sm:$0xff]  ;;  %v1992_v58 = vpack.c.bf16 %v1436_v49, %v1435_v47  ;;  %v1440_v60 = vadd.f32 %v2791_v3, %v1401_v51  ;;  %v1407_v48 = vld [vmem:[#allocation2 + $0x28] sm:$0xff]  ;;  %v1408_v53 = vld [vmem:[#allocation2 + $0xa0] sm:$0xff] }
 0x1b1   : > { %2033 = vst [vmem:[%s2674_s30 + $0x28] sm:$0xff] %v1977_v45   ;;  %v1441_v62 = vadd.f32 %v2791_v3, %v1402_v34  ;;  %v1442_v63 = vadd.f32 %v2791_v3, %v1403_v44  ;;  %v1406_v33 = vld [vmem:[#allocation2 + $0x10] sm:$0xff]  ;;  %2034 = vst [vmem:[%s2674_s30 + $0x30] sm:$0xff] %v1982_v52   ;;  %v1997_v0 = vpack.c.bf16 %v1438_v55, %v1437_v18  ;;  %v1409_v4 = vld [vmem:[#allocation2 + $0xf8] sm:$0xff] }
 0x1b2   : > { %2035 = vst [vmem:[%s2674_s30 + $0x38] sm:$0xff] %v1987_v54   ;;  %v1443_v36 = vadd.f32 %v2791_v3, %v1404_v46  ;;  %v1444_v2 = vadd.f32 %v2791_v3, %v1405_v57  ;;  %v1445_v38 = vadd.f32 %v2791_v3, %v1406_v33  ;;  %v1410_v5 = vld [vmem:[#allocation2 + $0x20] sm:$0xff]  ;;  %v1411_v61 = vld [vmem:[#allocation2 + $0x98] sm:$0xff]  ;;  %2036 = vst [vmem:[%s2674_s30 + $0x40] sm:$0xff] %v1992_v58  }
 0x1b3   : > { %v2002_v6 = vpack.c.bf16 %v1440_v60, %v1439_v56  ;;  %v2007_v7 = vpack.c.bf16 %v1442_v63, %v1441_v62  ;;  %v1446_v8 = vadd.f32 %v2791_v3, %v1407_v48  ;;  %v1447_v9 = vadd.f32 %v2791_v3, %v1408_v53  ;;  %2037 = vst [vmem:[%s2674_s30 + $0x48] sm:$0xff] %v1997_v0  }
 0x1b4   : > { %v2012_v59 = vpack.c.bf16 %v1444_v2, %v1443_v36  ;;  %v1448_v1 = vadd.f32 %v2791_v3, %v1409_v4  ;;  %v1449_v10 = vadd.f32 %v2791_v3, %v1410_v5  ;;  %v1450_v11 = vadd.f32 %v2791_v3, %v1411_v61 }
 0x1b5   : > { %2038 = vst [vmem:[%s2674_s30 + $0x50] sm:$0xff] %v2002_v6   ;;  %2039 = vst [vmem:[%s2674_s30 + $0x58] sm:$0xff] %v2007_v7   ;;  %v2017_v12 = vpack.c.bf16 %v1446_v8, %v1445_v38 }
 0x1b6   : > { %2040 = vst [vmem:[%s2674_s30 + $0x60] sm:$0xff] %v2012_v59   ;;  %v2022_v15 = vpack.c.bf16 %v1448_v1, %v1447_v9  ;;  %v2027_v17 = vpack.c.bf16 %v1450_v11, %v1449_v10 }
 0x1b7   : > { %2041 = vst [vmem:[%s2674_s30 + $0x68] sm:$0xff] %v2017_v12  }
 0x1b8   : > { %2042 = vst [vmem:[%s2674_s30 + $0x70] sm:$0xff] %v2022_v15   ;;  %2043 = vst [vmem:[%s2674_s30 + $0x78] sm:$0xff] %v2027_v17  }
 0x1b9 PF: > { %s13_s18 = sadd.s32 1, %s2446_s18   ;;  %s2866_s12 = smov %s2426_s13 }
 0x1ba   : > { %p10_p0 = scmp.ge.s32.totalorder %s13_s18, 6   ;;  %s2867_s13 = smov %s2520_s25 }
 0x1bb   : > { %s2868_s14 = smov %s2438_s16  ;;  %s2869_s15 = smov %s2442_s17 }
 0x1bc   : > { %s2870_s16 = smov %s2873_s19  ;;  %s2871_s17 = smov %s2877_s20 }
 0x1bd   :  { %12 = sbr.rel (!%p10_p0) target bundleno = 4 (0x4), region = 113 }

// kernel: encoder_block_forward.18
= control target key start
LH: loop header
LB: loop body
LE: loop exit
PB: predicated region body
PF: predicated region fallthrough
CT: control target
= control target key end

     0   :  { %s1318_s12 = smov 0   ;;  %s1320_s13 = smov 0   ;;  %s1607_s0 = inlined_call_operand.vmem [shape: bf16[2,256,128], index: 0, kind: input, shape index: {}]   ;;  %s1608_s1 = inlined_call_operand.vmem [shape: f32[2,1,128], index: 1, kind: input, shape index: {}]   ;;  %s1609_s2 = inlined_call_operand.vmem [shape: f32[2,1,128], index: 2, kind: input, shape index: {}]   ;;  %s1610_s3 = inlined_call_operand.vmem [shape: bf16[2,256,128], index: 3, kind: output, shape index: {}]  }
   0x1   :  { %s1322_s14 = smov 0  }
   0x2 LB: > { %s25_s15 = sadd.s32 1, %s1292_s13  ;;  %p873_p0 = scmp.ge.s32.totalorder %s1296_s14, 1  ;;  %s1296_s14 = sphi %s1322_s14, %s13_s14   ;;  %s1292_s13 = sphi %s1320_s13, %s1612_s13   ;;  %s1288_s12 = sphi %s1318_s12, %s1611_s12  }
   0x3   : > { %p27_p1 = scmp.ge.s32.totalorder %s25_s15, 2  ;;  %p174_p2 = scmp.lt.s32.totalorder %s1296_s14, 3 }
   0x5   : > { %s1614_s15 = smov (%p27_p1, %s25_s15), 0  ;;  %p175_p3 = pnand %p873_p0, %p174_p2 }
   0x6   : > { %p213_p4 = scmp.lt.s32.totalorder (!%p175_p3), %s1288_s12, 1 }
   0x7   : > { %178 = sbr.rel (%p175_p3) target bundleno = 123 (0x7b), region = 32 }
   0xc   : > { %s1616_s12 = smov (!%p213_p4, %s1288_s12), 1 }
   0xd   : > { %s914_s16 = sshll.u32 %s1616_s12, 7  ;;  %s224_s19 = scalar_lea.vmem %s1608_s1, %s1616_s12 }
   0xe   : > { %s1348_s22 = scalar_lea.vmem %s1607_s0, %s914_s16  ;;  %s227_s25 = scalar_lea.vmem %s1609_s2, %s1616_s12  ;;  %v1355_v1 = vld [vmem:[%s224_s19] ss:$0 sm:$0xff] }
   0xf   : > { %v949_v0 = vld [vmem:[%s1348_s22] sm:$0xff]   ;;  %v1092_v2 = vld [vmem:[%s1348_s22 + $0x8] sm:$0xff]   ;;  %v1093_v7 = vld [vmem:[%s1348_s22 + $0x10] sm:$0xff]   ;;  %s1507_s28 = scalar_lea.vmem %s1610_s3, %s914_s16 }
  0x10   : > { %v950_v3 = vunpack.c.l.bf16 %v949_v0  ;;  %v951_v4 = vunpack.c.h.bf16 %v949_v0  ;;  %v954_v5 = vunpack.c.l.bf16 %v1092_v2  ;;  %v955_v6 = vunpack.c.h.bf16 %v1092_v2  ;;  %v1094_v8 = vld [vmem:[%s1348_s22 + $0x18] sm:$0xff]   ;;  %v1360_v9 = vld [vmem:[%s227_s25] ss:$0 sm:$0xff]  ;;  %v1096_v39 = vld [vmem:[%s1348_s22 + $0x28] sm:$0xff]  }
  0x11   : > { %v958_v10 = vunpack.c.l.bf16 %v1093_v7  ;;  %v959_v11 = vunpack.c.h.bf16 %v1093_v7  ;;  %v962_v12 = vunpack.c.l.bf16 %v1094_v8  ;;  %v963_v13 = vunpack.c.h.bf16 %v1094_v8  ;;  %v1095_v30 = vld [vmem:[%s1348_s22 + $0x20] sm:$0xff]   ;;  %v1097_v40 = vld [vmem:[%s1348_s22 + $0x30] sm:$0xff]  }
  0x12   : > { %v309_v14 = vmul.f32 %v950_v3, %v1355_v1  ;;  %v310_v15 = vmul.f32 %v951_v4, %v1355_v1  ;;  %v311_v16 = vmul.f32 %v954_v5, %v1355_v1  ;;  %v312_v17 = vmul.f32 %v955_v6, %v1355_v1  ;;  %v1098_v4 = vld [vmem:[%s1348_s22 + $0x38] sm:$0xff]  }
  0x13   : > { %v313_v18 = vmul.f32 %v958_v10, %v1355_v1  ;;  %v314_v19 = vmul.f32 %v959_v11, %v1355_v1  ;;  %v315_v20 = vmul.f32 %v962_v12, %v1355_v1  ;;  %v316_v21 = vmul.f32 %v963_v13, %v1355_v1  ;;  %v1099_v12 = vld [vmem:[%s1348_s22 + $0x40] sm:$0xff]  }
  0x14   : > { %v1371_v22 = vadd.f32 %v1360_v9, %v309_v14  ;;  %v1374_v23 = vadd.f32 %v1360_v9, %v310_v15  ;;  %v1377_v24 = vadd.f32 %v1360_v9, %v311_v16  ;;  %v1380_v25 = vadd.f32 %v1360_v9, %v312_v17  ;;  %v1100_v16 = vld [vmem:[%s1348_s22 + $0x48] sm:$0xff]  }
  0x15   : > { %v1383_v26 = vadd.f32 %v1360_v9, %v313_v18  ;;  %v1386_v27 = vadd.f32 %v1360_v9, %v314_v19  ;;  %v1389_v28 = vadd.f32 %v1360_v9, %v315_v20  ;;  %v1392_v29 = vadd.f32 %v1360_v9, %v316_v21 }
  0x16   : > { %v380_v31 = vsub.f32 0.0, %v1371_v22  ;;  %v381_v32 = vsub.f32 0.0, %v1374_v23  ;;  %v382_v33 = vsub.f32 0.0, %v1377_v24  ;;  %v383_v34 = vsub.f32 0.0, %v1380_v25 }
  0x17   : > { %v384_v35 = vsub.f32 0.0, %v1383_v26  ;;  %v385_v36 = vsub.f32 0.0, %v1386_v27  ;;  %v386_v37 = vsub.f32 0.0, %v1389_v28  ;;  %v387_v38 = vsub.f32 0.0, %v1392_v29 }
  0x18   : > { %v412_v41 = vmul.f32 1.442695, %v380_v31  ;;  %v414_v42 = vmul.f32 1.442695, %v381_v32  ;;  %v416_v43 = vmul.f32 1.442695, %v382_v33  ;;  %v966_v44 = vunpack.c.l.bf16 %v1095_v30 }
  0x19   : > { %v418_v45 = vmul.f32 1.442695, %v383_v34  ;;  %v420_v46 = vmul.f32 1.442695, %v384_v35  ;;  %v422_v47 = vmul.f32 1.442695, %v385_v36  ;;  %v967_v48 = vunpack.c.h.bf16 %v1095_v30 }
  0x1a   : > { %1146 = vpow2.f32 %v412_v41  ;;  %v424_v49 = vmul.f32 1.442695, %v386_v37  ;;  %v426_v50 = vmul.f32 1.442695, %v387_v38  ;;  %v317_v51 = vmul.f32 %v966_v44, %v1355_v1 }
  0x1b   : > { %1148 = vpow2.f32 %v414_v42  ;;  %v318_v52 = vmul.f32 %v967_v48, %v1355_v1  ;;  %v970_v53 = vunpack.c.l.bf16 %v1096_v39  ;;  %v971_v54 = vunpack.c.h.bf16 %v1096_v39 }
  0x1c   : > { %1150 = vpow2.f32 %v416_v43  ;;  %v1408_v55 = vadd.f32 %v1360_v9, %v317_v51  ;;  %v974_v56 = vunpack.c.l.bf16 %v1097_v40  ;;  %v975_v57 = vunpack.c.h.bf16 %v1097_v40 }
  0x1d   : > { %1152 = vpow2.f32 %v418_v45  ;;  %v1411_v58 = vadd.f32 %v1360_v9, %v318_v52  ;;  %v319_v59 = vmul.f32 %v970_v53, %v1355_v1  ;;  %v320_v60 = vmul.f32 %v971_v54, %v1355_v1 }
  0x1e   : > { %1154 = vpow2.f32 %v420_v46  ;;  %v388_v61 = vsub.f32 0.0, %v1408_v55  ;;  %v321_v62 = vmul.f32 %v974_v56, %v1355_v1  ;;  %v322_v63 = vmul.f32 %v975_v57, %v1355_v1 }
  0x1f   : > { %1156 = vpow2.f32 %v422_v47  ;;  %v389_v0 = vsub.f32 0.0, %v1411_v58  ;;  %v1420_v2 = vadd.f32 %v1360_v9, %v319_v59  ;;  %v1423_v3 = vadd.f32 %v1360_v9, %v320_v60 }
  0x20   : > { %1158 = vpow2.f32 %v424_v49  ;;  %v428_v5 = vmul.f32 1.442695, %v388_v61  ;;  %v1427_v6 = vadd.f32 %v1360_v9, %v321_v62  ;;  %v1430_v7 = vadd.f32 %v1360_v9, %v322_v63  ;;  %v1101_v61 = vld [vmem:[%s1348_s22 + $0x50] sm:$0xff]  }
  0x21   : > { %1160 = vpow2.f32 %v426_v50  ;;  %v430_v8 = vmul.f32 1.442695, %v389_v0  ;;  %v390_v10 = vsub.f32 0.0, %v1420_v2  ;;  %v391_v11 = vsub.f32 0.0, %v1423_v3 }
  0x22   : > { %1162 = vpow2.f32 %v428_v5  ;;  %v392_v13 = vsub.f32 0.0, %v1427_v6  ;;  %v393_v14 = vsub.f32 0.0, %v1430_v7  ;;  %v978_v15 = vunpack.c.l.bf16 %v1098_v4 }
  0x23   : > { %1164 = vpow2.f32 %v430_v8  ;;  %v432_v17 = vmul.f32 1.442695, %v390_v10  ;;  %v434_v18 = vmul.f32 1.442695, %v391_v11  ;;  %v979_v19 = vunpack.c.h.bf16 %v1098_v4 }
  0x24   : > { %v436_v20 = vmul.f32 1.442695, %v392_v13  ;;  %v438_v21 = vmul.f32 1.442695, %v393_v14  ;;  %v323_v30 = vmul.f32 %v978_v15, %v1355_v1  ;;  %v982_v31 = vunpack.c.l.bf16 %v1099_v12 }
  0x25   : > { %1166 = vpow2.f32 %v432_v17  ;;  %v324_v32 = vmul.f32 %v979_v19, %v1355_v1  ;;  %v983_v33 = vunpack.c.h.bf16 %v1099_v12  ;;  %v986_v34 = vunpack.c.l.bf16 %v1100_v16 }
  0x26   : > { %1168 = vpow2.f32 %v434_v18  ;;  %v1441_v35 = vadd.f32 %v1360_v9, %v323_v30  ;;  %v325_v36 = vmul.f32 %v982_v31, %v1355_v1  ;;  %v987_v37 = vunpack.c.h.bf16 %v1100_v16 }
  0x27   : > { %v1147_v38 = vpop.eup %1146  ;;  %1170 = vpow2.f32 %v436_v20  ;;  %v1445_v39 = vadd.f32 %v1360_v9, %v324_v32  ;;  %v326_v40 = vmul.f32 %v983_v33, %v1355_v1  ;;  %v327_v41 = vmul.f32 %v986_v34, %v1355_v1  ;;  %v1102_v20 = vld [vmem:[%s1348_s22 + $0x58] sm:$0xff]   ;;  %v1103_v33 = vld [vmem:[%s1348_s22 + $0x60] sm:$0xff]  }
  0x28   : > { %v1149_v42 = vpop.eup %1148  ;;  %v476_v43 = vadd.f32 1.0, %v1147_v38  ;;  %1172 = vpow2.f32 %v438_v21  ;;  %v394_v44 = vsub.f32 0.0, %v1441_v35  ;;  %v1451_v45 = vadd.f32 %v1360_v9, %v325_v36 }
  0x29   : > { %v1151_v46 = vpop.eup %1150  ;;  %v477_v47 = vadd.f32 1.0, %v1149_v42  ;;  %v395_v48 = vsub.f32 0.0, %v1445_v39  ;;  %v1455_v49 = vadd.f32 %v1360_v9, %v326_v40  ;;  %v328_v50 = vmul.f32 %v987_v37, %v1355_v1 }
  0x2a   : > { %v1153_v51 = vpop.eup %1152  ;;  %1174 = vrcp.f32 %v476_v43  ;;  %v478_v52 = vadd.f32 1.0, %v1151_v46  ;;  %v440_v53 = vmul.f32 1.442695, %v394_v44  ;;  %v396_v54 = vsub.f32 0.0, %v1451_v45 }
  0x2b   : > { %v1155_v56 = vpop.eup %1154  ;;  %1176 = vrcp.f32 %v477_v47  ;;  %v479_v57 = vadd.f32 1.0, %v1153_v51  ;;  %v1459_v59 = vmul.f32 1.442695, %v395_v48  ;;  %v397_v60 = vsub.f32 0.0, %v1455_v49 }
  0x2c   : > { %v1157_v62 = vpop.eup %1156  ;;  %1178 = vrcp.f32 %v478_v52  ;;  %v480_v63 = vadd.f32 1.0, %v1155_v56  ;;  %v1463_v0 = vmul.f32 1.442695, %v396_v54  ;;  %v1466_v4 = vadd.f32 %v1360_v9, %v327_v41 }
  0x2d   : > { %v1159_v5 = vpop.eup %1158  ;;  %1180 = vrcp.f32 %v479_v57  ;;  %v481_v8 = vadd.f32 1.0, %v1157_v62  ;;  %v1468_v10 = vmul.f32 1.442695, %v397_v60  ;;  %v1471_v11 = vadd.f32 %v1360_v9, %v328_v50 }
  0x2e   : > { %v1161_v12 = vpop.eup %1160  ;;  %1182 = vrcp.f32 %v480_v63  ;;  %v482_v13 = vadd.f32 1.0, %v1159_v5  ;;  %v398_v14 = vsub.f32 0.0, %v1466_v4  ;;  %v990_v15 = vunpack.c.l.bf16 %v1101_v61 }
  0x2f   : > { %v1163_v16 = vpop.eup %1162  ;;  %1184 = vrcp.f32 %v481_v8  ;;  %v483_v17 = vadd.f32 1.0, %v1161_v12  ;;  %v399_v18 = vsub.f32 0.0, %v1471_v11  ;;  %v991_v19 = vunpack.c.h.bf16 %v1101_v61 }
  0x30   : > { %v1165_v21 = vpop.eup %1164  ;;  %1186 = vrcp.f32 %v482_v13  ;;  %v484_v30 = vadd.f32 1.0, %v1163_v16  ;;  %v448_v31 = vmul.f32 1.442695, %v398_v14  ;;  %v329_v32 = vmul.f32 %v990_v15, %v1355_v1 }
  0x31   : > { %1188 = vrcp.f32 %v483_v17  ;;  %v485_v34 = vadd.f32 1.0, %v1165_v21  ;;  %v450_v36 = vmul.f32 1.442695, %v399_v18  ;;  %v330_v37 = vmul.f32 %v991_v19, %v1355_v1 }
  0x32   : > { %v1167_v38 = vpop.eup %1166  ;;  %1190 = vrcp.f32 %v484_v30  ;;  %v1480_v40 = vadd.f32 %v1360_v9, %v329_v32  ;;  %v994_v41 = vunpack.c.l.bf16 %v1102_v20  ;;  %v995_v42 = vunpack.c.h.bf16 %v1102_v20 }
  0x33   : > { %v1169_v43 = vpop.eup %1168  ;;  %1192 = vrcp.f32 %v485_v34  ;;  %v486_v44 = vadd.f32 1.0, %v1167_v38  ;;  %v1483_v46 = vadd.f32 %v1360_v9, %v330_v37  ;;  %v998_v47 = vunpack.c.l.bf16 %v1103_v33 }
  0x34   : > { %v1171_v48 = vpop.eup %1170  ;;  %v487_v50 = vadd.f32 1.0, %v1169_v43  ;;  %1194 = vpow2.f32 %v440_v53  ;;  %v400_v51 = vsub.f32 0.0, %v1480_v40  ;;  %v331_v52 = vmul.f32 %v994_v41, %v1355_v1 }
  0x35   : > { %v1173_v54 = vpop.eup %1172  ;;  %1196 = vrcp.f32 %v486_v44  ;;  %v488_v56 = vadd.f32 1.0, %v1171_v48  ;;  %v401_v57 = vsub.f32 0.0, %v1483_v46  ;;  %v332_v60 = vmul.f32 %v995_v42, %v1355_v1 }
  0x36   : > { %1198 = vrcp.f32 %v487_v50  ;;  %v489_v61 = vadd.f32 1.0, %v1173_v54  ;;  %v452_v62 = vmul.f32 1.442695, %v400_v51  ;;  %v1490_v63 = vadd.f32 %v1360_v9, %v331_v52  ;;  %v1105_v54 = vld [vmem:[%s1348_s22 + $0x70] sm:$0xff]  }
  0x37   : > { %v1175_v5 = vpop.eup %1174  ;;  %1200 = vrcp.f32 %v488_v56  ;;  %v454_v53 = vmul.f32 1.442695, %v401_v57  ;;  %v1493_v8 = vadd.f32 %v1360_v9, %v332_v60  ;;  %v999_v12 = vunpack.c.h.bf16 %v1103_v33 }
  0x38   : > { %v1177_v13 = vpop.eup %1176  ;;  %v572_v14 = vmul.f32 %v1175_v5, %v1371_v22  ;;  %1202 = vrcp.f32 %v489_v61  ;;  %v402_v15 = vsub.f32 0.0, %v1490_v63  ;;  %v333_v16 = vmul.f32 %v998_v47, %v1355_v1 }
  0x39   : > { %v1179_v17 = vpop.eup %1178  ;;  %v573_v18 = vmul.f32 %v1177_v13, %v1374_v23  ;;  %1204 = vpow2.f32 %v1459_v59  ;;  %v403_v19 = vsub.f32 0.0, %v1493_v8  ;;  %v334_v20 = vmul.f32 %v999_v12, %v1355_v1  ;;  %v1104_v59 = vld [vmem:[%s1348_s22 + $0x68] sm:$0xff]  }
  0x3a   : > { %v1181_v21 = vpop.eup %1180  ;;  %v574_v22 = vmul.f32 %v1179_v17, %v1377_v24  ;;  %1206 = vpow2.f32 %v1463_v0  ;;  %v456_v30 = vmul.f32 1.442695, %v402_v15  ;;  %v1512_v23 = vadd.f32 %v1360_v9, %v333_v16 }
  0x3b   : > { %v1183_v32 = vpop.eup %1182  ;;  %v1015_v33 = vpack.c.bf16 %v573_v18, %v572_v14  ;;  %v575_v34 = vmul.f32 %v1181_v21, %v1380_v25  ;;  %1208 = vpow2.f32 %v1468_v10  ;;  %v458_v37 = vmul.f32 1.442695, %v403_v19 }
  0x3c   : > { %v1185_v38 = vpop.eup %1184  ;;  %v576_v41 = vmul.f32 %v1183_v32, %v1383_v26  ;;  %1210 = vpow2.f32 %v448_v31  ;;  %v1519_v24 = vadd.f32 %v1360_v9, %v334_v20  ;;  %v404_v0 = vsub.f32 0.0, %v1512_v23 }
  0x3d   : > { %v1187_v42 = vpop.eup %1186  ;;  %1016 = vst [vmem:[%s1507_s28] sm:$0xff] %v1015_v33   ;;  %v1020_v43 = vpack.c.bf16 %v575_v34, %v574_v22  ;;  %v577_v44 = vmul.f32 %v1185_v38, %v1386_v27  ;;  %1212 = vpow2.f32 %v450_v36  ;;  %v1002_v25 = vunpack.c.l.bf16 %v1104_v59 }
  0x3e   : > { %v1189_v10 = vpop.eup %1188  ;;  %v578_v47 = vmul.f32 %v1187_v42, %v1389_v28  ;;  %1214 = vpow2.f32 %v452_v62  ;;  %v405_v26 = vsub.f32 0.0, %v1519_v24  ;;  %v460_v31 = vmul.f32 1.442695, %v404_v0 }
  0x3f   : > { %v1191_v48 = vpop.eup %1190  ;;  %1107 = vst [vmem:[%s1507_s28 + $0x8] sm:$0xff] %v1020_v43   ;;  %v1025_v50 = vpack.c.bf16 %v577_v44, %v576_v41  ;;  %v579_v51 = vmul.f32 %v1189_v10, %v1392_v29  ;;  %1216 = vpow2.f32 %v454_v53  ;;  %v1003_v52 = vunpack.c.h.bf16 %v1104_v59 }
  0x40   : > { %v1193_v27 = vpop.eup %1192  ;;  %v580_v36 = vmul.f32 %v1191_v48, %v1408_v55  ;;  %1218 = vpow2.f32 %v456_v30  ;;  %v462_v28 = vmul.f32 1.442695, %v405_v26  ;;  %v335_v56 = vmul.f32 %v1002_v25, %v1355_v1  ;;  %v1106_v55 = vld [vmem:[%s1348_s22 + $0x78] sm:$0xff]  }
  0x41   : > { %v1195_v57 = vpop.eup %1194  ;;  %1108 = vst [vmem:[%s1507_s28 + $0x10] sm:$0xff] %v1025_v50   ;;  %v1030_v60 = vpack.c.bf16 %v579_v51, %v578_v47  ;;  %v581_v61 = vmul.f32 %v1193_v27, %v1411_v58  ;;  %1220 = vpow2.f32 %v458_v37  ;;  %v1006_v53 = vunpack.c.l.bf16 %v1105_v54 }
  0x42   : > { %v1197_v62 = vpop.eup %1196  ;;  %v490_v29 = vadd.f32 1.0, %v1195_v57  ;;  %1222 = vpow2.f32 %v460_v31  ;;  %v1534_v5 = vadd.f32 %v1360_v9, %v335_v56  ;;  %v336_v58 = vmul.f32 %v1003_v52, %v1355_v1 }
  0x43   : > { %v1199_v12 = vpop.eup %1198  ;;  %1109 = vst [vmem:[%s1507_s28 + $0x18] sm:$0xff] %v1030_v60   ;;  %v1035_v13 = vpack.c.bf16 %v581_v61, %v580_v36  ;;  %v582_v14 = vmul.f32 %v1197_v62, %v1420_v2  ;;  %1224 = vpow2.f32 %v462_v28  ;;  %v1007_v18 = vunpack.c.h.bf16 %v1105_v54 }
  0x44   : > { %v1201_v15 = vpop.eup %1200  ;;  %v583_v16 = vmul.f32 %v1199_v12, %v1423_v3  ;;  %v406_v17 = vsub.f32 0.0, %v1534_v5  ;;  %1226 = vrcp.f32 %v490_v29  ;;  %v337_v21 = vmul.f32 %v1006_v53, %v1355_v1 }
  0x45   : > { %v1203_v19 = vpop.eup %1202  ;;  %1110 = vst [vmem:[%s1507_s28 + $0x20] sm:$0xff] %v1035_v13   ;;  %v584_v20 = vmul.f32 %v1201_v15, %v1427_v6  ;;  %v1010_v22 = vunpack.c.l.bf16 %v1106_v55  ;;  %v338_v3 = vmul.f32 %v1007_v18, %v1355_v1  ;;  %v1011_v37 = vunpack.c.h.bf16 %v1106_v55 }
  0x46   : > { %v1205_v30 = vpop.eup %1204  ;;  %v1040_v2 = vpack.c.bf16 %v583_v16, %v582_v14  ;;  %v585_v59 = vmul.f32 %v1203_v19, %v1430_v7  ;;  %v464_v32 = vmul.f32 1.442695, %v406_v17  ;;  %v1549_v6 = vadd.f32 %v1360_v9, %v336_v58 }
  0x47   : > { %v1207_v33 = vpop.eup %1206  ;;  %v491_v34 = vadd.f32 1.0, %v1205_v30  ;;  %v1552_v7 = vadd.f32 %v1360_v9, %v337_v21  ;;  %v339_v44 = vmul.f32 %v1010_v22, %v1355_v1  ;;  %v1557_v47 = vadd.f32 %v1360_v9, %v338_v3 }
  0x48   : > { %v1209_v38 = vpop.eup %1208  ;;  %1111 = vst [vmem:[%s1507_s28 + $0x28] sm:$0xff] %v1040_v2   ;;  %v1045_v41 = vpack.c.bf16 %v585_v59, %v584_v20  ;;  %v492_v0 = vadd.f32 1.0, %v1207_v33  ;;  %1228 = vpow2.f32 %v464_v32  ;;  %v340_v26 = vmul.f32 %v1011_v37, %v1355_v1 }
  0x49   : > { %v1211_v42 = vpop.eup %1210  ;;  %1230 = vrcp.f32 %v491_v34  ;;  %v493_v43 = vadd.f32 1.0, %v1209_v38  ;;  %v1561_v50 = vadd.f32 %v1360_v9, %v339_v44  ;;  %v407_v54 = vsub.f32 0.0, %v1549_v6 }
  0x4a   : > { %v1213_v25 = vpop.eup %1212  ;;  %1112 = vst [vmem:[%s1507_s28 + $0x30] sm:$0xff] %v1045_v41   ;;  %1232 = vrcp.f32 %v492_v0  ;;  %v494_v10 = vadd.f32 1.0, %v1211_v42  ;;  %v408_v28 = vsub.f32 0.0, %v1552_v7  ;;  %v1566_v56 = vadd.f32 %v1360_v9, %v340_v26 }
  0x4b   : > { %v1215_v31 = vpop.eup %1214  ;;  %1234 = vrcp.f32 %v493_v43  ;;  %v495_v48 = vadd.f32 1.0, %v1213_v25  ;;  %v409_v60 = vsub.f32 0.0, %v1557_v47  ;;  %v410_v29 = vsub.f32 0.0, %v1561_v50 }
  0x4c   : > { %v1217_v51 = vpop.eup %1216  ;;  %1236 = vrcp.f32 %v494_v10  ;;  %v496_v52 = vadd.f32 1.0, %v1215_v31  ;;  %v466_v12 = vmul.f32 1.442695, %v407_v54  ;;  %v468_v14 = vmul.f32 1.442695, %v408_v28 }
  0x4d   : > { %v1219_v27 = vpop.eup %1218  ;;  %1238 = vrcp.f32 %v495_v48  ;;  %v497_v36 = vadd.f32 1.0, %v1217_v51  ;;  %v411_v9 = vsub.f32 0.0, %v1566_v56  ;;  %v470_v16 = vmul.f32 1.442695, %v409_v60 }
  0x4e   : > { %v1221_v1 = vpop.eup %1220  ;;  %1240 = vrcp.f32 %v496_v52  ;;  %v498_v57 = vadd.f32 1.0, %v1219_v27  ;;  %v472_v58 = vmul.f32 1.442695, %v410_v29 }
  0x4f   : > { %v1223_v61 = vpop.eup %1222  ;;  %1242 = vrcp.f32 %v497_v36  ;;  %v499_v62 = vadd.f32 1.0, %v1221_v1  ;;  %v474_v19 = vmul.f32 1.442695, %v411_v9 }
  0x50   : > { %v1225_v53 = vpop.eup %1224  ;;  %1244 = vrcp.f32 %v498_v57  ;;  %v500_v55 = vadd.f32 1.0, %v1223_v61 }
  0x51   : > { %1246 = vrcp.f32 %v499_v62  ;;  %v501_v13 = vadd.f32 1.0, %v1225_v53  ;;  %v1227_v15 = vpop.eup %1226 }
  0x52   : > { %1248 = vrcp.f32 %v500_v55  ;;  %v586_v18 = vmul.f32 %v1227_v15, %v1441_v35 }
  0x53   : > { %1250 = vrcp.f32 %v501_v13 }
  0x54   : > { %1252 = vpow2.f32 %v466_v12 }
  0x55   : > { %v1229_v17 = vpop.eup %1228  ;;  %1254 = vpow2.f32 %v468_v14 }
  0x56   : > { %v1231_v20 = vpop.eup %1230  ;;  %1256 = vpow2.f32 %v470_v16  ;;  %v502_v0 = vadd.f32 1.0, %v1229_v17 }
  0x57   : > { %v1233_v21 = vpop.eup %1232  ;;  %v587_v22 = vmul.f32 %v1231_v20, %v1445_v39  ;;  %1258 = vpow2.f32 %v472_v58 }
  0x58   : > { %v1235_v30 = vpop.eup %1234  ;;  %v588_v2 = vmul.f32 %v1233_v21, %v1451_v45  ;;  %1260 = vpow2.f32 %v474_v19 }
  0x59   : > { %v1237_v59 = vpop.eup %1236  ;;  %v1050_v32 = vpack.c.bf16 %v587_v22, %v586_v18  ;;  %v589_v3 = vmul.f32 %v1235_v30, %v1455_v49  ;;  %1262 = vrcp.f32 %v502_v0 }
  0x5a   : > { %v1239_v33 = vpop.eup %1238  ;;  %v590_v35 = vmul.f32 %v1237_v59, %v1466_v4 }
  0x5b   : > { %v1241_v34 = vpop.eup %1240  ;;  %1113 = vst [vmem:[%s1507_s28 + $0x38] sm:$0xff] %v1050_v32   ;;  %v1055_v37 = vpack.c.bf16 %v589_v3, %v588_v2  ;;  %v591_v38 = vmul.f32 %v1239_v33, %v1471_v11 }
  0x5c   : > { %v1243_v39 = vpop.eup %1242  ;;  %v592_v41 = vmul.f32 %v1241_v34, %v1480_v40 }
  0x5d   : > { %v1245_v45 = vpop.eup %1244  ;;  %1114 = vst [vmem:[%s1507_s28 + $0x40] sm:$0xff] %v1055_v37   ;;  %v1060_v42 = vpack.c.bf16 %v591_v38, %v590_v35  ;;  %v593_v49 = vmul.f32 %v1243_v39, %v1483_v46 }
  0x5e   : > { %v1247_v43 = vpop.eup %1246  ;;  %v594_v44 = vmul.f32 %v1245_v45, %v1490_v63 }
  0x5f   : > { %v1249_v4 = vpop.eup %1248  ;;  %1115 = vst [vmem:[%s1507_s28 + $0x48] sm:$0xff] %v1060_v42   ;;  %v1065_v25 = vpack.c.bf16 %v593_v49, %v592_v41  ;;  %v595_v10 = vmul.f32 %v1247_v43, %v1493_v8 }
  0x60   : > { %v1251_v11 = vpop.eup %1250  ;;  %v596_v40 = vmul.f32 %v1249_v4, %v1512_v23 }
  0x61   : > { %v1253_v26 = vpop.eup %1252  ;;  %1116 = vst [vmem:[%s1507_s28 + $0x50] sm:$0xff] %v1065_v25   ;;  %v1070_v31 = vpack.c.bf16 %v595_v10, %v594_v44  ;;  %v597_v48 = vmul.f32 %v1251_v11, %v1519_v24 }
  0x62   : > { %v1255_v46 = vpop.eup %1254  ;;  %v503_v51 = vadd.f32 1.0, %v1253_v26 }
  0x63   : > { %v1257_v52 = vpop.eup %1256  ;;  %1117 = vst [vmem:[%s1507_s28 + $0x58] sm:$0xff] %v1070_v31   ;;  %v1075_v63 = vpack.c.bf16 %v597_v48, %v596_v40  ;;  %v504_v54 = vadd.f32 1.0, %v1255_v46 }
  0x64   : > { %v1259_v27 = vpop.eup %1258  ;;  %1264 = vrcp.f32 %v503_v51  ;;  %v505_v36 = vadd.f32 1.0, %v1257_v52 }
  0x65   : > { %1118 = vst [vmem:[%s1507_s28 + $0x60] sm:$0xff] %v1075_v63   ;;  %1266 = vrcp.f32 %v504_v54  ;;  %v506_v8 = vadd.f32 1.0, %v1259_v27  ;;  %v1261_v28 = vpop.eup %1260 }
  0x66   : > { %1268 = vrcp.f32 %v505_v36  ;;  %v507_v23 = vadd.f32 1.0, %v1261_v28  ;;  %v1263_v24 = vpop.eup %1262 }
  0x67   : > { %1270 = vrcp.f32 %v506_v8  ;;  %v598_v1 = vmul.f32 %v1263_v24, %v1534_v5 }
  0x68   : > { %1272 = vrcp.f32 %v507_v23 }
  0x71   : > { %v1265_v57 = vpop.eup %1264 }
  0x72   : > { %v1267_v60 = vpop.eup %1266  ;;  %v599_v61 = vmul.f32 %v1265_v57, %v1549_v6 }
  0x73   : > { %v1269_v62 = vpop.eup %1268  ;;  %v600_v29 = vmul.f32 %v1267_v60, %v1552_v7 }
  0x74   : > { %v1271_v53 = vpop.eup %1270  ;;  %v1080_v55 = vpack.c.bf16 %v599_v61, %v598_v1  ;;  %v601_v12 = vmul.f32 %v1269_v62, %v1557_v47 }
  0x75   : > { %v602_v13 = vmul.f32 %v1271_v53, %v1561_v50  ;;  %v1273_v14 = vpop.eup %1272 }
  0x76   : > { %1119 = vst [vmem:[%s1507_s28 + $0x68] sm:$0xff] %v1080_v55   ;;  %v1085_v9 = vpack.c.bf16 %v601_v12, %v600_v29  ;;  %v603_v15 = vmul.f32 %v1273_v14, %v1566_v56 }
  0x78   : > { %1120 = vst [vmem:[%s1507_s28 + $0x70] sm:$0xff] %v1085_v9   ;;  %v1090_v5 = vpack.c.bf16 %v603_v15, %v602_v13 }
  0x7a   : > { %1121 = vst [vmem:[%s1507_s28 + $0x78] sm:$0xff] %v1090_v5  }
  0x7b PF: > { %s13_s14 = sadd.s32 1, %s1296_s14   ;;  %s1611_s12 = smov %s1292_s13 }
  0x7c   : > { %p10_p5 = scmp.ge.s32.totalorder %s13_s14, 4   ;;  %s1612_s13 = smov %s1614_s15 }
  0x7e   :  { %12 = sbr.rel (!%p10_p5) target bundleno = 2 (0x2), region = 68 }

// kernel: encoder_block_forward.19
= control target key start
LH: loop header
LB: loop body
LE: loop exit
PB: predicated region body
PF: predicated region fallthrough
CT: control target
= control target key end

     0   :  { %s1180_s12 = smov 0   ;;  %s1182_s13 = smov 0   ;;  %s1330_s0 = inlined_call_operand.vmem [shape: bf16[512,128], index: 0, kind: input, shape index: {}]   ;;  %s1331_s1 = inlined_call_operand.vmem [shape: bf16[128,128], index: 1, kind: input, shape index: {}]   ;;  %s1332_s2 = inlined_call_operand.vmem [shape: f32[1,128], index: 2, kind: input, shape index: {}]   ;;  %s1333_s3 = inlined_call_operand.vmem [shape: f32[512,128], index: 3, kind: output, shape index: {}]  }
   0x1   :  { %s1184_s14 = smov 0  }
   0x2 LB: > { %s32_s15 = sadd.s32 1, %s1154_s13  ;;  %p968_p0 = scmp.ge.s32.totalorder %s1158_s14, 1  ;;  %s1158_s14 = sphi %s1184_s14, %s13_s14   ;;  %s1154_s13 = sphi %s1182_s13, %s1335_s13   ;;  %s1150_s12 = sphi %s1180_s12, %s1334_s12  }
   0x3   : > { %p34_p1 = scmp.ge.s32.totalorder %s32_s15, 2  ;;  %p188_p2 = scmp.lt.s32.totalorder %s1158_s14, 3 }
   0x5   : > { %s1337_s15 = smov (%p34_p1, %s32_s15), 0  ;;  %p189_p3 = pnand %p968_p0, %p188_p2 }
   0x6   : > { %s969_s18 = sshll.u32 (!%p189_p3), %s1150_s12, 5 }
   0x7   : > { %192 = sbr.rel (%p189_p3) target bundleno = 271 (0x10f), region = 32  ;;  %p230_p4 = scmp.lt.s32.totalorder (!%p189_p3), %s969_s18, 63 }
   0xc   : > { %v1112_v0 = vld [vmem:[%s1331_s1 + $0x38] sm:$0xff]   ;;  %v1113_v1 = vld [vmem:[%s1331_s1 + $0x30] sm:$0xff]   ;;  %s1339_s18 = smov (!%p230_p4, %s969_s18), 63  ;;  %v1114_v2 = vld [vmem:[%s1331_s1 + $0x28] sm:$0xff]  }
   0xd   : > { %1024 = vmatprep.subr.bf16.mxu0 %v1112_v0  ;;  %1072 = vmatprep.subr.bf16.mxu1 %v1112_v0  ;;  %s970_s23 = sshll.u32 %s1339_s18, 2  ;;  %v1115_v3 = vld [vmem:[%s1331_s1 + $0x20] sm:$0xff]   ;;  %v1116_v6 = vld [vmem:[%s1331_s1 + $0x18] sm:$0xff]   ;;  %v1117_v7 = vld [vmem:[%s1331_s1 + $0x10] sm:$0xff]   ;;  %s972_s10 = sshll.u32 %s1339_s18, 3 }
   0xe   : > { %1025 = vmatpush3.bf16.msra.mxu0 %v1112_v0  ;;  %1080 = vmatpush3.bf16.msra.mxu1 %v1112_v0  ;;  %s1213_s26 = scalar_lea.vmem %s1330_s0, %s970_s23  ;;  %v1118_v8 = vld [vmem:[%s1331_s1 + $0x8] sm:$0xff]   ;;  %v1119_v9 = vld [vmem:[%s1331_s1] sm:$0xff]   ;;  %s1255_s19 = scalar_lea.vmem %s1333_s3, %s972_s10 }
   0xf   : > { %1026 = vmatprep.subr.bf16.mxu0 %v1113_v1  ;;  %1073 = vmatprep.subr.bf16.mxu1 %v1113_v1  ;;  %v1120_v4 = vld [vmem:[%s1213_s26] sm:$0xff]   ;;  %v1122_v10 = vld [vmem:[%s1213_s26 + $0x8] sm:$0xff]   ;;  %v1124_v12 = vld [vmem:[%s1213_s26 + $0x10] sm:$0xff]  }
  0x10   : > { %v1121_v5 = vld [vmem:[%s1213_s26 + $0x40] sm:$0xff]   ;;  %1040 = vmatprep.mubr.bf16.mxu0 %v1120_v4  ;;  %v1123_v11 = vld [vmem:[%s1213_s26 + $0x48] sm:$0xff]   ;;  %v1125_v13 = vld [vmem:[%s1213_s26 + $0x50] sm:$0xff]  }
  0x11   : > { %1056 = vmatprep.mubr.bf16.mxu1 %v1121_v5  ;;  %v1126_v14 = vld [vmem:[%s1213_s26 + $0x18] sm:$0xff]   ;;  %v1128_v16 = vld [vmem:[%s1213_s26 + $0x20] sm:$0xff]   ;;  %v1130_v18 = vld [vmem:[%s1213_s26 + $0x28] sm:$0xff]  }
  0x12   : > { %1027 = vmatpush3.bf16.msra.mxu0 %v1113_v1  ;;  %1081 = vmatpush3.bf16.msra.mxu1 %v1113_v1  ;;  %v1127_v15 = vld [vmem:[%s1213_s26 + $0x58] sm:$0xff]   ;;  %v1129_v17 = vld [vmem:[%s1213_s26 + $0x60] sm:$0xff]   ;;  %v1131_v19 = vld [vmem:[%s1213_s26 + $0x68] sm:$0xff]  }
  0x13   : > { %1028 = vmatprep.subr.bf16.mxu0 %v1114_v2  ;;  %1074 = vmatprep.subr.bf16.mxu1 %v1114_v2  ;;  %v1132_v20 = vld [vmem:[%s1213_s26 + $0x30] sm:$0xff]   ;;  %v1134_v22 = vld [vmem:[%s1213_s26 + $0x38] sm:$0xff]   ;;  %v1250_v24 = vld [vmem:[%s1332_s2] ss:$0 sm:$0xff] }
  0x14   : > { %v1133_v21 = vld [vmem:[%s1213_s26 + $0x70] sm:$0xff]   ;;  %v1135_v23 = vld [vmem:[%s1213_s26 + $0x78] sm:$0xff]  }
  0x16   : > { %1029 = vmatpush3.bf16.msra.mxu0 %v1114_v2  ;;  %1082 = vmatpush3.bf16.msra.mxu1 %v1114_v2 }
  0x17   : > { %1030 = vmatprep.subr.bf16.mxu0 %v1115_v3  ;;  %1075 = vmatprep.subr.bf16.mxu1 %v1115_v3 }
  0x1a   : > { %1031 = vmatpush3.bf16.msra.mxu0 %v1115_v3  ;;  %1083 = vmatpush3.bf16.msra.mxu1 %v1115_v3 }
  0x1b   : > { %1032 = vmatprep.subr.bf16.mxu0 %v1116_v6  ;;  %1076 = vmatprep.subr.bf16.mxu1 %v1116_v6 }
  0x1e   : > { %1033 = vmatpush3.bf16.msra.mxu0 %v1116_v6  ;;  %1084 = vmatpush3.bf16.msra.mxu1 %v1116_v6 }
  0x1f   : > { %1034 = vmatprep.subr.bf16.mxu0 %v1117_v7  ;;  %1077 = vmatprep.subr.bf16.mxu1 %v1117_v7 }
  0x22   : > { %1035 = vmatpush3.bf16.msra.mxu0 %v1117_v7  ;;  %1085 = vmatpush3.bf16.msra.mxu1 %v1117_v7 }
  0x23   : > { %1036 = vmatprep.subr.bf16.mxu0 %v1118_v8  ;;  %1078 = vmatprep.subr.bf16.mxu1 %v1118_v8 }
  0x26   : > { %1037 = vmatpush3.bf16.msra.mxu0 %v1118_v8  ;;  %1086 = vmatpush3.bf16.msra.mxu1 %v1118_v8 }
  0x27   : > { %1038 = vmatprep.subr.bf16.mxu0 %v1119_v9  ;;  %1079 = vmatprep.subr.bf16.mxu1 %v1119_v9 }
  0x2a   : > { %1039 = vmatpush3.bf16.msra.mxu0 %v1119_v9  ;;  %1087 = vmatpush3.bf16.msra.mxu1 %v1119_v9 }
  0x2d   : > { %1041 = vmatmul.mubr.bf16.vlgmr.msra.gmra.mxu0 %v1122_v10  ;;  %1057 = vmatmul.mubr.bf16.vlgmr.msra.gmra.mxu1 %v1123_v11 }
  0x2e   : > { %1044 = vmatprep.mubr.bf16.mxu0 %v1124_v12  ;;  %1060 = vmatprep.mubr.bf16.mxu1 %v1125_v13 }
  0x35   : > { %1045 = vmatmul.mubr.bf16.gmra.mxu0 %v1126_v14  ;;  %1061 = vmatmul.mubr.bf16.gmra.mxu1 %v1127_v15 }
  0x36   : > { %1048 = vmatprep.mubr.bf16.mxu0 %v1128_v16  ;;  %1064 = vmatprep.mubr.bf16.mxu1 %v1129_v17 }
  0x3d   : > { %1049 = vmatmul.mubr.bf16.gmra.mxu0 %v1130_v18  ;;  %1065 = vmatmul.mubr.bf16.gmra.mxu1 %v1131_v19 }
  0x3e   : > { %1052 = vmatprep.mubr.bf16.mxu0 %v1132_v20  ;;  %1068 = vmatprep.mubr.bf16.mxu1 %v1133_v21 }
  0x45   : > { %1053 = vmatmul.mubr.bf16.gmra.mxu0 %v1134_v22  ;;  %1069 = vmatmul.mubr.bf16.gmra.mxu1 %v1135_v23 }
  0xed   : > { %v1042_v25 = vpop.f32.mrf.mxu0  ;;  %v1058_v26 = vpop.f32.mrf.mxu1 }
  0xee   : > { %v789_v27 = vadd.f32 %v1042_v25, %v1250_v24  ;;  %v805_v28 = vadd.f32 %v1058_v26, %v1250_v24 }
  0xef   : > { %v554_v29 = vpop.f32.mrf.mxu0  ;;  %v618_v30 = vpop.f32.mrf.mxu1 }
  0xf0   : > { %821 = vst [vmem:[%s1255_s19 + $0x10] sm:$0xff] %v789_v27  ;;  %837 = vst [vmem:[%s1255_s19 + $0x90] sm:$0xff] %v805_v28  ;;  %v787_v31 = vadd.f32 %v1250_v24, %v554_v29  ;;  %v803_v32 = vadd.f32 %v1250_v24, %v618_v30 }
  0xf1   : > { %v1043_v33 = vpop.f32.mrf.mxu0  ;;  %v1059_v34 = vpop.f32.mrf.mxu1 }
  0xf2   : > { %819 = vst [vmem:[%s1255_s19] sm:$0xff] %v787_v31  ;;  %835 = vst [vmem:[%s1255_s19 + $0x80] sm:$0xff] %v803_v32  ;;  %v790_v35 = vadd.f32 %v1043_v33, %v1250_v24  ;;  %v806_v36 = vadd.f32 %v1059_v34, %v1250_v24 }
  0xf3   : > { %v557_v37 = vpop.f32.mrf.mxu0  ;;  %v621_v38 = vpop.f32.mrf.mxu1 }
  0xf4   : > { %822 = vst [vmem:[%s1255_s19 + $0x18] sm:$0xff] %v790_v35  ;;  %838 = vst [vmem:[%s1255_s19 + $0x98] sm:$0xff] %v806_v36  ;;  %v788_v39 = vadd.f32 %v1250_v24, %v557_v37  ;;  %v804_v40 = vadd.f32 %v1250_v24, %v621_v38 }
  0xf5   : > { %v1046_v41 = vpop.f32.mrf.mxu0  ;;  %v1062_v42 = vpop.f32.mrf.mxu1 }
  0xf6   : > { %820 = vst [vmem:[%s1255_s19 + $0x8] sm:$0xff] %v788_v39  ;;  %836 = vst [vmem:[%s1255_s19 + $0x88] sm:$0xff] %v804_v40  ;;  %v793_v43 = vadd.f32 %v1046_v41, %v1250_v24  ;;  %v809_v44 = vadd.f32 %v1062_v42, %v1250_v24 }
  0xf7   : > { %v570_v45 = vpop.f32.mrf.mxu0  ;;  %v634_v46 = vpop.f32.mrf.mxu1 }
  0xf8   : > { %825 = vst [vmem:[%s1255_s19 + $0x30] sm:$0xff] %v793_v43  ;;  %841 = vst [vmem:[%s1255_s19 + $0xb0] sm:$0xff] %v809_v44  ;;  %v791_v47 = vadd.f32 %v1250_v24, %v570_v45  ;;  %v807_v48 = vadd.f32 %v1250_v24, %v634_v46 }
  0xf9   : > { %v1047_v49 = vpop.f32.mrf.mxu0  ;;  %v1063_v50 = vpop.f32.mrf.mxu1 }
  0xfa   : > { %823 = vst [vmem:[%s1255_s19 + $0x20] sm:$0xff] %v791_v47  ;;  %839 = vst [vmem:[%s1255_s19 + $0xa0] sm:$0xff] %v807_v48  ;;  %v794_v51 = vadd.f32 %v1047_v49, %v1250_v24  ;;  %v810_v52 = vadd.f32 %v1063_v50, %v1250_v24 }
  0xfb   : > { %v573_v53 = vpop.f32.mrf.mxu0  ;;  %v637_v54 = vpop.f32.mrf.mxu1 }
  0xfc   : > { %826 = vst [vmem:[%s1255_s19 + $0x38] sm:$0xff] %v794_v51  ;;  %842 = vst [vmem:[%s1255_s19 + $0xb8] sm:$0xff] %v810_v52  ;;  %v792_v55 = vadd.f32 %v1250_v24, %v573_v53  ;;  %v808_v56 = vadd.f32 %v1250_v24, %v637_v54 }
  0xfd   : > { %v1050_v57 = vpop.f32.mrf.mxu0  ;;  %v1066_v58 = vpop.f32.mrf.mxu1 }
  0xfe   : > { %824 = vst [vmem:[%s1255_s19 + $0x28] sm:$0xff] %v792_v55  ;;  %840 = vst [vmem:[%s1255_s19 + $0xa8] sm:$0xff] %v808_v56  ;;  %v797_v59 = vadd.f32 %v1050_v57, %v1250_v24  ;;  %v813_v60 = vadd.f32 %v1066_v58, %v1250_v24 }
  0xff   : > { %v586_v61 = vpop.f32.mrf.mxu0  ;;  %v650_v62 = vpop.f32.mrf.mxu1 }
 0x100   : > { %829 = vst [vmem:[%s1255_s19 + $0x50] sm:$0xff] %v797_v59  ;;  %845 = vst [vmem:[%s1255_s19 + $0xd0] sm:$0xff] %v813_v60  ;;  %v795_v63 = vadd.f32 %v1250_v24, %v586_v61  ;;  %v811_v0 = vadd.f32 %v1250_v24, %v650_v62 }
 0x101   : > { %v1051_v1 = vpop.f32.mrf.mxu0  ;;  %v1067_v2 = vpop.f32.mrf.mxu1 }
 0x102   : > { %827 = vst [vmem:[%s1255_s19 + $0x40] sm:$0xff] %v795_v63  ;;  %843 = vst [vmem:[%s1255_s19 + $0xc0] sm:$0xff] %v811_v0  ;;  %v798_v3 = vadd.f32 %v1051_v1, %v1250_v24  ;;  %v814_v4 = vadd.f32 %v1067_v2, %v1250_v24 }
 0x103   : > { %v589_v5 = vpop.f32.mrf.mxu0  ;;  %v653_v6 = vpop.f32.mrf.mxu1 }
 0x104   : > { %830 = vst [vmem:[%s1255_s19 + $0x58] sm:$0xff] %v798_v3  ;;  %846 = vst [vmem:[%s1255_s19 + $0xd8] sm:$0xff] %v814_v4  ;;  %v796_v7 = vadd.f32 %v1250_v24, %v589_v5  ;;  %v812_v8 = vadd.f32 %v1250_v24, %v653_v6 }
 0x105   : > { %v1054_v9 = vpop.f32.mrf.mxu0  ;;  %v1070_v10 = vpop.f32.mrf.mxu1 }
 0x106   : > { %828 = vst [vmem:[%s1255_s19 + $0x48] sm:$0xff] %v796_v7  ;;  %844 = vst [vmem:[%s1255_s19 + $0xc8] sm:$0xff] %v812_v8  ;;  %v801_v11 = vadd.f32 %v1054_v9, %v1250_v24  ;;  %v817_v12 = vadd.f32 %v1070_v10, %v1250_v24 }
 0x107   : > { %v602_v13 = vpop.f32.mrf.mxu0  ;;  %v666_v14 = vpop.f32.mrf.mxu1 }
 0x108   : > { %833 = vst [vmem:[%s1255_s19 + $0x70] sm:$0xff] %v801_v11  ;;  %849 = vst [vmem:[%s1255_s19 + $0xf0] sm:$0xff] %v817_v12  ;;  %v799_v15 = vadd.f32 %v1250_v24, %v602_v13  ;;  %v815_v16 = vadd.f32 %v1250_v24, %v666_v14 }
 0x109   : > { %v1055_v17 = vpop.f32.mrf.mxu0  ;;  %v1071_v18 = vpop.f32.mrf.mxu1 }
 0x10a   : > { %831 = vst [vmem:[%s1255_s19 + $0x60] sm:$0xff] %v799_v15  ;;  %847 = vst [vmem:[%s1255_s19 + $0xe0] sm:$0xff] %v815_v16  ;;  %v802_v19 = vadd.f32 %v1055_v17, %v1250_v24  ;;  %v818_v20 = vadd.f32 %v1071_v18, %v1250_v24 }
 0x10b   : > { %v605_v21 = vpop.f32.mrf.mxu0  ;;  %v669_v22 = vpop.f32.mrf.mxu1 }
 0x10c   : > { %834 = vst [vmem:[%s1255_s19 + $0x78] sm:$0xff] %v802_v19  ;;  %850 = vst [vmem:[%s1255_s19 + $0xf8] sm:$0xff] %v818_v20  ;;  %v800_v23 = vadd.f32 %v1250_v24, %v605_v21  ;;  %v816_v25 = vadd.f32 %v1250_v24, %v669_v22 }
 0x10e   : > { %832 = vst [vmem:[%s1255_s19 + $0x68] sm:$0xff] %v800_v23  ;;  %848 = vst [vmem:[%s1255_s19 + $0xe8] sm:$0xff] %v816_v25 }
 0x10f PF: > { %s13_s14 = sadd.s32 1, %s1158_s14   ;;  %s1334_s12 = smov %s1154_s13 }
 0x110   : > { %p10_p5 = scmp.ge.s32.totalorder %s13_s14, 4   ;;  %s1335_s13 = smov %s1337_s15 }
 0x112   :  { %12 = sbr.rel (!%p10_p5) target bundleno = 2 (0x2), region = 76 }

// kernel: encoder_block_forward.21
= control target key start
LH: loop header
LB: loop body
LE: loop exit
PB: predicated region body
PF: predicated region fallthrough
CT: control target
= control target key end

     0   :  { %s488_s9 = smov 0   ;;  %s490_s10 = smov 0   ;;  %s568_s0 = inlined_call_operand.vmem [shape: f32[2,256,128], index: 0, kind: input, shape index: {}]   ;;  %s569_s1 = inlined_call_operand.vmem [shape: f32[2,1,128], index: 1, kind: output, shape index: {0}]   ;;  %s570_s2 = inlined_call_operand.vmem [shape: f32[2,1,128], index: 2, kind: output, shape index: {1}]  }
   0x1   :  { %s492_s11 = smov 0  }
   0x2 LB: > { %s25_s12 = sadd.s32 1, %s466_s10  ;;  %p417_p0 = scmp.ge.s32.totalorder %s470_s11, 1  ;;  %s470_s11 = sphi %s492_s11, %s13_s11   ;;  %s466_s10 = sphi %s490_s10, %s572_s10   ;;  %s462_s9 = sphi %s488_s9, %s571_s9  }
   0x3   : > { %p27_p1 = scmp.ge.s32.totalorder %s25_s12, 2  ;;  %p134_p2 = scmp.lt.s32.totalorder %s470_s11, 3 }
   0x5   : > { %s574_s12 = smov (%p27_p1, %s25_s12), 0  ;;  %p135_p3 = pnand %p417_p0, %p134_p2 }
   0x6   : > { %p162_p4 = scmp.lt.s32.totalorder (!%p135_p3), %s462_s9, 1 }
   0x7   : > { %138 = sbr.rel (%p135_p3) target bundleno = 95 (0x5f), region = 24 }
   0xc   : > { %s576_s9 = smov (!%p162_p4, %s462_s9), 1  ;;  %v472_v0 = vmov 0.0  }
   0xd   : > { %s422_s13 = sshll.u32 %s576_s9, 8  ;;  %s509_s16 = scalar_lea.vmem %s569_s1, %s576_s9 }
   0xe   : > { %s514_s19 = scalar_lea.vmem %s568_s0, %s422_s13  ;;  %181 = vst [vmem:[%s509_s16] sm:$0x1] %v472_v0  ;;  %s520_s22 = scalar_lea.vmem %s570_s2, %s576_s9 }
   0xf   : > { %182 = vst [vmem:[%s520_s22] sm:$0x1] %v472_v0  ;;  %v183_v1 = vld [vmem:[%s514_s19] sm:$0xff]  ;;  %v184_v2 = vld [vmem:[%s514_s19 + $0x8] sm:$0xff]  ;;  %v185_v3 = vld [vmem:[%s514_s19 + $0x10] sm:$0xff] }
  0x10   : > { %v186_v4 = vld [vmem:[%s514_s19 + $0x18] sm:$0xff]  ;;  %v216_v5 = vadd.f32 %v184_v2, %v183_v1  ;;  %v256_v6 = vmul.f32 %v183_v1, %v183_v1  ;;  %v257_v7 = vmul.f32 %v184_v2, %v184_v2  ;;  %v258_v8 = vmul.f32 %v185_v3, %v185_v3  ;;  %v187_v9 = vld [vmem:[%s514_s19 + $0x20] sm:$0xff]  ;;  %v188_v13 = vld [vmem:[%s514_s19 + $0x28] sm:$0xff] }
  0x11   : > { %v259_v11 = vmul.f32 %v186_v4, %v186_v4  ;;  %v260_v15 = vmul.f32 %v187_v9, %v187_v9  ;;  %v189_v17 = vld [vmem:[%s514_s19 + $0x30] sm:$0xff]  ;;  %v261_v19 = vmul.f32 %v188_v13, %v188_v13  ;;  %v190_v21 = vld [vmem:[%s514_s19 + $0x38] sm:$0xff]  ;;  %v191_v25 = vld [vmem:[%s514_s19 + $0x40] sm:$0xff] }
  0x12   : > { %v217_v10 = vadd.f32 %v216_v5, %v185_v3  ;;  %v288_v12 = vadd.f32 %v257_v7, %v256_v6  ;;  %v262_v23 = vmul.f32 %v189_v17, %v189_v17  ;;  %v263_v27 = vmul.f32 %v190_v21, %v190_v21  ;;  %v192_v29 = vld [vmem:[%s514_s19 + $0x48] sm:$0xff]  ;;  %v193_v33 = vld [vmem:[%s514_s19 + $0x50] sm:$0xff]  ;;  %v194_v37 = vld [vmem:[%s514_s19 + $0x58] sm:$0xff] }
  0x13   : > { %v264_v31 = vmul.f32 %v191_v25, %v191_v25  ;;  %v265_v35 = vmul.f32 %v192_v29, %v192_v29  ;;  %v266_v39 = vmul.f32 %v193_v33, %v193_v33  ;;  %v195_v41 = vld [vmem:[%s514_s19 + $0x60] sm:$0xff]  ;;  %v267_v43 = vmul.f32 %v194_v37, %v194_v37  ;;  %v196_v45 = vld [vmem:[%s514_s19 + $0x68] sm:$0xff]  ;;  %v197_v49 = vld [vmem:[%s514_s19 + $0x70] sm:$0xff] }
  0x14   : > { %v218_v14 = vadd.f32 %v217_v10, %v186_v4  ;;  %v289_v16 = vadd.f32 %v288_v12, %v258_v8  ;;  %v268_v47 = vmul.f32 %v195_v41, %v195_v41  ;;  %v269_v51 = vmul.f32 %v196_v45, %v196_v45  ;;  %v198_v53 = vld [vmem:[%s514_s19 + $0x78] sm:$0xff]  ;;  %v199_v57 = vld [vmem:[%s514_s19 + $0x80] sm:$0xff]  ;;  %v200_v61 = vld [vmem:[%s514_s19 + $0x88] sm:$0xff] }
  0x15   : > { %v270_v55 = vmul.f32 %v197_v49, %v197_v49  ;;  %v271_v59 = vmul.f32 %v198_v53, %v198_v53  ;;  %v272_v63 = vmul.f32 %v199_v57, %v199_v57  ;;  %v201_v1 = vld [vmem:[%s514_s19 + $0x90] sm:$0xff]  ;;  %v273_v3 = vmul.f32 %v200_v61, %v200_v61  ;;  %v202_v5 = vld [vmem:[%s514_s19 + $0x98] sm:$0xff] }
  0x16   : > { %v219_v18 = vadd.f32 %v218_v14, %v187_v9  ;;  %v290_v20 = vadd.f32 %v289_v16, %v259_v11  ;;  %v274_v7 = vmul.f32 %v201_v1, %v201_v1  ;;  %v203_v9 = vld [vmem:[%s514_s19 + $0xa0] sm:$0xff]  ;;  %v275_v11 = vmul.f32 %v202_v5, %v202_v5 }
  0x18   : > { %v220_v22 = vadd.f32 %v219_v18, %v188_v13  ;;  %v291_v24 = vadd.f32 %v290_v20, %v260_v15  ;;  %v204_v13 = vld [vmem:[%s514_s19 + $0xa8] sm:$0xff]  ;;  %v276_v15 = vmul.f32 %v203_v9, %v203_v9 }
  0x1a   : > { %v221_v26 = vadd.f32 %v220_v22, %v189_v17  ;;  %v292_v28 = vadd.f32 %v291_v24, %v261_v19  ;;  %v205_v17 = vld [vmem:[%s514_s19 + $0xb0] sm:$0xff]  ;;  %v277_v19 = vmul.f32 %v204_v13, %v204_v13 }
  0x1c   : > { %v222_v30 = vadd.f32 %v221_v26, %v190_v21  ;;  %v293_v32 = vadd.f32 %v292_v28, %v262_v23  ;;  %v206_v21 = vld [vmem:[%s514_s19 + $0xb8] sm:$0xff]  ;;  %v278_v23 = vmul.f32 %v205_v17, %v205_v17 }
  0x1e   : > { %v223_v34 = vadd.f32 %v222_v30, %v191_v25  ;;  %v294_v36 = vadd.f32 %v293_v32, %v263_v27  ;;  %v207_v25 = vld [vmem:[%s514_s19 + $0xc0] sm:$0xff]  ;;  %v279_v27 = vmul.f32 %v206_v21, %v206_v21 }
  0x20   : > { %v224_v38 = vadd.f32 %v223_v34, %v192_v29  ;;  %v295_v40 = vadd.f32 %v294_v36, %v264_v31  ;;  %v208_v29 = vld [vmem:[%s514_s19 + $0xc8] sm:$0xff]  ;;  %v280_v31 = vmul.f32 %v207_v25, %v207_v25 }
  0x22   : > { %v225_v42 = vadd.f32 %v224_v38, %v193_v33  ;;  %v296_v44 = vadd.f32 %v295_v40, %v265_v35  ;;  %v209_v33 = vld [vmem:[%s514_s19 + $0xd0] sm:$0xff]  ;;  %v281_v35 = vmul.f32 %v208_v29, %v208_v29 }
  0x24   : > { %v226_v46 = vadd.f32 %v225_v42, %v194_v37  ;;  %v297_v48 = vadd.f32 %v296_v44, %v266_v39  ;;  %v210_v37 = vld [vmem:[%s514_s19 + $0xd8] sm:$0xff]  ;;  %v282_v39 = vmul.f32 %v209_v33, %v209_v33 }
  0x26   : > { %v227_v50 = vadd.f32 %v226_v46, %v195_v41  ;;  %v298_v52 = vadd.f32 %v297_v48, %v267_v43  ;;  %v211_v41 = vld [vmem:[%s514_s19 + $0xe0] sm:$0xff]  ;;  %v283_v43 = vmul.f32 %v210_v37, %v210_v37 }
  0x28   : > { %v228_v54 = vadd.f32 %v227_v50, %v196_v45  ;;  %v299_v56 = vadd.f32 %v298_v52, %v268_v47  ;;  %v212_v45 = vld [vmem:[%s514_s19 + $0xe8] sm:$0xff]  ;;  %v284_v47 = vmul.f32 %v211_v41, %v211_v41 }
  0x2a   : > { %v229_v58 = vadd.f32 %v228_v54, %v197_v49  ;;  %v300_v60 = vadd.f32 %v299_v56, %v269_v51  ;;  %v213_v49 = vld [vmem:[%s514_s19 + $0xf0] sm:$0xff]  ;;  %v285_v51 = vmul.f32 %v212_v45, %v212_v45 }
  0x2c   : > { %v230_v62 = vadd.f32 %v229_v58, %v198_v53  ;;  %v301_v0 = vadd.f32 %v300_v60, %v270_v55  ;;  %v214_v53 = vld [vmem:[%s514_s19 + $0xf8] sm:$0xff]  ;;  %v286_v55 = vmul.f32 %v213_v49, %v213_v49 }
  0x2d   : > { %v287_v58 = vmul.f32 %v214_v53, %v214_v53 }
  0x2e   : > { %v231_v2 = vadd.f32 %v230_v62, %v199_v57  ;;  %v302_v4 = vadd.f32 %v301_v0, %v271_v59 }
  0x30   : > { %v232_v6 = vadd.f32 %v231_v2, %v200_v61  ;;  %v303_v8 = vadd.f32 %v302_v4, %v272_v63 }
  0x32   : > { %v233_v10 = vadd.f32 %v232_v6, %v201_v1  ;;  %v304_v12 = vadd.f32 %v303_v8, %v273_v3 }
  0x34   : > { %v234_v14 = vadd.f32 %v233_v10, %v202_v5  ;;  %v305_v16 = vadd.f32 %v304_v12, %v274_v7  ;;  %v215_v7 = vld [vmem:[%s509_s16] sm:$0x1] }
  0x35   : > { %v255_v12 = vld [vmem:[%s520_s22] sm:$0x1] }
  0x36   : > { %v235_v18 = vadd.f32 %v234_v14, %v203_v9  ;;  %v306_v20 = vadd.f32 %v305_v16, %v275_v11 }
  0x38   : > { %v236_v22 = vadd.f32 %v235_v18, %v204_v13  ;;  %v307_v24 = vadd.f32 %v306_v20, %v276_v15 }
  0x3a   : > { %v237_v26 = vadd.f32 %v236_v22, %v205_v17  ;;  %v308_v28 = vadd.f32 %v307_v24, %v277_v19 }
  0x3c   : > { %v238_v30 = vadd.f32 %v237_v26, %v206_v21  ;;  %v309_v32 = vadd.f32 %v308_v28, %v278_v23 }
  0x3e   : > { %v239_v34 = vadd.f32 %v238_v30, %v207_v25  ;;  %v310_v36 = vadd.f32 %v309_v32, %v279_v27 }
  0x40   : > { %v240_v38 = vadd.f32 %v239_v34, %v208_v29  ;;  %v311_v40 = vadd.f32 %v310_v36, %v280_v31 }
  0x42   : > { %v241_v42 = vadd.f32 %v240_v38, %v209_v33  ;;  %v312_v44 = vadd.f32 %v311_v40, %v281_v35 }
  0x44   : > { %v242_v46 = vadd.f32 %v241_v42, %v210_v37  ;;  %v313_v48 = vadd.f32 %v312_v44, %v282_v39 }
  0x46   : > { %v243_v50 = vadd.f32 %v242_v46, %v211_v41  ;;  %v314_v52 = vadd.f32 %v313_v48, %v283_v43 }
  0x48   : > { %v244_v54 = vadd.f32 %v243_v50, %v212_v45  ;;  %v315_v56 = vadd.f32 %v314_v52, %v284_v47 }
  0x4a   : > { %v245_v57 = vadd.f32 %v244_v54, %v213_v49  ;;  %v316_v59 = vadd.f32 %v315_v56, %v285_v51 }
  0x4c   : > { %v246_v60 = vadd.f32 %v245_v57, %v214_v53  ;;  %v317_v61 = vadd.f32 %v316_v59, %v286_v55 }
  0x4e   : > { %v247_v62 = vrot.slane %v246_v60, 4  ;;  %v318_v63 = vadd.f32 %v317_v61, %v287_v58 }
  0x50   : > { %v248_v0 = vadd.f32 %v247_v62, %v246_v60  ;;  %v319_v1 = vrot.slane %v318_v63, 4 }
  0x52   : > { %v249_v2 = vrot.slane %v248_v0, 2  ;;  %v320_v3 = vadd.f32 %v319_v1, %v318_v63 }
  0x54   : > { %v250_v4 = vadd.f32 %v249_v2, %v248_v0  ;;  %v321_v5 = vrot.slane %v320_v3, 2 }
  0x56   : > { %v251_v6 = vrot.slane %v250_v4, 1  ;;  %v322_v8 = vadd.f32 %v321_v5, %v320_v3 }
  0x58   : > { %v252_v9 = vadd.f32 %v251_v6, %v250_v4  ;;  %v323_v10 = vrot.slane %v322_v8, 1 }
  0x5a   : > { %v253_v11 = vadd.f32 %v252_v9, %v215_v7  ;;  %v324_v13 = vadd.f32 %v323_v10, %v322_v8 }
  0x5c   : > { %254 = vst [vmem:[%s509_s16] sm:$0x1] %v253_v11  ;;  %v325_v14 = vadd.f32 %v324_v13, %v255_v12 }
  0x5e   : > { %326 = vst [vmem:[%s520_s22] sm:$0x1] %v325_v14 }
  0x5f PF: > { %s13_s11 = sadd.s32 1, %s470_s11   ;;  %s571_s9 = smov %s466_s10 }
  0x60   : > { %p10_p5 = scmp.ge.s32.totalorder %s13_s11, 4   ;;  %s572_s10 = smov %s574_s12 }
  0x62   :  { %12 = sbr.rel (!%p10_p5) target bundleno = 2 (0x2), region = 70 }

// kernel: encoder_block_forward.20
= control target key start
LH: loop header
LB: loop body
LE: loop exit
PB: predicated region body
PF: predicated region fallthrough
CT: control target
= control target key end

     0   :  { %s2328_s15 = smov 0   ;;  %s2330_s16 = smov 0   ;;  %s2774_s0 = inlined_call_operand.vmem [shape: bf16[512,1152], index: 0, kind: input, shape index: {}]   ;;  %s2775_s1 = inlined_call_operand.vmem [shape: bf16[1152,128], index: 1, kind: input, shape index: {}]   ;;  %s2776_s2 = inlined_call_operand.vmem [shape: f32[1,128], index: 2, kind: input, shape index: {}]   ;;  %s2777_s3 = inlined_call_operand.vmem [shape: f32[512,128], index: 3, kind: input, shape index: {}]   ;;  %s2778_s4 = inlined_call_operand.vmem [shape: f32[512,128], index: 4, kind: output, shape index: {}]  }
   0x1   :  { %s2332_s17 = smov 0   ;;  %s2334_s18 = smov 0  }
   0x2   :  { %s2336_s19 = smov 0   ;;  %s2338_s20 = smov 0  }
   0x3   :  { %s2340_s21 = smov 0  }
   0x4 LB: > { %s26_s22 = sadd.s32 1, %s2292_s19  ;;  %s33_s23 = sadd.s32 1, %s2296_s20  ;;  %s2300_s21 = sphi %s2340_s21, %s14_s21   ;;  %s2296_s20 = sphi %s2338_s20, %s2784_s20   ;;  %s2292_s19 = sphi %s2336_s19, %s2783_s19   ;;  %s2288_s18 = sphi %s2334_s18, %s2782_s18   ;;  %s2284_s17 = sphi %s2332_s17, %s2781_s17   ;;  %s2280_s16 = sphi %s2330_s16, %s2780_s16   ;;  %s2276_s15 = sphi %s2328_s15, %s2779_s15  }
   0x5   : > { %p27_p0 = scmp.ge.s32.totalorder %s26_s22, 3  ;;  %p49_p1 = scmp.ne.s32.totalorder %s2280_s16, %s2276_s15 }
   0x6   : > { %p50_p2 = scmp.eq.s32.totalorder %s2300_s21, 0  ;;  %s42_s27 = sadd.s32 1, %s2280_s16 }
   0x7   : > { %s2786_s22 = smov (%p27_p0, %s26_s22), 0  ;;  %s2788_s23 = smov (!%p27_p0, %s33_s23), %s2296_s20 }
   0x8   : > { %p51_p3 = por %p50_p2, %p49_p1  ;;  %p35_p4 = scmp.ge.s32.totalorder %s2788_s23, 2 }
   0x9   : > { %s38_s24 = ssub.s32 %s2292_s19, %s2786_s22  ;;  %p1747_p6 = scmp.ge.s32.totalorder %s2300_s21, 6 }
   0xa   : > { %s2790_s23 = smov (%p35_p4, %s2788_s23), 0 }
   0xb   : > { %s37_s25 = ssub.s32 %s2296_s20, %s2790_s23  ;;  %191 = sbr.rel (%p1747_p6) target bundleno = 62 (0x3e), region = 20 }
   0xc   : > { %s39_s26 = sor.u32 %s38_s24, %s37_s25 }
   0xd   : > { %p40_p5 = scmp.eq.s32.totalorder %s39_s26, 0 }
   0xf   : > { %s2379_s28 = scalar_select %p40_p5, %s2280_s16, %s42_s27  }
  0x10   : > { %194 = sbr.rel (!%p51_p3) target bundleno = 62 (0x3e), region = 24  ;;  %s196_s29 = sand.u32 (%p51_p3), 1, %s2280_s16  }
  0x11   : > { %s200_s30 = smul.u32 (%p51_p3), 3, %s2292_s19 }
  0x12   : > { %s2098_s5 = smul.u32 (%p51_p3), 384, %s196_s29 }
  0x13   : > { %s2099_s6 = smul.u32 (%p51_p3), 288, %s2296_s20 }
  0x14   : > { %s2393_s12 = scalar_lea.vmem (%p51_p3), [#allocation3], %s2098_s5 }
  0x15   : > { %s202_s7 = sadd.s32 %s2099_s6, %s200_s30 }
  0x16   : > { %s1750_s8 = sshll.u32 %s202_s7, 2 }
  0x17   : > { %s2388_s11 = scalar_lea.vmem %s2774_s0, %s1750_s8 }
  0x18   : > { %v219_v0 = vld [vmem:[%s2388_s11] sm:$0xff]  ;;  %v223_v2 = vld [vmem:[%s2388_s11 + $0x48] sm:$0xff]  ;;  %v227_v4 = vld [vmem:[%s2388_s11 + $0x90] sm:$0xff] }
  0x19   : > { %v221_v1 = vld [vmem:[%s2388_s11 + $0x24] sm:$0xff]  ;;  %220 = vst [vmem:[%s2393_s12] sm:$0xff] %v219_v0  ;;  %224 = vst [vmem:[%s2393_s12 + $0x18] sm:$0xff] %v223_v2  ;;  %v225_v3 = vld [vmem:[%s2388_s11 + $0x6c] sm:$0xff] }
  0x1a   : > { %222 = vst [vmem:[%s2393_s12 + $0xc] sm:$0xff] %v221_v1  ;;  %v229_v5 = vld [vmem:[%s2388_s11 + $0xb4] sm:$0xff]  ;;  %226 = vst [vmem:[%s2393_s12 + $0x24] sm:$0xff] %v225_v3  ;;  %v233_v7 = vld [vmem:[%s2388_s11 + $0xfc] sm:$0xff] }
  0x1b   : > { %228 = vst [vmem:[%s2393_s12 + $0x30] sm:$0xff] %v227_v4  ;;  %230 = vst [vmem:[%s2393_s12 + $0x3c] sm:$0xff] %v229_v5  ;;  %v231_v6 = vld [vmem:[%s2388_s11 + $0xd8] sm:$0xff]  ;;  %v235_v8 = vld [vmem:[%s2388_s11 + $0x120] sm:$0xff] }
  0x1c   : > { %232 = vst [vmem:[%s2393_s12 + $0x48] sm:$0xff] %v231_v6  ;;  %234 = vst [vmem:[%s2393_s12 + $0x54] sm:$0xff] %v233_v7  ;;  %v237_v9 = vld [vmem:[%s2388_s11 + $0x144] sm:$0xff]  ;;  %v241_v11 = vld [vmem:[%s2388_s11 + $0x18c] sm:$0xff] }
  0x1d   : > { %236 = vst [vmem:[%s2393_s12 + $0x60] sm:$0xff] %v235_v8  ;;  %v239_v10 = vld [vmem:[%s2388_s11 + $0x168] sm:$0xff]  ;;  %238 = vst [vmem:[%s2393_s12 + $0x6c] sm:$0xff] %v237_v9  ;;  %v243_v12 = vld [vmem:[%s2388_s11 + $0x1b0] sm:$0xff] }
  0x1e   : > { %240 = vst [vmem:[%s2393_s12 + $0x78] sm:$0xff] %v239_v10  ;;  %242 = vst [vmem:[%s2393_s12 + $0x84] sm:$0xff] %v241_v11  ;;  %v245_v13 = vld [vmem:[%s2388_s11 + $0x1d4] sm:$0xff]  ;;  %v249_v15 = vld [vmem:[%s2388_s11 + $0x21c] sm:$0xff] }
  0x1f   : > { %v247_v14 = vld [vmem:[%s2388_s11 + $0x1f8] sm:$0xff]  ;;  %244 = vst [vmem:[%s2393_s12 + $0x90] sm:$0xff] %v243_v12  ;;  %246 = vst [vmem:[%s2393_s12 + $0x9c] sm:$0xff] %v245_v13  ;;  %v251_v16 = vld [vmem:[%s2388_s11 + $0x240] sm:$0xff] }
  0x20   : > { %248 = vst [vmem:[%s2393_s12 + $0xa8] sm:$0xff] %v247_v14  ;;  %v253_v17 = vld [vmem:[%s2388_s11 + $0x264] sm:$0xff]  ;;  %250 = vst [vmem:[%s2393_s12 + $0xb4] sm:$0xff] %v249_v15  ;;  %v257_v19 = vld [vmem:[%s2388_s11 + $0x2ac] sm:$0xff] }
  0x21   : > { %252 = vst [vmem:[%s2393_s12 + $0xc0] sm:$0xff] %v251_v16  ;;  %254 = vst [vmem:[%s2393_s12 + $0xcc] sm:$0xff] %v253_v17  ;;  %v255_v18 = vld [vmem:[%s2388_s11 + $0x288] sm:$0xff]  ;;  %v259_v20 = vld [vmem:[%s2388_s11 + $0x2d0] sm:$0xff] }
  0x22   : > { %256 = vst [vmem:[%s2393_s12 + $0xd8] sm:$0xff] %v255_v18  ;;  %258 = vst [vmem:[%s2393_s12 + $0xe4] sm:$0xff] %v257_v19  ;;  %v261_v21 = vld [vmem:[%s2388_s11 + $0x2f4] sm:$0xff]  ;;  %v265_v23 = vld [vmem:[%s2388_s11 + $0x33c] sm:$0xff] }
  0x23   : > { %260 = vst [vmem:[%s2393_s12 + $0xf0] sm:$0xff] %v259_v20  ;;  %v263_v22 = vld [vmem:[%s2388_s11 + $0x318] sm:$0xff]  ;;  %262 = vst [vmem:[%s2393_s12 + $0xfc] sm:$0xff] %v261_v21  ;;  %v267_v24 = vld [vmem:[%s2388_s11 + $0x360] sm:$0xff] }
  0x24   : > { %264 = vst [vmem:[%s2393_s12 + $0x108] sm:$0xff] %v263_v22  ;;  %266 = vst [vmem:[%s2393_s12 + $0x114] sm:$0xff] %v265_v23  ;;  %v269_v25 = vld [vmem:[%s2388_s11 + $0x384] sm:$0xff]  ;;  %v273_v27 = vld [vmem:[%s2388_s11 + $0x3cc] sm:$0xff] }
  0x25   : > { %v271_v26 = vld [vmem:[%s2388_s11 + $0x3a8] sm:$0xff]  ;;  %268 = vst [vmem:[%s2393_s12 + $0x120] sm:$0xff] %v267_v24  ;;  %270 = vst [vmem:[%s2393_s12 + $0x12c] sm:$0xff] %v269_v25  ;;  %v275_v28 = vld [vmem:[%s2388_s11 + $0x3f0] sm:$0xff] }
  0x26   : > { %272 = vst [vmem:[%s2393_s12 + $0x138] sm:$0xff] %v271_v26  ;;  %v277_v29 = vld [vmem:[%s2388_s11 + $0x414] sm:$0xff]  ;;  %274 = vst [vmem:[%s2393_s12 + $0x144] sm:$0xff] %v273_v27  ;;  %v281_v31 = vld [vmem:[%s2388_s11 + $0x45c] sm:$0xff] }
  0x27   : > { %276 = vst [vmem:[%s2393_s12 + $0x150] sm:$0xff] %v275_v28  ;;  %278 = vst [vmem:[%s2393_s12 + $0x15c] sm:$0xff] %v277_v29  ;;  %v279_v30 = vld [vmem:[%s2388_s11 + $0x438] sm:$0xff]  ;;  %v1751_v32 = vld [vmem:[%s2388_s11 + $0x8] sm:$0xf] }
  0x28   : > { %280 = vst [vmem:[%s2393_s12 + $0x168] sm:$0xff] %v279_v30  ;;  %282 = vst [vmem:[%s2393_s12 + $0x174] sm:$0xff] %v281_v31  ;;  %v1753_v33 = vld [vmem:[%s2388_s11 + $0x2c] sm:$0xf]  ;;  %v1755_v34 = vld [vmem:[%s2388_s11 + $0x50] sm:$0xf] }
  0x29   : > { %1752 = vst [vmem:[%s2393_s12 + $0x8] sm:$0xf] %v1751_v32  ;;  %v1757_v35 = vld [vmem:[%s2388_s11 + $0x74] sm:$0xf]  ;;  %1754 = vst [vmem:[%s2393_s12 + $0x14] sm:$0xf] %v1753_v33 }
  0x2a   : > { %1756 = vst [vmem:[%s2393_s12 + $0x20] sm:$0xf] %v1755_v34  ;;  %1758 = vst [vmem:[%s2393_s12 + $0x2c] sm:$0xf] %v1757_v35  ;;  %v1759_v36 = vld [vmem:[%s2388_s11 + $0x98] sm:$0xf] }
  0x2b   : > { %v1761_v37 = vld [vmem:[%s2388_s11 + $0xbc] sm:$0xf]  ;;  %v1763_v38 = vld [vmem:[%s2388_s11 + $0xe0] sm:$0xf]  ;;  %1760 = vst [vmem:[%s2393_s12 + $0x38] sm:$0xf] %v1759_v36 }
  0x2c   : > { %1762 = vst [vmem:[%s2393_s12 + $0x44] sm:$0xf] %v1761_v37  ;;  %1764 = vst [vmem:[%s2393_s12 + $0x50] sm:$0xf] %v1763_v38  ;;  %v1765_v39 = vld [vmem:[%s2388_s11 + $0x104] sm:$0xf] }
  0x2d   : > { %v1767_v40 = vld [vmem:[%s2388_s11 + $0x128] sm:$0xf]  ;;  %v1769_v41 = vld [vmem:[%s2388_s11 + $0x14c] sm:$0xf]  ;;  %1766 = vst [vmem:[%s2393_s12 + $0x5c] sm:$0xf] %v1765_v39 }
  0x2e   : > { %1768 = vst [vmem:[%s2393_s12 + $0x68] sm:$0xf] %v1767_v40  ;;  %1770 = vst [vmem:[%s2393_s12 + $0x74] sm:$0xf] %v1769_v41  ;;  %v1771_v42 = vld [vmem:[%s2388_s11 + $0x170] sm:$0xf] }
  0x2f   : > { %v1773_v43 = vld [vmem:[%s2388_s11 + $0x194] sm:$0xf]  ;;  %v1775_v44 = vld [vmem:[%s2388_s11 + $0x1b8] sm:$0xf]  ;;  %1772 = vst [vmem:[%s2393_s12 + $0x80] sm:$0xf] %v1771_v42 }
  0x30   : > { %1774 = vst [vmem:[%s2393_s12 + $0x8c] sm:$0xf] %v1773_v43  ;;  %1776 = vst [vmem:[%s2393_s12 + $0x98] sm:$0xf] %v1775_v44  ;;  %v1777_v45 = vld [vmem:[%s2388_s11 + $0x1dc] sm:$0xf] }
  0x31   : > { %v1779_v46 = vld [vmem:[%s2388_s11 + $0x200] sm:$0xf]  ;;  %v1781_v47 = vld [vmem:[%s2388_s11 + $0x224] sm:$0xf]  ;;  %1778 = vst [vmem:[%s2393_s12 + $0xa4] sm:$0xf] %v1777_v45 }
  0x32   : > { %1780 = vst [vmem:[%s2393_s12 + $0xb0] sm:$0xf] %v1779_v46  ;;  %1782 = vst [vmem:[%s2393_s12 + $0xbc] sm:$0xf] %v1781_v47  ;;  %v1783_v48 = vld [vmem:[%s2388_s11 + $0x248] sm:$0xf] }
  0x33   : > { %v1785_v49 = vld [vmem:[%s2388_s11 + $0x26c] sm:$0xf]  ;;  %v1787_v50 = vld [vmem:[%s2388_s11 + $0x290] sm:$0xf]  ;;  %1784 = vst [vmem:[%s2393_s12 + $0xc8] sm:$0xf] %v1783_v48 }
  0x34   : > { %1786 = vst [vmem:[%s2393_s12 + $0xd4] sm:$0xf] %v1785_v49  ;;  %1788 = vst [vmem:[%s2393_s12 + $0xe0] sm:$0xf] %v1787_v50  ;;  %v1789_v51 = vld [vmem:[%s2388_s11 + $0x2b4] sm:$0xf] }
  0x35   : > { %v1791_v52 = vld [vmem:[%s2388_s11 + $0x2d8] sm:$0xf]  ;;  %v1793_v53 = vld [vmem:[%s2388_s11 + $0x2fc] sm:$0xf]  ;;  %1790 = vst [vmem:[%s2393_s12 + $0xec] sm:$0xf] %v1789_v51 }
  0x36   : > { %1792 = vst [vmem:[%s2393_s12 + $0xf8] sm:$0xf] %v1791_v52  ;;  %1794 = vst [vmem:[%s2393_s12 + $0x104] sm:$0xf] %v1793_v53  ;;  %v1795_v54 = vld [vmem:[%s2388_s11 + $0x320] sm:$0xf] }
  0x37   : > { %v1797_v55 = vld [vmem:[%s2388_s11 + $0x344] sm:$0xf]  ;;  %v1799_v56 = vld [vmem:[%s2388_s11 + $0x368] sm:$0xf]  ;;  %1796 = vst [vmem:[%s2393_s12 + $0x110] sm:$0xf] %v1795_v54 }
  0x38   : > { %1798 = vst [vmem:[%s2393_s12 + $0x11c] sm:$0xf] %v1797_v55  ;;  %1800 = vst [vmem:[%s2393_s12 + $0x128] sm:$0xf] %v1799_v56  ;;  %v1801_v57 = vld [vmem:[%s2388_s11 + $0x38c] sm:$0xf] }
  0x39   : > { %v1803_v58 = vld [vmem:[%s2388_s11 + $0x3b0] sm:$0xf]  ;;  %v1805_v59 = vld [vmem:[%s2388_s11 + $0x3d4] sm:$0xf]  ;;  %1802 = vst [vmem:[%s2393_s12 + $0x134] sm:$0xf] %v1801_v57 }
  0x3a   : > { %1804 = vst [vmem:[%s2393_s12 + $0x140] sm:$0xf] %v1803_v58  ;;  %1806 = vst [vmem:[%s2393_s12 + $0x14c] sm:$0xf] %v1805_v59  ;;  %v1807_v60 = vld [vmem:[%s2388_s11 + $0x3f8] sm:$0xf] }
  0x3b   : > { %v1809_v61 = vld [vmem:[%s2388_s11 + $0x41c] sm:$0xf]  ;;  %v1811_v62 = vld [vmem:[%s2388_s11 + $0x440] sm:$0xf]  ;;  %1808 = vst [vmem:[%s2393_s12 + $0x158] sm:$0xf] %v1807_v60 }
  0x3c   : > { %1810 = vst [vmem:[%s2393_s12 + $0x164] sm:$0xf] %v1809_v61  ;;  %1812 = vst [vmem:[%s2393_s12 + $0x170] sm:$0xf] %v1811_v62  ;;  %v1813_v63 = vld [vmem:[%s2388_s11 + $0x464] sm:$0xf] }
  0x3d   : > { %1814 = vst [vmem:[%s2393_s12 + $0x17c] sm:$0xf] %v1813_v63 }
  0x3e PF: > { %p1815_p7 = scmp.ge.s32.totalorder %s2300_s21, 1  ;;  %p383_p8 = scmp.lt.s32.totalorder %s2300_s21, 7 }
  0x40   : > { %p384_p9 = pnand %p1815_p7, %p383_p8 }
  0x41   : > { %s390_s13 = sand.u32 (!%p384_p9), 1, %s2276_s15   ;;  %s439_s14 = smul.u32 (!%p384_p9), 48, %s2284_s17 }
  0x42   : > { %387 = sbr.rel (%p384_p9) target bundleno = 452 (0x1c4), region = 58  ;;  %s1817_s25 = sshll.u32 (!%p384_p9), %s2288_s18, 5 }
  0x43   : > { %s2100_s24 = smul.u32 (!%p384_p9), 384, %s390_s13  ;;  %p440_p10 = scmp.lt.s32.totalorder (!%p384_p9), %s439_s14, 143 }
  0x44   : > { %p452_p11 = scmp.lt.s32.totalorder (!%p384_p9), %s1817_s25, 63  ;;  %p1821_p12 = scmp.ne.s32.totalorder (!%p384_p9), %s2284_s17, 0 }
  0x45   : > { %s2540_s10 = scalar_lea.vmem (!%p384_p9), [#allocation3], %s2100_s24 }
  0x47   : > { %s2792_s14 = smov (!%p440_p10, %s439_s14), 143  ;;  %s2794_s25 = smov (!%p452_p11, %s1817_s25), 63 }
  0x48   : > { %s1816_s26 = sshll.u32 %s2792_s14, 2  ;;  %s1818_s5 = sshll.u32 %s2794_s25, 3 }
  0x49   : > { %s2528_s30 = scalar_lea.vmem %s2775_s1, %s1816_s26  ;;  %s2533_s8 = scalar_lea.vmem %s2777_s3, %s1818_s5 }
  0x4a   : > { %s2538_s18 = scalar_lea.vmem %s2778_s4, %s1818_s5  ;;  %473 = sbr.rel (%p1821_p12) target bundleno = 96 (0x60), region = 66 }
  0x4f   : > { %v2302_v0 = vmov 0.0  }
  0x50   : > { %474 = vst [vmem:[#allocation2 + $0xb0] sm:$0xff] %v2302_v0  ;;  %475 = vst [vmem:[#allocation2] sm:$0xff] %v2302_v0 }
  0x51   : > { %476 = vst [vmem:[#allocation2 + $0xd8] sm:$0xff] %v2302_v0  ;;  %477 = vst [vmem:[#allocation2 + $0x18] sm:$0xff] %v2302_v0 }
  0x52   : > { %478 = vst [vmem:[#allocation2 + $0x50] sm:$0xff] %v2302_v0  ;;  %479 = vst [vmem:[#allocation2 + $0x68] sm:$0xff] %v2302_v0 }
  0x53   : > { %480 = vst [vmem:[#allocation2 + $0x30] sm:$0xff] %v2302_v0  ;;  %481 = vst [vmem:[#allocation2 + $0x48] sm:$0xff] %v2302_v0 }
  0x54   : > { %482 = vst [vmem:[#allocation2 + $0x80] sm:$0xff] %v2302_v0  ;;  %483 = vst [vmem:[#allocation2 + $0x88] sm:$0xff] %v2302_v0 }
  0x55   : > { %484 = vst [vmem:[#allocation2 + $0xe8] sm:$0xff] %v2302_v0  ;;  %485 = vst [vmem:[#allocation2 + $0xb8] sm:$0xff] %v2302_v0 }
  0x56   : > { %486 = vst [vmem:[#allocation2 + $0x60] sm:$0xff] %v2302_v0  ;;  %487 = vst [vmem:[#allocation2 + $0xf0] sm:$0xff] %v2302_v0 }
  0x57   : > { %488 = vst [vmem:[#allocation2 + $0x8] sm:$0xff] %v2302_v0  ;;  %489 = vst [vmem:[#allocation2 + $0x78] sm:$0xff] %v2302_v0 }
  0x58   : > { %490 = vst [vmem:[#allocation2 + $0x38] sm:$0xff] %v2302_v0  ;;  %491 = vst [vmem:[#allocation2 + $0x58] sm:$0xff] %v2302_v0 }
  0x59   : > { %492 = vst [vmem:[#allocation2 + $0x40] sm:$0xff] %v2302_v0  ;;  %493 = vst [vmem:[#allocation2 + $0xc8] sm:$0xff] %v2302_v0 }
  0x5a   : > { %494 = vst [vmem:[#allocation2 + $0xe0] sm:$0xff] %v2302_v0  ;;  %495 = vst [vmem:[#allocation2 + $0x90] sm:$0xff] %v2302_v0 }
  0x5b   : > { %496 = vst [vmem:[#allocation2 + $0x70] sm:$0xff] %v2302_v0  ;;  %497 = vst [vmem:[#allocation2 + $0xc0] sm:$0xff] %v2302_v0 }
  0x5c   : > { %498 = vst [vmem:[#allocation2 + $0xa8] sm:$0xff] %v2302_v0  ;;  %499 = vst [vmem:[#allocation2 + $0xd0] sm:$0xff] %v2302_v0 }
  0x5d   : > { %500 = vst [vmem:[#allocation2 + $0x10] sm:$0xff] %v2302_v0  ;;  %501 = vst [vmem:[#allocation2 + $0x28] sm:$0xff] %v2302_v0 }
  0x5e   : > { %502 = vst [vmem:[#allocation2 + $0xa0] sm:$0xff] %v2302_v0  ;;  %503 = vst [vmem:[#allocation2 + $0xf8] sm:$0xff] %v2302_v0 }
  0x5f   : > { %504 = vst [vmem:[#allocation2 + $0x20] sm:$0xff] %v2302_v0  ;;  %505 = vst [vmem:[#allocation2 + $0x98] sm:$0xff] %v2302_v0 }
  0x60 PF: > { %v2158_v1 = vld [vmem:[%s2528_s30 + $0x78] sm:$0xff]   ;;  %v2160_v3 = vld [vmem:[%s2528_s30 + $0x70] sm:$0xff]   ;;  %v2162_v5 = vld [vmem:[%s2528_s30 + $0x68] sm:$0xff]   ;;  %p1894_p13 = scmp.ne.s32.totalorder %s2284_s17, 2 }
  0x61   : > { %v2159_v2 = vld [vmem:[%s2528_s30 + $0x38] sm:$0xff]   ;;  %1898 = vmatprep.subr.bf16.mxu0 %v2158_v1  ;;  %2082 = vmatprep.subr.bf16.mxu1 %v2158_v1  ;;  %v2161_v4 = vld [vmem:[%s2528_s30 + $0x30] sm:$0xff]   ;;  %v2163_v6 = vld [vmem:[%s2528_s30 + $0x28] sm:$0xff]  }
  0x62   : > { %1899 = vmatpush3.bf16.msra.mxu0 %v2159_v2  ;;  %2090 = vmatpush3.bf16.msra.mxu1 %v2159_v2  ;;  %v2164_v7 = vld [vmem:[%s2528_s30 + $0x60] sm:$0xff]   ;;  %v2166_v9 = vld [vmem:[%s2528_s30 + $0x58] sm:$0xff]   ;;  %v2168_v11 = vld [vmem:[%s2528_s30 + $0x50] sm:$0xff]  }
  0x63   : > { %1900 = vmatprep.subr.bf16.mxu0 %v2160_v3  ;;  %2083 = vmatprep.subr.bf16.mxu1 %v2160_v3  ;;  %v2165_v8 = vld [vmem:[%s2528_s30 + $0x20] sm:$0xff]   ;;  %v2167_v10 = vld [vmem:[%s2528_s30 + $0x18] sm:$0xff]   ;;  %v2169_v14 = vld [vmem:[%s2528_s30 + $0x10] sm:$0xff]  }
  0x64   : > { %v2176_v12 = vld [vmem:[%s2540_s10 + $0x4] ss:$12 sps:$4 sm:$0xff]   ;;  %v2170_v15 = vld [vmem:[%s2528_s30 + $0x48] sm:$0xff]   ;;  %v2180_v19 = vld [vmem:[%s2528_s30 + $0xb8] sm:$0xff]  }
  0x65   : > { %v2179_v13 = vld [vmem:[%s2540_s10 + $0x124] ss:$12 sps:$4 sm:$0xff]   ;;  %1082 = vmatprep.mubr.bf16.mxu0 %v2176_v12  ;;  %v2171_v16 = vld [vmem:[%s2528_s30 + $0x8] sm:$0xff]   ;;  %v2190_v29 = vld [vmem:[%s2540_s10 + $0x34] ss:$12 sps:$4 sm:$0xff]  }
  0x66   : > { %1901 = vmatpush3.bf16.msra.mxu0 %v2161_v4  ;;  %2091 = vmatpush3.bf16.msra.mxu1 %v2161_v4  ;;  %v2172_v17 = vld [vmem:[%s2528_s30 + $0x40] sm:$0xff]   ;;  %v2182_v22 = vld [vmem:[%s2540_s10 + $0x1c] ss:$12 sps:$4 sm:$0xff]   ;;  %v2181_v23 = vld [vmem:[%s2528_s30 + $0xb0] sm:$0xff]  }
  0x67   : > { %1902 = vmatprep.subr.bf16.mxu0 %v2162_v5  ;;  %2084 = vmatprep.subr.bf16.mxu1 %v2162_v5  ;;  %v2173_v18 = vld [vmem:[%s2528_s30] sm:$0xff]   ;;  %v2184_v24 = vld [vmem:[%s2540_s10 + $0x13c] ss:$12 sps:$4 sm:$0xff]   ;;  %v2197_v34 = vld [vmem:[%s2528_s30 + $0x90] sm:$0xff]  }
  0x68   : > { %1178 = vmatprep.mubr.bf16.mxu1 %v2179_v13  ;;  %v2174_v20 = vld [vmem:[%s2540_s10] ss:$12 sps:$4 sm:$0xff]   ;;  %v2186_v25 = vld [vmem:[%s2540_s10 + $0x18] ss:$12 sps:$4 sm:$0xff]   ;;  %v2194_v32 = vld [vmem:[%s2540_s10 + $0x30] ss:$12 sps:$4 sm:$0xff]  }
  0x69   : > { %v2177_v21 = vld [vmem:[%s2540_s10 + $0x120] ss:$12 sps:$4 sm:$0xff]   ;;  %v2187_v27 = vld [vmem:[%s2540_s10 + $0x138] ss:$12 sps:$4 sm:$0xff]   ;;  %v2195_v33 = vld [vmem:[%s2540_s10 + $0x150] ss:$12 sps:$4 sm:$0xff]  }
  0x6a   : > { %1903 = vmatpush3.bf16.msra.mxu0 %v2163_v6  ;;  %2092 = vmatpush3.bf16.msra.mxu1 %v2163_v6  ;;  %v2188_v26 = vld [vmem:[%s2528_s30 + $0xa8] sm:$0xff]   ;;  %v2189_v28 = vld [vmem:[%s2528_s30 + $0xa0] sm:$0xff]   ;;  %v2196_v31 = vld [vmem:[%s2528_s30 + $0x98] sm:$0xff]  }
  0x6b   : > { %1904 = vmatprep.subr.bf16.mxu0 %v2164_v7  ;;  %2085 = vmatprep.subr.bf16.mxu1 %v2164_v7  ;;  %v2192_v30 = vld [vmem:[%s2540_s10 + $0x154] ss:$12 sps:$4 sm:$0xff]   ;;  %v2198_v35 = vld [vmem:[%s2540_s10 + $0x4c] ss:$12 sps:$4 sm:$0xff]   ;;  %v2206_v40 = vld [vmem:[%s2540_s10 + $0x64] ss:$12 sps:$4 sm:$0xff]  }
  0x6c   : > { %v2200_v36 = vld [vmem:[%s2540_s10 + $0x16c] ss:$12 sps:$4 sm:$0xff]   ;;  %v2202_v38 = vld [vmem:[%s2540_s10 + $0x48] ss:$12 sps:$4 sm:$0xff]   ;;  %v2205_v41 = vld [vmem:[%s2528_s30 + $0x80] sm:$0xff]  }
  0x6d   : > { %v2204_v37 = vld [vmem:[%s2528_s30 + $0x88] sm:$0xff]   ;;  %v2213_v46 = vld [vmem:[%s2540_s10 + $0x38] ss:$12 sps:$4 sm:$0xff]   ;;  %v2215_v48 = vld [vmem:[%s2540_s10 + $0x50] ss:$12 sps:$4 sm:$0xff]  }
  0x6e   : > { %1905 = vmatpush3.bf16.msra.mxu0 %v2165_v8  ;;  %2093 = vmatpush3.bf16.msra.mxu1 %v2165_v8  ;;  %v2203_v39 = vld [vmem:[%s2540_s10 + $0x168] ss:$12 sps:$4 sm:$0xff]   ;;  %v2209_v43 = vld [vmem:[%s2540_s10 + $0x60] ss:$12 sps:$4 sm:$0xff]   ;;  %v2214_v47 = vld [vmem:[%s2540_s10 + $0x78] ss:$12 sps:$4 sm:$0xff]  }
  0x6f   : > { %1906 = vmatprep.subr.bf16.mxu0 %v2166_v9  ;;  %2086 = vmatprep.subr.bf16.mxu1 %v2166_v9  ;;  %v2208_v42 = vld [vmem:[%s2540_s10 + $0x8] ss:$12 sps:$4 sm:$0xff]   ;;  %v2210_v44 = vld [vmem:[%s2540_s10 + $0x20] ss:$12 sps:$4 sm:$0xff]   ;;  %v2219_v51 = vld [vmem:[%s2540_s10 + $0x90] ss:$12 sps:$4 sm:$0xff]  }
  0x70   : > { %v2211_v45 = vld [vmem:[%s2540_s10 + $0x7c] ss:$12 sps:$4 sm:$0xff]   ;;  %v2216_v49 = vld [vmem:[%s2540_s10 + $0x94] ss:$12 sps:$4 sm:$0xff]   ;;  %v2221_v53 = vld [vmem:[%s2540_s10 + $0xac] ss:$12 sps:$4 sm:$0xff]  }
  0x71   : > { %v2218_v50 = vld [vmem:[%s2540_s10 + $0x68] ss:$12 sps:$4 sm:$0xff]   ;;  %v2220_v52 = vld [vmem:[%s2540_s10 + $0x80] ss:$12 sps:$4 sm:$0xff]   ;;  %v2223_v54 = vld [vmem:[%s2540_s10 + $0x98] ss:$12 sps:$4 sm:$0xff]  }
  0x72   : > { %1907 = vmatpush3.bf16.msra.mxu0 %v2167_v10  ;;  %2094 = vmatpush3.bf16.msra.mxu1 %v2167_v10  ;;  %v2224_v55 = vld [vmem:[%s2540_s10 + $0xa8] ss:$12 sps:$4 sm:$0xff]   ;;  %v2225_v56 = vld [vmem:[%s2540_s10 + $0xb0] ss:$12 sps:$4 sm:$0xff]   ;;  %v2229_v59 = vld [vmem:[%s2540_s10 + $0xc0] ss:$12 sps:$4 sm:$0xff]  }
  0x73   : > { %1908 = vmatprep.subr.bf16.mxu0 %v2168_v11  ;;  %2087 = vmatprep.subr.bf16.mxu1 %v2168_v11  ;;  %v2226_v57 = vld [vmem:[%s2540_s10 + $0xc4] ss:$12 sps:$4 sm:$0xff]   ;;  %v2228_v58 = vld [vmem:[%s2540_s10 + $0xc8] ss:$12 sps:$4 sm:$0xff]   ;;  %v2230_v60 = vld [vmem:[%s2540_s10 + $0xe0] ss:$12 sps:$4 sm:$0xff]  }
  0x74   : > { %v2231_v61 = vld [vmem:[%s2540_s10 + $0xdc] ss:$12 sps:$4 sm:$0xff]   ;;  %v2233_v62 = vld [vmem:[%s2540_s10 + $0xf8] ss:$12 sps:$4 sm:$0xff]   ;;  %v2236_v1 = vld [vmem:[%s2540_s10 + $0xf4] ss:$12 sps:$4 sm:$0xff]  }
  0x75   : > { %v2234_v63 = vld [vmem:[%s2540_s10 + $0xd8] ss:$12 sps:$4 sm:$0xff]   ;;  %v2235_v0 = vld [vmem:[%s2540_s10 + $0x110] ss:$12 sps:$4 sm:$0xff]   ;;  %v2238_v2 = vld [vmem:[%s2540_s10 + $0x128] ss:$12 sps:$4 sm:$0xff]  }
  0x76   : > { %1909 = vmatpush3.bf16.msra.mxu0 %v2169_v14  ;;  %2095 = vmatpush3.bf16.msra.mxu1 %v2169_v14  ;;  %v2239_v3 = vld [vmem:[%s2540_s10 + $0xf0] ss:$12 sps:$4 sm:$0xff]   ;;  %v2240_v4 = vld [vmem:[%s2540_s10 + $0x140] ss:$12 sps:$4 sm:$0xff]   ;;  %v2243_v6 = vld [vmem:[%s2540_s10 + $0x158] ss:$12 sps:$4 sm:$0xff]  }
  0x77   : > { %1910 = vmatprep.subr.bf16.mxu0 %v2170_v15  ;;  %2088 = vmatprep.subr.bf16.mxu1 %v2170_v15  ;;  %v2241_v5 = vld [vmem:[%s2540_s10 + $0x10c] ss:$12 sps:$4 sm:$0xff]   ;;  %v2244_v7 = vld [vmem:[%s2540_s10 + $0x108] ss:$12 sps:$4 sm:$0xff]   ;;  %v2245_v8 = vld [vmem:[%s2540_s10 + $0x170] ss:$12 sps:$4 sm:$0xff]  }
  0x7a   : > { %1911 = vmatpush3.bf16.msra.mxu0 %v2171_v16  ;;  %2096 = vmatpush3.bf16.msra.mxu1 %v2171_v16 }
  0x7b   : > { %1912 = vmatprep.subr.bf16.mxu0 %v2172_v17  ;;  %2089 = vmatprep.subr.bf16.mxu1 %v2172_v17 }
  0x7e   : > { %1913 = vmatpush3.bf16.msra.mxu0 %v2173_v18  ;;  %2097 = vmatpush3.bf16.msra.mxu1 %v2173_v18 }
  0x7f   : > { %2034 = vmatprep.subr.bf16.mxu1 %v2180_v19 }
  0x81   : > { %1083 = vmatmul.mubr.bf16.vlgmr.msra.gmra.mxu0 %v2174_v20  ;;  %1179 = vmatmul.mubr.bf16.vlgmr.msra.gmra.mxu1 %v2177_v21 }
  0x82   : > { %2035 = vmatpush3.bf16.msra.mxu1 %v2180_v19  ;;  %1090 = vmatprep.mubr.bf16.mxu0 %v2182_v22 }
  0x83   : > { %2036 = vmatprep.subr.bf16.mxu1 %v2181_v23  ;;  %1186 = vmatprep.mubr.bf16.mxu1 %v2184_v24 }
  0x86   : > { %2037 = vmatpush3.bf16.msra.mxu1 %v2181_v23 }
  0x87   : > { %2038 = vmatprep.subr.bf16.mxu1 %v2188_v26 }
  0x89   : > { %1091 = vmatmul.mubr.bf16.gmra.mxu0 %v2186_v25  ;;  %1187 = vmatmul.mubr.bf16.gmra.mxu1 %v2187_v27 }
  0x8a   : > { %2039 = vmatpush3.bf16.msra.mxu1 %v2188_v26  ;;  %1098 = vmatprep.mubr.bf16.mxu0 %v2190_v29 }
  0x8b   : > { %2040 = vmatprep.subr.bf16.mxu1 %v2189_v28  ;;  %1194 = vmatprep.mubr.bf16.mxu1 %v2192_v30 }
  0x8e   : > { %2041 = vmatpush3.bf16.msra.mxu1 %v2189_v28 }
  0x8f   : > { %2042 = vmatprep.subr.bf16.mxu1 %v2196_v31 }
  0x91   : > { %1099 = vmatmul.mubr.bf16.gmra.mxu0 %v2194_v32  ;;  %1195 = vmatmul.mubr.bf16.gmra.mxu1 %v2195_v33 }
  0x92   : > { %2043 = vmatpush3.bf16.msra.mxu1 %v2196_v31  ;;  %1106 = vmatprep.mubr.bf16.mxu0 %v2198_v35 }
  0x93   : > { %2044 = vmatprep.subr.bf16.mxu1 %v2197_v34  ;;  %1202 = vmatprep.mubr.bf16.mxu1 %v2200_v36 }
  0x96   : > { %2045 = vmatpush3.bf16.msra.mxu1 %v2197_v34 }
  0x97   : > { %2046 = vmatprep.subr.bf16.mxu1 %v2204_v37 }
  0x99   : > { %1107 = vmatmul.mubr.bf16.gmra.mxu0 %v2202_v38  ;;  %1203 = vmatmul.mubr.bf16.gmra.mxu1 %v2203_v39 }
  0x9a   : > { %2047 = vmatpush3.bf16.msra.mxu1 %v2204_v37  ;;  %1114 = vmatprep.mubr.bf16.mxu0 %v2206_v40 }
  0x9b   : > { %2048 = vmatprep.subr.bf16.mxu1 %v2205_v41  ;;  %2050 = vmatprep.mubr.bf16.mxu1 %v2208_v42 }
  0x9e   : > { %2049 = vmatpush3.bf16.msra.mxu1 %v2205_v41 }
  0xa1   : > { %1115 = vmatmul.mubr.bf16.gmra.mxu0 %v2209_v43  ;;  %2051 = vmatmul.mubr.bf16.vlgmr.msra.gmra.mxu1 %v2210_v44 }
  0xa2   : > { %1122 = vmatprep.mubr.bf16.mxu0 %v2211_v45  ;;  %2054 = vmatprep.mubr.bf16.mxu1 %v2213_v46 }
  0xa9   : > { %1123 = vmatmul.mubr.bf16.gmra.mxu0 %v2214_v47  ;;  %2055 = vmatmul.mubr.bf16.gmra.mxu1 %v2215_v48 }
  0xaa   : > { %1130 = vmatprep.mubr.bf16.mxu0 %v2216_v49  ;;  %2058 = vmatprep.mubr.bf16.mxu1 %v2218_v50  ;;  %v508_v49 = vld [vmem:[#allocation2 + $0xd8] sm:$0xff] }
  0xb1   : > { %1131 = vmatmul.mubr.bf16.gmra.mxu0 %v2219_v51  ;;  %2059 = vmatmul.mubr.bf16.gmra.mxu1 %v2220_v52 }
  0xb2   : > { %1138 = vmatprep.mubr.bf16.mxu0 %v2221_v53  ;;  %2062 = vmatprep.mubr.bf16.mxu1 %v2223_v54  ;;  %v506_v54 = vld [vmem:[#allocation2 + $0xb0] sm:$0xff] }
  0xb9   : > { %1139 = vmatmul.mubr.bf16.gmra.mxu0 %v2224_v55  ;;  %2063 = vmatmul.mubr.bf16.gmra.mxu1 %v2225_v56 }
  0xba   : > { %1146 = vmatprep.mubr.bf16.mxu0 %v2226_v57  ;;  %2066 = vmatprep.mubr.bf16.mxu1 %v2228_v58 }
  0xc1   : > { %1147 = vmatmul.mubr.bf16.gmra.mxu0 %v2229_v59  ;;  %2067 = vmatmul.mubr.bf16.gmra.mxu1 %v2230_v60  ;;  %v509_v60 = vld [vmem:[#allocation2 + $0x18] sm:$0xff] }
  0xc2   : > { %1154 = vmatprep.mubr.bf16.mxu0 %v2231_v61  ;;  %2070 = vmatprep.mubr.bf16.mxu1 %v2233_v62 }
  0xc9   : > { %1155 = vmatmul.mubr.bf16.gmra.mxu0 %v2234_v63  ;;  %2071 = vmatmul.mubr.bf16.gmra.mxu1 %v2235_v0 }
  0xca   : > { %1162 = vmatprep.mubr.bf16.mxu0 %v2236_v1  ;;  %2074 = vmatprep.mubr.bf16.mxu1 %v2238_v2  ;;  %v507_v2 = vld [vmem:[#allocation2] sm:$0xff] }
  0xd1   : > { %1163 = vmatmul.mubr.bf16.gmra.mxu0 %v2239_v3  ;;  %2075 = vmatmul.mubr.bf16.gmra.mxu1 %v2240_v4 }
  0xd2   : > { %1170 = vmatprep.mubr.bf16.mxu0 %v2241_v5  ;;  %2078 = vmatprep.mubr.bf16.mxu1 %v2243_v6 }
  0xd9   : > { %1171 = vmatmul.mubr.bf16.gmra.mxu0 %v2244_v7  ;;  %2079 = vmatmul.mubr.bf16.gmra.mxu1 %v2245_v8  ;;  %v512_v8 = vld [vmem:[#allocation2 + $0x30] sm:$0xff] }
 0x141   : > { %v1914_v9 = vpop.f32.mrf.mxu0  ;;  %v1986_v10 = vpop.f32.mrf.mxu1 }
 0x143   : > { %v1915_v11 = vpop.f32.mrf.mxu0  ;;  %v1987_v12 = vpop.f32.mrf.mxu1 }
 0x144   : > { %v2615_v13 = vadd.f32 %v1987_v12, %v1986_v10  ;;  %v1916_v51 = vadd.f32 %v1915_v11, %v1914_v9 }
 0x145   : > { %v1917_v14 = vpop.f32.mrf.mxu0  ;;  %v1989_v15 = vpop.f32.mrf.mxu1 }
 0x147   : > { %v1918_v16 = vpop.f32.mrf.mxu0  ;;  %v1990_v17 = vpop.f32.mrf.mxu1 }
 0x148   : > { %v2617_v18 = vadd.f32 %v1990_v17, %v1989_v15  ;;  %v1919_v62 = vadd.f32 %v1918_v16, %v1917_v14  ;;  %v510_v17 = vld [vmem:[#allocation2 + $0x50] sm:$0xff] }
 0x149   : > { %v1920_v19 = vpop.f32.mrf.mxu0  ;;  %v1992_v20 = vpop.f32.mrf.mxu1 }
 0x14b   : > { %v1921_v21 = vpop.f32.mrf.mxu0  ;;  %v1993_v22 = vpop.f32.mrf.mxu1 }
 0x14c   : > { %v2619_v23 = vadd.f32 %v1993_v22, %v1992_v20  ;;  %v1922_v47 = vadd.f32 %v1921_v21, %v1920_v19  ;;  %v513_v22 = vld [vmem:[#allocation2 + $0x48] sm:$0xff] }
 0x14d   : > { %v1923_v24 = vpop.f32.mrf.mxu0  ;;  %v1995_v25 = vpop.f32.mrf.mxu1 }
 0x14f   : > { %v1924_v26 = vpop.f32.mrf.mxu0  ;;  %v1996_v27 = vpop.f32.mrf.mxu1 }
 0x150   : > { %v2621_v28 = vadd.f32 %v1996_v27, %v1995_v25  ;;  %v1925_v56 = vadd.f32 %v1924_v26, %v1923_v24 }
 0x151   : > { %v1926_v29 = vpop.f32.mrf.mxu0  ;;  %v1998_v30 = vpop.f32.mrf.mxu1 }
 0x153   : > { %v1927_v31 = vpop.f32.mrf.mxu0  ;;  %v1999_v32 = vpop.f32.mrf.mxu1 }
 0x154   : > { %v2623_v33 = vadd.f32 %v1999_v32, %v1998_v30  ;;  %v1928_v10 = vadd.f32 %v1927_v31, %v1926_v29  ;;  %v511_v32 = vld [vmem:[#allocation2 + $0x68] sm:$0xff] }
 0x155   : > { %v1929_v34 = vpop.f32.mrf.mxu0  ;;  %v2001_v35 = vpop.f32.mrf.mxu1 }
 0x157   : > { %v1930_v36 = vpop.f32.mrf.mxu0  ;;  %v2002_v37 = vpop.f32.mrf.mxu1 }
 0x158   : > { %v2625_v38 = vadd.f32 %v2002_v37, %v2001_v35  ;;  %v1931_v25 = vadd.f32 %v1930_v36, %v1929_v34 }
 0x159   : > { %v1932_v39 = vpop.f32.mrf.mxu0  ;;  %v2627_v40 = vpop.f32.mrf.mxu1 }
 0x15b   : > { %v1933_v41 = vpop.f32.mrf.mxu0  ;;  %v2629_v42 = vpop.f32.mrf.mxu1 }
 0x15c   : > { %v1934_v4 = vadd.f32 %v1933_v41, %v1932_v39  ;;  %v516_v41 = vld [vmem:[#allocation2 + $0xe8] sm:$0xff] }
 0x15d   : > { %v1935_v43 = vpop.f32.mrf.mxu0  ;;  %v2631_v44 = vpop.f32.mrf.mxu1 }
 0x15f   : > { %v1936_v45 = vpop.f32.mrf.mxu0  ;;  %v2633_v46 = vpop.f32.mrf.mxu1 }
 0x160   : > { %v1937_v16 = vadd.f32 %v1936_v45, %v1935_v43 }
 0x161   : > { %v1938_v48 = vpop.f32.mrf.mxu0  ;;  %v2052_v50 = vpop.f32.mrf.mxu1 }
 0x162   : > { %v1254_v52 = vadd.f32 %v2052_v50, %v1922_v47 }
 0x163   : > { %v1939_v53 = vpop.f32.mrf.mxu0  ;;  %v1245_v55 = vpop.f32.mrf.mxu1 }
 0x164   : > { %v1374_v57 = vadd.f32 %v1254_v52, %v508_v49  ;;  %v1246_v58 = vadd.f32 %v1916_v51, %v1245_v55  ;;  %v1940_v45 = vadd.f32 %v1939_v53, %v1938_v48  ;;  %v514_v51 = vld [vmem:[#allocation2 + $0x80] sm:$0xff] }
 0x165   : > { %v1941_v59 = vpop.f32.mrf.mxu0  ;;  %v2053_v61 = vpop.f32.mrf.mxu1 }
 0x166   : > { %1406 = vst [vmem:[#allocation2 + $0xd8] sm:$0xff] %v1374_v57  ;;  %v1372_v63 = vadd.f32 %v1246_v58, %v506_v54  ;;  %v1257_v0 = vadd.f32 %v2053_v61, %v1925_v56  ;;  %v517_v56 = vld [vmem:[#allocation2 + $0xb8] sm:$0xff] }
 0x167   : > { %v1942_v1 = vpop.f32.mrf.mxu0  ;;  %v1248_v3 = vpop.f32.mrf.mxu1 }
 0x168   : > { %1404 = vst [vmem:[#allocation2 + $0xb0] sm:$0xff] %v1372_v63  ;;  %v1375_v5 = vadd.f32 %v1257_v0, %v509_v60  ;;  %v1249_v6 = vadd.f32 %v1919_v62, %v1248_v3  ;;  %v1943_v58 = vadd.f32 %v1942_v1, %v1941_v59  ;;  %v515_v63 = vld [vmem:[#allocation2 + $0x88] sm:$0xff] }
 0x169   : > { %v1944_v7 = vpop.f32.mrf.mxu0  ;;  %v2056_v9 = vpop.f32.mrf.mxu1  ;;  %v520_v1 = vld [vmem:[#allocation2 + $0x8] sm:$0xff] }
 0x16a   : > { %1407 = vst [vmem:[#allocation2 + $0x18] sm:$0xff] %v1375_v5  ;;  %v1373_v11 = vadd.f32 %v1249_v6, %v507_v2  ;;  %v1270_v12 = vadd.f32 %v2056_v9, %v1934_v4 }
 0x16b   : > { %v1945_v15 = vpop.f32.mrf.mxu0  ;;  %v1261_v14 = vpop.f32.mrf.mxu1 }
 0x16c   : > { %1405 = vst [vmem:[#allocation2] sm:$0xff] %v1373_v11  ;;  %v1378_v19 = vadd.f32 %v1270_v12, %v512_v8  ;;  %v1262_v20 = vadd.f32 %v1928_v10, %v1261_v14  ;;  %v1946_v31 = vadd.f32 %v1945_v15, %v1944_v7  ;;  %v518_v7 = vld [vmem:[#allocation2 + $0x60] sm:$0xff] }
 0x16d   : > { %v1947_v21 = vpop.f32.mrf.mxu0  ;;  %v2057_v24 = vpop.f32.mrf.mxu1 }
 0x16e   : > { %1410 = vst [vmem:[#allocation2 + $0x30] sm:$0xff] %v1378_v19  ;;  %v1376_v26 = vadd.f32 %v1262_v20, %v510_v17  ;;  %v1273_v27 = vadd.f32 %v2057_v24, %v1937_v16  ;;  %v519_v16 = vld [vmem:[#allocation2 + $0xf0] sm:$0xff]  ;;  %v521_v24 = vld [vmem:[#allocation2 + $0x78] sm:$0xff] }
 0x16f   : > { %v1948_v30 = vpop.f32.mrf.mxu0  ;;  %v1264_v29 = vpop.f32.mrf.mxu1 }
 0x170   : > { %1408 = vst [vmem:[#allocation2 + $0x50] sm:$0xff] %v1376_v26  ;;  %v1379_v35 = vadd.f32 %v1273_v27, %v513_v22  ;;  %v1265_v37 = vadd.f32 %v1931_v25, %v1264_v29  ;;  %v1949_v36 = vadd.f32 %v1948_v30, %v1947_v21 }
 0x171   : > { %v1950_v39 = vpop.f32.mrf.mxu0  ;;  %v2060_v43 = vpop.f32.mrf.mxu1 }
 0x172   : > { %1411 = vst [vmem:[#allocation2 + $0x48] sm:$0xff] %v1379_v35  ;;  %v1377_v47 = vadd.f32 %v1265_v37, %v511_v32  ;;  %v1286_v49 = vadd.f32 %v2060_v43, %v1946_v31  ;;  %v522_v37 = vld [vmem:[#allocation2 + $0x38] sm:$0xff] }
 0x173   : > { %v1951_v50 = vpop.f32.mrf.mxu0  ;;  %v1277_v34 = vpop.f32.mrf.mxu1 }
 0x174   : > { %1409 = vst [vmem:[#allocation2 + $0x68] sm:$0xff] %v1377_v47  ;;  %v1382_v52 = vadd.f32 %v1286_v49, %v516_v41  ;;  %v1278_v54 = vadd.f32 %v1940_v45, %v1277_v34  ;;  %v1952_v4 = vadd.f32 %v1951_v50, %v1950_v39 }
 0x175   : > { %v1953_v55 = vpop.f32.mrf.mxu0  ;;  %v2061_v57 = vpop.f32.mrf.mxu1 }
 0x176   : > { %1414 = vst [vmem:[#allocation2 + $0xe8] sm:$0xff] %v1382_v52  ;;  %v1380_v60 = vadd.f32 %v1278_v54, %v514_v51  ;;  %v1289_v61 = vadd.f32 %v2061_v57, %v1949_v36  ;;  %v523_v51 = vld [vmem:[#allocation2 + $0x58] sm:$0xff] }
 0x177   : > { %v1954_v62 = vpop.f32.mrf.mxu0  ;;  %v1280_v48 = vpop.f32.mrf.mxu1 }
 0x178   : > { %1412 = vst [vmem:[#allocation2 + $0x80] sm:$0xff] %v1380_v60  ;;  %v1383_v53 = vadd.f32 %v1289_v61, %v517_v56  ;;  %v1281_v0 = vadd.f32 %v1943_v58, %v1280_v48  ;;  %v1955_v12 = vadd.f32 %v1954_v62, %v1953_v55  ;;  %v524_v58 = vld [vmem:[#allocation2 + $0x40] sm:$0xff] }
 0x179   : > { %v1956_v2 = vpop.f32.mrf.mxu0  ;;  %v2064_v3 = vpop.f32.mrf.mxu1 }
 0x17a   : > { %1415 = vst [vmem:[#allocation2 + $0xb8] sm:$0xff] %v1383_v53  ;;  %v1381_v5 = vadd.f32 %v1281_v0, %v515_v63 }
 0x17b   : > { %v1957_v6 = vpop.f32.mrf.mxu0  ;;  %v1293_v8 = vpop.f32.mrf.mxu1 }
 0x17c   : > { %1413 = vst [vmem:[#allocation2 + $0x88] sm:$0xff] %v1381_v5  ;;  %v1958_v9 = vadd.f32 %v1957_v6, %v1956_v2  ;;  %v1294_v59 = vadd.f32 %v1952_v4, %v1293_v8  ;;  %v525_v2 = vld [vmem:[#allocation2 + $0xc8] sm:$0xff]  ;;  %v532_v4 = vld [vmem:[#allocation2 + $0x10] sm:$0xff] }
 0x17d   : > { %v1959_v10 = vpop.f32.mrf.mxu0  ;;  %v2065_v11 = vpop.f32.mrf.mxu1 }
 0x17e   : > { %v1302_v15 = vadd.f32 %v2064_v3, %v1958_v9  ;;  %v1384_v17 = vadd.f32 %v1294_v59, %v518_v7  ;;  %v530_v9 = vld [vmem:[#allocation2 + $0xa8] sm:$0xff] }
 0x17f   : > { %v1960_v14 = vpop.f32.mrf.mxu0  ;;  %v1296_v19 = vpop.f32.mrf.mxu1 }
 0x180   : > { %v1386_v20 = vadd.f32 %v1302_v15, %v520_v1  ;;  %1416 = vst [vmem:[#allocation2 + $0x60] sm:$0xff] %v1384_v17  ;;  %v1961_v21 = vadd.f32 %v1960_v14, %v1959_v10  ;;  %v1297_v22 = vadd.f32 %v1955_v12, %v1296_v19  ;;  %v526_v15 = vld [vmem:[#allocation2 + $0xe0] sm:$0xff]  ;;  %v533_v14 = vld [vmem:[#allocation2 + $0x28] sm:$0xff] }
 0x181   : > { %v1962_v25 = vpop.f32.mrf.mxu0  ;;  %v2068_v26 = vpop.f32.mrf.mxu1 }
 0x182   : > { %1418 = vst [vmem:[#allocation2 + $0x8] sm:$0xff] %v1386_v20  ;;  %v1305_v27 = vadd.f32 %v2065_v11, %v1961_v21  ;;  %v1385_v30 = vadd.f32 %v1297_v22, %v519_v16 }
 0x183   : > { %v1963_v32 = vpop.f32.mrf.mxu0  ;;  %v1309_v29 = vpop.f32.mrf.mxu1 }
 0x184   : > { %v1387_v31 = vadd.f32 %v1305_v27, %v521_v24  ;;  %1417 = vst [vmem:[#allocation2 + $0xf0] sm:$0xff] %v1385_v30  ;;  %v1964_v35 = vadd.f32 %v1963_v32, %v1962_v25  ;;  %v531_v24 = vld [vmem:[#allocation2 + $0xd0] sm:$0xff] }
 0x185   : > { %v1965_v39 = vpop.f32.mrf.mxu0  ;;  %v2069_v41 = vpop.f32.mrf.mxu1  ;;  %v527_v32 = vld [vmem:[#allocation2 + $0x90] sm:$0xff] }
 0x186   : > { %1419 = vst [vmem:[#allocation2 + $0x78] sm:$0xff] %v1387_v31  ;;  %v1310_v43 = vadd.f32 %v1964_v35, %v1309_v29  ;;  %v536_v31 = vld [vmem:[#allocation2 + $0x20] sm:$0xff] }
 0x187   : > { %v1966_v45 = vpop.f32.mrf.mxu0  ;;  %v1312_v47 = vpop.f32.mrf.mxu1 }
 0x188   : > { %v1388_v49 = vadd.f32 %v1310_v43, %v522_v37  ;;  %v1967_v50 = vadd.f32 %v1966_v45, %v1965_v39 }
 0x189   : > { %v1968_v34 = vpop.f32.mrf.mxu0  ;;  %v2635_v36 = vpop.f32.mrf.mxu1 }
 0x18a   : > { %1420 = vst [vmem:[#allocation2 + $0x38] sm:$0xff] %v1388_v49  ;;  %v1313_v52 = vadd.f32 %v1967_v50, %v1312_v47  ;;  %v528_v50 = vld [vmem:[#allocation2 + $0x70] sm:$0xff] }
 0x18b   : > { %v1969_v54 = vpop.f32.mrf.mxu0  ;;  %v1325_v55 = vpop.f32.mrf.mxu1 }
 0x18c   : > { %v1389_v56 = vadd.f32 %v1313_v52, %v523_v51  ;;  %v1970_v57 = vadd.f32 %v1969_v54, %v1968_v34  ;;  %v537_v34 = vld [vmem:[#allocation2 + $0x98] sm:$0xff] }
 0x18d   : > { %v1971_v60 = vpop.f32.mrf.mxu0  ;;  %v2637_v61 = vpop.f32.mrf.mxu1 }
 0x18e   : > { %1421 = vst [vmem:[#allocation2 + $0x58] sm:$0xff] %v1389_v56  ;;  %v1318_v62 = vadd.f32 %v2068_v26, %v1970_v57 }
 0x18f   : > { %v1972_v63 = vpop.f32.mrf.mxu0  ;;  %v1328_v48 = vpop.f32.mrf.mxu1 }
 0x190   : > { %v1390_v53 = vadd.f32 %v1318_v62, %v524_v58  ;;  %v1973_v0 = vadd.f32 %v1972_v63, %v1971_v60 }
 0x191   : > { %v1974_v3 = vpop.f32.mrf.mxu0  ;;  %v2076_v5 = vpop.f32.mrf.mxu1 }
 0x192   : > { %1422 = vst [vmem:[#allocation2 + $0x40] sm:$0xff] %v1390_v53  ;;  %v1321_v6 = vadd.f32 %v2069_v41, %v1973_v0  ;;  %v1350_v7 = vadd.f32 %v2076_v5, %v2619_v23  ;;  %v2006_v23 = vadd.f32 %v2629_v42, %v2627_v40  ;;  %v2009_v40 = vadd.f32 %v2633_v46, %v2631_v44  ;;  %v534_v41 = vld [vmem:[#allocation2 + $0xa0] sm:$0xff]  ;;  %v535_v46 = vld [vmem:[#allocation2 + $0xf8] sm:$0xff] }
 0x193   : > { %v1975_v8 = vpop.f32.mrf.mxu0  ;;  %v1341_v59 = vpop.f32.mrf.mxu1 }
 0x194   : > { %v1391_v1 = vadd.f32 %v1321_v6, %v525_v2  ;;  %v1398_v10 = vadd.f32 %v1350_v7, %v532_v4  ;;  %v1976_v11 = vadd.f32 %v1975_v8, %v1974_v3  ;;  %v1342_v12 = vadd.f32 %v2615_v13, %v1341_v59 }
 0x195   : > { %v1977_v17 = vpop.f32.mrf.mxu0  ;;  %v2077_v16 = vpop.f32.mrf.mxu1 }
 0x196   : > { %1423 = vst [vmem:[#allocation2 + $0xc8] sm:$0xff] %v1391_v1  ;;  %1430 = vst [vmem:[#allocation2 + $0x10] sm:$0xff] %v1398_v10  ;;  %v1326_v19 = vadd.f32 %v1976_v11, %v1325_v55  ;;  %v1396_v20 = vadd.f32 %v1342_v12, %v530_v9  ;;  %v1353_v21 = vadd.f32 %v2077_v16, %v2621_v28 }
 0x197   : > { %v1978_v22 = vpop.f32.mrf.mxu0  ;;  %v1344_v25 = vpop.f32.mrf.mxu1 }
 0x198   : > { %v1392_v26 = vadd.f32 %v1326_v19, %v526_v15  ;;  %1428 = vst [vmem:[#allocation2 + $0xa8] sm:$0xff] %v1396_v20  ;;  %v1399_v27 = vadd.f32 %v1353_v21, %v533_v14  ;;  %v1979_v13 = vadd.f32 %v1978_v22, %v1977_v17  ;;  %v1345_v30 = vadd.f32 %v2617_v18, %v1344_v25 }
 0x199   : > { %v1980_v29 = vpop.f32.mrf.mxu0  ;;  %v2080_v35 = vpop.f32.mrf.mxu1 }
 0x19a   : > { %1424 = vst [vmem:[#allocation2 + $0xe0] sm:$0xff] %v1392_v26  ;;  %1431 = vst [vmem:[#allocation2 + $0x28] sm:$0xff] %v1399_v27  ;;  %v1329_v37 = vadd.f32 %v1979_v13, %v1328_v48  ;;  %v1397_v28 = vadd.f32 %v1345_v30, %v531_v24  ;;  %v1366_v39 = vadd.f32 %v2080_v35, %v2006_v23 }
 0x19b   : > { %v1981_v42 = vpop.f32.mrf.mxu0  ;;  %v1357_v43 = vpop.f32.mrf.mxu1 }
 0x19c   : > { %v1393_v45 = vadd.f32 %v1329_v37, %v527_v32  ;;  %1429 = vst [vmem:[#allocation2 + $0xd0] sm:$0xff] %v1397_v28  ;;  %v1402_v47 = vadd.f32 %v1366_v39, %v536_v31  ;;  %v1982_v49 = vadd.f32 %v1981_v42, %v1980_v29  ;;  %v1358_v18 = vadd.f32 %v2623_v33, %v1357_v43  ;;  %v529_v33 = vld [vmem:[#allocation2 + $0xc0] sm:$0xff] }
 0x19d   : > { %v1983_v51 = vpop.f32.mrf.mxu0  ;;  %v2081_v52 = vpop.f32.mrf.mxu1 }
 0x19e   : > { %1425 = vst [vmem:[#allocation2 + $0x90] sm:$0xff] %v1393_v45  ;;  %1434 = vst [vmem:[#allocation2 + $0x20] sm:$0xff] %v1402_v47  ;;  %v1334_v54 = vadd.f32 %v2635_v36, %v1982_v49  ;;  %v1400_v55 = vadd.f32 %v1358_v18, %v534_v41  ;;  %v1369_v56 = vadd.f32 %v2081_v52, %v2009_v40 }
 0x19f   : > { %v1984_v44 = vpop.f32.mrf.mxu0  ;;  %v1360_v57 = vpop.f32.mrf.mxu1 }
 0x1a0   : > { %v1394_v58 = vadd.f32 %v1334_v54, %v528_v50  ;;  %1432 = vst [vmem:[#allocation2 + $0xa0] sm:$0xff] %v1400_v55  ;;  %v1403_v60 = vadd.f32 %v1369_v56, %v537_v34  ;;  %v1985_v62 = vadd.f32 %v1984_v44, %v1983_v51  ;;  %v1361_v63 = vadd.f32 %v2625_v38, %v1360_v57 }
 0x1a2   : > { %1426 = vst [vmem:[#allocation2 + $0x70] sm:$0xff] %v1394_v58  ;;  %1435 = vst [vmem:[#allocation2 + $0x98] sm:$0xff] %v1403_v60  ;;  %v1337_v48 = vadd.f32 %v2637_v61, %v1985_v62  ;;  %v1401_v53 = vadd.f32 %v1361_v63, %v535_v46  ;;  %1439 = sbr.rel (%p1894_p13) target bundleno = 452 (0x1c4), region = 70 }
 0x1a4   : > { %v1395_v0 = vadd.f32 %v1337_v48, %v529_v33  ;;  %1433 = vst [vmem:[#allocation2 + $0xf8] sm:$0xff] %v1401_v53 }
 0x1a6   : > { %1427 = vst [vmem:[#allocation2 + $0xc0] sm:$0xff] %v1395_v0 }
 0x1a7   : > { %v1440_v36 = vld [vmem:[#allocation2 + $0xb0] sm:$0xff]  ;;  %v2655_v38 = vld [vmem:[%s2776_s2] ss:$0 sm:$0xff]  ;;  %v1512_v4 = vld [vmem:[%s2533_s8 + $0x8] sm:$0xff] }
 0x1a8   : > { %v1511_v2 = vld [vmem:[%s2533_s8] sm:$0xff]  ;;  %v1479_v61 = vadd.f32 %v2655_v38, %v1440_v36  ;;  %v1442_v5 = vld [vmem:[#allocation2 + $0xd8] sm:$0xff]  ;;  %v1513_v8 = vld [vmem:[%s2533_s8 + $0x10] sm:$0xff] }
 0x1a9   : > { %v1441_v3 = vld [vmem:[#allocation2] sm:$0xff]  ;;  %v1481_v7 = vadd.f32 %v2655_v38, %v1442_v5  ;;  %v1443_v9 = vld [vmem:[#allocation2 + $0x18] sm:$0xff]  ;;  %v1444_v11 = vld [vmem:[#allocation2 + $0x50] sm:$0xff] }
 0x1aa   : > { %v1480_v6 = vadd.f32 %v2655_v38, %v1441_v3  ;;  %v1514_v59 = vld [vmem:[%s2533_s8 + $0x18] sm:$0xff]  ;;  %v1543_v1 = vadd.f32 %v1511_v2, %v1479_v61  ;;  %v1482_v10 = vadd.f32 %v2655_v38, %v1443_v9  ;;  %v1515_v12 = vld [vmem:[%s2533_s8 + $0x20] sm:$0xff]  ;;  %v1445_v15 = vld [vmem:[#allocation2 + $0x68] sm:$0xff]  ;;  %v1483_v16 = vadd.f32 %v2655_v38, %v1444_v11 }
 0x1ab   : > { %v1545_v14 = vadd.f32 %v1513_v8, %v1481_v7  ;;  %v1484_v19 = vadd.f32 %v2655_v38, %v1445_v15  ;;  %v1516_v20 = vld [vmem:[%s2533_s8 + $0x28] sm:$0xff]  ;;  %v1446_v21 = vld [vmem:[#allocation2 + $0x30] sm:$0xff]  ;;  %v1518_v26 = vld [vmem:[%s2533_s8 + $0x38] sm:$0xff] }
 0x1ac   : > { %v1544_v17 = vadd.f32 %v1512_v4, %v1480_v6  ;;  %v1517_v23 = vld [vmem:[%s2533_s8 + $0x30] sm:$0xff]  ;;  %1575 = vst [vmem:[%s2538_s18] sm:$0xff] %v1543_v1  ;;  %v1546_v22 = vadd.f32 %v1514_v59, %v1482_v10  ;;  %v1485_v24 = vadd.f32 %v2655_v38, %v1446_v21  ;;  %v1447_v25 = vld [vmem:[#allocation2 + $0x48] sm:$0xff]  ;;  %v1448_v27 = vld [vmem:[#allocation2 + $0x80] sm:$0xff]  ;;  %v1547_v13 = vadd.f32 %v1515_v12, %v1483_v16 }
 0x1ad   : > { %1577 = vst [vmem:[%s2538_s18 + $0x10] sm:$0xff] %v1545_v14  ;;  %v1548_v30 = vadd.f32 %v1516_v20, %v1484_v19  ;;  %v1486_v32 = vadd.f32 %v2655_v38, %v1447_v25  ;;  %v1487_v29 = vadd.f32 %v2655_v38, %v1448_v27  ;;  %v1519_v31 = vld [vmem:[%s2533_s8 + $0x40] sm:$0xff]  ;;  %v1449_v35 = vld [vmem:[#allocation2 + $0x88] sm:$0xff]  ;;  %v1521_v42 = vld [vmem:[%s2533_s8 + $0x50] sm:$0xff] }
 0x1ae   : > { %1576 = vst [vmem:[%s2538_s18 + $0x8] sm:$0xff] %v1544_v17  ;;  %v1520_v37 = vld [vmem:[%s2533_s8 + $0x48] sm:$0xff]  ;;  %1578 = vst [vmem:[%s2538_s18 + $0x18] sm:$0xff] %v1546_v22  ;;  %v1549_v28 = vadd.f32 %v1517_v23, %v1485_v24  ;;  %v1488_v39 = vadd.f32 %v2655_v38, %v1449_v35  ;;  %v1451_v41 = vld [vmem:[#allocation2 + $0xb8] sm:$0xff] }
 0x1af   : > { %v1450_v40 = vld [vmem:[#allocation2 + $0xe8] sm:$0xff]  ;;  %1579 = vst [vmem:[%s2538_s18 + $0x20] sm:$0xff] %v1547_v13  ;;  %1580 = vst [vmem:[%s2538_s18 + $0x28] sm:$0xff] %v1548_v30  ;;  %v1550_v43 = vadd.f32 %v1518_v26, %v1486_v32  ;;  %v1551_v45 = vadd.f32 %v1519_v31, %v1487_v29  ;;  %v1490_v49 = vadd.f32 %v2655_v38, %v1451_v41  ;;  %v1522_v18 = vld [vmem:[%s2533_s8 + $0x58] sm:$0xff] }
 0x1b0   : > { %v1489_v47 = vadd.f32 %v2655_v38, %v1450_v40  ;;  %v1452_v50 = vld [vmem:[#allocation2 + $0x60] sm:$0xff]  ;;  %1581 = vst [vmem:[%s2538_s18 + $0x30] sm:$0xff] %v1549_v28  ;;  %v1552_v34 = vadd.f32 %v1520_v37, %v1488_v39  ;;  %v1453_v54 = vld [vmem:[#allocation2 + $0xf0] sm:$0xff]  ;;  %v1524_v55 = vld [vmem:[%s2533_s8 + $0x68] sm:$0xff] }
 0x1b1   : > { %v1523_v51 = vld [vmem:[%s2533_s8 + $0x60] sm:$0xff]  ;;  %v1491_v52 = vadd.f32 %v2655_v38, %v1452_v50  ;;  %v1454_v56 = vld [vmem:[#allocation2 + $0x8] sm:$0xff]  ;;  %1582 = vst [vmem:[%s2538_s18 + $0x38] sm:$0xff] %v1550_v43  ;;  %1583 = vst [vmem:[%s2538_s18 + $0x40] sm:$0xff] %v1551_v45  ;;  %v1554_v46 = vadd.f32 %v1522_v18, %v1490_v49  ;;  %v1492_v57 = vadd.f32 %v2655_v38, %v1453_v54 }
 0x1b2   : > { %v1553_v44 = vadd.f32 %v1521_v42, %v1489_v47  ;;  %v1493_v58 = vadd.f32 %v2655_v38, %v1454_v56  ;;  %v1525_v60 = vld [vmem:[%s2533_s8 + $0x70] sm:$0xff]  ;;  %v1455_v62 = vld [vmem:[#allocation2 + $0x78] sm:$0xff]  ;;  %1584 = vst [vmem:[%s2538_s18 + $0x48] sm:$0xff] %v1552_v34  ;;  %v1527_v0 = vld [vmem:[%s2533_s8 + $0x80] sm:$0xff] }
 0x1b3   : > { %v1526_v63 = vld [vmem:[%s2533_s8 + $0x78] sm:$0xff]  ;;  %v1555_v33 = vadd.f32 %v1523_v51, %v1491_v52  ;;  %v1494_v48 = vadd.f32 %v2655_v38, %v1455_v62  ;;  %1586 = vst [vmem:[%s2538_s18 + $0x58] sm:$0xff] %v1554_v46  ;;  %v1556_v2 = vadd.f32 %v1524_v55, %v1492_v57  ;;  %v1528_v5 = vld [vmem:[%s2533_s8 + $0x88] sm:$0xff]  ;;  %v1458_v6 = vld [vmem:[#allocation2 + $0x40] sm:$0xff] }
 0x1b4   : > { %v1456_v53 = vld [vmem:[#allocation2 + $0x38] sm:$0xff]  ;;  %1585 = vst [vmem:[%s2538_s18 + $0x50] sm:$0xff] %v1553_v44  ;;  %v1557_v61 = vadd.f32 %v1525_v60, %v1493_v58  ;;  %v1529_v7 = vld [vmem:[%s2533_s8 + $0x90] sm:$0xff]  ;;  %v1497_v9 = vadd.f32 %v2655_v38, %v1458_v6  ;;  %v1459_v59 = vld [vmem:[#allocation2 + $0xc8] sm:$0xff] }
 0x1b5   : > { %v1457_v36 = vld [vmem:[#allocation2 + $0x58] sm:$0xff]  ;;  %v1495_v3 = vadd.f32 %v2655_v38, %v1456_v53  ;;  %1587 = vst [vmem:[%s2538_s18 + $0x60] sm:$0xff] %v1555_v33  ;;  %v1558_v8 = vadd.f32 %v1526_v63, %v1494_v48  ;;  %v1460_v10 = vld [vmem:[#allocation2 + $0xe0] sm:$0xff]  ;;  %1588 = vst [vmem:[%s2538_s18 + $0x68] sm:$0xff] %v1556_v2  ;;  %v1498_v15 = vadd.f32 %v2655_v38, %v1459_v59 }
 0x1b6   : > { %v1496_v4 = vadd.f32 %v2655_v38, %v1457_v36  ;;  %v1530_v1 = vld [vmem:[%s2533_s8 + $0x98] sm:$0xff]  ;;  %1589 = vst [vmem:[%s2538_s18 + $0x70] sm:$0xff] %v1557_v61  ;;  %v1499_v17 = vadd.f32 %v2655_v38, %v1460_v10  ;;  %v1531_v14 = vld [vmem:[%s2533_s8 + $0xa0] sm:$0xff]  ;;  %v1461_v16 = vld [vmem:[#allocation2 + $0x90] sm:$0xff]  ;;  %v1561_v20 = vadd.f32 %v1529_v7, %v1497_v9 }
 0x1b7   : > { %v1559_v11 = vadd.f32 %v1527_v0, %v1495_v3  ;;  %v1532_v19 = vld [vmem:[%s2533_s8 + $0xa8] sm:$0xff]  ;;  %1590 = vst [vmem:[%s2538_s18 + $0x78] sm:$0xff] %v1558_v8  ;;  %v1500_v21 = vadd.f32 %v2655_v38, %v1461_v16  ;;  %v1462_v23 = vld [vmem:[#allocation2 + $0x70] sm:$0xff]  ;;  %v1463_v24 = vld [vmem:[#allocation2 + $0xc0] sm:$0xff]  ;;  %v1562_v25 = vadd.f32 %v1530_v1, %v1498_v15 }
 0x1b8   : > { %v1560_v12 = vadd.f32 %v1528_v5, %v1496_v4  ;;  %v1533_v22 = vld [vmem:[%s2533_s8 + $0xb0] sm:$0xff]  ;;  %v1563_v26 = vadd.f32 %v1531_v14, %v1499_v17  ;;  %v1501_v27 = vadd.f32 %v2655_v38, %v1462_v23  ;;  %v1502_v13 = vadd.f32 %v2655_v38, %v1463_v24  ;;  %v1534_v30 = vld [vmem:[%s2533_s8 + $0xb8] sm:$0xff]  ;;  %v1464_v32 = vld [vmem:[#allocation2 + $0xa8] sm:$0xff]  ;;  %1593 = vst [vmem:[%s2538_s18 + $0x90] sm:$0xff] %v1561_v20 }
 0x1b9   : > { %1591 = vst [vmem:[%s2538_s18 + $0x80] sm:$0xff] %v1559_v11  ;;  %v1535_v29 = vld [vmem:[%s2533_s8 + $0xc0] sm:$0xff]  ;;  %v1564_v31 = vadd.f32 %v1532_v19, %v1500_v21  ;;  %v1503_v35 = vadd.f32 %v2655_v38, %v1464_v32  ;;  %v1465_v37 = vld [vmem:[#allocation2 + $0xd0] sm:$0xff]  ;;  %v1536_v28 = vld [vmem:[%s2533_s8 + $0xc8] sm:$0xff] }
 0x1ba   : > { %1592 = vst [vmem:[%s2538_s18 + $0x88] sm:$0xff] %v1560_v12  ;;  %v1466_v39 = vld [vmem:[#allocation2 + $0x10] sm:$0xff]  ;;  %1594 = vst [vmem:[%s2538_s18 + $0x98] sm:$0xff] %v1562_v25  ;;  %v1565_v40 = vadd.f32 %v1533_v22, %v1501_v27  ;;  %v1566_v42 = vadd.f32 %v1534_v30, %v1502_v13  ;;  %v1504_v41 = vadd.f32 %v2655_v38, %v1465_v37  ;;  %v1467_v47 = vld [vmem:[#allocation2 + $0x28] sm:$0xff] }
 0x1bb   : > { %1595 = vst [vmem:[%s2538_s18 + $0xa0] sm:$0xff] %v1563_v26  ;;  %v1505_v43 = vadd.f32 %v2655_v38, %v1466_v39  ;;  %v1537_v45 = vld [vmem:[%s2533_s8 + $0xd0] sm:$0xff]  ;;  %v1538_v49 = vld [vmem:[%s2533_s8 + $0xd8] sm:$0xff]  ;;  %1596 = vst [vmem:[%s2538_s18 + $0xa8] sm:$0xff] %v1564_v31  ;;  %v1567_v18 = vadd.f32 %v1535_v29, %v1503_v35  ;;  %v1506_v50 = vadd.f32 %v2655_v38, %v1467_v47 }
 0x1bc   : > { %v1468_v51 = vld [vmem:[#allocation2 + $0xa0] sm:$0xff]  ;;  %v1469_v52 = vld [vmem:[#allocation2 + $0xf8] sm:$0xff]  ;;  %1597 = vst [vmem:[%s2538_s18 + $0xb0] sm:$0xff] %v1565_v40  ;;  %1598 = vst [vmem:[%s2538_s18 + $0xb8] sm:$0xff] %v1566_v42  ;;  %v1568_v54 = vadd.f32 %v1536_v28, %v1504_v41 }
 0x1bd   : > { %v1539_v34 = vld [vmem:[%s2533_s8 + $0xe0] sm:$0xff]  ;;  %v1569_v55 = vadd.f32 %v1537_v45, %v1505_v43  ;;  %v1507_v56 = vadd.f32 %v2655_v38, %v1468_v51  ;;  %v1508_v44 = vadd.f32 %v2655_v38, %v1469_v52  ;;  %v1540_v46 = vld [vmem:[%s2533_s8 + $0xe8] sm:$0xff]  ;;  %v1541_v58 = vld [vmem:[%s2533_s8 + $0xf0] sm:$0xff]  ;;  %1599 = vst [vmem:[%s2538_s18 + $0xc0] sm:$0xff] %v1567_v18  ;;  %v1570_v60 = vadd.f32 %v1538_v49, %v1506_v50 }
 0x1be   : > { %v1470_v57 = vld [vmem:[#allocation2 + $0x20] sm:$0xff]  ;;  %v1471_v63 = vld [vmem:[#allocation2 + $0x98] sm:$0xff]  ;;  %1600 = vst [vmem:[%s2538_s18 + $0xc8] sm:$0xff] %v1568_v54 }
 0x1bf   : > { %v1509_v62 = vadd.f32 %v2655_v38, %v1470_v57  ;;  %v1542_v33 = vld [vmem:[%s2533_s8 + $0xf8] sm:$0xff]  ;;  %1601 = vst [vmem:[%s2538_s18 + $0xd0] sm:$0xff] %v1569_v55  ;;  %v1571_v48 = vadd.f32 %v1539_v34, %v1507_v56  ;;  %v1572_v53 = vadd.f32 %v1540_v46, %v1508_v44  ;;  %v1510_v0 = vadd.f32 %v2655_v38, %v1471_v63 }
 0x1c0   : > { %1602 = vst [vmem:[%s2538_s18 + $0xd8] sm:$0xff] %v1570_v60 }
 0x1c1   : > { %v1573_v36 = vadd.f32 %v1541_v58, %v1509_v62  ;;  %1603 = vst [vmem:[%s2538_s18 + $0xe0] sm:$0xff] %v1571_v48  ;;  %1604 = vst [vmem:[%s2538_s18 + $0xe8] sm:$0xff] %v1572_v53  ;;  %v1574_v2 = vadd.f32 %v1542_v33, %v1510_v0 }
 0x1c3   : > { %1605 = vst [vmem:[%s2538_s18 + $0xf0] sm:$0xff] %v1573_v36  ;;  %1606 = vst [vmem:[%s2538_s18 + $0xf8] sm:$0xff] %v1574_v2 }
 0x1c4 PF: > { %s14_s21 = sadd.s32 1, %s2300_s21   ;;  %s2779_s15 = smov %s2280_s16 }
 0x1c5   : > { %p11_p0 = scmp.ge.s32.totalorder %s14_s21, 8   ;;  %s2780_s16 = smov %s2379_s28 }
 0x1c6   : > { %s2781_s17 = smov %s2292_s19  ;;  %s2782_s18 = smov %s2296_s20 }
 0x1c7   : > { %s2783_s19 = smov %s2786_s22  ;;  %s2784_s20 = smov %s2790_s23 }
 0x1c8   :  { %13 = sbr.rel (!%p11_p0) target bundleno = 4 (0x4), region = 120 }

// kernel: encoder_block_forward.22
= control target key start
LH: loop header
LB: loop body
LE: loop exit
PB: predicated region body
PF: predicated region fallthrough
CT: control target
= control target key end

     0   :  { %s1207_s12 = smov 0   ;;  %s1209_s13 = smov 0   ;;  %s1518_s0 = inlined_call_operand.vmem [shape: f32[2,256,128], index: 0, kind: input, shape index: {}]   ;;  %s1519_s1 = inlined_call_operand.vmem [shape: f32[2,1,128], index: 1, kind: input, shape index: {}]   ;;  %s1520_s2 = inlined_call_operand.vmem [shape: f32[2,1,128], index: 2, kind: input, shape index: {}]   ;;  %s1521_s3 = inlined_call_operand.vmem [shape: bf16[2,256,128], index: 3, kind: output, shape index: {}]  }
   0x1   :  { %s1211_s14 = smov 0  }
   0x2 LB: > { %s25_s15 = sadd.s32 1, %s1181_s13  ;;  %p841_p0 = scmp.ge.s32.totalorder %s1185_s14, 1  ;;  %s1185_s14 = sphi %s1211_s14, %s13_s14   ;;  %s1181_s13 = sphi %s1209_s13, %s1523_s13   ;;  %s1177_s12 = sphi %s1207_s12, %s1522_s12  }
   0x3   : > { %p27_p1 = scmp.ge.s32.totalorder %s25_s15, 2  ;;  %p174_p2 = scmp.lt.s32.totalorder %s1185_s14, 3 }
   0x5   : > { %s1525_s15 = smov (%p27_p1, %s25_s15), 0  ;;  %p175_p3 = pnand %p841_p0, %p174_p2 }
   0x6   : > { %p213_p4 = scmp.lt.s32.totalorder (!%p175_p3), %s1177_s12, 1 }
   0x7   : > { %178 = sbr.rel (%p175_p3) target bundleno = 121 (0x79), region = 32 }
   0xc   : > { %s1527_s12 = smov (!%p213_p4, %s1177_s12), 1 }
   0xd   : > { %s882_s16 = sshll.u32 %s1527_s12, 8  ;;  %s224_s19 = scalar_lea.vmem %s1519_s1, %s1527_s12 }
   0xe   : > { %s1235_s22 = scalar_lea.vmem %s1518_s0, %s882_s16  ;;  %s227_s25 = scalar_lea.vmem %s1520_s2, %s1527_s12  ;;  %v1241_v0 = vld [vmem:[%s224_s19] ss:$0 sm:$0xff] }
   0xf   : > { %v238_v1 = vld [vmem:[%s1235_s22] sm:$0xff]  ;;  %v239_v2 = vld [vmem:[%s1235_s22 + $0x8] sm:$0xff]  ;;  %v240_v6 = vld [vmem:[%s1235_s22 + $0x10] sm:$0xff]  ;;  %s883_s26 = sshll.u32 %s1527_s12, 7 }
  0x10   : > { %v1245_v3 = vld [vmem:[%s227_s25] ss:$0 sm:$0xff]  ;;  %v277_v4 = vmul.f32 %v1241_v0, %v238_v1  ;;  %v278_v5 = vmul.f32 %v1241_v0, %v239_v2  ;;  %v241_v7 = vld [vmem:[%s1235_s22 + $0x18] sm:$0xff]  ;;  %v279_v9 = vmul.f32 %v1241_v0, %v240_v6  ;;  %v243_v11 = vld [vmem:[%s1235_s22 + $0x28] sm:$0xff]  ;;  %s1433_s29 = scalar_lea.vmem %s1521_s3, %s883_s26 }
  0x11   : > { %v242_v8 = vld [vmem:[%s1235_s22 + $0x20] sm:$0xff]  ;;  %v280_v10 = vmul.f32 %v1241_v0, %v241_v7  ;;  %v244_v13 = vld [vmem:[%s1235_s22 + $0x30] sm:$0xff]  ;;  %v245_v14 = vld [vmem:[%s1235_s22 + $0x38] sm:$0xff]  ;;  %v282_v17 = vmul.f32 %v1241_v0, %v243_v11 }
  0x12   : > { %v281_v12 = vmul.f32 %v1241_v0, %v242_v8  ;;  %v1259_v15 = vadd.f32 %v1245_v3, %v277_v4  ;;  %v1262_v16 = vadd.f32 %v1245_v3, %v278_v5  ;;  %v283_v18 = vmul.f32 %v1241_v0, %v244_v13  ;;  %v246_v27 = vld [vmem:[%s1235_s22 + $0x40] sm:$0xff]  ;;  %v247_v28 = vld [vmem:[%s1235_s22 + $0x48] sm:$0xff]  ;;  %v248_v33 = vld [vmem:[%s1235_s22 + $0x50] sm:$0xff] }
  0x13   : > { %v1267_v19 = vadd.f32 %v1245_v3, %v279_v9  ;;  %v1270_v20 = vadd.f32 %v1245_v3, %v280_v10  ;;  %v284_v22 = vmul.f32 %v1241_v0, %v245_v14  ;;  %v1279_v25 = vadd.f32 %v1245_v3, %v282_v17  ;;  %v249_v34 = vld [vmem:[%s1235_s22 + $0x58] sm:$0xff]  ;;  %v250_v35 = vld [vmem:[%s1235_s22 + $0x60] sm:$0xff]  ;;  %v251_v50 = vld [vmem:[%s1235_s22 + $0x68] sm:$0xff] }
  0x14   : > { %v1273_v21 = vadd.f32 %v1245_v3, %v281_v12  ;;  %v348_v23 = vsub.f32 0.0, %v1259_v15  ;;  %v349_v24 = vsub.f32 0.0, %v1262_v16  ;;  %v1282_v26 = vadd.f32 %v1245_v3, %v283_v18  ;;  %v252_v60 = vld [vmem:[%s1235_s22 + $0x70] sm:$0xff]  ;;  %v253_v5 = vld [vmem:[%s1235_s22 + $0x78] sm:$0xff]  ;;  %v254_v6 = vld [vmem:[%s1235_s22 + $0x80] sm:$0xff] }
  0x15   : > { %v350_v29 = vsub.f32 0.0, %v1267_v19  ;;  %v351_v30 = vsub.f32 0.0, %v1270_v20  ;;  %v1290_v32 = vadd.f32 %v1245_v3, %v284_v22  ;;  %v353_v38 = vsub.f32 0.0, %v1279_v25  ;;  %v255_v10 = vld [vmem:[%s1235_s22 + $0x88] sm:$0xff]  ;;  %v256_v11 = vld [vmem:[%s1235_s22 + $0x90] sm:$0xff] }
  0x16   : > { %v352_v31 = vsub.f32 0.0, %v1273_v21  ;;  %v380_v36 = vmul.f32 1.442695, %v348_v23  ;;  %v382_v37 = vmul.f32 1.442695, %v349_v24  ;;  %v354_v39 = vsub.f32 0.0, %v1282_v26 }
  0x17   : > { %v384_v40 = vmul.f32 1.442695, %v350_v29  ;;  %v386_v41 = vmul.f32 1.442695, %v351_v30  ;;  %v285_v43 = vmul.f32 %v1241_v0, %v246_v27  ;;  %v390_v44 = vmul.f32 1.442695, %v353_v38 }
  0x18   : > { %v388_v42 = vmul.f32 1.442695, %v352_v31  ;;  %1035 = vpow2.f32 %v380_v36  ;;  %v355_v45 = vsub.f32 0.0, %v1290_v32  ;;  %v392_v46 = vmul.f32 1.442695, %v354_v39  ;;  %v257_v23 = vld [vmem:[%s1235_s22 + $0x98] sm:$0xff] }
  0x19   : > { %1037 = vpow2.f32 %v382_v37  ;;  %v286_v47 = vmul.f32 %v1241_v0, %v247_v28  ;;  %v1301_v48 = vadd.f32 %v1245_v3, %v285_v43  ;;  %v287_v49 = vmul.f32 %v1241_v0, %v248_v33 }
  0x1a   : > { %1039 = vpow2.f32 %v384_v40  ;;  %v394_v51 = vmul.f32 1.442695, %v355_v45  ;;  %v288_v52 = vmul.f32 %v1241_v0, %v249_v34  ;;  %v289_v53 = vmul.f32 %v1241_v0, %v250_v35 }
  0x1b   : > { %1041 = vpow2.f32 %v386_v41  ;;  %v1308_v54 = vadd.f32 %v1245_v3, %v286_v47  ;;  %v356_v55 = vsub.f32 0.0, %v1301_v48  ;;  %v1312_v56 = vadd.f32 %v1245_v3, %v287_v49  ;;  %v259_v49 = vld [vmem:[%s1235_s22 + $0xa8] sm:$0xff] }
  0x1c   : > { %1043 = vpow2.f32 %v388_v42  ;;  %v1315_v57 = vadd.f32 %v1245_v3, %v288_v52  ;;  %v290_v58 = vmul.f32 %v1241_v0, %v251_v50  ;;  %v1319_v59 = vadd.f32 %v1245_v3, %v289_v53 }
  0x1d   : > { %1045 = vpow2.f32 %v390_v44  ;;  %v357_v61 = vsub.f32 0.0, %v1308_v54  ;;  %v396_v62 = vmul.f32 1.442695, %v356_v55  ;;  %v358_v63 = vsub.f32 0.0, %v1312_v56  ;;  %v258_v44 = vld [vmem:[%s1235_s22 + $0xa0] sm:$0xff]  ;;  %v260_v55 = vld [vmem:[%s1235_s22 + $0xb0] sm:$0xff] }
  0x1e   : > { %1047 = vpow2.f32 %v392_v46  ;;  %v359_v1 = vsub.f32 0.0, %v1315_v57  ;;  %v1326_v2 = vadd.f32 %v1245_v3, %v290_v58  ;;  %v360_v4 = vsub.f32 0.0, %v1319_v59 }
  0x1f   : > { %1049 = vpow2.f32 %v394_v51  ;;  %v398_v7 = vmul.f32 1.442695, %v357_v61  ;;  %v400_v8 = vmul.f32 1.442695, %v358_v63  ;;  %v291_v9 = vmul.f32 %v1241_v0, %v252_v60  ;;  %v261_v63 = vld [vmem:[%s1235_s22 + $0xb8] sm:$0xff] }
  0x20   : > { %1051 = vpow2.f32 %v396_v62  ;;  %v402_v12 = vmul.f32 1.442695, %v359_v1  ;;  %v361_v13 = vsub.f32 0.0, %v1326_v2  ;;  %v404_v14 = vmul.f32 1.442695, %v360_v4 }
  0x21   : > { %1053 = vpow2.f32 %v398_v7  ;;  %v292_v17 = vmul.f32 %v1241_v0, %v253_v5  ;;  %v1337_v18 = vadd.f32 %v1245_v3, %v291_v9  ;;  %v293_v22 = vmul.f32 %v1241_v0, %v254_v6 }
  0x22   : > { %1055 = vpow2.f32 %v400_v8  ;;  %v406_v24 = vmul.f32 1.442695, %v361_v13  ;;  %v294_v27 = vmul.f32 %v1241_v0, %v255_v10  ;;  %v295_v28 = vmul.f32 %v1241_v0, %v256_v11 }
  0x23   : > { %1057 = vpow2.f32 %v402_v12  ;;  %v1344_v29 = vadd.f32 %v1245_v3, %v292_v17  ;;  %v362_v30 = vsub.f32 0.0, %v1337_v18  ;;  %v1348_v31 = vadd.f32 %v1245_v3, %v293_v22 }
  0x24   : > { %1059 = vpow2.f32 %v404_v14  ;;  %v1351_v33 = vadd.f32 %v1245_v3, %v294_v27  ;;  %v296_v34 = vmul.f32 %v1241_v0, %v257_v23  ;;  %v1355_v35 = vadd.f32 %v1245_v3, %v295_v28 }
  0x25   : > { %v1036_v36 = vpop.eup %1035  ;;  %1061 = vpow2.f32 %v406_v24  ;;  %v363_v37 = vsub.f32 0.0, %v1344_v29  ;;  %v408_v38 = vmul.f32 1.442695, %v362_v30  ;;  %v364_v39 = vsub.f32 0.0, %v1348_v31 }
  0x26   : > { %v1038_v40 = vpop.eup %1037  ;;  %v444_v41 = vadd.f32 1.0, %v1036_v36  ;;  %v365_v42 = vsub.f32 0.0, %v1351_v33  ;;  %v1361_v43 = vadd.f32 %v1245_v3, %v296_v34  ;;  %v366_v47 = vsub.f32 0.0, %v1355_v35  ;;  %v262_v36 = vld [vmem:[%s1235_s22 + $0xc0] sm:$0xff] }
  0x27   : > { %v1040_v45 = vpop.eup %1039  ;;  %v445_v46 = vadd.f32 1.0, %v1038_v40  ;;  %1063 = vpow2.f32 %v408_v38  ;;  %v1366_v52 = vmul.f32 1.442695, %v363_v37  ;;  %v1368_v53 = vmul.f32 1.442695, %v364_v39 }
  0x28   : > { %v1042_v50 = vpop.eup %1041  ;;  %1065 = vrcp.f32 %v444_v41  ;;  %v446_v51 = vadd.f32 1.0, %v1040_v45  ;;  %v1371_v61 = vmul.f32 1.442695, %v365_v42  ;;  %v297_v62 = vmul.f32 %v1241_v0, %v258_v44  ;;  %v263_v41 = vld [vmem:[%s1235_s22 + $0xc8] sm:$0xff] }
  0x29   : > { %v1044_v58 = vpop.eup %1043  ;;  %1067 = vrcp.f32 %v445_v46  ;;  %v447_v60 = vadd.f32 1.0, %v1042_v50  ;;  %v367_v5 = vsub.f32 0.0, %v1361_v43  ;;  %v298_v6 = vmul.f32 %v1241_v0, %v259_v49  ;;  %v264_v49 = vld [vmem:[%s1235_s22 + $0xd0] sm:$0xff] }
  0x2a   : > { %v1046_v1 = vpop.eup %1045  ;;  %1069 = vrcp.f32 %v446_v51  ;;  %v448_v4 = vadd.f32 1.0, %v1044_v58  ;;  %v1378_v9 = vadd.f32 %v1245_v3, %v297_v62  ;;  %v299_v10 = vmul.f32 %v1241_v0, %v260_v55 }
  0x2b   : > { %v1048_v7 = vpop.eup %1047  ;;  %1071 = vrcp.f32 %v447_v60  ;;  %v449_v8 = vadd.f32 1.0, %v1046_v1  ;;  %v1382_v13 = vadd.f32 %v1245_v3, %v298_v6  ;;  %v300_v14 = vmul.f32 %v1241_v0, %v261_v63 }
  0x2c   : > { %v1050_v11 = vpop.eup %1049  ;;  %1073 = vrcp.f32 %v448_v4  ;;  %v450_v12 = vadd.f32 1.0, %v1048_v7  ;;  %v368_v23 = vsub.f32 0.0, %v1378_v9  ;;  %v1387_v24 = vadd.f32 %v1245_v3, %v299_v10 }
  0x2d   : > { %v1052_v17 = vpop.eup %1051  ;;  %1075 = vrcp.f32 %v449_v8  ;;  %v451_v22 = vadd.f32 1.0, %v1050_v11  ;;  %v369_v30 = vsub.f32 0.0, %v1382_v13  ;;  %v1391_v34 = vadd.f32 %v1245_v3, %v300_v14 }
  0x2e   : > { %v1054_v27 = vpop.eup %1053  ;;  %1077 = vrcp.f32 %v450_v12  ;;  %v452_v28 = vadd.f32 1.0, %v1052_v17  ;;  %v416_v39 = vmul.f32 1.442695, %v366_v47  ;;  %v1394_v40 = vmul.f32 1.442695, %v367_v5  ;;  %v265_v47 = vld [vmem:[%s1235_s22 + $0xd8] sm:$0xff] }
  0x2f   : > { %v1056_v37 = vpop.eup %1055  ;;  %1079 = vrcp.f32 %v451_v22  ;;  %v453_v38 = vadd.f32 1.0, %v1054_v27  ;;  %v1397_v45 = vmul.f32 1.442695, %v368_v23  ;;  %v370_v46 = vsub.f32 0.0, %v1387_v24  ;;  %v266_v12 = vld [vmem:[%s1235_s22 + $0xe0] sm:$0xff] }
  0x30   : > { %v1058_v42 = vpop.eup %1057  ;;  %1081 = vrcp.f32 %v452_v28  ;;  %v454_v44 = vadd.f32 1.0, %v1056_v37  ;;  %v1401_v55 = vmul.f32 1.442695, %v369_v30  ;;  %v301_v58 = vmul.f32 %v1241_v0, %v262_v36 }
  0x31   : > { %v1060_v50 = vpop.eup %1059  ;;  %1083 = vrcp.f32 %v453_v38  ;;  %v455_v51 = vadd.f32 1.0, %v1058_v42  ;;  %v371_v63 = vsub.f32 0.0, %v1391_v34  ;;  %v302_v1 = vmul.f32 %v1241_v0, %v263_v41  ;;  %v267_v42 = vld [vmem:[%s1235_s22 + $0xe8] sm:$0xff] }
  0x32   : > { %v1062_v60 = vpop.eup %1061  ;;  %1085 = vrcp.f32 %v454_v44  ;;  %v456_v62 = vadd.f32 1.0, %v1060_v50  ;;  %v1408_v5 = vadd.f32 %v1245_v3, %v301_v58  ;;  %v303_v6 = vmul.f32 %v1241_v0, %v264_v49 }
  0x33   : > { %1087 = vrcp.f32 %v455_v51  ;;  %v457_v4 = vadd.f32 1.0, %v1062_v60  ;;  %v424_v8 = vmul.f32 1.442695, %v370_v46  ;;  %v1412_v10 = vadd.f32 %v1245_v3, %v302_v1 }
  0x34   : > { %v1064_v7 = vpop.eup %1063  ;;  %1089 = vrcp.f32 %v456_v62  ;;  %v304_v11 = vmul.f32 %v1241_v0, %v265_v47  ;;  %v372_v22 = vsub.f32 0.0, %v1408_v5  ;;  %v1419_v23 = vadd.f32 %v1245_v3, %v303_v6  ;;  %v268_v47 = vld [vmem:[%s1235_s22 + $0xf0] sm:$0xff] }
  0x35   : > { %v1066_v14 = vpop.eup %1065  ;;  %1091 = vrcp.f32 %v457_v4  ;;  %v458_v17 = vadd.f32 1.0, %v1064_v7  ;;  %v373_v30 = vsub.f32 0.0, %v1412_v10  ;;  %v426_v41 = vmul.f32 1.442695, %v371_v63 }
  0x36   : > { %v1068_v27 = vpop.eup %1067  ;;  %v540_v28 = vmul.f32 %v1066_v14, %v1259_v15  ;;  %1093 = vpow2.f32 %v1366_v52  ;;  %v1425_v36 = vadd.f32 %v1245_v3, %v304_v11  ;;  %v305_v44 = vmul.f32 %v1241_v0, %v266_v12 }
  0x37   : > { %v1070_v37 = vpop.eup %1069  ;;  %v541_v38 = vmul.f32 %v1068_v27, %v1262_v16  ;;  %1095 = vrcp.f32 %v458_v17  ;;  %v428_v52 = vmul.f32 1.442695, %v372_v22  ;;  %v374_v16 = vsub.f32 0.0, %v1419_v23 }
  0x38   : > { %v1072_v46 = vpop.eup %1071  ;;  %v542_v15 = vmul.f32 %v1070_v37, %v1267_v19  ;;  %1097 = vpow2.f32 %v1368_v53  ;;  %v430_v58 = vmul.f32 1.442695, %v373_v30  ;;  %v375_v19 = vsub.f32 0.0, %v1425_v36 }
  0x39   : > { %v1074_v49 = vpop.eup %1073  ;;  %v919_v50 = vpack.c.bf16 %v541_v38, %v540_v28  ;;  %v543_v51 = vmul.f32 %v1072_v46, %v1270_v20  ;;  %1099 = vpow2.f32 %v1371_v61  ;;  %v306_v53 = vmul.f32 %v1241_v0, %v267_v42 }
  0x3a   : > { %v1076_v60 = vpop.eup %1075  ;;  %v544_v62 = vmul.f32 %v1074_v49, %v1273_v21  ;;  %1101 = vpow2.f32 %v416_v39  ;;  %v1448_v20 = vadd.f32 %v1245_v3, %v305_v44  ;;  %v307_v39 = vmul.f32 %v1241_v0, %v268_v47 }
  0x3b   : > { %v1078_v63 = vpop.eup %1077  ;;  %920 = vst [vmem:[%s1433_s29] sm:$0xff] %v919_v50   ;;  %v924_v1 = vpack.c.bf16 %v543_v51, %v542_v15  ;;  %v545_v4 = vmul.f32 %v1076_v60, %v1279_v25  ;;  %1103 = vpow2.f32 %v1394_v40  ;;  %v1453_v21 = vadd.f32 %v1245_v3, %v306_v53 }
  0x3c   : > { %v1080_v61 = vpop.eup %1079  ;;  %v546_v6 = vmul.f32 %v1078_v63, %v1282_v26  ;;  %1105 = vpow2.f32 %v1397_v45  ;;  %v376_v40 = vsub.f32 0.0, %v1448_v20  ;;  %v432_v45 = vmul.f32 1.442695, %v374_v16 }
  0x3d   : > { %v1082_v7 = vpop.eup %1081  ;;  %996 = vst [vmem:[%s1433_s29 + $0x8] sm:$0xff] %v924_v1   ;;  %v929_v11 = vpack.c.bf16 %v545_v4, %v544_v62  ;;  %v547_v25 = vmul.f32 %v1080_v61, %v1290_v32  ;;  %1107 = vpow2.f32 %v1401_v55  ;;  %v377_v14 = vsub.f32 0.0, %v1453_v21 }
  0x3e   : > { %v1084_v12 = vpop.eup %1083  ;;  %v548_v26 = vmul.f32 %v1082_v7, %v1301_v48  ;;  %1109 = vpow2.f32 %v424_v8  ;;  %v434_v28 = vmul.f32 1.442695, %v375_v19  ;;  %v436_v30 = vmul.f32 1.442695, %v376_v40 }
  0x3f   : > { %v1086_v17 = vpop.eup %1085  ;;  %997 = vst [vmem:[%s1433_s29 + $0x10] sm:$0xff] %v929_v11   ;;  %v934_v22 = vpack.c.bf16 %v547_v25, %v546_v6  ;;  %v549_v27 = vmul.f32 %v1084_v12, %v1308_v54  ;;  %1111 = vpow2.f32 %v426_v41  ;;  %v1466_v48 = vadd.f32 %v1245_v3, %v307_v39 }
  0x40   : > { %v1088_v32 = vpop.eup %1087  ;;  %v550_v55 = vmul.f32 %v1086_v17, %v1312_v56  ;;  %1113 = vpow2.f32 %v428_v52  ;;  %v438_v42 = vmul.f32 1.442695, %v377_v14  ;;  %v269_v52 = vld [vmem:[%s1235_s22 + $0xf8] sm:$0xff] }
  0x41   : > { %v1090_v8 = vpop.eup %1089  ;;  %998 = vst [vmem:[%s1433_s29 + $0x18] sm:$0xff] %v934_v22   ;;  %v939_v37 = vpack.c.bf16 %v549_v27, %v548_v26  ;;  %v551_v38 = vmul.f32 %v1088_v32, %v1315_v57  ;;  %1115 = vpow2.f32 %v430_v58  ;;  %v378_v56 = vsub.f32 0.0, %v1466_v48 }
  0x42   : > { %v1092_v54 = vpop.eup %1091  ;;  %v552_v41 = vmul.f32 %v1090_v8, %v1319_v59  ;;  %1117 = vpow2.f32 %v432_v45  ;;  %v308_v47 = vmul.f32 %v1241_v0, %v269_v52 }
  0x43   : > { %v1094_v44 = vpop.eup %1093  ;;  %999 = vst [vmem:[%s1433_s29 + $0x20] sm:$0xff] %v939_v37   ;;  %v944_v46 = vpack.c.bf16 %v551_v38, %v550_v55  ;;  %v553_v15 = vmul.f32 %v1092_v54, %v1326_v2  ;;  %1119 = vpow2.f32 %v434_v28  ;;  %v440_v57 = vmul.f32 1.442695, %v378_v56 }
  0x44   : > { %v1096_v16 = vpop.eup %1095  ;;  %v459_v49 = vadd.f32 1.0, %v1094_v44  ;;  %1121 = vpow2.f32 %v436_v30  ;;  %v1479_v61 = vadd.f32 %v1245_v3, %v308_v47 }
  0x45   : > { %v1098_v50 = vpop.eup %1097  ;;  %1000 = vst [vmem:[%s1433_s29 + $0x28] sm:$0xff] %v944_v46   ;;  %v949_v51 = vpack.c.bf16 %v553_v15, %v552_v41  ;;  %1123 = vpow2.f32 %v438_v42  ;;  %v554_v32 = vmul.f32 %v1096_v16, %v1337_v18 }
  0x46   : > { %v1100_v59 = vpop.eup %1099  ;;  %1125 = vrcp.f32 %v459_v49  ;;  %v460_v58 = vadd.f32 1.0, %v1098_v50  ;;  %v379_v26 = vsub.f32 0.0, %v1479_v61 }
  0x47   : > { %v1102_v60 = vpop.eup %1101  ;;  %1001 = vst [vmem:[%s1433_s29 + $0x30] sm:$0xff] %v949_v51   ;;  %v461_v62 = vadd.f32 1.0, %v1100_v59  ;;  %1127 = vpow2.f32 %v440_v57 }
  0x48   : > { %v1104_v2 = vpop.eup %1103  ;;  %1129 = vrcp.f32 %v460_v58  ;;  %v462_v19 = vadd.f32 1.0, %v1102_v60  ;;  %v442_v30 = vmul.f32 1.442695, %v379_v26 }
  0x49   : > { %v1106_v53 = vpop.eup %1105  ;;  %1131 = vrcp.f32 %v461_v62  ;;  %v463_v63 = vadd.f32 1.0, %v1104_v2 }
  0x4a   : > { %v1108_v1 = vpop.eup %1107  ;;  %1133 = vrcp.f32 %v462_v19  ;;  %v464_v4 = vadd.f32 1.0, %v1106_v53 }
  0x4b   : > { %v1110_v6 = vpop.eup %1109  ;;  %1135 = vrcp.f32 %v463_v63  ;;  %v465_v39 = vadd.f32 1.0, %v1108_v1 }
  0x4c   : > { %v1112_v0 = vpop.eup %1111  ;;  %1137 = vrcp.f32 %v464_v4  ;;  %v466_v7 = vadd.f32 1.0, %v1110_v6 }
  0x4d   : > { %v1114_v11 = vpop.eup %1113  ;;  %1139 = vrcp.f32 %v465_v39  ;;  %v467_v25 = vadd.f32 1.0, %v1112_v0 }
  0x4e   : > { %v1116_v40 = vpop.eup %1115  ;;  %1141 = vrcp.f32 %v466_v7  ;;  %v468_v12 = vadd.f32 1.0, %v1114_v11 }
  0x4f   : > { %v1118_v45 = vpop.eup %1117  ;;  %1143 = vrcp.f32 %v467_v25  ;;  %v469_v14 = vadd.f32 1.0, %v1116_v40 }
  0x50   : > { %v1120_v17 = vpop.eup %1119  ;;  %1145 = vrcp.f32 %v468_v12  ;;  %v470_v3 = vadd.f32 1.0, %v1118_v45 }
  0x51   : > { %v1122_v22 = vpop.eup %1121  ;;  %1147 = vrcp.f32 %v469_v14  ;;  %v471_v27 = vadd.f32 1.0, %v1120_v17 }
  0x52   : > { %v1124_v28 = vpop.eup %1123  ;;  %1149 = vrcp.f32 %v470_v3  ;;  %v472_v55 = vadd.f32 1.0, %v1122_v22 }
  0x53   : > { %v1126_v8 = vpop.eup %1125  ;;  %1151 = vrcp.f32 %v471_v27  ;;  %v473_v37 = vadd.f32 1.0, %v1124_v28 }
  0x54   : > { %v1128_v38 = vpop.eup %1127  ;;  %v555_v42 = vmul.f32 %v1126_v8, %v1344_v29  ;;  %1153 = vrcp.f32 %v472_v55 }
  0x55   : > { %v1130_v54 = vpop.eup %1129  ;;  %1155 = vrcp.f32 %v473_v37  ;;  %v474_v2 = vadd.f32 1.0, %v1128_v38 }
  0x56   : > { %v1132_v41 = vpop.eup %1131  ;;  %v954_v56 = vpack.c.bf16 %v555_v42, %v554_v32  ;;  %v556_v44 = vmul.f32 %v1130_v54, %v1348_v31  ;;  %1157 = vpow2.f32 %v442_v30 }
  0x57   : > { %v1134_v18 = vpop.eup %1133  ;;  %v557_v46 = vmul.f32 %v1132_v41, %v1351_v33  ;;  %1159 = vrcp.f32 %v474_v2 }
  0x58   : > { %v1136_v15 = vpop.eup %1135  ;;  %1002 = vst [vmem:[%s1433_s29 + $0x38] sm:$0xff] %v954_v56   ;;  %v558_v52 = vmul.f32 %v1134_v18, %v1355_v35 }
  0x59   : > { %v1138_v16 = vpop.eup %1137  ;;  %v959_v49 = vpack.c.bf16 %v557_v46, %v556_v44  ;;  %v559_v29 = vmul.f32 %v1136_v15, %v1361_v43 }
  0x5a   : > { %v1140_v57 = vpop.eup %1139  ;;  %v560_v50 = vmul.f32 %v1138_v16, %v1378_v9 }
  0x5b   : > { %v1142_v51 = vpop.eup %1141  ;;  %1003 = vst [vmem:[%s1433_s29 + $0x40] sm:$0xff] %v959_v49   ;;  %v964_v31 = vpack.c.bf16 %v559_v29, %v558_v52  ;;  %v561_v59 = vmul.f32 %v1140_v57, %v1382_v13 }
  0x5c   : > { %v1144_v58 = vpop.eup %1143  ;;  %v562_v33 = vmul.f32 %v1142_v51, %v1387_v24 }
  0x5d   : > { %v1146_v47 = vpop.eup %1145  ;;  %1004 = vst [vmem:[%s1433_s29 + $0x48] sm:$0xff] %v964_v31   ;;  %v969_v35 = vpack.c.bf16 %v561_v59, %v560_v50  ;;  %v563_v60 = vmul.f32 %v1144_v58, %v1391_v34 }
  0x5e   : > { %v1148_v62 = vpop.eup %1147  ;;  %v564_v43 = vmul.f32 %v1146_v47, %v1408_v5 }
  0x5f   : > { %v1150_v9 = vpop.eup %1149  ;;  %1005 = vst [vmem:[%s1433_s29 + $0x50] sm:$0xff] %v969_v35   ;;  %v974_v19 = vpack.c.bf16 %v563_v60, %v562_v33  ;;  %v565_v13 = vmul.f32 %v1148_v62, %v1412_v10 }
  0x60   : > { %v1152_v53 = vpop.eup %1151  ;;  %v566_v63 = vmul.f32 %v1150_v9, %v1419_v23 }
  0x61   : > { %v1154_v24 = vpop.eup %1153  ;;  %1006 = vst [vmem:[%s1433_s29 + $0x58] sm:$0xff] %v974_v19   ;;  %v979_v1 = vpack.c.bf16 %v565_v13, %v564_v43  ;;  %v567_v34 = vmul.f32 %v1152_v53, %v1425_v36 }
  0x62   : > { %v1156_v4 = vpop.eup %1155  ;;  %v568_v5 = vmul.f32 %v1154_v24, %v1448_v20 }
  0x63   : > { %v1158_v6 = vpop.eup %1157  ;;  %1007 = vst [vmem:[%s1433_s29 + $0x60] sm:$0xff] %v979_v1   ;;  %v984_v39 = vpack.c.bf16 %v567_v34, %v566_v63  ;;  %v569_v0 = vmul.f32 %v1156_v4, %v1453_v21 }
  0x64   : > { %v475_v10 = vadd.f32 1.0, %v1158_v6  ;;  %v1160_v23 = vpop.eup %1159 }
  0x65   : > { %1008 = vst [vmem:[%s1433_s29 + $0x68] sm:$0xff] %v984_v39   ;;  %v989_v7 = vpack.c.bf16 %v569_v0, %v568_v5  ;;  %v570_v11 = vmul.f32 %v1160_v23, %v1466_v48 }
  0x66   : > { %1161 = vrcp.f32 %v475_v10 }
  0x67   : > { %1009 = vst [vmem:[%s1433_s29 + $0x70] sm:$0xff] %v989_v7  }
  0x73   : > { %v1162_v25 = vpop.eup %1161 }
  0x74   : > { %v571_v36 = vmul.f32 %v1162_v25, %v1479_v61 }
  0x76   : > { %v994_v40 = vpack.c.bf16 %v571_v36, %v570_v11 }
  0x78   : > { %1010 = vst [vmem:[%s1433_s29 + $0x78] sm:$0xff] %v994_v40  }
  0x79 PF: > { %s13_s14 = sadd.s32 1, %s1185_s14   ;;  %s1522_s12 = smov %s1181_s13 }
  0x7a   : > { %p10_p5 = scmp.ge.s32.totalorder %s13_s14, 4   ;;  %s1523_s13 = smov %s1525_s15 }
  0x7c   :  { %12 = sbr.rel (!%p10_p5) target bundleno = 2 (0x2), region = 68 }

// kernel: encoder_block_forward.23
= control target key start
LH: loop header
LB: loop body
LE: loop exit
PB: predicated region body
PF: predicated region fallthrough
CT: control target
= control target key end

     0   :  { %s2469_s12 = smov 0   ;;  %s2471_s13 = smov 0   ;;  %s2862_s0 = inlined_call_operand.vmem [shape: bf16[512,1152], index: 0, kind: input, shape index: {}]   ;;  %s2863_s1 = inlined_call_operand.vmem [shape: bf16[1152,128], index: 1, kind: input, shape index: {}]   ;;  %s2864_s2 = inlined_call_operand.vmem [shape: f32[1,128], index: 2, kind: input, shape index: {}]   ;;  %s2865_s3 = inlined_call_operand.vmem [shape: bf16[512,128], index: 3, kind: output, shape index: {}]  }
   0x1   :  { %s2473_s14 = smov 0   ;;  %s2475_s15 = smov 0  }
   0x2   :  { %s2477_s16 = smov 0   ;;  %s2479_s17 = smov 0  }
   0x3   :  { %s2481_s18 = smov 0  }
   0x4 LB: > { %s25_s19 = sadd.s32 1, %s2438_s16  ;;  %s32_s20 = sadd.s32 1, %s2442_s17  ;;  %s2446_s18 = sphi %s2481_s18, %s13_s18   ;;  %s2442_s17 = sphi %s2479_s17, %s2871_s17   ;;  %s2438_s16 = sphi %s2477_s16, %s2870_s16   ;;  %s2434_s15 = sphi %s2475_s15, %s2869_s15   ;;  %s2430_s14 = sphi %s2473_s14, %s2868_s14   ;;  %s2426_s13 = sphi %s2471_s13, %s2867_s13   ;;  %s2422_s12 = sphi %s2469_s12, %s2866_s12  }
   0x5   : > { %p26_p0 = scmp.ge.s32.totalorder %s25_s19, 3  ;;  %p48_p1 = scmp.ne.s32.totalorder %s2426_s13, %s2422_s12 }
   0x6   : > { %p49_p2 = scmp.eq.s32.totalorder %s2446_s18, 0  ;;  %s41_s24 = sadd.s32 1, %s2426_s13 }
   0x7   : > { %s2873_s19 = smov (%p26_p0, %s25_s19), 0  ;;  %s2875_s20 = smov (!%p26_p0, %s32_s20), %s2442_s17 }
   0x8   : > { %p50_p3 = por %p49_p2, %p48_p1  ;;  %p34_p4 = scmp.ge.s32.totalorder %s2875_s20, 2 }
   0x9   : > { %s37_s21 = ssub.s32 %s2438_s16, %s2873_s19  ;;  %p1736_p6 = scmp.ge.s32.totalorder %s2446_s18, 6 }
   0xa   : > { %s2877_s20 = smov (%p34_p4, %s2875_s20), 0 }
   0xb   : > { %s36_s22 = ssub.s32 %s2442_s17, %s2877_s20  ;;  %162 = sbr.rel (%p1736_p6) target bundleno = 62 (0x3e), region = 20 }
   0xc   : > { %s38_s23 = sor.u32 %s37_s21, %s36_s22 }
   0xd   : > { %p39_p5 = scmp.eq.s32.totalorder %s38_s23, 0 }
   0xf   : > { %s2520_s25 = scalar_select %p39_p5, %s2426_s13, %s41_s24  }
  0x10   : > { %165 = sbr.rel (!%p50_p3) target bundleno = 62 (0x3e), region = 24  ;;  %s167_s26 = sand.u32 (%p50_p3), 1, %s2426_s13  }
  0x11   : > { %s171_s27 = smul.u32 (%p50_p3), 3, %s2438_s16 }
  0x12   : > { %s2244_s28 = smul.u32 (%p50_p3), 384, %s167_s26 }
  0x13   : > { %s2245_s29 = smul.u32 (%p50_p3), 288, %s2442_s17 }
  0x14   : > { %s2534_s8 = scalar_lea.vmem (%p50_p3), [#allocation3], %s2244_s28 }
  0x15   : > { %s173_s30 = sadd.s32 %s2245_s29, %s171_s27 }
  0x16   : > { %s1739_s4 = sshll.u32 %s173_s30, 2 }
  0x17   : > { %s2529_s7 = scalar_lea.vmem %s2862_s0, %s1739_s4 }
  0x18   : > { %v190_v0 = vld [vmem:[%s2529_s7] sm:$0xff]  ;;  %v194_v2 = vld [vmem:[%s2529_s7 + $0x48] sm:$0xff]  ;;  %v198_v4 = vld [vmem:[%s2529_s7 + $0x90] sm:$0xff] }
  0x19   : > { %v192_v1 = vld [vmem:[%s2529_s7 + $0x24] sm:$0xff]  ;;  %191 = vst [vmem:[%s2534_s8] sm:$0xff] %v190_v0  ;;  %195 = vst [vmem:[%s2534_s8 + $0x18] sm:$0xff] %v194_v2  ;;  %v196_v3 = vld [vmem:[%s2529_s7 + $0x6c] sm:$0xff] }
  0x1a   : > { %193 = vst [vmem:[%s2534_s8 + $0xc] sm:$0xff] %v192_v1  ;;  %v200_v5 = vld [vmem:[%s2529_s7 + $0xb4] sm:$0xff]  ;;  %197 = vst [vmem:[%s2534_s8 + $0x24] sm:$0xff] %v196_v3  ;;  %v204_v7 = vld [vmem:[%s2529_s7 + $0xfc] sm:$0xff] }
  0x1b   : > { %199 = vst [vmem:[%s2534_s8 + $0x30] sm:$0xff] %v198_v4  ;;  %201 = vst [vmem:[%s2534_s8 + $0x3c] sm:$0xff] %v200_v5  ;;  %v202_v6 = vld [vmem:[%s2529_s7 + $0xd8] sm:$0xff]  ;;  %v206_v8 = vld [vmem:[%s2529_s7 + $0x120] sm:$0xff] }
  0x1c   : > { %203 = vst [vmem:[%s2534_s8 + $0x48] sm:$0xff] %v202_v6  ;;  %205 = vst [vmem:[%s2534_s8 + $0x54] sm:$0xff] %v204_v7  ;;  %v208_v9 = vld [vmem:[%s2529_s7 + $0x144] sm:$0xff]  ;;  %v212_v11 = vld [vmem:[%s2529_s7 + $0x18c] sm:$0xff] }
  0x1d   : > { %207 = vst [vmem:[%s2534_s8 + $0x60] sm:$0xff] %v206_v8  ;;  %v210_v10 = vld [vmem:[%s2529_s7 + $0x168] sm:$0xff]  ;;  %209 = vst [vmem:[%s2534_s8 + $0x6c] sm:$0xff] %v208_v9  ;;  %v214_v12 = vld [vmem:[%s2529_s7 + $0x1b0] sm:$0xff] }
  0x1e   : > { %211 = vst [vmem:[%s2534_s8 + $0x78] sm:$0xff] %v210_v10  ;;  %213 = vst [vmem:[%s2534_s8 + $0x84] sm:$0xff] %v212_v11  ;;  %v216_v13 = vld [vmem:[%s2529_s7 + $0x1d4] sm:$0xff]  ;;  %v220_v15 = vld [vmem:[%s2529_s7 + $0x21c] sm:$0xff] }
  0x1f   : > { %v218_v14 = vld [vmem:[%s2529_s7 + $0x1f8] sm:$0xff]  ;;  %215 = vst [vmem:[%s2534_s8 + $0x90] sm:$0xff] %v214_v12  ;;  %217 = vst [vmem:[%s2534_s8 + $0x9c] sm:$0xff] %v216_v13  ;;  %v222_v16 = vld [vmem:[%s2529_s7 + $0x240] sm:$0xff] }
  0x20   : > { %219 = vst [vmem:[%s2534_s8 + $0xa8] sm:$0xff] %v218_v14  ;;  %v224_v17 = vld [vmem:[%s2529_s7 + $0x264] sm:$0xff]  ;;  %221 = vst [vmem:[%s2534_s8 + $0xb4] sm:$0xff] %v220_v15  ;;  %v228_v19 = vld [vmem:[%s2529_s7 + $0x2ac] sm:$0xff] }
  0x21   : > { %223 = vst [vmem:[%s2534_s8 + $0xc0] sm:$0xff] %v222_v16  ;;  %225 = vst [vmem:[%s2534_s8 + $0xcc] sm:$0xff] %v224_v17  ;;  %v226_v18 = vld [vmem:[%s2529_s7 + $0x288] sm:$0xff]  ;;  %v230_v20 = vld [vmem:[%s2529_s7 + $0x2d0] sm:$0xff] }
  0x22   : > { %227 = vst [vmem:[%s2534_s8 + $0xd8] sm:$0xff] %v226_v18  ;;  %229 = vst [vmem:[%s2534_s8 + $0xe4] sm:$0xff] %v228_v19  ;;  %v232_v21 = vld [vmem:[%s2529_s7 + $0x2f4] sm:$0xff]  ;;  %v236_v23 = vld [vmem:[%s2529_s7 + $0x33c] sm:$0xff] }
  0x23   : > { %231 = vst [vmem:[%s2534_s8 + $0xf0] sm:$0xff] %v230_v20  ;;  %v234_v22 = vld [vmem:[%s2529_s7 + $0x318] sm:$0xff]  ;;  %233 = vst [vmem:[%s2534_s8 + $0xfc] sm:$0xff] %v232_v21  ;;  %v238_v24 = vld [vmem:[%s2529_s7 + $0x360] sm:$0xff] }
  0x24   : > { %235 = vst [vmem:[%s2534_s8 + $0x108] sm:$0xff] %v234_v22  ;;  %237 = vst [vmem:[%s2534_s8 + $0x114] sm:$0xff] %v236_v23  ;;  %v240_v25 = vld [vmem:[%s2529_s7 + $0x384] sm:$0xff]  ;;  %v244_v27 = vld [vmem:[%s2529_s7 + $0x3cc] sm:$0xff] }
  0x25   : > { %v242_v26 = vld [vmem:[%s2529_s7 + $0x3a8] sm:$0xff]  ;;  %239 = vst [vmem:[%s2534_s8 + $0x120] sm:$0xff] %v238_v24  ;;  %241 = vst [vmem:[%s2534_s8 + $0x12c] sm:$0xff] %v240_v25  ;;  %v246_v28 = vld [vmem:[%s2529_s7 + $0x3f0] sm:$0xff] }
  0x26   : > { %243 = vst [vmem:[%s2534_s8 + $0x138] sm:$0xff] %v242_v26  ;;  %v248_v29 = vld [vmem:[%s2529_s7 + $0x414] sm:$0xff]  ;;  %245 = vst [vmem:[%s2534_s8 + $0x144] sm:$0xff] %v244_v27  ;;  %v252_v31 = vld [vmem:[%s2529_s7 + $0x45c] sm:$0xff] }
  0x27   : > { %247 = vst [vmem:[%s2534_s8 + $0x150] sm:$0xff] %v246_v28  ;;  %249 = vst [vmem:[%s2534_s8 + $0x15c] sm:$0xff] %v248_v29  ;;  %v250_v30 = vld [vmem:[%s2529_s7 + $0x438] sm:$0xff]  ;;  %v1740_v32 = vld [vmem:[%s2529_s7 + $0x8] sm:$0xf] }
  0x28   : > { %251 = vst [vmem:[%s2534_s8 + $0x168] sm:$0xff] %v250_v30  ;;  %253 = vst [vmem:[%s2534_s8 + $0x174] sm:$0xff] %v252_v31  ;;  %v1742_v33 = vld [vmem:[%s2529_s7 + $0x2c] sm:$0xf]  ;;  %v1744_v34 = vld [vmem:[%s2529_s7 + $0x50] sm:$0xf] }
  0x29   : > { %1741 = vst [vmem:[%s2534_s8 + $0x8] sm:$0xf] %v1740_v32  ;;  %v1746_v35 = vld [vmem:[%s2529_s7 + $0x74] sm:$0xf]  ;;  %1743 = vst [vmem:[%s2534_s8 + $0x14] sm:$0xf] %v1742_v33 }
  0x2a   : > { %1745 = vst [vmem:[%s2534_s8 + $0x20] sm:$0xf] %v1744_v34  ;;  %1747 = vst [vmem:[%s2534_s8 + $0x2c] sm:$0xf] %v1746_v35  ;;  %v1748_v36 = vld [vmem:[%s2529_s7 + $0x98] sm:$0xf] }
  0x2b   : > { %v1750_v37 = vld [vmem:[%s2529_s7 + $0xbc] sm:$0xf]  ;;  %v1752_v38 = vld [vmem:[%s2529_s7 + $0xe0] sm:$0xf]  ;;  %1749 = vst [vmem:[%s2534_s8 + $0x38] sm:$0xf] %v1748_v36 }
  0x2c   : > { %1751 = vst [vmem:[%s2534_s8 + $0x44] sm:$0xf] %v1750_v37  ;;  %1753 = vst [vmem:[%s2534_s8 + $0x50] sm:$0xf] %v1752_v38  ;;  %v1754_v39 = vld [vmem:[%s2529_s7 + $0x104] sm:$0xf] }
  0x2d   : > { %v1756_v40 = vld [vmem:[%s2529_s7 + $0x128] sm:$0xf]  ;;  %v1758_v41 = vld [vmem:[%s2529_s7 + $0x14c] sm:$0xf]  ;;  %1755 = vst [vmem:[%s2534_s8 + $0x5c] sm:$0xf] %v1754_v39 }
  0x2e   : > { %1757 = vst [vmem:[%s2534_s8 + $0x68] sm:$0xf] %v1756_v40  ;;  %1759 = vst [vmem:[%s2534_s8 + $0x74] sm:$0xf] %v1758_v41  ;;  %v1760_v42 = vld [vmem:[%s2529_s7 + $0x170] sm:$0xf] }
  0x2f   : > { %v1762_v43 = vld [vmem:[%s2529_s7 + $0x194] sm:$0xf]  ;;  %v1764_v44 = vld [vmem:[%s2529_s7 + $0x1b8] sm:$0xf]  ;;  %1761 = vst [vmem:[%s2534_s8 + $0x80] sm:$0xf] %v1760_v42 }
  0x30   : > { %1763 = vst [vmem:[%s2534_s8 + $0x8c] sm:$0xf] %v1762_v43  ;;  %1765 = vst [vmem:[%s2534_s8 + $0x98] sm:$0xf] %v1764_v44  ;;  %v1766_v45 = vld [vmem:[%s2529_s7 + $0x1dc] sm:$0xf] }
  0x31   : > { %v1768_v46 = vld [vmem:[%s2529_s7 + $0x200] sm:$0xf]  ;;  %v1770_v47 = vld [vmem:[%s2529_s7 + $0x224] sm:$0xf]  ;;  %1767 = vst [vmem:[%s2534_s8 + $0xa4] sm:$0xf] %v1766_v45 }
  0x32   : > { %1769 = vst [vmem:[%s2534_s8 + $0xb0] sm:$0xf] %v1768_v46  ;;  %1771 = vst [vmem:[%s2534_s8 + $0xbc] sm:$0xf] %v1770_v47  ;;  %v1772_v48 = vld [vmem:[%s2529_s7 + $0x248] sm:$0xf] }
  0x33   : > { %v1774_v49 = vld [vmem:[%s2529_s7 + $0x26c] sm:$0xf]  ;;  %v1776_v50 = vld [vmem:[%s2529_s7 + $0x290] sm:$0xf]  ;;  %1773 = vst [vmem:[%s2534_s8 + $0xc8] sm:$0xf] %v1772_v48 }
  0x34   : > { %1775 = vst [vmem:[%s2534_s8 + $0xd4] sm:$0xf] %v1774_v49  ;;  %1777 = vst [vmem:[%s2534_s8 + $0xe0] sm:$0xf] %v1776_v50  ;;  %v1778_v51 = vld [vmem:[%s2529_s7 + $0x2b4] sm:$0xf] }
  0x35   : > { %v1780_v52 = vld [vmem:[%s2529_s7 + $0x2d8] sm:$0xf]  ;;  %v1782_v53 = vld [vmem:[%s2529_s7 + $0x2fc] sm:$0xf]  ;;  %1779 = vst [vmem:[%s2534_s8 + $0xec] sm:$0xf] %v1778_v51 }
  0x36   : > { %1781 = vst [vmem:[%s2534_s8 + $0xf8] sm:$0xf] %v1780_v52  ;;  %1783 = vst [vmem:[%s2534_s8 + $0x104] sm:$0xf] %v1782_v53  ;;  %v1784_v54 = vld [vmem:[%s2529_s7 + $0x320] sm:$0xf] }
  0x37   : > { %v1786_v55 = vld [vmem:[%s2529_s7 + $0x344] sm:$0xf]  ;;  %v1788_v56 = vld [vmem:[%s2529_s7 + $0x368] sm:$0xf]  ;;  %1785 = vst [vmem:[%s2534_s8 + $0x110] sm:$0xf] %v1784_v54 }
  0x38   : > { %1787 = vst [vmem:[%s2534_s8 + $0x11c] sm:$0xf] %v1786_v55  ;;  %1789 = vst [vmem:[%s2534_s8 + $0x128] sm:$0xf] %v1788_v56  ;;  %v1790_v57 = vld [vmem:[%s2529_s7 + $0x38c] sm:$0xf] }
  0x39   : > { %v1792_v58 = vld [vmem:[%s2529_s7 + $0x3b0] sm:$0xf]  ;;  %v1794_v59 = vld [vmem:[%s2529_s7 + $0x3d4] sm:$0xf]  ;;  %1791 = vst [vmem:[%s2534_s8 + $0x134] sm:$0xf] %v1790_v57 }
  0x3a   : > { %1793 = vst [vmem:[%s2534_s8 + $0x140] sm:$0xf] %v1792_v58  ;;  %1795 = vst [vmem:[%s2534_s8 + $0x14c] sm:$0xf] %v1794_v59  ;;  %v1796_v60 = vld [vmem:[%s2529_s7 + $0x3f8] sm:$0xf] }
  0x3b   : > { %v1798_v61 = vld [vmem:[%s2529_s7 + $0x41c] sm:$0xf]  ;;  %v1800_v62 = vld [vmem:[%s2529_s7 + $0x440] sm:$0xf]  ;;  %1797 = vst [vmem:[%s2534_s8 + $0x158] sm:$0xf] %v1796_v60 }
  0x3c   : > { %1799 = vst [vmem:[%s2534_s8 + $0x164] sm:$0xf] %v1798_v61  ;;  %1801 = vst [vmem:[%s2534_s8 + $0x170] sm:$0xf] %v1800_v62  ;;  %v1802_v63 = vld [vmem:[%s2529_s7 + $0x464] sm:$0xf] }
  0x3d   : > { %1803 = vst [vmem:[%s2534_s8 + $0x17c] sm:$0xf] %v1802_v63 }
  0x3e PF: > { %p1804_p7 = scmp.ge.s32.totalorder %s2446_s18, 1  ;;  %p342_p8 = scmp.lt.s32.totalorder %s2446_s18, 7 }
  0x40   : > { %p343_p9 = pnand %p1804_p7, %p342_p8 }
  0x41   : > { %s349_s9 = sand.u32 (!%p343_p9), 1, %s2422_s12   ;;  %s388_s10 = smul.u32 (!%p343_p9), 48, %s2430_s14 }
  0x42   : > { %346 = sbr.rel (%p343_p9) target bundleno = 441 (0x1b9), region = 54  ;;  %s1806_s21 = sshll.u32 (!%p343_p9), %s2434_s15, 5 }
  0x43   : > { %s2246_s11 = smul.u32 (!%p343_p9), 384, %s349_s9  ;;  %p389_p10 = scmp.lt.s32.totalorder (!%p343_p9), %s388_s10, 143 }
  0x44   : > { %p401_p11 = scmp.lt.s32.totalorder (!%p343_p9), %s1806_s21, 63  ;;  %p1808_p12 = scmp.ne.s32.totalorder (!%p343_p9), %s2430_s14, 0 }
  0x45   : > { %s2676_s12 = scalar_lea.vmem (!%p343_p9), [#allocation3], %s2246_s11 }
  0x47   : > { %s2879_s10 = smov (!%p389_p10, %s388_s10), 143  ;;  %s2881_s21 = smov (!%p401_p11, %s1806_s21), 63 }
  0x48   : > { %s1805_s22 = sshll.u32 %s2879_s10, 2  ;;  %s1807_s27 = sshll.u32 %s2881_s21, 2 }
  0x49   : > { %s2669_s26 = scalar_lea.vmem %s2863_s1, %s1805_s22  ;;  %s2674_s30 = scalar_lea.vmem %s2865_s3, %s1807_s27 }
  0x4a   : > { %413 = sbr.rel (%p1808_p12) target bundleno = 96 (0x60), region = 62 }
  0x4f   : > { %v2448_v0 = vmov 0.0  }
  0x50   : > { %414 = vst [vmem:[#allocation2 + $0xb0] sm:$0xff] %v2448_v0  ;;  %415 = vst [vmem:[#allocation2] sm:$0xff] %v2448_v0 }
  0x51   : > { %416 = vst [vmem:[#allocation2 + $0xd8] sm:$0xff] %v2448_v0  ;;  %417 = vst [vmem:[#allocation2 + $0x18] sm:$0xff] %v2448_v0 }
  0x52   : > { %418 = vst [vmem:[#allocation2 + $0x50] sm:$0xff] %v2448_v0  ;;  %419 = vst [vmem:[#allocation2 + $0x68] sm:$0xff] %v2448_v0 }
  0x53   : > { %420 = vst [vmem:[#allocation2 + $0x30] sm:$0xff] %v2448_v0  ;;  %421 = vst [vmem:[#allocation2 + $0x48] sm:$0xff] %v2448_v0 }
  0x54   : > { %422 = vst [vmem:[#allocation2 + $0x80] sm:$0xff] %v2448_v0  ;;  %423 = vst [vmem:[#allocation2 + $0x88] sm:$0xff] %v2448_v0 }
  0x55   : > { %424 = vst [vmem:[#allocation2 + $0xe8] sm:$0xff] %v2448_v0  ;;  %425 = vst [vmem:[#allocation2 + $0xb8] sm:$0xff] %v2448_v0 }
  0x56   : > { %426 = vst [vmem:[#allocation2 + $0x60] sm:$0xff] %v2448_v0  ;;  %427 = vst [vmem:[#allocation2 + $0xf0] sm:$0xff] %v2448_v0 }
  0x57   : > { %428 = vst [vmem:[#allocation2 + $0x8] sm:$0xff] %v2448_v0  ;;  %429 = vst [vmem:[#allocation2 + $0x78] sm:$0xff] %v2448_v0 }
  0x58   : > { %430 = vst [vmem:[#allocation2 + $0x38] sm:$0xff] %v2448_v0  ;;  %431 = vst [vmem:[#allocation2 + $0x58] sm:$0xff] %v2448_v0 }
  0x59   : > { %432 = vst [vmem:[#allocation2 + $0x40] sm:$0xff] %v2448_v0  ;;  %433 = vst [vmem:[#allocation2 + $0xc8] sm:$0xff] %v2448_v0 }
  0x5a   : > { %434 = vst [vmem:[#allocation2 + $0xe0] sm:$0xff] %v2448_v0  ;;  %435 = vst [vmem:[#allocation2 + $0x90] sm:$0xff] %v2448_v0 }
  0x5b   : > { %436 = vst [vmem:[#allocation2 + $0x70] sm:$0xff] %v2448_v0  ;;  %437 = vst [vmem:[#allocation2 + $0xc0] sm:$0xff] %v2448_v0 }
  0x5c   : > { %438 = vst [vmem:[#allocation2 + $0xa8] sm:$0xff] %v2448_v0  ;;  %439 = vst [vmem:[#allocation2 + $0xd0] sm:$0xff] %v2448_v0 }
  0x5d   : > { %440 = vst [vmem:[#allocation2 + $0x10] sm:$0xff] %v2448_v0  ;;  %441 = vst [vmem:[#allocation2 + $0x28] sm:$0xff] %v2448_v0 }
  0x5e   : > { %442 = vst [vmem:[#allocation2 + $0xa0] sm:$0xff] %v2448_v0  ;;  %443 = vst [vmem:[#allocation2 + $0xf8] sm:$0xff] %v2448_v0 }
  0x5f   : > { %444 = vst [vmem:[#allocation2 + $0x20] sm:$0xff] %v2448_v0  ;;  %445 = vst [vmem:[#allocation2 + $0x98] sm:$0xff] %v2448_v0 }
  0x60 PF: > { %v2304_v1 = vld [vmem:[%s2669_s26 + $0x78] sm:$0xff]   ;;  %v2306_v3 = vld [vmem:[%s2669_s26 + $0x70] sm:$0xff]   ;;  %v2308_v5 = vld [vmem:[%s2669_s26 + $0x68] sm:$0xff]   ;;  %p1881_p13 = scmp.ne.s32.totalorder %s2430_s14, 2 }
  0x61   : > { %v2305_v2 = vld [vmem:[%s2669_s26 + $0x38] sm:$0xff]   ;;  %2044 = vmatprep.subr.bf16.mxu0 %v2304_v1  ;;  %2228 = vmatprep.subr.bf16.mxu1 %v2304_v1  ;;  %v2307_v4 = vld [vmem:[%s2669_s26 + $0x30] sm:$0xff]   ;;  %v2309_v6 = vld [vmem:[%s2669_s26 + $0x28] sm:$0xff]  }
  0x62   : > { %2045 = vmatpush3.bf16.msra.mxu0 %v2305_v2  ;;  %2236 = vmatpush3.bf16.msra.mxu1 %v2305_v2  ;;  %v2310_v7 = vld [vmem:[%s2669_s26 + $0x60] sm:$0xff]   ;;  %v2312_v9 = vld [vmem:[%s2669_s26 + $0x58] sm:$0xff]   ;;  %v2314_v11 = vld [vmem:[%s2669_s26 + $0x50] sm:$0xff]  }
  0x63   : > { %2046 = vmatprep.subr.bf16.mxu0 %v2306_v3  ;;  %2229 = vmatprep.subr.bf16.mxu1 %v2306_v3  ;;  %v2311_v8 = vld [vmem:[%s2669_s26 + $0x20] sm:$0xff]   ;;  %v2313_v10 = vld [vmem:[%s2669_s26 + $0x18] sm:$0xff]   ;;  %v2315_v14 = vld [vmem:[%s2669_s26 + $0x10] sm:$0xff]  }
  0x64   : > { %v2322_v12 = vld [vmem:[%s2676_s12 + $0x4] ss:$12 sps:$4 sm:$0xff]   ;;  %v2316_v15 = vld [vmem:[%s2669_s26 + $0x48] sm:$0xff]   ;;  %v2326_v19 = vld [vmem:[%s2669_s26 + $0xb8] sm:$0xff]  }
  0x65   : > { %v2325_v13 = vld [vmem:[%s2676_s12 + $0x124] ss:$12 sps:$4 sm:$0xff]   ;;  %1022 = vmatprep.mubr.bf16.mxu0 %v2322_v12  ;;  %v2317_v16 = vld [vmem:[%s2669_s26 + $0x8] sm:$0xff]   ;;  %v2336_v29 = vld [vmem:[%s2676_s12 + $0x34] ss:$12 sps:$4 sm:$0xff]  }
  0x66   : > { %2047 = vmatpush3.bf16.msra.mxu0 %v2307_v4  ;;  %2237 = vmatpush3.bf16.msra.mxu1 %v2307_v4  ;;  %v2318_v17 = vld [vmem:[%s2669_s26 + $0x40] sm:$0xff]   ;;  %v2328_v22 = vld [vmem:[%s2676_s12 + $0x1c] ss:$12 sps:$4 sm:$0xff]   ;;  %v2327_v23 = vld [vmem:[%s2669_s26 + $0xb0] sm:$0xff]  }
  0x67   : > { %2048 = vmatprep.subr.bf16.mxu0 %v2308_v5  ;;  %2230 = vmatprep.subr.bf16.mxu1 %v2308_v5  ;;  %v2319_v18 = vld [vmem:[%s2669_s26] sm:$0xff]   ;;  %v2330_v24 = vld [vmem:[%s2676_s12 + $0x13c] ss:$12 sps:$4 sm:$0xff]   ;;  %v2343_v34 = vld [vmem:[%s2669_s26 + $0x90] sm:$0xff]  }
  0x68   : > { %1118 = vmatprep.mubr.bf16.mxu1 %v2325_v13  ;;  %v2320_v20 = vld [vmem:[%s2676_s12] ss:$12 sps:$4 sm:$0xff]   ;;  %v2332_v25 = vld [vmem:[%s2676_s12 + $0x18] ss:$12 sps:$4 sm:$0xff]   ;;  %v2340_v32 = vld [vmem:[%s2676_s12 + $0x30] ss:$12 sps:$4 sm:$0xff]  }
  0x69   : > { %v2323_v21 = vld [vmem:[%s2676_s12 + $0x120] ss:$12 sps:$4 sm:$0xff]   ;;  %v2333_v27 = vld [vmem:[%s2676_s12 + $0x138] ss:$12 sps:$4 sm:$0xff]   ;;  %v2341_v33 = vld [vmem:[%s2676_s12 + $0x150] ss:$12 sps:$4 sm:$0xff]  }
  0x6a   : > { %2049 = vmatpush3.bf16.msra.mxu0 %v2309_v6  ;;  %2238 = vmatpush3.bf16.msra.mxu1 %v2309_v6  ;;  %v2334_v26 = vld [vmem:[%s2669_s26 + $0xa8] sm:$0xff]   ;;  %v2335_v28 = vld [vmem:[%s2669_s26 + $0xa0] sm:$0xff]   ;;  %v2342_v31 = vld [vmem:[%s2669_s26 + $0x98] sm:$0xff]  }
  0x6b   : > { %2050 = vmatprep.subr.bf16.mxu0 %v2310_v7  ;;  %2231 = vmatprep.subr.bf16.mxu1 %v2310_v7  ;;  %v2338_v30 = vld [vmem:[%s2676_s12 + $0x154] ss:$12 sps:$4 sm:$0xff]   ;;  %v2344_v35 = vld [vmem:[%s2676_s12 + $0x4c] ss:$12 sps:$4 sm:$0xff]   ;;  %v2352_v40 = vld [vmem:[%s2676_s12 + $0x64] ss:$12 sps:$4 sm:$0xff]  }
  0x6c   : > { %v2346_v36 = vld [vmem:[%s2676_s12 + $0x16c] ss:$12 sps:$4 sm:$0xff]   ;;  %v2348_v38 = vld [vmem:[%s2676_s12 + $0x48] ss:$12 sps:$4 sm:$0xff]   ;;  %v2351_v41 = vld [vmem:[%s2669_s26 + $0x80] sm:$0xff]  }
  0x6d   : > { %v2350_v37 = vld [vmem:[%s2669_s26 + $0x88] sm:$0xff]   ;;  %v2359_v46 = vld [vmem:[%s2676_s12 + $0x38] ss:$12 sps:$4 sm:$0xff]   ;;  %v2361_v48 = vld [vmem:[%s2676_s12 + $0x50] ss:$12 sps:$4 sm:$0xff]  }
  0x6e   : > { %2051 = vmatpush3.bf16.msra.mxu0 %v2311_v8  ;;  %2239 = vmatpush3.bf16.msra.mxu1 %v2311_v8  ;;  %v2349_v39 = vld [vmem:[%s2676_s12 + $0x168] ss:$12 sps:$4 sm:$0xff]   ;;  %v2355_v43 = vld [vmem:[%s2676_s12 + $0x60] ss:$12 sps:$4 sm:$0xff]   ;;  %v2360_v47 = vld [vmem:[%s2676_s12 + $0x78] ss:$12 sps:$4 sm:$0xff]  }
  0x6f   : > { %2052 = vmatprep.subr.bf16.mxu0 %v2312_v9  ;;  %2232 = vmatprep.subr.bf16.mxu1 %v2312_v9  ;;  %v2354_v42 = vld [vmem:[%s2676_s12 + $0x8] ss:$12 sps:$4 sm:$0xff]   ;;  %v2356_v44 = vld [vmem:[%s2676_s12 + $0x20] ss:$12 sps:$4 sm:$0xff]   ;;  %v2365_v51 = vld [vmem:[%s2676_s12 + $0x90] ss:$12 sps:$4 sm:$0xff]  }
  0x70   : > { %v2357_v45 = vld [vmem:[%s2676_s12 + $0x7c] ss:$12 sps:$4 sm:$0xff]   ;;  %v2362_v49 = vld [vmem:[%s2676_s12 + $0x94] ss:$12 sps:$4 sm:$0xff]   ;;  %v2367_v53 = vld [vmem:[%s2676_s12 + $0xac] ss:$12 sps:$4 sm:$0xff]  }
  0x71   : > { %v2364_v50 = vld [vmem:[%s2676_s12 + $0x68] ss:$12 sps:$4 sm:$0xff]   ;;  %v2366_v52 = vld [vmem:[%s2676_s12 + $0x80] ss:$12 sps:$4 sm:$0xff]   ;;  %v2369_v54 = vld [vmem:[%s2676_s12 + $0x98] ss:$12 sps:$4 sm:$0xff]  }
  0x72   : > { %2053 = vmatpush3.bf16.msra.mxu0 %v2313_v10  ;;  %2240 = vmatpush3.bf16.msra.mxu1 %v2313_v10  ;;  %v2370_v55 = vld [vmem:[%s2676_s12 + $0xa8] ss:$12 sps:$4 sm:$0xff]   ;;  %v2371_v56 = vld [vmem:[%s2676_s12 + $0xb0] ss:$12 sps:$4 sm:$0xff]   ;;  %v2375_v59 = vld [vmem:[%s2676_s12 + $0xc0] ss:$12 sps:$4 sm:$0xff]  }
  0x73   : > { %2054 = vmatprep.subr.bf16.mxu0 %v2314_v11  ;;  %2233 = vmatprep.subr.bf16.mxu1 %v2314_v11  ;;  %v2372_v57 = vld [vmem:[%s2676_s12 + $0xc4] ss:$12 sps:$4 sm:$0xff]   ;;  %v2374_v58 = vld [vmem:[%s2676_s12 + $0xc8] ss:$12 sps:$4 sm:$0xff]   ;;  %v2376_v60 = vld [vmem:[%s2676_s12 + $0xe0] ss:$12 sps:$4 sm:$0xff]  }
  0x74   : > { %v2377_v61 = vld [vmem:[%s2676_s12 + $0xdc] ss:$12 sps:$4 sm:$0xff]   ;;  %v2379_v62 = vld [vmem:[%s2676_s12 + $0xf8] ss:$12 sps:$4 sm:$0xff]   ;;  %v2382_v1 = vld [vmem:[%s2676_s12 + $0xf4] ss:$12 sps:$4 sm:$0xff]  }
  0x75   : > { %v2380_v63 = vld [vmem:[%s2676_s12 + $0xd8] ss:$12 sps:$4 sm:$0xff]   ;;  %v2381_v0 = vld [vmem:[%s2676_s12 + $0x110] ss:$12 sps:$4 sm:$0xff]   ;;  %v2384_v2 = vld [vmem:[%s2676_s12 + $0x128] ss:$12 sps:$4 sm:$0xff]  }
  0x76   : > { %2055 = vmatpush3.bf16.msra.mxu0 %v2315_v14  ;;  %2241 = vmatpush3.bf16.msra.mxu1 %v2315_v14  ;;  %v2385_v3 = vld [vmem:[%s2676_s12 + $0xf0] ss:$12 sps:$4 sm:$0xff]   ;;  %v2386_v4 = vld [vmem:[%s2676_s12 + $0x140] ss:$12 sps:$4 sm:$0xff]   ;;  %v2389_v6 = vld [vmem:[%s2676_s12 + $0x158] ss:$12 sps:$4 sm:$0xff]  }
  0x77   : > { %2056 = vmatprep.subr.bf16.mxu0 %v2316_v15  ;;  %2234 = vmatprep.subr.bf16.mxu1 %v2316_v15  ;;  %v2387_v5 = vld [vmem:[%s2676_s12 + $0x10c] ss:$12 sps:$4 sm:$0xff]   ;;  %v2390_v7 = vld [vmem:[%s2676_s12 + $0x108] ss:$12 sps:$4 sm:$0xff]   ;;  %v2391_v8 = vld [vmem:[%s2676_s12 + $0x170] ss:$12 sps:$4 sm:$0xff]  }
  0x7a   : > { %2057 = vmatpush3.bf16.msra.mxu0 %v2317_v16  ;;  %2242 = vmatpush3.bf16.msra.mxu1 %v2317_v16 }
  0x7b   : > { %2058 = vmatprep.subr.bf16.mxu0 %v2318_v17  ;;  %2235 = vmatprep.subr.bf16.mxu1 %v2318_v17 }
  0x7e   : > { %2059 = vmatpush3.bf16.msra.mxu0 %v2319_v18  ;;  %2243 = vmatpush3.bf16.msra.mxu1 %v2319_v18 }
  0x7f   : > { %2180 = vmatprep.subr.bf16.mxu1 %v2326_v19 }
  0x81   : > { %1023 = vmatmul.mubr.bf16.vlgmr.msra.gmra.mxu0 %v2320_v20  ;;  %1119 = vmatmul.mubr.bf16.vlgmr.msra.gmra.mxu1 %v2323_v21 }
  0x82   : > { %2181 = vmatpush3.bf16.msra.mxu1 %v2326_v19  ;;  %1030 = vmatprep.mubr.bf16.mxu0 %v2328_v22 }
  0x83   : > { %2182 = vmatprep.subr.bf16.mxu1 %v2327_v23  ;;  %1126 = vmatprep.mubr.bf16.mxu1 %v2330_v24 }
  0x86   : > { %2183 = vmatpush3.bf16.msra.mxu1 %v2327_v23 }
  0x87   : > { %2184 = vmatprep.subr.bf16.mxu1 %v2334_v26 }
  0x89   : > { %1031 = vmatmul.mubr.bf16.gmra.mxu0 %v2332_v25  ;;  %1127 = vmatmul.mubr.bf16.gmra.mxu1 %v2333_v27 }
  0x8a   : > { %2185 = vmatpush3.bf16.msra.mxu1 %v2334_v26  ;;  %1038 = vmatprep.mubr.bf16.mxu0 %v2336_v29 }
  0x8b   : > { %2186 = vmatprep.subr.bf16.mxu1 %v2335_v28  ;;  %1134 = vmatprep.mubr.bf16.mxu1 %v2338_v30 }
  0x8e   : > { %2187 = vmatpush3.bf16.msra.mxu1 %v2335_v28 }
  0x8f   : > { %2188 = vmatprep.subr.bf16.mxu1 %v2342_v31 }
  0x91   : > { %1039 = vmatmul.mubr.bf16.gmra.mxu0 %v2340_v32  ;;  %1135 = vmatmul.mubr.bf16.gmra.mxu1 %v2341_v33 }
  0x92   : > { %2189 = vmatpush3.bf16.msra.mxu1 %v2342_v31  ;;  %1046 = vmatprep.mubr.bf16.mxu0 %v2344_v35 }
  0x93   : > { %2190 = vmatprep.subr.bf16.mxu1 %v2343_v34  ;;  %1142 = vmatprep.mubr.bf16.mxu1 %v2346_v36 }
  0x96   : > { %2191 = vmatpush3.bf16.msra.mxu1 %v2343_v34 }
  0x97   : > { %2192 = vmatprep.subr.bf16.mxu1 %v2350_v37 }
  0x99   : > { %1047 = vmatmul.mubr.bf16.gmra.mxu0 %v2348_v38  ;;  %1143 = vmatmul.mubr.bf16.gmra.mxu1 %v2349_v39 }
  0x9a   : > { %2193 = vmatpush3.bf16.msra.mxu1 %v2350_v37  ;;  %1054 = vmatprep.mubr.bf16.mxu0 %v2352_v40 }
  0x9b   : > { %2194 = vmatprep.subr.bf16.mxu1 %v2351_v41  ;;  %2196 = vmatprep.mubr.bf16.mxu1 %v2354_v42 }
  0x9e   : > { %2195 = vmatpush3.bf16.msra.mxu1 %v2351_v41 }
  0xa1   : > { %1055 = vmatmul.mubr.bf16.gmra.mxu0 %v2355_v43  ;;  %2197 = vmatmul.mubr.bf16.vlgmr.msra.gmra.mxu1 %v2356_v44 }
  0xa2   : > { %1062 = vmatprep.mubr.bf16.mxu0 %v2357_v45  ;;  %2200 = vmatprep.mubr.bf16.mxu1 %v2359_v46 }
  0xa9   : > { %1063 = vmatmul.mubr.bf16.gmra.mxu0 %v2360_v47  ;;  %2201 = vmatmul.mubr.bf16.gmra.mxu1 %v2361_v48 }
  0xaa   : > { %1070 = vmatprep.mubr.bf16.mxu0 %v2362_v49  ;;  %2204 = vmatprep.mubr.bf16.mxu1 %v2364_v50  ;;  %v448_v49 = vld [vmem:[#allocation2 + $0xd8] sm:$0xff] }
  0xb1   : > { %1071 = vmatmul.mubr.bf16.gmra.mxu0 %v2365_v51  ;;  %2205 = vmatmul.mubr.bf16.gmra.mxu1 %v2366_v52 }
  0xb2   : > { %1078 = vmatprep.mubr.bf16.mxu0 %v2367_v53  ;;  %2208 = vmatprep.mubr.bf16.mxu1 %v2369_v54  ;;  %v446_v54 = vld [vmem:[#allocation2 + $0xb0] sm:$0xff] }
  0xb9   : > { %1079 = vmatmul.mubr.bf16.gmra.mxu0 %v2370_v55  ;;  %2209 = vmatmul.mubr.bf16.gmra.mxu1 %v2371_v56 }
  0xba   : > { %1086 = vmatprep.mubr.bf16.mxu0 %v2372_v57  ;;  %2212 = vmatprep.mubr.bf16.mxu1 %v2374_v58 }
  0xc1   : > { %1087 = vmatmul.mubr.bf16.gmra.mxu0 %v2375_v59  ;;  %2213 = vmatmul.mubr.bf16.gmra.mxu1 %v2376_v60  ;;  %v449_v60 = vld [vmem:[#allocation2 + $0x18] sm:$0xff] }
  0xc2   : > { %1094 = vmatprep.mubr.bf16.mxu0 %v2377_v61  ;;  %2216 = vmatprep.mubr.bf16.mxu1 %v2379_v62 }
  0xc9   : > { %1095 = vmatmul.mubr.bf16.gmra.mxu0 %v2380_v63  ;;  %2217 = vmatmul.mubr.bf16.gmra.mxu1 %v2381_v0 }
  0xca   : > { %1102 = vmatprep.mubr.bf16.mxu0 %v2382_v1  ;;  %2220 = vmatprep.mubr.bf16.mxu1 %v2384_v2  ;;  %v447_v2 = vld [vmem:[#allocation2] sm:$0xff] }
  0xd1   : > { %1103 = vmatmul.mubr.bf16.gmra.mxu0 %v2385_v3  ;;  %2221 = vmatmul.mubr.bf16.gmra.mxu1 %v2386_v4 }
  0xd2   : > { %1110 = vmatprep.mubr.bf16.mxu0 %v2387_v5  ;;  %2224 = vmatprep.mubr.bf16.mxu1 %v2389_v6 }
  0xd9   : > { %1111 = vmatmul.mubr.bf16.gmra.mxu0 %v2390_v7  ;;  %2225 = vmatmul.mubr.bf16.gmra.mxu1 %v2391_v8  ;;  %v452_v8 = vld [vmem:[#allocation2 + $0x30] sm:$0xff] }
 0x141   : > { %v2060_v9 = vpop.f32.mrf.mxu0  ;;  %v2132_v10 = vpop.f32.mrf.mxu1 }
 0x143   : > { %v2061_v11 = vpop.f32.mrf.mxu0  ;;  %v2133_v12 = vpop.f32.mrf.mxu1 }
 0x144   : > { %v2751_v13 = vadd.f32 %v2133_v12, %v2132_v10  ;;  %v2062_v51 = vadd.f32 %v2061_v11, %v2060_v9 }
 0x145   : > { %v2063_v14 = vpop.f32.mrf.mxu0  ;;  %v2135_v15 = vpop.f32.mrf.mxu1 }
 0x147   : > { %v2064_v16 = vpop.f32.mrf.mxu0  ;;  %v2136_v17 = vpop.f32.mrf.mxu1 }
 0x148   : > { %v2753_v18 = vadd.f32 %v2136_v17, %v2135_v15  ;;  %v2065_v62 = vadd.f32 %v2064_v16, %v2063_v14  ;;  %v450_v17 = vld [vmem:[#allocation2 + $0x50] sm:$0xff] }
 0x149   : > { %v2066_v19 = vpop.f32.mrf.mxu0  ;;  %v2138_v20 = vpop.f32.mrf.mxu1 }
 0x14b   : > { %v2067_v21 = vpop.f32.mrf.mxu0  ;;  %v2139_v22 = vpop.f32.mrf.mxu1 }
 0x14c   : > { %v2755_v23 = vadd.f32 %v2139_v22, %v2138_v20  ;;  %v2068_v47 = vadd.f32 %v2067_v21, %v2066_v19  ;;  %v453_v22 = vld [vmem:[#allocation2 + $0x48] sm:$0xff] }
 0x14d   : > { %v2069_v24 = vpop.f32.mrf.mxu0  ;;  %v2141_v25 = vpop.f32.mrf.mxu1 }
 0x14f   : > { %v2070_v26 = vpop.f32.mrf.mxu0  ;;  %v2142_v27 = vpop.f32.mrf.mxu1 }
 0x150   : > { %v2757_v28 = vadd.f32 %v2142_v27, %v2141_v25  ;;  %v2071_v56 = vadd.f32 %v2070_v26, %v2069_v24 }
 0x151   : > { %v2072_v29 = vpop.f32.mrf.mxu0  ;;  %v2144_v30 = vpop.f32.mrf.mxu1 }
 0x153   : > { %v2073_v31 = vpop.f32.mrf.mxu0  ;;  %v2145_v32 = vpop.f32.mrf.mxu1 }
 0x154   : > { %v2759_v33 = vadd.f32 %v2145_v32, %v2144_v30  ;;  %v2074_v10 = vadd.f32 %v2073_v31, %v2072_v29  ;;  %v451_v32 = vld [vmem:[#allocation2 + $0x68] sm:$0xff] }
 0x155   : > { %v2075_v34 = vpop.f32.mrf.mxu0  ;;  %v2147_v35 = vpop.f32.mrf.mxu1 }
 0x157   : > { %v2076_v36 = vpop.f32.mrf.mxu0  ;;  %v2148_v37 = vpop.f32.mrf.mxu1 }
 0x158   : > { %v2761_v38 = vadd.f32 %v2148_v37, %v2147_v35  ;;  %v2077_v25 = vadd.f32 %v2076_v36, %v2075_v34 }
 0x159   : > { %v2078_v39 = vpop.f32.mrf.mxu0  ;;  %v2763_v40 = vpop.f32.mrf.mxu1 }
 0x15b   : > { %v2079_v41 = vpop.f32.mrf.mxu0  ;;  %v2765_v42 = vpop.f32.mrf.mxu1 }
 0x15c   : > { %v2080_v4 = vadd.f32 %v2079_v41, %v2078_v39  ;;  %v456_v41 = vld [vmem:[#allocation2 + $0xe8] sm:$0xff] }
 0x15d   : > { %v2081_v43 = vpop.f32.mrf.mxu0  ;;  %v2767_v44 = vpop.f32.mrf.mxu1 }
 0x15f   : > { %v2082_v45 = vpop.f32.mrf.mxu0  ;;  %v2769_v46 = vpop.f32.mrf.mxu1 }
 0x160   : > { %v2083_v16 = vadd.f32 %v2082_v45, %v2081_v43 }
 0x161   : > { %v2084_v48 = vpop.f32.mrf.mxu0  ;;  %v2198_v50 = vpop.f32.mrf.mxu1 }
 0x162   : > { %v1194_v52 = vadd.f32 %v2198_v50, %v2068_v47 }
 0x163   : > { %v2085_v53 = vpop.f32.mrf.mxu0  ;;  %v1185_v55 = vpop.f32.mrf.mxu1 }
 0x164   : > { %v1314_v57 = vadd.f32 %v1194_v52, %v448_v49  ;;  %v1186_v58 = vadd.f32 %v2062_v51, %v1185_v55  ;;  %v2086_v45 = vadd.f32 %v2085_v53, %v2084_v48  ;;  %v454_v51 = vld [vmem:[#allocation2 + $0x80] sm:$0xff] }
 0x165   : > { %v2087_v59 = vpop.f32.mrf.mxu0  ;;  %v2199_v61 = vpop.f32.mrf.mxu1 }
 0x166   : > { %1346 = vst [vmem:[#allocation2 + $0xd8] sm:$0xff] %v1314_v57  ;;  %v1312_v63 = vadd.f32 %v1186_v58, %v446_v54  ;;  %v1197_v0 = vadd.f32 %v2199_v61, %v2071_v56  ;;  %v457_v56 = vld [vmem:[#allocation2 + $0xb8] sm:$0xff] }
 0x167   : > { %v2088_v1 = vpop.f32.mrf.mxu0  ;;  %v1188_v3 = vpop.f32.mrf.mxu1 }
 0x168   : > { %1344 = vst [vmem:[#allocation2 + $0xb0] sm:$0xff] %v1312_v63  ;;  %v1315_v5 = vadd.f32 %v1197_v0, %v449_v60  ;;  %v1189_v6 = vadd.f32 %v2065_v62, %v1188_v3  ;;  %v2089_v58 = vadd.f32 %v2088_v1, %v2087_v59  ;;  %v455_v63 = vld [vmem:[#allocation2 + $0x88] sm:$0xff] }
 0x169   : > { %v2090_v7 = vpop.f32.mrf.mxu0  ;;  %v2202_v9 = vpop.f32.mrf.mxu1  ;;  %v460_v1 = vld [vmem:[#allocation2 + $0x8] sm:$0xff] }
 0x16a   : > { %1347 = vst [vmem:[#allocation2 + $0x18] sm:$0xff] %v1315_v5  ;;  %v1313_v11 = vadd.f32 %v1189_v6, %v447_v2  ;;  %v1210_v12 = vadd.f32 %v2202_v9, %v2080_v4 }
 0x16b   : > { %v2091_v15 = vpop.f32.mrf.mxu0  ;;  %v1201_v14 = vpop.f32.mrf.mxu1 }
 0x16c   : > { %1345 = vst [vmem:[#allocation2] sm:$0xff] %v1313_v11  ;;  %v1318_v19 = vadd.f32 %v1210_v12, %v452_v8  ;;  %v1202_v20 = vadd.f32 %v2074_v10, %v1201_v14  ;;  %v2092_v31 = vadd.f32 %v2091_v15, %v2090_v7  ;;  %v458_v7 = vld [vmem:[#allocation2 + $0x60] sm:$0xff] }
 0x16d   : > { %v2093_v21 = vpop.f32.mrf.mxu0  ;;  %v2203_v24 = vpop.f32.mrf.mxu1 }
 0x16e   : > { %1350 = vst [vmem:[#allocation2 + $0x30] sm:$0xff] %v1318_v19  ;;  %v1316_v26 = vadd.f32 %v1202_v20, %v450_v17  ;;  %v1213_v27 = vadd.f32 %v2203_v24, %v2083_v16  ;;  %v459_v16 = vld [vmem:[#allocation2 + $0xf0] sm:$0xff]  ;;  %v461_v24 = vld [vmem:[#allocation2 + $0x78] sm:$0xff] }
 0x16f   : > { %v2094_v30 = vpop.f32.mrf.mxu0  ;;  %v1204_v29 = vpop.f32.mrf.mxu1 }
 0x170   : > { %1348 = vst [vmem:[#allocation2 + $0x50] sm:$0xff] %v1316_v26  ;;  %v1319_v35 = vadd.f32 %v1213_v27, %v453_v22  ;;  %v1205_v37 = vadd.f32 %v2077_v25, %v1204_v29  ;;  %v2095_v36 = vadd.f32 %v2094_v30, %v2093_v21 }
 0x171   : > { %v2096_v39 = vpop.f32.mrf.mxu0  ;;  %v2206_v43 = vpop.f32.mrf.mxu1 }
 0x172   : > { %1351 = vst [vmem:[#allocation2 + $0x48] sm:$0xff] %v1319_v35  ;;  %v1317_v47 = vadd.f32 %v1205_v37, %v451_v32  ;;  %v1226_v49 = vadd.f32 %v2206_v43, %v2092_v31  ;;  %v462_v37 = vld [vmem:[#allocation2 + $0x38] sm:$0xff] }
 0x173   : > { %v2097_v50 = vpop.f32.mrf.mxu0  ;;  %v1217_v34 = vpop.f32.mrf.mxu1 }
 0x174   : > { %1349 = vst [vmem:[#allocation2 + $0x68] sm:$0xff] %v1317_v47  ;;  %v1322_v52 = vadd.f32 %v1226_v49, %v456_v41  ;;  %v1218_v54 = vadd.f32 %v2086_v45, %v1217_v34  ;;  %v2098_v4 = vadd.f32 %v2097_v50, %v2096_v39 }
 0x175   : > { %v2099_v55 = vpop.f32.mrf.mxu0  ;;  %v2207_v57 = vpop.f32.mrf.mxu1 }
 0x176   : > { %1354 = vst [vmem:[#allocation2 + $0xe8] sm:$0xff] %v1322_v52  ;;  %v1320_v60 = vadd.f32 %v1218_v54, %v454_v51  ;;  %v1229_v61 = vadd.f32 %v2207_v57, %v2095_v36  ;;  %v463_v51 = vld [vmem:[#allocation2 + $0x58] sm:$0xff] }
 0x177   : > { %v2100_v62 = vpop.f32.mrf.mxu0  ;;  %v1220_v48 = vpop.f32.mrf.mxu1 }
 0x178   : > { %1352 = vst [vmem:[#allocation2 + $0x80] sm:$0xff] %v1320_v60  ;;  %v1323_v53 = vadd.f32 %v1229_v61, %v457_v56  ;;  %v1221_v0 = vadd.f32 %v2089_v58, %v1220_v48  ;;  %v2101_v12 = vadd.f32 %v2100_v62, %v2099_v55  ;;  %v464_v58 = vld [vmem:[#allocation2 + $0x40] sm:$0xff] }
 0x179   : > { %v2102_v2 = vpop.f32.mrf.mxu0  ;;  %v2210_v3 = vpop.f32.mrf.mxu1 }
 0x17a   : > { %1355 = vst [vmem:[#allocation2 + $0xb8] sm:$0xff] %v1323_v53  ;;  %v1321_v5 = vadd.f32 %v1221_v0, %v455_v63 }
 0x17b   : > { %v2103_v6 = vpop.f32.mrf.mxu0  ;;  %v1233_v8 = vpop.f32.mrf.mxu1 }
 0x17c   : > { %1353 = vst [vmem:[#allocation2 + $0x88] sm:$0xff] %v1321_v5  ;;  %v2104_v9 = vadd.f32 %v2103_v6, %v2102_v2  ;;  %v1234_v59 = vadd.f32 %v2098_v4, %v1233_v8  ;;  %v465_v2 = vld [vmem:[#allocation2 + $0xc8] sm:$0xff]  ;;  %v472_v4 = vld [vmem:[#allocation2 + $0x10] sm:$0xff] }
 0x17d   : > { %v2105_v10 = vpop.f32.mrf.mxu0  ;;  %v2211_v11 = vpop.f32.mrf.mxu1 }
 0x17e   : > { %v1242_v15 = vadd.f32 %v2210_v3, %v2104_v9  ;;  %v1324_v17 = vadd.f32 %v1234_v59, %v458_v7  ;;  %v470_v9 = vld [vmem:[#allocation2 + $0xa8] sm:$0xff] }
 0x17f   : > { %v2106_v14 = vpop.f32.mrf.mxu0  ;;  %v1236_v19 = vpop.f32.mrf.mxu1 }
 0x180   : > { %v1326_v20 = vadd.f32 %v1242_v15, %v460_v1  ;;  %1356 = vst [vmem:[#allocation2 + $0x60] sm:$0xff] %v1324_v17  ;;  %v2107_v21 = vadd.f32 %v2106_v14, %v2105_v10  ;;  %v1237_v22 = vadd.f32 %v2101_v12, %v1236_v19  ;;  %v466_v15 = vld [vmem:[#allocation2 + $0xe0] sm:$0xff]  ;;  %v473_v14 = vld [vmem:[#allocation2 + $0x28] sm:$0xff] }
 0x181   : > { %v2108_v25 = vpop.f32.mrf.mxu0  ;;  %v2214_v26 = vpop.f32.mrf.mxu1 }
 0x182   : > { %1358 = vst [vmem:[#allocation2 + $0x8] sm:$0xff] %v1326_v20  ;;  %v1245_v27 = vadd.f32 %v2211_v11, %v2107_v21  ;;  %v1325_v30 = vadd.f32 %v1237_v22, %v459_v16 }
 0x183   : > { %v2109_v32 = vpop.f32.mrf.mxu0  ;;  %v1249_v29 = vpop.f32.mrf.mxu1 }
 0x184   : > { %v1327_v31 = vadd.f32 %v1245_v27, %v461_v24  ;;  %1357 = vst [vmem:[#allocation2 + $0xf0] sm:$0xff] %v1325_v30  ;;  %v2110_v35 = vadd.f32 %v2109_v32, %v2108_v25  ;;  %v471_v24 = vld [vmem:[#allocation2 + $0xd0] sm:$0xff] }
 0x185   : > { %v2111_v39 = vpop.f32.mrf.mxu0  ;;  %v2215_v41 = vpop.f32.mrf.mxu1  ;;  %v467_v32 = vld [vmem:[#allocation2 + $0x90] sm:$0xff] }
 0x186   : > { %1359 = vst [vmem:[#allocation2 + $0x78] sm:$0xff] %v1327_v31  ;;  %v1250_v43 = vadd.f32 %v2110_v35, %v1249_v29  ;;  %v476_v31 = vld [vmem:[#allocation2 + $0x20] sm:$0xff] }
 0x187   : > { %v2112_v45 = vpop.f32.mrf.mxu0  ;;  %v1252_v47 = vpop.f32.mrf.mxu1 }
 0x188   : > { %v1328_v49 = vadd.f32 %v1250_v43, %v462_v37  ;;  %v2113_v50 = vadd.f32 %v2112_v45, %v2111_v39 }
 0x189   : > { %v2114_v34 = vpop.f32.mrf.mxu0  ;;  %v2771_v36 = vpop.f32.mrf.mxu1 }
 0x18a   : > { %1360 = vst [vmem:[#allocation2 + $0x38] sm:$0xff] %v1328_v49  ;;  %v1253_v52 = vadd.f32 %v2113_v50, %v1252_v47  ;;  %v468_v50 = vld [vmem:[#allocation2 + $0x70] sm:$0xff] }
 0x18b   : > { %v2115_v54 = vpop.f32.mrf.mxu0  ;;  %v1265_v55 = vpop.f32.mrf.mxu1 }
 0x18c   : > { %v1329_v56 = vadd.f32 %v1253_v52, %v463_v51  ;;  %v2116_v57 = vadd.f32 %v2115_v54, %v2114_v34  ;;  %v477_v34 = vld [vmem:[#allocation2 + $0x98] sm:$0xff] }
 0x18d   : > { %v2117_v60 = vpop.f32.mrf.mxu0  ;;  %v2773_v61 = vpop.f32.mrf.mxu1 }
 0x18e   : > { %1361 = vst [vmem:[#allocation2 + $0x58] sm:$0xff] %v1329_v56  ;;  %v1258_v62 = vadd.f32 %v2214_v26, %v2116_v57 }
 0x18f   : > { %v2118_v63 = vpop.f32.mrf.mxu0  ;;  %v1268_v48 = vpop.f32.mrf.mxu1 }
 0x190   : > { %v1330_v53 = vadd.f32 %v1258_v62, %v464_v58  ;;  %v2119_v0 = vadd.f32 %v2118_v63, %v2117_v60 }
 0x191   : > { %v2120_v3 = vpop.f32.mrf.mxu0  ;;  %v2222_v5 = vpop.f32.mrf.mxu1 }
 0x192   : > { %1362 = vst [vmem:[#allocation2 + $0x40] sm:$0xff] %v1330_v53  ;;  %v1261_v6 = vadd.f32 %v2215_v41, %v2119_v0  ;;  %v1290_v7 = vadd.f32 %v2222_v5, %v2755_v23  ;;  %v2152_v23 = vadd.f32 %v2765_v42, %v2763_v40  ;;  %v2155_v40 = vadd.f32 %v2769_v46, %v2767_v44  ;;  %v474_v41 = vld [vmem:[#allocation2 + $0xa0] sm:$0xff]  ;;  %v475_v46 = vld [vmem:[#allocation2 + $0xf8] sm:$0xff] }
 0x193   : > { %v2121_v8 = vpop.f32.mrf.mxu0  ;;  %v1281_v59 = vpop.f32.mrf.mxu1 }
 0x194   : > { %v1331_v1 = vadd.f32 %v1261_v6, %v465_v2  ;;  %v1338_v10 = vadd.f32 %v1290_v7, %v472_v4  ;;  %v2122_v11 = vadd.f32 %v2121_v8, %v2120_v3  ;;  %v1282_v12 = vadd.f32 %v2751_v13, %v1281_v59 }
 0x195   : > { %v2123_v17 = vpop.f32.mrf.mxu0  ;;  %v2223_v16 = vpop.f32.mrf.mxu1 }
 0x196   : > { %1363 = vst [vmem:[#allocation2 + $0xc8] sm:$0xff] %v1331_v1  ;;  %1370 = vst [vmem:[#allocation2 + $0x10] sm:$0xff] %v1338_v10  ;;  %v1266_v19 = vadd.f32 %v2122_v11, %v1265_v55  ;;  %v1336_v20 = vadd.f32 %v1282_v12, %v470_v9  ;;  %v1293_v21 = vadd.f32 %v2223_v16, %v2757_v28 }
 0x197   : > { %v2124_v22 = vpop.f32.mrf.mxu0  ;;  %v1284_v25 = vpop.f32.mrf.mxu1 }
 0x198   : > { %v1332_v26 = vadd.f32 %v1266_v19, %v466_v15  ;;  %1368 = vst [vmem:[#allocation2 + $0xa8] sm:$0xff] %v1336_v20  ;;  %v1339_v27 = vadd.f32 %v1293_v21, %v473_v14  ;;  %v2125_v13 = vadd.f32 %v2124_v22, %v2123_v17  ;;  %v1285_v30 = vadd.f32 %v2753_v18, %v1284_v25 }
 0x199   : > { %v2126_v29 = vpop.f32.mrf.mxu0  ;;  %v2226_v35 = vpop.f32.mrf.mxu1 }
 0x19a   : > { %1364 = vst [vmem:[#allocation2 + $0xe0] sm:$0xff] %v1332_v26  ;;  %1371 = vst [vmem:[#allocation2 + $0x28] sm:$0xff] %v1339_v27  ;;  %v1269_v37 = vadd.f32 %v2125_v13, %v1268_v48  ;;  %v1337_v28 = vadd.f32 %v1285_v30, %v471_v24  ;;  %v1306_v39 = vadd.f32 %v2226_v35, %v2152_v23 }
 0x19b   : > { %v2127_v42 = vpop.f32.mrf.mxu0  ;;  %v1297_v43 = vpop.f32.mrf.mxu1 }
 0x19c   : > { %v1333_v45 = vadd.f32 %v1269_v37, %v467_v32  ;;  %1369 = vst [vmem:[#allocation2 + $0xd0] sm:$0xff] %v1337_v28  ;;  %v1342_v47 = vadd.f32 %v1306_v39, %v476_v31  ;;  %v2128_v49 = vadd.f32 %v2127_v42, %v2126_v29  ;;  %v1298_v18 = vadd.f32 %v2759_v33, %v1297_v43  ;;  %v469_v33 = vld [vmem:[#allocation2 + $0xc0] sm:$0xff] }
 0x19d   : > { %v2129_v51 = vpop.f32.mrf.mxu0  ;;  %v2227_v52 = vpop.f32.mrf.mxu1 }
 0x19e   : > { %1365 = vst [vmem:[#allocation2 + $0x90] sm:$0xff] %v1333_v45  ;;  %1374 = vst [vmem:[#allocation2 + $0x20] sm:$0xff] %v1342_v47  ;;  %v1274_v54 = vadd.f32 %v2771_v36, %v2128_v49  ;;  %v1340_v55 = vadd.f32 %v1298_v18, %v474_v41  ;;  %v1309_v56 = vadd.f32 %v2227_v52, %v2155_v40 }
 0x19f   : > { %v2130_v44 = vpop.f32.mrf.mxu0  ;;  %v1300_v57 = vpop.f32.mrf.mxu1 }
 0x1a0   : > { %v1334_v58 = vadd.f32 %v1274_v54, %v468_v50  ;;  %1372 = vst [vmem:[#allocation2 + $0xa0] sm:$0xff] %v1340_v55  ;;  %v1343_v60 = vadd.f32 %v1309_v56, %v477_v34  ;;  %v2131_v62 = vadd.f32 %v2130_v44, %v2129_v51  ;;  %v1301_v63 = vadd.f32 %v2761_v38, %v1300_v57 }
 0x1a2   : > { %1366 = vst [vmem:[#allocation2 + $0x70] sm:$0xff] %v1334_v58  ;;  %1375 = vst [vmem:[#allocation2 + $0x98] sm:$0xff] %v1343_v60  ;;  %v1277_v48 = vadd.f32 %v2773_v61, %v2131_v62  ;;  %v1341_v53 = vadd.f32 %v1301_v63, %v475_v46  ;;  %1379 = sbr.rel (%p1881_p13) target bundleno = 441 (0x1b9), region = 66 }
 0x1a4   : > { %v1335_v0 = vadd.f32 %v1277_v48, %v469_v33  ;;  %1373 = vst [vmem:[#allocation2 + $0xf8] sm:$0xff] %v1341_v53 }
 0x1a6   : > { %1367 = vst [vmem:[#allocation2 + $0xc0] sm:$0xff] %v1335_v0 }
 0x1a7   : > { %v1380_v36 = vld [vmem:[#allocation2 + $0xb0] sm:$0xff]  ;;  %v1381_v2 = vld [vmem:[#allocation2] sm:$0xff]  ;;  %v1382_v5 = vld [vmem:[#allocation2 + $0xd8] sm:$0xff] }
 0x1a8   : > { %v2791_v3 = vld [vmem:[%s2864_s2] ss:$0 sm:$0xff]  ;;  %v1383_v61 = vld [vmem:[#allocation2 + $0x18] sm:$0xff]  ;;  %v1384_v6 = vld [vmem:[#allocation2 + $0x50] sm:$0xff] }
 0x1a9   : > { %v1419_v38 = vadd.f32 %v2791_v3, %v1380_v36  ;;  %v1420_v4 = vadd.f32 %v2791_v3, %v1381_v2  ;;  %v1421_v7 = vadd.f32 %v2791_v3, %v1382_v5  ;;  %v1422_v8 = vadd.f32 %v2791_v3, %v1383_v61  ;;  %v1385_v9 = vld [vmem:[#allocation2 + $0x68] sm:$0xff]  ;;  %v1386_v1 = vld [vmem:[#allocation2 + $0x30] sm:$0xff]  ;;  %v1388_v14 = vld [vmem:[#allocation2 + $0x80] sm:$0xff] }
 0x1aa   : > { %v1423_v59 = vadd.f32 %v2791_v3, %v1384_v6  ;;  %v1387_v10 = vld [vmem:[#allocation2 + $0x48] sm:$0xff]  ;;  %v1424_v12 = vadd.f32 %v2791_v3, %v1385_v9  ;;  %v1425_v15 = vadd.f32 %v2791_v3, %v1386_v1  ;;  %v1427_v21 = vadd.f32 %v2791_v3, %v1388_v14  ;;  %v1391_v22 = vld [vmem:[#allocation2 + $0xb8] sm:$0xff]  ;;  %v1392_v25 = vld [vmem:[#allocation2 + $0x60] sm:$0xff] }
 0x1ab   : > { %v1952_v11 = vpack.c.bf16 %v1420_v4, %v1419_v38  ;;  %v1426_v17 = vadd.f32 %v2791_v3, %v1387_v10  ;;  %v1389_v16 = vld [vmem:[#allocation2 + $0x88] sm:$0xff]  ;;  %v1957_v20 = vpack.c.bf16 %v1422_v8, %v1421_v7  ;;  %v1393_v26 = vld [vmem:[#allocation2 + $0xf0] sm:$0xff]  ;;  %v1430_v30 = vadd.f32 %v2791_v3, %v1391_v22  ;;  %v1395_v31 = vld [vmem:[#allocation2 + $0x78] sm:$0xff] }
 0x1ac   : > { %v1390_v19 = vld [vmem:[#allocation2 + $0xe8] sm:$0xff]  ;;  %v1428_v23 = vadd.f32 %v2791_v3, %v1389_v16  ;;  %v1962_v27 = vpack.c.bf16 %v1424_v12, %v1423_v59  ;;  %v1431_v32 = vadd.f32 %v2791_v3, %v1392_v25  ;;  %v1396_v35 = vld [vmem:[#allocation2 + $0x38] sm:$0xff]  ;;  %v1432_v28 = vadd.f32 %v2791_v3, %v1393_v26  ;;  %v1398_v41 = vld [vmem:[#allocation2 + $0x40] sm:$0xff] }
 0x1ad   : > { %v1429_v24 = vadd.f32 %v2791_v3, %v1390_v19  ;;  %1953 = vst [vmem:[%s2674_s30] sm:$0xff] %v1952_v11   ;;  %v1967_v13 = vpack.c.bf16 %v1426_v17, %v1425_v15  ;;  %v1394_v29 = vld [vmem:[#allocation2 + $0x8] sm:$0xff]  ;;  %2029 = vst [vmem:[%s2674_s30 + $0x8] sm:$0xff] %v1957_v20   ;;  %v1434_v40 = vadd.f32 %v2791_v3, %v1395_v31  ;;  %v1397_v42 = vld [vmem:[#allocation2 + $0x58] sm:$0xff] }
 0x1ae   : > { %v1972_v37 = vpack.c.bf16 %v1428_v23, %v1427_v21  ;;  %v1433_v39 = vadd.f32 %v2791_v3, %v1394_v29  ;;  %v1399_v43 = vld [vmem:[#allocation2 + $0xc8] sm:$0xff]  ;;  %2030 = vst [vmem:[%s2674_s30 + $0x10] sm:$0xff] %v1962_v27   ;;  %v1435_v47 = vadd.f32 %v2791_v3, %v1396_v35  ;;  %v1436_v49 = vadd.f32 %v2791_v3, %v1397_v42  ;;  %v1400_v50 = vld [vmem:[#allocation2 + $0xe0] sm:$0xff]  ;;  %v1401_v51 = vld [vmem:[#allocation2 + $0x90] sm:$0xff] }
 0x1af   : > { %2031 = vst [vmem:[%s2674_s30 + $0x18] sm:$0xff] %v1967_v13   ;;  %v1977_v45 = vpack.c.bf16 %v1430_v30, %v1429_v24  ;;  %v1437_v18 = vadd.f32 %v2791_v3, %v1398_v41  ;;  %v1402_v34 = vld [vmem:[#allocation2 + $0x70] sm:$0xff]  ;;  %v1982_v52 = vpack.c.bf16 %v1432_v28, %v1431_v32  ;;  %v1438_v55 = vadd.f32 %v2791_v3, %v1399_v43  ;;  %v1403_v44 = vld [vmem:[#allocation2 + $0xc0] sm:$0xff]  ;;  %v1404_v46 = vld [vmem:[#allocation2 + $0xa8] sm:$0xff] }
 0x1b0   : > { %2032 = vst [vmem:[%s2674_s30 + $0x20] sm:$0xff] %v1972_v37   ;;  %v1987_v54 = vpack.c.bf16 %v1434_v40, %v1433_v39  ;;  %v1439_v56 = vadd.f32 %v2791_v3, %v1400_v50  ;;  %v1405_v57 = vld [vmem:[#allocation2 + $0xd0] sm:$0xff]  ;;  %v1992_v58 = vpack.c.bf16 %v1436_v49, %v1435_v47  ;;  %v1440_v60 = vadd.f32 %v2791_v3, %v1401_v51  ;;  %v1407_v48 = vld [vmem:[#allocation2 + $0x28] sm:$0xff]  ;;  %v1408_v53 = vld [vmem:[#allocation2 + $0xa0] sm:$0xff] }
 0x1b1   : > { %2033 = vst [vmem:[%s2674_s30 + $0x28] sm:$0xff] %v1977_v45   ;;  %v1441_v62 = vadd.f32 %v2791_v3, %v1402_v34  ;;  %v1442_v63 = vadd.f32 %v2791_v3, %v1403_v44  ;;  %v1406_v33 = vld [vmem:[#allocation2 + $0x10] sm:$0xff]  ;;  %2034 = vst [vmem:[%s2674_s30 + $0x30] sm:$0xff] %v1982_v52   ;;  %v1997_v0 = vpack.c.bf16 %v1438_v55, %v1437_v18  ;;  %v1409_v4 = vld [vmem:[#allocation2 + $0xf8] sm:$0xff] }
 0x1b2   : > { %2035 = vst [vmem:[%s2674_s30 + $0x38] sm:$0xff] %v1987_v54   ;;  %v1443_v36 = vadd.f32 %v2791_v3, %v1404_v46  ;;  %v1444_v2 = vadd.f32 %v2791_v3, %v1405_v57  ;;  %v1445_v38 = vadd.f32 %v2791_v3, %v1406_v33  ;;  %v1410_v5 = vld [vmem:[#allocation2 + $0x20] sm:$0xff]  ;;  %v1411_v61 = vld [vmem:[#allocation2 + $0x98] sm:$0xff]  ;;  %2036 = vst [vmem:[%s2674_s30 + $0x40] sm:$0xff] %v1992_v58  }
 0x1b3   : > { %v2002_v6 = vpack.c.bf16 %v1440_v60, %v1439_v56  ;;  %v2007_v7 = vpack.c.bf16 %v1442_v63, %v1441_v62  ;;  %v1446_v8 = vadd.f32 %v2791_v3, %v1407_v48  ;;  %v1447_v9 = vadd.f32 %v2791_v3, %v1408_v53  ;;  %2037 = vst [vmem:[%s2674_s30 + $0x48] sm:$0xff] %v1997_v0  }
 0x1b4   : > { %v2012_v59 = vpack.c.bf16 %v1444_v2, %v1443_v36  ;;  %v1448_v1 = vadd.f32 %v2791_v3, %v1409_v4  ;;  %v1449_v10 = vadd.f32 %v2791_v3, %v1410_v5  ;;  %v1450_v11 = vadd.f32 %v2791_v3, %v1411_v61 }
 0x1b5   : > { %2038 = vst [vmem:[%s2674_s30 + $0x50] sm:$0xff] %v2002_v6   ;;  %2039 = vst [vmem:[%s2674_s30 + $0x58] sm:$0xff] %v2007_v7   ;;  %v2017_v12 = vpack.c.bf16 %v1446_v8, %v1445_v38 }
 0x1b6   : > { %2040 = vst [vmem:[%s2674_s30 + $0x60] sm:$0xff] %v2012_v59   ;;  %v2022_v15 = vpack.c.bf16 %v1448_v1, %v1447_v9  ;;  %v2027_v17 = vpack.c.bf16 %v1450_v11, %v1449_v10 }
 0x1b7   : > { %2041 = vst [vmem:[%s2674_s30 + $0x68] sm:$0xff] %v2017_v12  }
 0x1b8   : > { %2042 = vst [vmem:[%s2674_s30 + $0x70] sm:$0xff] %v2022_v15   ;;  %2043 = vst [vmem:[%s2674_s30 + $0x78] sm:$0xff] %v2027_v17  }
 0x1b9 PF: > { %s13_s18 = sadd.s32 1, %s2446_s18   ;;  %s2866_s12 = smov %s2426_s13 }
 0x1ba   : > { %p10_p0 = scmp.ge.s32.totalorder %s13_s18, 8   ;;  %s2867_s13 = smov %s2520_s25 }
 0x1bb   : > { %s2868_s14 = smov %s2438_s16  ;;  %s2869_s15 = smov %s2442_s17 }
 0x1bc   : > { %s2870_s16 = smov %s2873_s19  ;;  %s2871_s17 = smov %s2877_s20 }
 0x1bd   :  { %12 = sbr.rel (!%p10_p0) target bundleno = 4 (0x4), region = 113 }

// kernel: encoder_block_forward.27
= control target key start
LH: loop header
LB: loop body
LE: loop exit
PB: predicated region body
PF: predicated region fallthrough
CT: control target
= control target key end

     0   :  { %s1418_s12 = smov 0   ;;  %s1420_s13 = smov 0   ;;  %s1653_s0 = inlined_call_operand.vmem [shape: bf16[104,1152], index: 0, kind: input, shape index: {}]   ;;  %s1654_s1 = inlined_call_operand.vmem [shape: bf16[1152,128], index: 1, kind: input, shape index: {}]   ;;  %s1655_s2 = inlined_call_operand.vmem [shape: f32[1,128], index: 2, kind: input, shape index: {}]   ;;  %s1656_s3 = inlined_call_operand.vmem [shape: f32[104,128], index: 3, kind: output, shape index: {}]  }
   0x1   :  { %s1422_s14 = smov 0   ;;  %s1424_s15 = smov 0  }
   0x2   :  { %s1426_s16 = smov 0  }
   0x3 LB: > { %s25_s17 = sadd.s32 1, %s1389_s15  ;;  %p48_p1 = scmp.ne.s32.totalorder %s1381_s13, %s1377_s12  ;;  %s1393_s16 = sphi %s1426_s16, %s13_s16   ;;  %s1389_s15 = sphi %s1424_s15, %s1660_s15   ;;  %s1385_s14 = sphi %s1422_s14, %s1659_s14   ;;  %s1381_s13 = sphi %s1420_s13, %s1658_s13   ;;  %s1377_s12 = sphi %s1418_s12, %s1657_s12  }
   0x4   : > { %p26_p0 = scmp.ge.s32.totalorder %s25_s17, 3  ;;  %p49_p2 = scmp.eq.s32.totalorder %s1393_s16, 0 }
   0x5   : > { %s41_s19 = sadd.s32 1, %s1381_s13  ;;  %p1059_p5 = scmp.ge.s32.totalorder %s1393_s16, 3 }
   0x6   : > { %s1662_s17 = smov (%p26_p0, %s25_s17), 0  ;;  %p50_p3 = por %p49_p2, %p48_p1 }
   0x7   : > { %s37_s18 = ssub.s32 %s1389_s15, %s1662_s17  ;;  %162 = sbr.rel (%p1059_p5) target bundleno = 32 (0x20), region = 20 }
   0x8   : > { %p39_p4 = scmp.eq.s32.totalorder %s37_s18, 0 }
   0xa   : > { %s1453_s20 = scalar_select %p39_p4, %s1381_s13, %s41_s19  }
   0xc   : > { %165 = sbr.rel (!%p50_p3) target bundleno = 32 (0x20), region = 24  ;;  %s167_s21 = sand.u32 (%p50_p3), 1, %s1381_s13  }
   0xd   : > { %s1141_s22 = smul.u32 (%p50_p3), 12, %s1389_s15 }
   0xe   : > { %s1259_s23 = smul.u32 (%p50_p3), 156, %s167_s21 }
   0xf   : > { %s1461_s26 = scalar_lea.vmem (%p50_p3), %s1653_s0, %s1141_s22 }
  0x10   : > { %v190_v0 = vld [vmem:[%s1461_s26] sm:$0xff] (%p50_p3)  ;;  %v194_v2 = vld [vmem:[%s1461_s26 + $0x48] sm:$0xff] (%p50_p3)  ;;  %s1466_s27 = scalar_lea.vmem (%p50_p3), [#allocation3], %s1259_s23  ;;  %v198_v4 = vld [vmem:[%s1461_s26 + $0x90] sm:$0xff] (%p50_p3) }
  0x11   : > { %v192_v1 = vld [vmem:[%s1461_s26 + $0x24] sm:$0xff]  ;;  %191 = vst [vmem:[%s1466_s27] sm:$0xff] %v190_v0  ;;  %195 = vst [vmem:[%s1466_s27 + $0x18] sm:$0xff] %v194_v2  ;;  %v196_v3 = vld [vmem:[%s1461_s26 + $0x6c] sm:$0xff] }
  0x12   : > { %193 = vst [vmem:[%s1466_s27 + $0xc] sm:$0xff] %v192_v1  ;;  %v200_v5 = vld [vmem:[%s1461_s26 + $0xb4] sm:$0xff]  ;;  %197 = vst [vmem:[%s1466_s27 + $0x24] sm:$0xff] %v196_v3  ;;  %v204_v7 = vld [vmem:[%s1461_s26 + $0xfc] sm:$0xff] }
  0x13   : > { %199 = vst [vmem:[%s1466_s27 + $0x30] sm:$0xff] %v198_v4  ;;  %201 = vst [vmem:[%s1466_s27 + $0x3c] sm:$0xff] %v200_v5  ;;  %v202_v6 = vld [vmem:[%s1461_s26 + $0xd8] sm:$0xff]  ;;  %v206_v8 = vld [vmem:[%s1461_s26 + $0x120] sm:$0xff] }
  0x14   : > { %203 = vst [vmem:[%s1466_s27 + $0x48] sm:$0xff] %v202_v6  ;;  %205 = vst [vmem:[%s1466_s27 + $0x54] sm:$0xff] %v204_v7  ;;  %v208_v9 = vld [vmem:[%s1461_s26 + $0x144] sm:$0xff]  ;;  %v212_v11 = vld [vmem:[%s1461_s26 + $0x18c] sm:$0xff] }
  0x15   : > { %207 = vst [vmem:[%s1466_s27 + $0x60] sm:$0xff] %v206_v8  ;;  %v210_v10 = vld [vmem:[%s1461_s26 + $0x168] sm:$0xff]  ;;  %209 = vst [vmem:[%s1466_s27 + $0x6c] sm:$0xff] %v208_v9  ;;  %v214_v12 = vld [vmem:[%s1461_s26 + $0x1b0] sm:$0xff] }
  0x16   : > { %211 = vst [vmem:[%s1466_s27 + $0x78] sm:$0xff] %v210_v10  ;;  %213 = vst [vmem:[%s1466_s27 + $0x84] sm:$0xff] %v212_v11  ;;  %v1061_v13 = vld [vmem:[%s1461_s26 + $0x8] sm:$0xf]  ;;  %v1063_v14 = vld [vmem:[%s1461_s26 + $0x2c] sm:$0xf] }
  0x17   : > { %215 = vst [vmem:[%s1466_s27 + $0x90] sm:$0xff] %v214_v12  ;;  %1062 = vst [vmem:[%s1466_s27 + $0x8] sm:$0xf] %v1061_v13  ;;  %v1065_v15 = vld [vmem:[%s1461_s26 + $0x50] sm:$0xf] }
  0x18   : > { %1064 = vst [vmem:[%s1466_s27 + $0x14] sm:$0xf] %v1063_v14  ;;  %v1067_v16 = vld [vmem:[%s1461_s26 + $0x74] sm:$0xf]  ;;  %v1069_v17 = vld [vmem:[%s1461_s26 + $0x98] sm:$0xf] }
  0x19   : > { %1066 = vst [vmem:[%s1466_s27 + $0x20] sm:$0xf] %v1065_v15  ;;  %1068 = vst [vmem:[%s1466_s27 + $0x2c] sm:$0xf] %v1067_v16  ;;  %v1071_v18 = vld [vmem:[%s1461_s26 + $0xbc] sm:$0xf] }
  0x1a   : > { %1070 = vst [vmem:[%s1466_s27 + $0x38] sm:$0xf] %v1069_v17  ;;  %v1073_v19 = vld [vmem:[%s1461_s26 + $0xe0] sm:$0xf]  ;;  %v1075_v20 = vld [vmem:[%s1461_s26 + $0x104] sm:$0xf] }
  0x1b   : > { %1072 = vst [vmem:[%s1466_s27 + $0x44] sm:$0xf] %v1071_v18  ;;  %1074 = vst [vmem:[%s1466_s27 + $0x50] sm:$0xf] %v1073_v19  ;;  %v1077_v21 = vld [vmem:[%s1461_s26 + $0x128] sm:$0xf] }
  0x1c   : > { %1076 = vst [vmem:[%s1466_s27 + $0x5c] sm:$0xf] %v1075_v20  ;;  %v1079_v22 = vld [vmem:[%s1461_s26 + $0x14c] sm:$0xf]  ;;  %v1081_v23 = vld [vmem:[%s1461_s26 + $0x170] sm:$0xf] }
  0x1d   : > { %1078 = vst [vmem:[%s1466_s27 + $0x68] sm:$0xf] %v1077_v21  ;;  %1080 = vst [vmem:[%s1466_s27 + $0x74] sm:$0xf] %v1079_v22  ;;  %v1083_v24 = vld [vmem:[%s1461_s26 + $0x194] sm:$0xf] }
  0x1e   : > { %1082 = vst [vmem:[%s1466_s27 + $0x80] sm:$0xf] %v1081_v23  ;;  %v1085_v25 = vld [vmem:[%s1461_s26 + $0x1b8] sm:$0xf]  ;;  %1084 = vst [vmem:[%s1466_s27 + $0x8c] sm:$0xf] %v1083_v24 }
  0x1f   : > { %1086 = vst [vmem:[%s1466_s27 + $0x98] sm:$0xf] %v1085_v25 }
  0x20 PF: > { %p1087_p6 = scmp.ge.s32.totalorder %s1393_s16, 1  ;;  %p266_p7 = scmp.lt.s32.totalorder %s1393_s16, 4 }
  0x22   : > { %p267_p8 = pnand %p1087_p6, %p266_p7 }
  0x23   : > { %s273_s28 = sand.u32 (!%p267_p8), 1, %s1377_s12   ;;  %s312_s29 = smul.u32 (!%p267_p8), 48, %s1385_s14 }
  0x24   : > { %270 = sbr.rel (%p267_p8) target bundleno = 348 (0x15c), region = 54  ;;  %p1089_p10 = scmp.ne.s32.totalorder (!%p267_p8), %s1385_s14, 0 }
  0x25   : > { %s1260_s30 = smul.u32 (!%p267_p8), 156, %s273_s28  ;;  %p313_p9 = scmp.lt.s32.totalorder (!%p267_p8), %s312_s29, 143 }
  0x27   : > { %s1526_s8 = scalar_lea.vmem (!%p267_p8), [#allocation3], %s1260_s30 }
  0x29   : > { %s1664_s29 = smov (!%p313_p9, %s312_s29), 143  ;;  %337 = sbr.rel (%p1089_p10) target bundleno = 54 (0x36), region = 62 }
  0x2a   : > { %s1088_s4 = sshll.u32 %s1664_s29, 2 }
  0x2b   : > { %s1524_s7 = scalar_lea.vmem %s1654_s1, %s1088_s4 }
  0x2e   : > { %v1395_v26 = vmov 0.0  }
  0x2f   : > { %338 = vst [vmem:[#allocation2 + $0x30] sm:$0xff] %v1395_v26  ;;  %339 = vst [vmem:[#allocation2] sm:$0xff] %v1395_v26 }
  0x30   : > { %340 = vst [vmem:[#allocation2 + $0x58] sm:$0xff] %v1395_v26  ;;  %341 = vst [vmem:[#allocation2 + $0x18] sm:$0xff] %v1395_v26 }
  0x31   : > { %342 = vst [vmem:[#allocation2 + $0x50] sm:$0xff] %v1395_v26  ;;  %343 = vst [vmem:[#allocation2 + $0x20] sm:$0xff] %v1395_v26 }
  0x32   : > { %344 = vst [vmem:[#allocation2 + $0x8] sm:$0xff] %v1395_v26  ;;  %345 = vst [vmem:[#allocation2 + $0x38] sm:$0xff] %v1395_v26 }
  0x33   : > { %346 = vst [vmem:[#allocation2 + $0x28] sm:$0xff] %v1395_v26  ;;  %347 = vst [vmem:[#allocation2 + $0x48] sm:$0xff] %v1395_v26 }
  0x34   : > { %348 = vst [vmem:[#allocation2 + $0x10] sm:$0xff] %v1395_v26  ;;  %349 = vst [vmem:[#allocation2 + $0x60] sm:$0xff] %v1395_v26 }
  0x35   : > { %350 = vst [vmem:[#allocation2 + $0x40] sm:$0xff] %v1395_v26 }
  0x36 PF: > { %v1304_v27 = vld [vmem:[%s1524_s7 + $0x78] sm:$0xff]   ;;  %v1396_v28 = vmov 0.0   ;;  %vm1397_vm0 = vmmov 0   ;;  %v1307_v31 = vld [vmem:[%s1524_s7 + $0x70] sm:$0xff]   ;;  %v1310_v34 = vld [vmem:[%s1524_s7 + $0x68] sm:$0xff]   ;;  %p1135_p11 = scmp.ne.s32.totalorder %s1385_s14, 2 }
  0x37   : > { %1215 = vmatprep.subr.bf16.mxu1 %v1396_v28  ;;  %v1305_v29 = vld [vmem:[%s1524_s7 + $0xb8] sm:$0xff]   ;;  %1142 = vmatprep.subr.bf16.mxu0 %v1304_v27  ;;  %v1308_v32 = vld [vmem:[%s1524_s7 + $0xb0] sm:$0xff]   ;;  %v1311_v35 = vld [vmem:[%s1524_s7 + $0xa8] sm:$0xff]  }
  0x38   : > { %v1306_v30 = vld [vmem:[%s1524_s7 + $0x38] sm:$0xff]   ;;  %1231 = vmatprep.mubr.msk.bf16.mxu1 %vm1397_vm0, %v1396_v28  ;;  %1216 = vmatpush3.bf16.msra.mxu1 %v1305_v29  ;;  %v1309_v33 = vld [vmem:[%s1524_s7 + $0x30] sm:$0xff]   ;;  %v1312_v36 = vld [vmem:[%s1524_s7 + $0x28] sm:$0xff]  }
  0x39   : > { %1143 = vmatpush3.bf16.msra.mxu0 %v1306_v30  ;;  %1217 = vmatprep.subr.bf16.mxu1 %v1396_v28  ;;  %v1313_v37 = vld [vmem:[%s1524_s7 + $0x60] sm:$0xff]   ;;  %v1316_v40 = vld [vmem:[%s1524_s7 + $0x58] sm:$0xff]   ;;  %v1319_v43 = vld [vmem:[%s1524_s7 + $0x50] sm:$0xff]  }
  0x3a   : > { %1144 = vmatprep.subr.bf16.mxu0 %v1307_v31  ;;  %v1314_v38 = vld [vmem:[%s1524_s7 + $0xa0] sm:$0xff]   ;;  %v1317_v41 = vld [vmem:[%s1524_s7 + $0x98] sm:$0xff]   ;;  %v1320_v44 = vld [vmem:[%s1524_s7 + $0x90] sm:$0xff]  }
  0x3b   : > { %v1315_v39 = vld [vmem:[%s1524_s7 + $0x20] sm:$0xff]   ;;  %v1318_v42 = vld [vmem:[%s1524_s7 + $0x18] sm:$0xff]   ;;  %v1321_v45 = vld [vmem:[%s1524_s7 + $0x10] sm:$0xff]  }
  0x3c   : > { %1218 = vmatpush3.bf16.msra.mxu1 %v1308_v32  ;;  %v1322_v46 = vld [vmem:[%s1524_s7 + $0x48] sm:$0xff]   ;;  %v1325_v49 = vld [vmem:[%s1524_s7 + $0x40] sm:$0xff]   ;;  %v388_v4 = vld [vmem:[%s1526_s8 + $0x90] sm:$0xff] }
  0x3d   : > { %1145 = vmatpush3.bf16.msra.mxu0 %v1309_v33  ;;  %1219 = vmatprep.subr.bf16.mxu1 %v1396_v28  ;;  %v1323_v47 = vld [vmem:[%s1524_s7 + $0x88] sm:$0xff]   ;;  %v1326_v51 = vld [vmem:[%s1524_s7 + $0x80] sm:$0xff]   ;;  %v1109_v7 = vcombine.high %v388_v4, %v388_v4  ;;  %v1108_v9 = vcombine.low %v388_v4, %v388_v4  ;;  %v351_v16 = vld [vmem:[#allocation2 + $0x30] sm:$0xff] }
  0x3e   : > { %1146 = vmatprep.subr.bf16.mxu0 %v1310_v34  ;;  %v1324_v48 = vld [vmem:[%s1524_s7 + $0x8] sm:$0xff]   ;;  %v1327_v52 = vld [vmem:[%s1524_s7] sm:$0xff]   ;;  %v353_v32 = vld [vmem:[#allocation2 + $0x58] sm:$0xff] }
  0x3f   : > { %v1330_v50 = vld [vmem:[%s1526_s8 + $0x4] ss:$12 sps:$4 sm:$0xff]   ;;  %v1331_v53 = vld [vmem:[%s1526_s8 + $0x8] ss:$12 sps:$4 sm:$0xff]   ;;  %v1328_v54 = vld [vmem:[%s1526_s8] ss:$12 sps:$4 sm:$0xff]  }
  0x40   : > { %1220 = vmatpush3.bf16.msra.mxu1 %v1311_v35  ;;  %721 = vmatprep.mubr.bf16.mxu0 %v1330_v50  ;;  %v1332_v55 = vld [vmem:[%s1526_s8 + $0x1c] ss:$12 sps:$4 sm:$0xff]   ;;  %v1334_v56 = vld [vmem:[%s1526_s8 + $0x20] ss:$12 sps:$4 sm:$0xff]   ;;  %v1335_v57 = vld [vmem:[%s1526_s8 + $0x18] ss:$12 sps:$4 sm:$0xff]  }
  0x41   : > { %1147 = vmatpush3.bf16.msra.mxu0 %v1312_v36  ;;  %1221 = vmatprep.subr.bf16.mxu1 %v1396_v28  ;;  %v1336_v58 = vld [vmem:[%s1526_s8 + $0x34] ss:$12 sps:$4 sm:$0xff]   ;;  %v1338_v59 = vld [vmem:[%s1526_s8 + $0x38] ss:$12 sps:$4 sm:$0xff]   ;;  %v1339_v60 = vld [vmem:[%s1526_s8 + $0x30] ss:$12 sps:$4 sm:$0xff]  }
  0x42   : > { %1148 = vmatprep.subr.bf16.mxu0 %v1313_v37  ;;  %v1340_v61 = vld [vmem:[%s1526_s8 + $0x4c] ss:$12 sps:$4 sm:$0xff]   ;;  %v1342_v62 = vld [vmem:[%s1526_s8 + $0x50] ss:$12 sps:$4 sm:$0xff]   ;;  %v1343_v63 = vld [vmem:[%s1526_s8 + $0x48] ss:$12 sps:$4 sm:$0xff]  }
  0x43   : > { %v1344_v0 = vld [vmem:[%s1526_s8 + $0x64] ss:$12 sps:$4 sm:$0xff]   ;;  %v1346_v1 = vld [vmem:[%s1526_s8 + $0x68] ss:$12 sps:$4 sm:$0xff]   ;;  %v1347_v2 = vld [vmem:[%s1526_s8 + $0x60] ss:$12 sps:$4 sm:$0xff]  }
  0x44   : > { %1222 = vmatpush3.bf16.msra.mxu1 %v1314_v38  ;;  %v1348_v3 = vld [vmem:[%s1526_s8 + $0x7c] ss:$12 sps:$4 sm:$0xff]   ;;  %v1350_v5 = vld [vmem:[%s1526_s8 + $0x80] ss:$12 sps:$4 sm:$0xff]   ;;  %v1351_v6 = vld [vmem:[%s1526_s8 + $0x78] ss:$12 sps:$4 sm:$0xff]  }
  0x45   : > { %1149 = vmatpush3.bf16.msra.mxu0 %v1315_v39  ;;  %1223 = vmatprep.subr.bf16.mxu1 %v1396_v28  ;;  %v1353_v8 = vld [vmem:[%s1526_s8 + $0x98] ss:$0 sps:$4 sm:$0xff]  }
  0x46   : > { %1150 = vmatprep.subr.bf16.mxu0 %v1316_v40  ;;  %v352_v24 = vld [vmem:[#allocation2] sm:$0xff]  ;;  %v354_v40 = vld [vmem:[#allocation2 + $0x18] sm:$0xff] }
  0x48   : > { %1224 = vmatpush3.bf16.msra.mxu1 %v1317_v41 }
  0x49   : > { %1151 = vmatpush3.bf16.msra.mxu0 %v1318_v42  ;;  %1225 = vmatprep.subr.bf16.mxu1 %v1396_v28 }
  0x4a   : > { %1152 = vmatprep.subr.bf16.mxu0 %v1319_v43 }
  0x4c   : > { %1226 = vmatpush3.bf16.msra.mxu1 %v1320_v44 }
  0x4d   : > { %1153 = vmatpush3.bf16.msra.mxu0 %v1321_v45  ;;  %1227 = vmatprep.subr.bf16.mxu1 %v1396_v28 }
  0x4e   : > { %1154 = vmatprep.subr.bf16.mxu0 %v1322_v46 }
  0x50   : > { %1228 = vmatpush3.bf16.msra.mxu1 %v1323_v47 }
  0x51   : > { %1155 = vmatpush3.bf16.msra.mxu0 %v1324_v48  ;;  %1229 = vmatprep.subr.bf16.mxu1 %v1396_v28  ;;  %v355_v48 = vld [vmem:[#allocation2 + $0x50] sm:$0xff] }
  0x52   : > { %1156 = vmatprep.subr.bf16.mxu0 %v1325_v49 }
  0x54   : > { %1230 = vmatpush3.bf16.msra.mxu1 %v1326_v51 }
  0x55   : > { %1157 = vmatpush3.bf16.msra.mxu0 %v1327_v52 }
  0x57   : > { %1232 = vmatmul.mubr.bf16.vlgmr.msra.gmra.mxu1 %v1331_v53 }
  0x58   : > { %722 = vmatmul.mubr.bf16.vlgmr.msra.gmra.mxu0 %v1328_v54  ;;  %1235 = vmatprep.mubr.msk.bf16.mxu1 %vm1397_vm0, %v1396_v28 }
  0x59   : > { %729 = vmatprep.mubr.bf16.mxu0 %v1332_v55 }
  0x5f   : > { %1236 = vmatmul.mubr.bf16.gmra.mxu1 %v1334_v56  ;;  %v356_v56 = vld [vmem:[#allocation2 + $0x20] sm:$0xff] }
  0x60   : > { %730 = vmatmul.mubr.bf16.gmra.mxu0 %v1335_v57  ;;  %1239 = vmatprep.mubr.msk.bf16.mxu1 %vm1397_vm0, %v1396_v28 }
  0x61   : > { %737 = vmatprep.mubr.bf16.mxu0 %v1336_v58 }
  0x67   : > { %1240 = vmatmul.mubr.bf16.gmra.mxu1 %v1338_v59 }
  0x68   : > { %738 = vmatmul.mubr.bf16.gmra.mxu0 %v1339_v60  ;;  %1243 = vmatprep.mubr.msk.bf16.mxu1 %vm1397_vm0, %v1396_v28 }
  0x69   : > { %745 = vmatprep.mubr.bf16.mxu0 %v1340_v61 }
  0x6f   : > { %1244 = vmatmul.mubr.bf16.gmra.mxu1 %v1342_v62 }
  0x70   : > { %746 = vmatmul.mubr.bf16.gmra.mxu0 %v1343_v63  ;;  %1247 = vmatprep.mubr.msk.bf16.mxu1 %vm1397_vm0, %v1396_v28 }
  0x71   : > { %753 = vmatprep.mubr.bf16.mxu0 %v1344_v0  ;;  %v357_v0 = vld [vmem:[#allocation2 + $0x8] sm:$0xff] }
  0x77   : > { %1248 = vmatmul.mubr.bf16.gmra.mxu1 %v1346_v1 }
  0x78   : > { %754 = vmatmul.mubr.bf16.gmra.mxu0 %v1347_v2  ;;  %1251 = vmatprep.mubr.msk.bf16.mxu1 %vm1397_vm0, %v1396_v28 }
  0x79   : > { %761 = vmatprep.mubr.bf16.mxu0 %v1348_v3 }
  0x7f   : > { %1252 = vmatmul.mubr.bf16.gmra.mxu1 %v1350_v5 }
  0x80   : > { %762 = vmatmul.mubr.bf16.gmra.mxu0 %v1351_v6  ;;  %1255 = vmatprep.mubr.msk.bf16.mxu1 %vm1397_vm0, %v1396_v28 }
  0x81   : > { %769 = vmatprep.mubr.bf16.mxu0 %v1109_v7 }
  0x87   : > { %1256 = vmatmul.mubr.bf16.gmra.mxu1 %v1353_v8  ;;  %v358_v8 = vld [vmem:[#allocation2 + $0x38] sm:$0xff] }
  0x88   : > { %770 = vmatmul.mubr.bf16.gmra.mxu0 %v1108_v9 }
 0x117   : > { %v811_v10 = vpop.f32.mrf.mxu1 }
 0x118   : > { %v1158_v11 = vpop.f32.mrf.mxu0 }
 0x119   : > { %v1233_v12 = vpop.f32.mrf.mxu1 }
 0x11a   : > { %v1159_v13 = vpop.f32.mrf.mxu0 }
 0x11b   : > { %v1160_v14 = vadd.f32 %v1159_v13, %v1158_v11  ;;  %v814_v15 = vpop.f32.mrf.mxu1 }
 0x11c   : > { %v1161_v17 = vpop.f32.mrf.mxu0 }
 0x11d   : > { %v812_v18 = vadd.f32 %v1160_v14, %v811_v10  ;;  %v1234_v19 = vpop.f32.mrf.mxu1 }
 0x11e   : > { %v1162_v20 = vpop.f32.mrf.mxu0 }
 0x11f   : > { %v865_v21 = vadd.f32 %v812_v18, %v351_v16  ;;  %v1163_v22 = vadd.f32 %v1162_v20, %v1161_v17  ;;  %v819_v23 = vpop.f32.mrf.mxu1  ;;  %v359_v16 = vld [vmem:[#allocation2 + $0x28] sm:$0xff] }
 0x120   : > { %v1164_v25 = vpop.f32.mrf.mxu0 }
 0x121   : > { %878 = vst [vmem:[#allocation2 + $0x30] sm:$0xff] %v865_v21  ;;  %v815_v26 = vadd.f32 %v1163_v22, %v814_v15  ;;  %v1237_v27 = vpop.f32.mrf.mxu1 }
 0x122   : > { %v1165_v28 = vpop.f32.mrf.mxu0 }
 0x123   : > { %v866_v29 = vadd.f32 %v815_v26, %v352_v24  ;;  %v1166_v30 = vadd.f32 %v1165_v28, %v1164_v25  ;;  %v822_v31 = vpop.f32.mrf.mxu1  ;;  %v360_v24 = vld [vmem:[#allocation2 + $0x48] sm:$0xff] }
 0x124   : > { %v1167_v33 = vpop.f32.mrf.mxu0 }
 0x125   : > { %879 = vst [vmem:[#allocation2] sm:$0xff] %v866_v29  ;;  %v820_v34 = vadd.f32 %v1166_v30, %v819_v23  ;;  %v1238_v35 = vpop.f32.mrf.mxu1 }
 0x126   : > { %v1168_v36 = vpop.f32.mrf.mxu0 }
 0x127   : > { %v867_v37 = vadd.f32 %v820_v34, %v353_v32  ;;  %v1169_v38 = vadd.f32 %v1168_v36, %v1167_v33  ;;  %v827_v39 = vpop.f32.mrf.mxu1  ;;  %v361_v32 = vld [vmem:[#allocation2 + $0x10] sm:$0xff] }
 0x128   : > { %v1170_v41 = vpop.f32.mrf.mxu0 }
 0x129   : > { %880 = vst [vmem:[#allocation2 + $0x58] sm:$0xff] %v867_v37  ;;  %v823_v42 = vadd.f32 %v1169_v38, %v822_v31  ;;  %v1241_v43 = vpop.f32.mrf.mxu1 }
 0x12a   : > { %v1171_v44 = vpop.f32.mrf.mxu0 }
 0x12b   : > { %v868_v45 = vadd.f32 %v823_v42, %v354_v40  ;;  %v1172_v46 = vadd.f32 %v1171_v44, %v1170_v41  ;;  %v830_v47 = vpop.f32.mrf.mxu1  ;;  %v362_v40 = vld [vmem:[#allocation2 + $0x60] sm:$0xff] }
 0x12c   : > { %v1173_v49 = vpop.f32.mrf.mxu0 }
 0x12d   : > { %881 = vst [vmem:[#allocation2 + $0x18] sm:$0xff] %v868_v45  ;;  %v828_v50 = vadd.f32 %v1172_v46, %v827_v39  ;;  %v1242_v51 = vpop.f32.mrf.mxu1 }
 0x12e   : > { %v1174_v52 = vpop.f32.mrf.mxu0 }
 0x12f   : > { %v869_v53 = vadd.f32 %v828_v50, %v355_v48  ;;  %v1175_v54 = vadd.f32 %v1174_v52, %v1173_v49  ;;  %v835_v55 = vpop.f32.mrf.mxu1  ;;  %v363_v48 = vld [vmem:[#allocation2 + $0x40] sm:$0xff] }
 0x130   : > { %v1176_v57 = vpop.f32.mrf.mxu0 }
 0x131   : > { %882 = vst [vmem:[#allocation2 + $0x50] sm:$0xff] %v869_v53  ;;  %v831_v58 = vadd.f32 %v1175_v54, %v830_v47  ;;  %v1245_v59 = vpop.f32.mrf.mxu1 }
 0x132   : > { %v1177_v60 = vpop.f32.mrf.mxu0 }
 0x133   : > { %v870_v61 = vadd.f32 %v831_v58, %v356_v56  ;;  %v1178_v62 = vadd.f32 %v1177_v60, %v1176_v57  ;;  %v838_v63 = vpop.f32.mrf.mxu1 }
 0x134   : > { %v1179_v1 = vpop.f32.mrf.mxu0 }
 0x135   : > { %883 = vst [vmem:[#allocation2 + $0x20] sm:$0xff] %v870_v61  ;;  %v836_v2 = vadd.f32 %v1178_v62, %v835_v55  ;;  %v1246_v3 = vpop.f32.mrf.mxu1 }
 0x136   : > { %v1180_v4 = vpop.f32.mrf.mxu0 }
 0x137   : > { %v871_v5 = vadd.f32 %v836_v2, %v357_v0  ;;  %v1181_v6 = vadd.f32 %v1180_v4, %v1179_v1  ;;  %v843_v7 = vpop.f32.mrf.mxu1 }
 0x138   : > { %v1182_v9 = vpop.f32.mrf.mxu0 }
 0x139   : > { %884 = vst [vmem:[#allocation2 + $0x8] sm:$0xff] %v871_v5  ;;  %v839_v10 = vadd.f32 %v1181_v6, %v838_v63  ;;  %v1249_v11 = vpop.f32.mrf.mxu1 }
 0x13a   : > { %v1183_v12 = vpop.f32.mrf.mxu0 }
 0x13b   : > { %v872_v13 = vadd.f32 %v839_v10, %v358_v8  ;;  %v1184_v14 = vadd.f32 %v1183_v12, %v1182_v9  ;;  %v846_v15 = vpop.f32.mrf.mxu1 }
 0x13c   : > { %v1185_v17 = vpop.f32.mrf.mxu0 }
 0x13d   : > { %885 = vst [vmem:[#allocation2 + $0x38] sm:$0xff] %v872_v13  ;;  %v844_v18 = vadd.f32 %v1184_v14, %v843_v7  ;;  %v1250_v19 = vpop.f32.mrf.mxu1 }
 0x13e   : > { %v1186_v20 = vpop.f32.mrf.mxu0 }
 0x13f   : > { %v873_v21 = vadd.f32 %v844_v18, %v359_v16  ;;  %v1187_v22 = vadd.f32 %v1186_v20, %v1185_v17  ;;  %v851_v23 = vpop.f32.mrf.mxu1 }
 0x140   : > { %v1188_v25 = vpop.f32.mrf.mxu0 }
 0x141   : > { %886 = vst [vmem:[#allocation2 + $0x28] sm:$0xff] %v873_v21  ;;  %v847_v26 = vadd.f32 %v1187_v22, %v846_v15  ;;  %v1253_v27 = vpop.f32.mrf.mxu1 }
 0x142   : > { %v1189_v28 = vpop.f32.mrf.mxu0 }
 0x143   : > { %v874_v29 = vadd.f32 %v847_v26, %v360_v24  ;;  %v1190_v30 = vadd.f32 %v1189_v28, %v1188_v25  ;;  %v854_v31 = vpop.f32.mrf.mxu1 }
 0x144   : > { %v1191_v33 = vpop.f32.mrf.mxu0 }
 0x145   : > { %887 = vst [vmem:[#allocation2 + $0x48] sm:$0xff] %v874_v29  ;;  %v852_v34 = vadd.f32 %v1190_v30, %v851_v23  ;;  %v1254_v35 = vpop.f32.mrf.mxu1 }
 0x146   : > { %v1192_v36 = vpop.f32.mrf.mxu0 }
 0x147   : > { %v875_v37 = vadd.f32 %v852_v34, %v361_v32  ;;  %v1193_v38 = vadd.f32 %v1192_v36, %v1191_v33  ;;  %v859_v39 = vpop.f32.mrf.mxu1 }
 0x148   : > { %v1194_v41 = vpop.f32.mrf.mxu0 }
 0x149   : > { %888 = vst [vmem:[#allocation2 + $0x10] sm:$0xff] %v875_v37  ;;  %v855_v42 = vadd.f32 %v1193_v38, %v854_v31  ;;  %v1257_v43 = vpop.f32.mrf.mxu1 }
 0x14a   : > { %v1195_v44 = vpop.f32.mrf.mxu0 }
 0x14b   : > { %v876_v45 = vadd.f32 %v855_v42, %v362_v40  ;;  %v1196_v46 = vadd.f32 %v1195_v44, %v1194_v41  ;;  %v862_v47 = vpop.f32.mrf.mxu1 }
 0x14c   : > { %v1197_v49 = vpop.f32.mrf.mxu0 }
 0x14d   : > { %889 = vst [vmem:[#allocation2 + $0x60] sm:$0xff] %v876_v45  ;;  %v860_v50 = vadd.f32 %v1196_v46, %v859_v39  ;;  %v1258_v51 = vpop.f32.mrf.mxu1  ;;  %894 = sbr.rel (%p1135_p11) target bundleno = 348 (0x15c), region = 66 }
 0x14e   : > { %v1198_v52 = vpop.f32.mrf.mxu0 }
 0x14f   : > { %v877_v53 = vadd.f32 %v860_v50, %v363_v48 }
 0x151   : > { %890 = vst [vmem:[#allocation2 + $0x40] sm:$0xff] %v877_v53 }
 0x152   : > { %v895_v54 = vld [vmem:[#allocation2 + $0x30] sm:$0xff]  ;;  %v1136_v55 = vld [vmem:[%s1655_s2] ss:$0 sm:$0xff]  ;;  %v897_v59 = vld [vmem:[#allocation2 + $0x58] sm:$0xff] }
 0x153   : > { %v896_v56 = vld [vmem:[#allocation2] sm:$0xff]  ;;  %v915_v57 = vadd.f32 %v1136_v55, %v895_v54  ;;  %v898_v60 = vld [vmem:[#allocation2 + $0x18] sm:$0xff]  ;;  %v899_v61 = vld [vmem:[#allocation2 + $0x50] sm:$0xff]  ;;  %v917_v62 = vadd.f32 %v1136_v55, %v897_v59 }
 0x154   : > { %v916_v58 = vadd.f32 %v1136_v55, %v896_v56  ;;  %v918_v63 = vadd.f32 %v1136_v55, %v898_v60  ;;  %v919_v0 = vadd.f32 %v1136_v55, %v899_v61  ;;  %v900_v1 = vld [vmem:[#allocation2 + $0x20] sm:$0xff]  ;;  %v901_v2 = vld [vmem:[#allocation2 + $0x8] sm:$0xff]  ;;  %v902_v3 = vld [vmem:[#allocation2 + $0x38] sm:$0xff] }
 0x155   : > { %928 = vst [vmem:[%s1656_s3] sm:$0xff] %v915_v57  ;;  %v920_v4 = vadd.f32 %v1136_v55, %v900_v1  ;;  %v921_v5 = vadd.f32 %v1136_v55, %v901_v2  ;;  %v922_v6 = vadd.f32 %v1136_v55, %v902_v3  ;;  %v903_v7 = vld [vmem:[#allocation2 + $0x28] sm:$0xff]  ;;  %v905_v9 = vld [vmem:[#allocation2 + $0x10] sm:$0xff]  ;;  %930 = vst [vmem:[%s1656_s3 + $0x10] sm:$0xff] %v917_v62 }
 0x156   : > { %929 = vst [vmem:[%s1656_s3 + $0x8] sm:$0xff] %v916_v58  ;;  %v904_v8 = vld [vmem:[#allocation2 + $0x48] sm:$0xff]  ;;  %931 = vst [vmem:[%s1656_s3 + $0x18] sm:$0xff] %v918_v63  ;;  %v923_v10 = vadd.f32 %v1136_v55, %v903_v7  ;;  %v925_v12 = vadd.f32 %v1136_v55, %v905_v9  ;;  %v906_v13 = vld [vmem:[#allocation2 + $0x60] sm:$0xff] }
 0x157   : > { %932 = vst [vmem:[%s1656_s3 + $0x20] sm:$0xff] %v919_v0  ;;  %v924_v11 = vadd.f32 %v1136_v55, %v904_v8  ;;  %933 = vst [vmem:[%s1656_s3 + $0x28] sm:$0xff] %v920_v4  ;;  %v926_v15 = vadd.f32 %v1136_v55, %v906_v13 }
 0x158   : > { %v907_v14 = vld [vmem:[#allocation2 + $0x40] sm:$0xff]  ;;  %934 = vst [vmem:[%s1656_s3 + $0x30] sm:$0xff] %v921_v5  ;;  %935 = vst [vmem:[%s1656_s3 + $0x38] sm:$0xff] %v922_v6 }
 0x159   : > { %v927_v16 = vadd.f32 %v1136_v55, %v907_v14  ;;  %936 = vst [vmem:[%s1656_s3 + $0x40] sm:$0xff] %v923_v10  ;;  %937 = vst [vmem:[%s1656_s3 + $0x48] sm:$0xff] %v924_v11 }
 0x15a   : > { %938 = vst [vmem:[%s1656_s3 + $0x50] sm:$0xff] %v925_v12  ;;  %939 = vst [vmem:[%s1656_s3 + $0x58] sm:$0xff] %v926_v15 }
 0x15b   : > { %940 = vst [vmem:[%s1656_s3 + $0x60] sm:$0xff] %v927_v16 }
 0x15c PF: > { %s13_s16 = sadd.s32 1, %s1393_s16   ;;  %s1657_s12 = smov %s1381_s13 }
 0x15d   : > { %p10_p12 = scmp.ge.s32.totalorder %s13_s16, 5   ;;  %s1658_s13 = smov %s1453_s20 }
 0x15e   : > { %s1659_s14 = smov %s1389_s15  ;;  %s1660_s15 = smov %s1662_s17 }
 0x15f   :  { %12 = sbr.rel (!%p10_p12) target bundleno = 3 (0x3), region = 113 }

</bundles_post_ra>
